<compile_context>
chip_gen: v6e
topology: v6e:2x2x1
jax: 0.10.0
libtpu: 0.0.40
codegen_flags: <defaults>
</compile_context>

<pallas_src>
import functools
import math

import jax
import jax.numpy as jnp
from jax import lax
from jax.experimental import pallas as pl
from jax.experimental.pallas import tpu as pltpu

EPS = 1e-5
VMEM_LIMIT = 48 * 1024 * 1024          # <= 48 MiB: leaves headroom on v7x (64 MiB/TC)
MEM_SIZE = 2000
HASH_SIZE = 128

# Static block configuration: name -> (blocktype, in_channels, out_channels)
_BLOCKS = {
    'DA1': ('DA', 3, 32), 'DA2': ('DA', 32, 64), 'DA3': ('DA', 64, 128),
    'semantic_SA': ('SA', 128, 128),
    'reduce_SA1': ('SA', 256, 128), 'reduce_SA2': ('SA', 128, 64),
    'semantic_UA': ('UA', 128, 64),
    'UA1': ('UA', 128, 64), 'UA2': ('UA', 64, 32), 'UA3': ('UA', 32, 3),
}


# ----------------------------------------------------------------------------
# In-kernel helpers (shared bodies)
# ----------------------------------------------------------------------------
def _sum_leading(t):
    """Sum a (B, C, 1) value over its leading axis -> (1, C, 1) (unrolled adds)."""
    s = t[0]
    for b in range(1, t.shape[0]):
        s = s + t[b]
    return s[None]


def _bn3(y, count):
    """BatchNorm2d (training mode) per channel (axis 1) of a (B, C, N) tensor."""
    mean = _sum_leading(jnp.sum(y, axis=2, keepdims=True)) / count
    d = y - mean
    var = _sum_leading(jnp.sum(d * d, axis=2, keepdims=True)) / count
    return d * lax.rsqrt(var + EPS)


def _hash01(t):
    """0.5 * (sign(t) + 1), sign in {-1, 0, +1}."""
    return jnp.where(t > 0, 1.0, jnp.where(t < 0, 0.0, 0.5))


def _pal_body(x, w, b, scale):
    """PatchAttentionLayer on (B, C, N): stacked QKV 1x1 conv + BN + attention.

    The attention is reassociated exactly:  V (K^T Q) == (V K^T) Q, so the
    (N x N) pixel map is never materialized (only a (C x C) gram per batch)."""
    B, C, N = x.shape
    y = lax.dot_general(w, x, (((2,), (1,)), ((0,), (0,))),
                        preferred_element_type=jnp.float32) + b     # (B, 3C, N)
    y = _bn3(y, float(B * N))
    q = y[:, 0 * C:1 * C, :]
    k = y[:, 1 * C:2 * C, :]
    v = y[:, 2 * C:3 * C, :]
    vk = lax.dot_general(v, k, (((2,), (2,)), ((0,), (0,))),
                         preferred_element_type=jnp.float32)        # (B, C, C)
    return lax.dot_general(vk, q, (((2,), (1,)), ((0,), (0,))),
                           preferred_element_type=jnp.float32) * scale


def _cal_body(pq, xkv, wq, bq, wkv, bkv):
    """ChannelAttentionLayer: Q conv via im2col patches, stacked K/V 1x1 conv,
    BN, softmax-over-key-position channel attention (normalized post-matmul).

    pq: (B, Kd, NQ) patches; xkv: (B, C, NK); wq: (B, oc, Kd); wkv: (B, 2oc, C).
    Returns (B, oc, NQ)."""
    B = pq.shape[0]
    oc = wkv.shape[1] // 2
    NQ = pq.shape[2]
    NK = xkv.shape[2]
    q = _bn3(lax.dot_general(wq, pq, (((2,), (1,)), ((0,), (0,))),
                             preferred_element_type=jnp.float32) + bq,
             float(B * NQ))                                         # (B, oc, NQ)
    kv = _bn3(lax.dot_general(wkv, xkv, (((2,), (1,)), ((0,), (0,))),
                              preferred_element_type=jnp.float32) + bkv,
              float(B * NK))                                        # (B, 2oc, NK)
    k = kv[:, :oc, :]
    v = kv[:, oc:, :]
    s = lax.dot_general(k, q, (((1,), (1,)), ((0,), (0,))),
                        preferred_element_type=jnp.float32)         # (B, NK, NQ)
    e = jnp.exp(s - jnp.max(s, axis=1, keepdims=True))
    num = lax.dot_general(v, e, (((2,), (1,)), ((0,), (0,))),
                          preferred_element_type=jnp.float32)       # (B, oc, NQ)
    return num / jnp.sum(e, axis=1, keepdims=True)


# ----------------------------------------------------------------------------
# Pallas kernels
# ----------------------------------------------------------------------------
def _pal_kernel(x_ref, w_ref, b_ref, o_ref, *, scale):
    o_ref[...] = _pal_body(x_ref[...], w_ref[...], b_ref[...], scale)


def _cal_kernel(pq_ref, xkv_ref, wq_ref, bq_ref, wkv_ref, bkv_ref, o_ref):
    o_ref[...] = _cal_body(pq_ref[...], xkv_ref[...], wq_ref[...], bq_ref[...],
                           wkv_ref[...], bkv_ref[...])


def _cal_pal_kernel(pq_ref, xkv_ref, wq_ref, bq_ref, wkv_ref, bkv_ref,
                    pw_ref, pb_ref, o_ref, *, scale):
    """Fused ChannelAttention of block i + PatchAttention of block i+1 (both are
    channel-mixing ops on the (B, C, N) layout -> one pallas_call, no HBM trip)."""
    co = _cal_body(pq_ref[...], xkv_ref[...], wq_ref[...], bq_ref[...],
                   wkv_ref[...], bkv_ref[...])                      # (B, oc, NQ)
    o_ref[...] = _pal_body(co, pw_ref[...], pb_ref[...], scale)


def _mem_hash_kernel(mem_ref, wt_ref, b_ref, o_ref):
    """Hash a tile of the memory bank: 0.5*(sign(Linear(mem) - 0.5) + 1)."""
    z = jnp.dot(mem_ref[...], wt_ref[...],
                preferred_element_type=jnp.float32) + b_ref[...]
    o_ref[...] = _hash01(z - 0.5)


def _hash_dist_kernel(feat_ref, wt_ref, b_ref, hmt_ref, rs_ref, o_ref):
    """Hash the feature and compute distances to every memory code as a matmul:
    sum|hm - hf| == rowsum(hm) + rowsum(hf) - 2 * hf @ hm^T for {0,1} codes
    (differs only when both codes hit the measure-zero tie value 0.5)."""
    zf = jnp.dot(feat_ref[...], wt_ref[...],
                 preferred_element_type=jnp.float32) + b_ref[...]    # (B, 128)
    hf = _hash01(zf - 0.5)
    cross = jnp.dot(hf, hmt_ref[...],
                    preferred_element_type=jnp.float32)              # (B, Mpad)
    rs_hf = jnp.sum(hf, axis=1, keepdims=True)                       # (B, 1)
    o_ref[...] = rs_ref[...] + rs_hf - 2.0 * cross


# ----------------------------------------------------------------------------
# JAX glue: im2col, layer wrappers
# ----------------------------------------------------------------------------
def _im2col(x, kh, kw, stride, pad):
    if pad:
        x = jnp.pad(x, ((0, 0), (0, 0), (pad, pad), (pad, pad)))
    B, C, Hp, Wp = x.shape
    Ho = (Hp - kh) // stride + 1
    Wo = (Wp - kw) // stride + 1
    cols = []
    for i in range(kh):
        for j in range(kw):
            cols.append(x[:, :, i:i + stride * (Ho - 1) + 1:stride,
                                j:j + stride * (Wo - 1) + 1:stride])
    patches = jnp.stack(cols, axis=2)                  # (B, C, kh*kw, Ho, Wo)
    return patches.reshape(B, C * kh * kw, Ho * Wo), Ho, Wo


def _pal_forward(x, p):
    B, C, H, W = x.shape
    N = H * W
    out = pl.pallas_call(
        functools.partial(_pal_kernel, scale=float(H) ** (-0.5)),
        out_shape=jax.ShapeDtypeStruct((B, C, N), jnp.float32),
        compiler_params=pltpu.CompilerParams(vmem_limit_bytes=VMEM_LIMIT),
    )(x.reshape(B, C, N),
      jnp.broadcast_to(p['pal_w'][None], (B, 3 * C, C)),
      p['pal_b'][None])
    return out.reshape(B, C, H, W)


def _cal_prep(x, p, blocktype):
    """im2col / padding / dilation glue shared by the fused and standalone CAL."""
    B, C, H, W = x.shape
    oc = p['cal_kv_w'].shape[0] // 2
    if blocktype == 'UA':
        # ConvTranspose2d(ic, oc, 3, stride=2, padding=1, output_padding=1)
        # == stride-1 conv of the zero-dilated, (1,2)-padded input with the
        # spatially flipped, channel-swapped kernel (folded into cal_q_w at init).
        s = 2
        Hd, Wd = (H - 1) * s + 1, (W - 1) * s + 1
        xd = jnp.zeros((B, C, Hd, Wd), x.dtype).at[:, :, ::s, ::s].set(x)
        xd = jnp.pad(xd, ((0, 0), (0, 0), (1, 2), (1, 2)))
        patches, Ho, Wo = _im2col(xd, 3, 3, 1, 0)
        x_kv4 = x                                    # K/V: Conv2d(k=1, s=1, p=0)
    else:
        stride = 2 if blocktype == 'DA' else 1
        patches, Ho, Wo = _im2col(x, 3, 3, stride, 1)
        x_kv4 = jnp.pad(x, ((0, 0), (0, 0), (1, 1), (1, 1)))   # K/V: k=1, p=1
    NK = x_kv4.shape[2] * x_kv4.shape[3]
    return patches, x_kv4.reshape(B, C, NK), oc, Ho, Wo


def _cal_args(patches, xkv, p, oc):
    B, C = xkv.shape[0], xkv.shape[1]
    Kd = patches.shape[1]
    return (patches, xkv,
            jnp.broadcast_to(p['cal_q_w'][None], (B, oc, Kd)), p['cal_q_b'][None],
            jnp.broadcast_to(p['cal_kv_w'][None], (B, 2 * oc, C)),
            p['cal_kv_b'][None])


def _cal_forward(x, p, blocktype):
    B = x.shape[0]
    patches, xkv, oc, Ho, Wo = _cal_prep(x, p, blocktype)
    out = pl.pallas_call(
        _cal_kernel,
        out_shape=jax.ShapeDtypeStruct((B, oc, Ho * Wo), jnp.float32),
        compiler_params=pltpu.CompilerParams(vmem_limit_bytes=VMEM_LIMIT),
    )(*_cal_args(patches, xkv, p, oc))
    return out.reshape(B, oc, Ho, Wo)


def _cal_pal_forward(x, p_cal, blocktype, p_next):
    """Fused: CAL of the current block followed by the PAL of the next block."""
    B = x.shape[0]
    patches, xkv, oc, Ho, Wo = _cal_prep(x, p_cal, blocktype)
    out = pl.pallas_call(
        functools.partial(_cal_pal_kernel, scale=float(Ho) ** (-0.5)),
        out_shape=jax.ShapeDtypeStruct((B, oc, Ho * Wo), jnp.float32),
        compiler_params=pltpu.CompilerParams(vmem_limit_bytes=VMEM_LIMIT),
    )(*_cal_args(patches, xkv, p_cal, oc),
      jnp.broadcast_to(p_next['pal_w'][None], (B, 3 * oc, oc)),
      p_next['pal_b'][None])
    return out.reshape(B, oc, Ho, Wo)


def _msab_forward(x, p, blocktype):
    # TODO(synk): fusing PAL+CAL *within* a block into one pallas_call is still
    # blocked by the 3x3-conv im2col between the two layers (strided spatial
    # slicing has no clean in-kernel lowering); the CAL_i+PAL_{i+1} fusion used
    # on the linear chain avoids that entirely.
    return _cal_forward(_pal_forward(x, p), p, blocktype)


def _hash_memory(memory, hash_wt, hash_b, tile=512):
    """Hash the (constant) memory bank once, at parameter-setup time."""
    F = memory.shape[1]
    mpad = ((MEM_SIZE + tile - 1) // tile) * tile            # 2048 (lane-dense)
    mem_p = jnp.pad(memory, ((0, mpad - MEM_SIZE), (0, 0)))
    return pl.pallas_call(
        _mem_hash_kernel,
        out_shape=jax.ShapeDtypeStruct((mpad, HASH_SIZE), jnp.float32),
        grid=(mpad // tile,),
        in_specs=[pl.BlockSpec((tile, F), lambda i: (i, 0)),
                  pl.BlockSpec((F, HASH_SIZE), lambda i: (0, 0)),
                  pl.BlockSpec((1, HASH_SIZE), lambda i: (0, 0))],
        out_specs=pl.BlockSpec((tile, HASH_SIZE), lambda i: (i, 0)),
        compiler_params=pltpu.CompilerParams(
            dimension_semantics=("parallel",), vmem_limit_bytes=VMEM_LIMIT),
    )(mem_p, hash_wt, hash_b)


def _hsl_forward(x, p):
    B, C, H, W = x.shape
    feat = x.reshape(B, C * H * W)
    hd = pl.pallas_call(
        _hash_dist_kernel,
        out_shape=jax.ShapeDtypeStruct((B, p['hm_t'].shape[1]), jnp.float32),
        compiler_params=pltpu.CompilerParams(vmem_limit_bytes=VMEM_LIMIT),
    )(feat, p['hash_wt'], p['hash_b'], p['hm_t'], p['hm_rowsum'])
    # argmin over the real memory rows + data-dependent row gather: JAX glue.
    idx = jnp.argmin(hd[:, :MEM_SIZE], axis=1)               # (B,)
    return p['memory'][idx].reshape(B, C, H, W)


def mamanet_forward(x, params):
    P = params

    # DA chain: fuse CAL_i + PAL_{i+1} wherever the output has a single consumer.
    t = _pal_forward(x, P['DA1'])
    t = _cal_pal_forward(t, P['DA1'], 'DA', P['DA2'])
    t = _cal_pal_forward(t, P['DA2'], 'DA', P['DA3'])
    x3 = _cal_forward(t, P['DA3'], 'DA')                     # feeds SA + HSL

    semantic = _msab_forward(x3, P['semantic_SA'], 'SA')
    h = _hsl_forward(x3, P['HSL'])
    t = jnp.concatenate([h, semantic], axis=1)

    t = _pal_forward(t, P['reduce_SA1'])
    t = _cal_pal_forward(t, P['reduce_SA1'], 'SA', P['UA1'])
    t = _cal_forward(t, P['UA1'], 'UA')                      # feeds concat

    sem2 = _msab_forward(semantic, P['semantic_UA'], 'UA')
    t = jnp.concatenate([t, sem2], axis=1)

    t = _pal_forward(t, P['reduce_SA2'])
    t = _cal_pal_forward(t, P['reduce_SA2'], 'SA', P['UA2'])
    t = _cal_pal_forward(t, P['UA2'], 'UA', P['UA3'])
    t = _cal_forward(t, P['UA3'], 'UA')
    return t


# ----------------------------------------------------------------------------
# Deterministic parameter initialization (shapes follow the torch module)
# ----------------------------------------------------------------------------
def init_params(seed=0):
    key = jax.random.PRNGKey(seed)
    keys = iter(jax.random.split(key, 256))

    def unif(shape, fan_in):
        bound = 1.0 / math.sqrt(fan_in)
        return jax.random.uniform(next(keys), shape, jnp.float32, -bound, bound)

    params = {}
    for name, (blocktype, ic, oc) in _BLOCKS.items():
        p = {}
        # PatchAttentionLayer: three 1x1 convs (ic -> ic) stacked into one matmul.
        p['pal_w'] = jnp.concatenate([unif((ic, ic), ic) for _ in range(3)], axis=0)
        p['pal_b'] = jnp.concatenate([unif((ic, 1), ic) for _ in range(3)], axis=0)
        # ChannelAttentionLayer Q conv (3x3 conv, or transposed conv folded into
        # an equivalent direct conv at init time).
        if blocktype == 'UA':
            wq = unif((ic, oc, 3, 3), ic * 9)          # ConvTranspose2d weight
            wq = jnp.flip(wq, axis=(2, 3)).transpose(1, 0, 2, 3)   # (oc, ic, 3, 3)
        else:
            wq = unif((oc, ic, 3, 3), ic * 9)          # Conv2d 3x3 weight
        p['cal_q_w'] = wq.reshape(oc, ic * 9)
        p['cal_q_b'] = unif((oc, 1), ic * 9)
        # K/V 1x1 convs stacked into one matmul.
        p['cal_kv_w'] = jnp.concatenate([unif((oc, ic), ic) for _ in range(2)], axis=0)
        p['cal_kv_b'] = jnp.concatenate([unif((oc, 1), ic) for _ in range(2)], axis=0)
        params[name] = p

    F = 128 * 5 * 5
    memory = unif((MEM_SIZE, F), F)
    hash_w = unif((HASH_SIZE, F), F)
    hash_b = unif((1, HASH_SIZE), F)
    hash_wt = hash_w.T                                  # (F, 128): K-major RHS
    # Memory-bank hash codes depend only on constant parameters -> hoisted out
    # of the forward pass and cached (padded to 2048 rows, lane-dense).
    hm = _hash_memory(memory, hash_wt, hash_b)          # (2048, 128)
    params['HSL'] = {
        'memory': memory,
        'hash_wt': hash_wt,
        'hash_b': hash_b,
        'hm_t': hm.T,                                   # (128, 2048)
        'hm_rowsum': jnp.sum(hm, axis=1)[None, :],      # (1, 2048)
    }
    return params


if __name__ == "__main__":
    params = init_params(0)
    # HSL fixes feature_size = 128*5*5 => spatial must reduce 40 -> 20 -> 10 -> 5.
    x = jax.random.normal(jax.random.PRNGKey(0), (2, 3, 40, 40), jnp.float32)
    fwd = jax.jit(mamanet_forward)
    out = jax.block_until_ready(fwd(x, params))
    assert out.shape == (2, 3, 40, 40), out.shape
    assert bool(jnp.all(jnp.isfinite(out)))
    print("KERNEL_OK")
</pallas_src>

<mosaic_0001>
module attributes {stable_mosaic.version = 11 : i64} {
  func.func @_mem_hash_kernel(%arg0: i32, %arg1: memref<512x3200xf32, #tpu.memory_space<vmem>>, %arg2: memref<3200x128xf32, #tpu.memory_space<vmem>>, %arg3: memref<1x128xf32, #tpu.memory_space<vmem>>, %arg4: memref<512x128xf32, #tpu.memory_space<vmem>>) attributes {dimension_semantics = [#tpu.dimension_semantics<parallel>], iteration_bounds = array<i64: 4>, scalar_prefetch = 0 : i64, scratch_operands = 0 : i64, tpu.core_type = #tpu.core_type<tc>, window_params = [{transform_indices = @transform_0, window_bounds = array<i64: 512, 3200>}, {pipeline_mode = #tpu.pipeline_mode<synchronous>, transform_indices = @transform_1, window_bounds = array<i64: 3200, 128>}, {pipeline_mode = #tpu.pipeline_mode<synchronous>, transform_indices = @transform_2, window_bounds = array<i64: 1, 128>}, {transform_indices = @transform_3, window_bounds = array<i64: 512, 128>}]} {
    %c0 = arith.constant 0 : index
    %c0_0 = arith.constant 0 : index
    %0 = vector.load %arg1[%c0, %c0_0] : memref<512x3200xf32, #tpu.memory_space<vmem>>, vector<512x3200xf32>
    %c0_1 = arith.constant 0 : index
    %c0_2 = arith.constant 0 : index
    %1 = vector.load %arg2[%c0_1, %c0_2] : memref<3200x128xf32, #tpu.memory_space<vmem>>, vector<3200x128xf32>
    %cst = arith.constant dense<0.000000e+00> : vector<512x128xf32>
    %2 = tpu.matmul %0, %1, %cst {dimension_numbers = #tpu.dot_dimension_numbers<[1], [0], [0], [1], [0, 0, 1, 1], [], []>} : vector<512x3200xf32>, vector<3200x128xf32>, vector<512x128xf32> -> vector<512x128xf32>
    %c0_3 = arith.constant 0 : index
    %c0_4 = arith.constant 0 : index
    %3 = vector.load %arg3[%c0_3, %c0_4] : memref<1x128xf32, #tpu.memory_space<vmem>>, vector<1x128xf32>
    %4 = vector.broadcast %3 : vector<1x128xf32> to vector<512x128xf32>
    %5 = arith.addf %2, %4 : vector<512x128xf32>
    %cst_5 = arith.constant 5.000000e-01 : f32
    %6 = vector.broadcast %cst_5 : f32 to vector<512x128xf32>
    %7 = arith.subf %5, %6 : vector<512x128xf32>
    %cst_6 = arith.constant 0.000000e+00 : f32
    %8 = vector.broadcast %cst_6 : f32 to vector<512x128xf32>
    %9 = arith.cmpf ogt, %7, %8 : vector<512x128xf32>
    %cst_7 = arith.constant 0.000000e+00 : f32
    %10 = vector.broadcast %cst_7 : f32 to vector<512x128xf32>
    %11 = arith.cmpf olt, %7, %10 : vector<512x128xf32>
    %cst_8 = arith.constant 0.000000e+00 : f32
    %cst_9 = arith.constant 5.000000e-01 : f32
    %12 = vector.broadcast %cst_8 : f32 to vector<512x128xf32>
    %13 = vector.broadcast %cst_9 : f32 to vector<512x128xf32>
    %14 = arith.select %11, %12, %13 : vector<512x128xi1>, vector<512x128xf32>
    %cst_10 = arith.constant 1.000000e+00 : f32
    %15 = vector.broadcast %cst_10 : f32 to vector<512x128xf32>
    %16 = arith.select %9, %15, %14 : vector<512x128xi1>, vector<512x128xf32>
    %c0_11 = arith.constant 0 : index
    %c0_12 = arith.constant 0 : index
    %17 = vector.load %arg4[%c0_11, %c0_12] : memref<512x128xf32, #tpu.memory_space<vmem>>, vector<512x128xf32>
    tpu.vector_store %arg4[%c0_11, %c0_12], %16 {strides = array<i32>} : memref<512x128xf32, #tpu.memory_space<vmem>>, vector<512x128xf32>,
    return
  }
  func.func @transform_0(%arg0: i32) -> (i32, i32) {
    %c0_i32 = arith.constant 0 : i32
    %c0_i32_0 = arith.constant 0 : i32
    return %arg0, %c0_i32 : i32, i32
  }
  func.func @transform_1(%arg0: i32) -> (i32, i32) {
    %c0_i32 = arith.constant 0 : i32
    %c0_i32_0 = arith.constant 0 : i32
    %c0_i32_1 = arith.constant 0 : i32
    return %c0_i32, %c0_i32_0 : i32, i32
  }
  func.func @transform_2(%arg0: i32) -> (i32, i32) {
    %c0_i32 = arith.constant 0 : i32
    %c0_i32_0 = arith.constant 0 : i32
    %c0_i32_1 = arith.constant 0 : i32
    return %c0_i32, %c0_i32_0 : i32, i32
  }
  func.func @transform_3(%arg0: i32) -> (i32, i32) {
    %c0_i32 = arith.constant 0 : i32
    %c0_i32_0 = arith.constant 0 : i32
    return %arg0, %c0_i32 : i32, i32
  }
}

</mosaic_0001>

<bundles_post_ra>
// kernel: tpu_custom_call.1
= control target key start
LH: loop header
LB: loop body
LE: loop exit
PB: predicated region body
PF: predicated region fallthrough
CT: control target
= control target key end

     0   :  { %8 = vsyncpa [#allocation3], 0  ;;  %s13028_s0 = inlined_call_operand.hbm [shape: f32[2048,3200], index: 0, kind: input, shape index: {}]   ;;  %s13029_s1 = inlined_call_operand.hbm [shape: f32[3200,128], index: 1, kind: input, shape index: {}]   ;;  %s13030_s2 = inlined_call_operand.hbm [shape: f32[1,128], index: 2, kind: input, shape index: {}]   ;;  %s13031_s3 = inlined_call_operand.hbm [shape: f32[2048,128], index: 3, kind: output, shape index: {}]  }
   0x1   :  { %10 = vsyncpa [#allocation3 + $0x1], 0 }
   0x2   :  { %11 = vsyncpa [#allocation6], 0 }
   0x3   :  { %12 = vsyncpa [#allocation4], 0 }
   0x4   :  { %14 = vsyncpa [#allocation4 + $0x1], 0  ;;  %s8339_s12 = smov 0   ;;  %s8341_s13 = smov 0  }
   0x5   :  { %s8343_s14 = smov 0   ;;  %s8345_s15 = smov 0  }
   0x6 LB: > { %s8360_s16 = sadd.s32 4294967295, %s8305_s15   ;;  %s7721_s17 = sadd.s32 4294967294, %s8305_s15   ;;  %s8305_s15 = sphi %s8345_s15, %s13397_s15   ;;  %s8301_s14 = sphi %s8343_s14, %s13396_s14   ;;  %s8297_s13 = sphi %s8341_s13, %s13395_s13   ;;  %s8293_s12 = sphi %s8339_s12, %s13394_s12  }
   0x7   : > { %p40_p0 = scmp.ne.s32.totalorder %s8297_s13, %s8293_s12  ;;  %p13032_p1 = scmp.eq.s32.totalorder %s8360_s16, 0 }
   0x8   : > { %p112_p3 = scmp.eq.s32.totalorder %s7721_s17, 3  ;;  %p7722_p5 = scmp.ge.s32.totalorder %s8305_s15, 1 }
   0x9   : > { %p8369_p4 = por %p13032_p1, %p40_p0  ;;  %p119_p7 = scmp.lt.s32.totalorder %s8305_s15, 5 }
   0xa   : > { %p8374_p6 = por %p112_p3, %p40_p0  ;;  %s8307_s21 = smov [#allocation5]  }
   0xb   : > { %s13038_s18 = scalar_select %p8369_p4, 1, 0 }
   0xc   : > { %s13039_s19 = scalar_select %p8374_p6, 1, 0 }
   0xd   : > { %p8379_p8 = pnand %p7722_p5, %p119_p7  ;;  %s131_s22 = sshll.u32 %s8307_s21, 4  ;;  %s132_s22 = int_to_ptr.vmem [resolvable:$true] %s131_s22 }
   0xe   : > { %s8308_s24 = smov [#allocation7]   ;;  %s8168_s26 = scalar_lea.vmem %s132_s22, 51200 }
   0xf   : > { %s13040_s20 = scalar_select %p8379_p8, 1, 0 }
  0x10   : > { %p8091_p9 = pneg %p8379_p8  ;;  %s145_s25 = sshll.u32 %s8308_s24, 4  ;;  %s146_s25 = int_to_ptr.vmem [resolvable:$true] %s145_s25 }
  0x11   : > { %p8169_p12 = scmp.ne.s32.totalorder %s132_s22, %s8168_s26  ;;  %p8176_p3 = scmp.lt.s32.totalorder %s132_s22, %s132_s22 }
  0x12   : > { %p8387_p10 = pnand %p8091_p9, %p13032_p1  ;;  %p8177_p5 = scmp.lt.s32.totalorder %s8168_s26, %s8168_s26 }
  0x14   : > { %p8159_p11 = pneg %p8387_p10  ;;  %p8178_p7 = por %p8177_p5, %p8176_p3 }
  0x16   : > { %p8171_p13 = pnand %p8169_p12, %p8159_p11 }
  0x18   : > { %p8172_p0 = pneg %p8171_p13 }
  0x1a   : > { %p8179_p9 = pnand %p8178_p7, %p8172_p0 }
  0x1c   : > { %8182 = shalt.err (!%p8179_p9)
}
  0x1d   : > { %s8309_s27 = smov 128   ;;  %s8310_s28 = smov 8  }
  0x1e   : > { %8094 = dma.hbm_to_vmem [thread:$0]  (!%p8387_p10), %s13029_s1, 51200, %s132_s22, [#allocation6], %s8309_s27, %s8309_s27, %s8310_s28  }
  0x1f   : > { %s8194_s4 = scalar_lea.vmem %s146_s25, 16  ;;  %s8201_s5 = scalar_lea.vmem %s146_s25, 32 }
  0x20   : > { %p8195_p1 = scmp.ne.s32.totalorder %s146_s25, %s8194_s4  ;;  %p8202_p2 = scmp.lt.s32.totalorder %s146_s25, %s146_s25 }
  0x21   : > { %p8203_p3 = scmp.lt.s32.totalorder %s8201_s5, %s8194_s4 }
  0x22   : > { %p8197_p12 = pnand %p8195_p1, %p8159_p11 }
  0x23   : > { %p8204_p0 = por %p8203_p3, %p8202_p2 }
  0x24   : > { %p8198_p13 = pneg %p8197_p12 }
  0x26   : > { %p8205_p5 = pnand %p8204_p0, %p8198_p13 }
  0x28   : > { %8208 = shalt.err (!%p8205_p5)
}
  0x29   : > { %8097 = dma.hbm_to_vmem [thread:$0]  (!%p8387_p10), %s13030_s2, 16, %s146_s25, [#allocation6]  }
  0x2a   : > { %s8410_s8 = sadd.s32 1, %s8305_s15   ;;  %s27_s9 = sadd.s32 1, %s8301_s14 }
  0x2b   : > { %s24_s10 = ssub.s32 %s8305_s15, %s8410_s8  ;;  %p34_p1 = scmp.ne.s32.totalorder %s8301_s14, %s8297_s13 }
  0x2c   : > { %p25_p2 = scmp.eq.s32.totalorder %s24_s10, 0  ;;  %p35_p11 = scmp.eq.s32.totalorder %s8305_s15, 0 }
  0x2d   : > { %p13042_p7 = scmp.eq.s32.totalorder %s8360_s16, 3  ;;  %p8108_p12 = scmp.lt.s32.totalorder %s8305_s15, 4 }
  0x2e   : > { %s8426_s17 = scalar_select %p25_p2, %s8301_s14, %s27_s9  }
  0x2f   : > { %p8420_p9 = por %p13042_p7, %p34_p1  ;;  %p36_p13 = por %p35_p11, %p34_p1 }
  0x30   : > { %s156_s21 = sand.u32 1, %s8301_s14   ;;  %s8077_s23 = smul.u32 204800, %s8305_s15 }
  0x31   : > { %s13043_s11 = scalar_select %p8420_p9, 1, 0 }
  0x32   : > { %s8076_s22 = smul.u32 12800, %s156_s21  ;;  %p8430_p10 = pnand %p8108_p12, %p36_p13 }
  0x33   : > { %s8437_s27 = scalar_lea.hbm %s13028_s0, %s8077_s23  ;;  %s8441_s30 = scalar_lea.sflag [#allocation3], %s156_s21 }
  0x34   : > { %s160_s28 = scalar_lea.vmem [#allocation2], %s8076_s22  ;;  %s8209_s4 = scalar_lea.hbm %s8437_s27, 204800 }
  0x35   : > { %s168_s29 = sshll.u32 %s160_s28, 4  ;;  %p8210_p3 = scmp.ne.s32.totalorder %s8437_s27, %s8209_s4  ;;  %s8439_s29 = int_to_ptr.vmem [resolvable:$true] %s168_s29 }
  0x36   : > { %p8211_p0 = pneg %p8430_p10  ;;  %s8214_s7 = scalar_lea.hbm %s13028_s0, 819200 }
  0x37   : > { %p8215_p2 = scmp.lt.s32.totalorder %s8437_s27, %s13028_s0  ;;  %p8216_p11 = scmp.lt.s32.totalorder %s8214_s7, %s8209_s4 }
  0x38   : > { %p8212_p5 = pnand %p8211_p0, %p8210_p3 }
  0x39   : > { %p8217_p7 = por %p8216_p11, %p8215_p2 }
  0x3a   : > { %p8213_p1 = pneg %p8212_p5 }
  0x3c   : > { %p8218_p12 = pnand %p8217_p7, %p8213_p1 }
  0x3e   : > { %8221 = shalt.err (!%p8218_p12)
}
  0x3f   : > { %s8222_s21 = scalar_lea.vmem %s8439_s29, 204800  ;;  %s8311_s22 = smov [#allocation2]  }
  0x40   : > { %p8223_p13 = scmp.ne.s32.totalorder %s8439_s29, %s8222_s21  ;;  %s8227_s23 = sshll.u32 %s8311_s22, 4  ;;  %s8228_s23 = int_to_ptr.vmem [resolvable:$false] %s8227_s23 }
  0x41   : > { %s8229_s25 = scalar_lea.vmem %s8228_s23, 409600  ;;  %p8230_p5 = scmp.lt.s32.totalorder %s8439_s29, %s8228_s23 }
  0x42   : > { %p8225_p6 = pnand %p8223_p13, %p8211_p0  ;;  %p8231_p9 = scmp.lt.s32.totalorder %s8229_s25, %s8222_s21 }
  0x44   : > { %p8226_p3 = pneg %p8225_p6  ;;  %p8232_p4 = por %p8231_p9, %p8230_p5 }
  0x46   : > { %p8233_p8 = pnand %p8232_p4, %p8226_p3 }
  0x48   : > { %8236 = shalt.err (!%p8233_p8)
}
  0x49   : > { %s8312_s26 = smov 3200   ;;  %s8313_s28 = smov 200  }
  0x4a   : > { %8101 = dma.hbm_to_vmem [thread:$0]  (!%p8430_p10), %s8437_s27, 204800, %s8439_s29, %s8441_s30, %s8312_s26, %s8312_s26, %s8313_s28  }
  0x4b   : > { %p13045_p0 = scmp.ne.s32.totalorder %s13040_s20, 0 }
  0x4d   : > { %180 = sbr.rel (%p13045_p0) target bundleno = 1979 (0x7bb), region = 32 }
  0x52   : > { %s8465_s4 = sand.u32 1, %s8297_s13   ;;  %p13046_p4 = scmp.ne.s32.totalorder %s13038_s18, 0 }
  0x53   : > { %s8078_s5 = smul.u32 12800, %s8465_s4  ;;  %s183_s6 = scalar_lea.sflag [#allocation3], %s8465_s4 }
  0x55   : > { %s8469_s7 = scalar_lea.vmem [#allocation2], %s8078_s5 }
  0x56   : > { %8280 = dma.done.wait (%p13046_p4), %s183_s6, 204800  }
  0x57   : > { %8282 = vsyncadd (%p13046_p4), %s183_s6, 4294762496  ;;  %p13047_p6 = scmp.eq.s32.totalorder %s8360_s16, 0 }
  0x59   : > { %8284 = dma.done.wait (%p13047_p6), [#allocation6], 51216   ;;  %p13048_p8 = pmov %p13047_p6 }
  0x5a   : > { %v13036_v0 = vmov 0.0   ;;  %v1834_v1 = vld [vmem:[#allocation5 + $0x78] sm:$0xff]  ;;  %v1833_v2 = vld [vmem:[#allocation5 + $0x70] sm:$0xff]  ;;  %v1832_v3 = vld [vmem:[#allocation5 + $0x68] sm:$0xff]  ;;  %s7732_s18 = sshll.u32 %s8465_s4, 9  ;;  %s7803_s24 = sshll.u32 %s8360_s16, 13 }
  0x5b   : > { %8286 = vsyncadd (%p13048_p8), [#allocation6], 4294916080  ;;  %2226 = vmatprep.subr.mxu0 %v13036_v0  ;;  %8012 = vmatprep.subr.mxu1 %v13036_v0  ;;  %v1831_v4 = vld [vmem:[#allocation5 + $0x60] sm:$0xff]  ;;  %v1830_v5 = vld [vmem:[#allocation5 + $0x58] sm:$0xff]  ;;  %s12719_s20 = scalar_lea.vmem [#allocation8], %s7732_s18  ;;  %s12980_s9 = scalar_lea.hbm %s13031_s3, %s7803_s24 }
  0x5c   : > { %2227 = vmatpush1.msra.mxu0 %v1834_v1  ;;  %8044 = vmatpush1.msra.mxu1 %v1834_v1  ;;  %v1829_v6 = vld [vmem:[#allocation5 + $0x50] sm:$0xff]  ;;  %v1828_v7 = vld [vmem:[#allocation5 + $0x48] sm:$0xff]  ;;  %v1827_v8 = vld [vmem:[#allocation5 + $0x40] sm:$0xff]  ;;  %s7629_s27 = sshll.u32 %s12719_s20, 4  ;;  %s7616_s16 = scalar_lea.sflag [#allocation4], %s8465_s4  ;;  %s12982_s27 = int_to_ptr.vmem [resolvable:$true] %s7629_s27 }
  0x5d   : > { %2228 = vmatprep.subr.mxu0 %v13036_v0  ;;  %8013 = vmatprep.subr.mxu1 %v13036_v0  ;;  %v1826_v9 = vld [vmem:[#allocation5 + $0x38] sm:$0xff]  ;;  %v1825_v10 = vld [vmem:[#allocation5 + $0x30] sm:$0xff]  ;;  %v1824_v11 = vld [vmem:[#allocation5 + $0x28] sm:$0xff]  ;;  %s8237_s10 = scalar_lea.vmem %s12982_s27, 8192  ;;  %p13392_p10 = scmp.ne.s32.totalorder %s13043_s11, 0 }
  0x5e   : > { %2229 = vmatpush1.msra.mxu0 %v1833_v2  ;;  %8045 = vmatpush1.msra.mxu1 %v1833_v2  ;;  %v1823_v12 = vld [vmem:[#allocation5 + $0x20] sm:$0xff]  ;;  %v1822_v13 = vld [vmem:[#allocation5 + $0x18] sm:$0xff]  ;;  %v1821_v14 = vld [vmem:[#allocation5 + $0x10] sm:$0xff]  ;;  %p8238_p9 = scmp.ne.s32.totalorder %s12982_s27, %s8237_s10  ;;  %s8316_s21 = smov [#allocation8]  }
  0x5f   : > { %2230 = vmatprep.subr.mxu0 %v13036_v0  ;;  %8014 = vmatprep.subr.mxu1 %v13036_v0  ;;  %v1820_v15 = vld [vmem:[#allocation5 + $0x8] sm:$0xff]  ;;  %v1819_v16 = vld [vmem:[#allocation5] sm:$0xff]  ;;  %v1850_v17 = vld [vmem:[#allocation5 + $0xf8] sm:$0xff]  ;;  %s8241_s22 = sshll.u32 %s8316_s21, 4  ;;  %s8242_s22 = int_to_ptr.vmem [resolvable:$false] %s8241_s22 }
  0x60   : > { %2231 = vmatpush1.msra.mxu0 %v1832_v3  ;;  %8046 = vmatpush1.msra.mxu1 %v1832_v3  ;;  %v1849_v18 = vld [vmem:[#allocation5 + $0xf0] sm:$0xff]  ;;  %v1848_v19 = vld [vmem:[#allocation5 + $0xe8] sm:$0xff]  ;;  %v1847_v20 = vld [vmem:[#allocation5 + $0xe0] sm:$0xff]  ;;  %p8239_p1 = pnand %p8238_p9, %p13392_p10  ;;  %s8243_s23 = scalar_lea.vmem %s8242_s22, 16384 }
  0x61   : > { %2232 = vmatprep.subr.mxu0 %v13036_v0  ;;  %8015 = vmatprep.subr.mxu1 %v13036_v0  ;;  %v1846_v21 = vld [vmem:[#allocation5 + $0xd8] sm:$0xff]  ;;  %v1845_v22 = vld [vmem:[#allocation5 + $0xd0] sm:$0xff]  ;;  %v1844_v23 = vld [vmem:[#allocation5 + $0xc8] sm:$0xff]  ;;  %p8244_p11 = scmp.lt.s32.totalorder %s12982_s27, %s8242_s22  ;;  %p8245_p7 = scmp.lt.s32.totalorder %s8243_s23, %s8237_s10 }
  0x62   : > { %2233 = vmatpush1.msra.mxu0 %v1831_v4  ;;  %8047 = vmatpush1.msra.mxu1 %v1831_v4  ;;  %v1843_v24 = vld [vmem:[#allocation5 + $0xc0] sm:$0xff]  ;;  %v1842_v25 = vld [vmem:[#allocation5 + $0xb8] sm:$0xff]  ;;  %v1841_v26 = vld [vmem:[#allocation5 + $0xb0] sm:$0xff]  ;;  %p8240_p2 = pneg %p8239_p1 }
  0x63   : > { %2234 = vmatprep.subr.mxu0 %v13036_v0  ;;  %8016 = vmatprep.subr.mxu1 %v13036_v0  ;;  %v1840_v27 = vld [vmem:[#allocation5 + $0xa8] sm:$0xff]  ;;  %v1839_v28 = vld [vmem:[#allocation5 + $0xa0] sm:$0xff]  ;;  %v1838_v29 = vld [vmem:[#allocation5 + $0x98] sm:$0xff]  ;;  %p8246_p12 = por %p8245_p7, %p8244_p11 }
  0x64   : > { %2235 = vmatpush1.msra.mxu0 %v1830_v5  ;;  %8048 = vmatpush1.msra.mxu1 %v1830_v5  ;;  %v1837_v30 = vld [vmem:[#allocation5 + $0x90] sm:$0xff]  ;;  %v1836_v31 = vld [vmem:[#allocation5 + $0x88] sm:$0xff]  ;;  %v1835_v32 = vld [vmem:[#allocation5 + $0x80] sm:$0xff] }
  0x65   : > { %2236 = vmatprep.subr.mxu0 %v13036_v0  ;;  %8017 = vmatprep.subr.mxu1 %v13036_v0  ;;  %v220_v33 = vld [vmem:[%s8469_s7 + $0x8] sm:$0xff]  ;;  %v219_v35 = vld [vmem:[%s8469_s7] sm:$0xff]  ;;  %v1866_v37 = vld [vmem:[#allocation5 + $0x178] sm:$0xff]  ;;  %p8247_p13 = pnand %p8246_p12, %p8240_p2 }
  0x66   : > { %2237 = vmatpush1.msra.mxu0 %v1829_v6  ;;  %8049 = vmatpush1.msra.mxu1 %v1829_v6  ;;  %v1420_v34 = vld [vmem:[%s8469_s7 + $0x2588] sm:$0xff]  ;;  %v1419_v36 = vld [vmem:[%s8469_s7 + $0x2580] sm:$0xff]  ;;  %v1898_v38 = vld [vmem:[#allocation5 + $0x278] sm:$0xff] }
  0x67   : > { %2238 = vmatprep.subr.mxu0 %v13036_v0  ;;  %8018 = vmatprep.subr.mxu1 %v13036_v0  ;;  %v245_v39 = vld [vmem:[%s8469_s7 + $0xd0] sm:$0xff]  ;;  %v244_v42 = vld [vmem:[%s8469_s7 + $0xc8] sm:$0xff]  ;;  %v270_v45 = vld [vmem:[%s8469_s7 + $0x198] sm:$0xff] }
  0x68   : > { %2239 = vmatpush1.msra.mxu0 %v1828_v7  ;;  %8050 = vmatpush1.msra.mxu1 %v1828_v7  ;;  %v1445_v40 = vld [vmem:[%s8469_s7 + $0x2650] sm:$0xff]  ;;  %v1444_v43 = vld [vmem:[%s8469_s7 + $0x2648] sm:$0xff]  ;;  %v1470_v46 = vld [vmem:[%s8469_s7 + $0x2718] sm:$0xff] }
  0x69   : > { %2240 = vmatprep.subr.mxu0 %v13036_v0  ;;  %8019 = vmatprep.subr.mxu1 %v13036_v0  ;;  %v1865_v41 = vld [vmem:[#allocation5 + $0x170] sm:$0xff]  ;;  %v1864_v44 = vld [vmem:[#allocation5 + $0x168] sm:$0xff]  ;;  %v1863_v47 = vld [vmem:[#allocation5 + $0x160] sm:$0xff] }
  0x6a   : > { %2241 = vmatpush1.msra.mxu0 %v1827_v8  ;;  %8051 = vmatpush1.msra.mxu1 %v1827_v8  ;;  %v1897_v48 = vld [vmem:[#allocation5 + $0x270] sm:$0xff]  ;;  %v295_v51 = vld [vmem:[%s8469_s7 + $0x260] sm:$0xff]  ;;  %v1862_v52 = vld [vmem:[#allocation5 + $0x158] sm:$0xff] }
  0x6b   : > { %2242 = vmatprep.subr.mxu0 %v13036_v0  ;;  %8020 = vmatprep.subr.mxu1 %v13036_v0  ;;  %v269_v49 = vld [vmem:[%s8469_s7 + $0x190] sm:$0xff]  ;;  %v1495_v53 = vld [vmem:[%s8469_s7 + $0x27e0] sm:$0xff]  ;;  %v294_v55 = vld [vmem:[%s8469_s7 + $0x258] sm:$0xff] }
  0x6c   : > { %2243 = vmatpush1.msra.mxu0 %v1826_v9  ;;  %8052 = vmatpush1.msra.mxu1 %v1826_v9  ;;  %v1469_v50 = vld [vmem:[%s8469_s7 + $0x2710] sm:$0xff]  ;;  %v1494_v56 = vld [vmem:[%s8469_s7 + $0x27d8] sm:$0xff]  ;;  %v1860_v57 = vld [vmem:[#allocation5 + $0x148] sm:$0xff] }
  0x6d   : > { %2244 = vmatprep.subr.mxu0 %v13036_v0  ;;  %8021 = vmatprep.subr.mxu1 %v13036_v0  ;;  %v1861_v54 = vld [vmem:[#allocation5 + $0x150] sm:$0xff]  ;;  %v1896_v58 = vld [vmem:[#allocation5 + $0x268] sm:$0xff]  ;;  %v1859_v61 = vld [vmem:[#allocation5 + $0x140] sm:$0xff] }
  0x6e   : > { %2245 = vmatpush1.msra.mxu0 %v1825_v10  ;;  %8053 = vmatpush1.msra.mxu1 %v1825_v10  ;;  %v320_v59 = vld [vmem:[%s8469_s7 + $0x328] sm:$0xff]  ;;  %v319_v62 = vld [vmem:[%s8469_s7 + $0x320] sm:$0xff]  ;;  %v1858_v1 = vld [vmem:[#allocation5 + $0x138] sm:$0xff] }
  0x6f   : > { %2246 = vmatprep.subr.mxu0 %v13036_v0  ;;  %8022 = vmatprep.subr.mxu1 %v13036_v0  ;;  %v1520_v60 = vld [vmem:[%s8469_s7 + $0x28a8] sm:$0xff]  ;;  %v1519_v63 = vld [vmem:[%s8469_s7 + $0x28a0] sm:$0xff]  ;;  %v345_v2 = vld [vmem:[%s8469_s7 + $0x3f0] sm:$0xff] }
  0x70   : > { %2247 = vmatpush1.msra.mxu0 %v1824_v11  ;;  %8054 = vmatpush1.msra.mxu1 %v1824_v11  ;;  %v1545_v3 = vld [vmem:[%s8469_s7 + $0x2970] sm:$0xff]  ;;  %v1895_v5 = vld [vmem:[#allocation5 + $0x260] sm:$0xff]  ;;  %v344_v6 = vld [vmem:[%s8469_s7 + $0x3e8] sm:$0xff] }
  0x71   : > { %2248 = vmatprep.subr.mxu0 %v13036_v0  ;;  %8023 = vmatprep.subr.mxu1 %v13036_v0  ;;  %v1857_v4 = vld [vmem:[#allocation5 + $0x130] sm:$0xff]  ;;  %v1544_v7 = vld [vmem:[%s8469_s7 + $0x2968] sm:$0xff]  ;;  %v370_v8 = vld [vmem:[%s8469_s7 + $0x4b8] sm:$0xff] }
  0x72   : > { %2249 = vmatpush1.msra.mxu0 %v1823_v12  ;;  %8055 = vmatpush1.msra.mxu1 %v1823_v12  ;;  %v1856_v9 = vld [vmem:[#allocation5 + $0x128] sm:$0xff]  ;;  %v1570_v10 = vld [vmem:[%s8469_s7 + $0x2a38] sm:$0xff]  ;;  %v1855_v11 = vld [vmem:[#allocation5 + $0x120] sm:$0xff] }
  0x73   : > { %2250 = vmatprep.subr.mxu0 %v13036_v0  ;;  %8024 = vmatprep.subr.mxu1 %v13036_v0  ;;  %v369_v12 = vld [vmem:[%s8469_s7 + $0x4b0] sm:$0xff] }
  0x74   : > { %2251 = vmatpush1.msra.mxu0 %v1822_v13  ;;  %8056 = vmatpush1.msra.mxu1 %v1822_v13  ;;  %v1569_v13 = vld [vmem:[%s8469_s7 + $0x2a30] sm:$0xff] }
  0x75   : > { %2252 = vmatprep.subr.mxu0 %v13036_v0  ;;  %8025 = vmatprep.subr.mxu1 %v13036_v0 }
  0x76   : > { %2253 = vmatpush1.msra.mxu0 %v1821_v14  ;;  %8057 = vmatpush1.msra.mxu1 %v1821_v14  ;;  %v1854_v14 = vld [vmem:[#allocation5 + $0x118] sm:$0xff] }
  0x77   : > { %2254 = vmatprep.subr.mxu0 %v13036_v0  ;;  %8026 = vmatprep.subr.mxu1 %v13036_v0 }
  0x78   : > { %2255 = vmatpush1.msra.mxu0 %v1820_v15  ;;  %8058 = vmatpush1.msra.mxu1 %v1820_v15  ;;  %v1894_v15 = vld [vmem:[#allocation5 + $0x258] sm:$0xff] }
  0x79   : > { %2256 = vmatprep.subr.mxu0 %v13036_v0  ;;  %8027 = vmatprep.subr.mxu1 %v13036_v0 }
  0x7a   : > { %2257 = vmatpush1.msra.mxu0 %v1819_v16  ;;  %8059 = vmatpush1.msra.mxu1 %v1819_v16  ;;  %v395_v16 = vld [vmem:[%s8469_s7 + $0x580] sm:$0xff] }
  0x7b   : > { %2258 = vmatprep.subr.mxu0 %v13036_v0  ;;  %8028 = vmatprep.subr.mxu1 %v13036_v0 }
  0x7c   : > { %2259 = vmatpush2.msra.mxu0 %v1850_v17  ;;  %8060 = vmatpush2.msra.mxu1 %v1850_v17  ;;  %v1595_v17 = vld [vmem:[%s8469_s7 + $0x2b00] sm:$0xff] }
  0x7d   : > { %2260 = vmatprep.subr.mxu0 %v13036_v0  ;;  %8029 = vmatprep.subr.mxu1 %v13036_v0 }
  0x7e   : > { %2261 = vmatpush2.msra.mxu0 %v1849_v18  ;;  %8061 = vmatpush2.msra.mxu1 %v1849_v18  ;;  %v1853_v18 = vld [vmem:[#allocation5 + $0x110] sm:$0xff] }
  0x7f   : > { %2262 = vmatprep.subr.mxu0 %v13036_v0  ;;  %8030 = vmatprep.subr.mxu1 %v13036_v0 }
  0x80   : > { %2263 = vmatpush2.msra.mxu0 %v1848_v19  ;;  %8062 = vmatpush2.msra.mxu1 %v1848_v19  ;;  %v394_v19 = vld [vmem:[%s8469_s7 + $0x578] sm:$0xff] }
  0x81   : > { %2264 = vmatprep.subr.mxu0 %v13036_v0  ;;  %8031 = vmatprep.subr.mxu1 %v13036_v0 }
  0x82   : > { %2265 = vmatpush2.msra.mxu0 %v1847_v20  ;;  %8063 = vmatpush2.msra.mxu1 %v1847_v20  ;;  %v1594_v20 = vld [vmem:[%s8469_s7 + $0x2af8] sm:$0xff] }
  0x83   : > { %2266 = vmatprep.subr.mxu0 %v13036_v0  ;;  %8032 = vmatprep.subr.mxu1 %v13036_v0 }
  0x84   : > { %2267 = vmatpush2.msra.mxu0 %v1846_v21  ;;  %8064 = vmatpush2.msra.mxu1 %v1846_v21  ;;  %v1852_v21 = vld [vmem:[#allocation5 + $0x108] sm:$0xff] }
  0x85   : > { %2268 = vmatprep.subr.mxu0 %v13036_v0  ;;  %8033 = vmatprep.subr.mxu1 %v13036_v0 }
  0x86   : > { %2269 = vmatpush2.msra.mxu0 %v1845_v22  ;;  %8065 = vmatpush2.msra.mxu1 %v1845_v22  ;;  %v420_v22 = vld [vmem:[%s8469_s7 + $0x648] sm:$0xff] }
  0x87   : > { %2270 = vmatprep.subr.mxu0 %v13036_v0  ;;  %8034 = vmatprep.subr.mxu1 %v13036_v0 }
  0x88   : > { %2271 = vmatpush2.msra.mxu0 %v1844_v23  ;;  %8066 = vmatpush2.msra.mxu1 %v1844_v23  ;;  %v1620_v23 = vld [vmem:[%s8469_s7 + $0x2bc8] sm:$0xff] }
  0x89   : > { %2272 = vmatprep.subr.mxu0 %v13036_v0  ;;  %8035 = vmatprep.subr.mxu1 %v13036_v0 }
  0x8a   : > { %2273 = vmatpush2.msra.mxu0 %v1843_v24  ;;  %8067 = vmatpush2.msra.mxu1 %v1843_v24  ;;  %v1851_v24 = vld [vmem:[#allocation5 + $0x100] sm:$0xff] }
  0x8b   : > { %2274 = vmatprep.subr.mxu0 %v13036_v0  ;;  %8036 = vmatprep.subr.mxu1 %v13036_v0 }
  0x8c   : > { %2275 = vmatpush2.msra.mxu0 %v1842_v25  ;;  %8068 = vmatpush2.msra.mxu1 %v1842_v25  ;;  %v1893_v25 = vld [vmem:[#allocation5 + $0x250] sm:$0xff] }
  0x8d   : > { %2276 = vmatprep.subr.mxu0 %v13036_v0  ;;  %8037 = vmatprep.subr.mxu1 %v13036_v0 }
  0x8e   : > { %2277 = vmatpush2.msra.mxu0 %v1841_v26  ;;  %8069 = vmatpush2.msra.mxu1 %v1841_v26  ;;  %v419_v26 = vld [vmem:[%s8469_s7 + $0x640] sm:$0xff] }
  0x8f   : > { %2278 = vmatprep.subr.mxu0 %v13036_v0  ;;  %8038 = vmatprep.subr.mxu1 %v13036_v0 }
  0x90   : > { %2279 = vmatpush2.msra.mxu0 %v1840_v27  ;;  %8070 = vmatpush2.msra.mxu1 %v1840_v27  ;;  %v1619_v27 = vld [vmem:[%s8469_s7 + $0x2bc0] sm:$0xff] }
  0x91   : > { %2280 = vmatprep.subr.mxu0 %v13036_v0  ;;  %8039 = vmatprep.subr.mxu1 %v13036_v0 }
  0x92   : > { %2281 = vmatpush2.msra.mxu0 %v1839_v28  ;;  %8071 = vmatpush2.msra.mxu1 %v1839_v28  ;;  %v445_v28 = vld [vmem:[%s8469_s7 + $0x710] sm:$0xff] }
  0x93   : > { %2282 = vmatprep.subr.mxu0 %v13036_v0  ;;  %8040 = vmatprep.subr.mxu1 %v13036_v0 }
  0x94   : > { %2283 = vmatpush2.msra.mxu0 %v1838_v29  ;;  %8072 = vmatpush2.msra.mxu1 %v1838_v29  ;;  %v1882_v29 = vld [vmem:[#allocation5 + $0x1f8] sm:$0xff] }
  0x95   : > { %2284 = vmatprep.subr.mxu0 %v13036_v0  ;;  %8041 = vmatprep.subr.mxu1 %v13036_v0 }
  0x96   : > { %2285 = vmatpush2.msra.mxu0 %v1837_v30  ;;  %8073 = vmatpush2.msra.mxu1 %v1837_v30  ;;  %v1645_v30 = vld [vmem:[%s8469_s7 + $0x2c90] sm:$0xff] }
  0x97   : > { %2286 = vmatprep.subr.mxu0 %v13036_v0  ;;  %8042 = vmatprep.subr.mxu1 %v13036_v0 }
  0x98   : > { %2287 = vmatpush2.msra.mxu0 %v1836_v31  ;;  %8074 = vmatpush2.msra.mxu1 %v1836_v31  ;;  %v1881_v31 = vld [vmem:[#allocation5 + $0x1f0] sm:$0xff] }
  0x99   : > { %2288 = vmatprep.subr.mxu0 %v13036_v0  ;;  %8043 = vmatprep.subr.mxu1 %v13036_v0 }
  0x9a   : > { %2289 = vmatpush2.msra.mxu0 %v1835_v32  ;;  %8075 = vmatpush2.msra.mxu1 %v1835_v32  ;;  %v444_v32 = vld [vmem:[%s8469_s7 + $0x708] sm:$0xff] }
  0x9b   : > { %2290 = vmatprep.mubr.f32.mxu0 %v220_v33  ;;  %2530 = vmatprep.mubr.f32.mxu1 %v1420_v34  ;;  %v1644_v33 = vld [vmem:[%s8469_s7 + $0x2c88] sm:$0xff] }
  0x9c   : > { %2291 = vmatmul.mubr.f32.vlgmr.msra.gmra.mxu0 %v219_v35  ;;  %2531 = vmatmul.mubr.f32.vlgmr.msra.gmra.mxu1 %v1419_v36  ;;  %v1880_v34 = vld [vmem:[#allocation5 + $0x1e8] sm:$0xff]  ;;  %v470_v36 = vld [vmem:[%s8469_s7 + $0x7d8] sm:$0xff] }
  0x9d   : > { %2611 = vmatprep.subr.mxu1 %v13036_v0  ;;  %2996 = vmatprep.subr.mxu0 %v13036_v0  ;;  %v1892_v35 = vld [vmem:[#allocation5 + $0x248] sm:$0xff] }
  0x9e   : > { %2612 = vmatpush1.msra.mxu1 %v1866_v37  ;;  %2997 = vmatpush1.msra.mxu0 %v1898_v38  ;;  %v1670_v37 = vld [vmem:[%s8469_s7 + $0x2d58] sm:$0xff]  ;;  %v1879_v38 = vld [vmem:[#allocation5 + $0x1e0] sm:$0xff] }
  0x9f   : > { %2613 = vmatprep.subr.mxu1 %v13036_v0  ;;  %2295 = vmatprep.mubr.f32.mxu0 %v245_v39  ;;  %v469_v39 = vld [vmem:[%s8469_s7 + $0x7d0] sm:$0xff] }
  0xa0   : > { %2535 = vmatprep.mubr.f32.mxu1 %v1445_v40  ;;  %2614 = vmatpush1.msra.mxu1 %v1865_v41  ;;  %v1669_v40 = vld [vmem:[%s8469_s7 + $0x2d50] sm:$0xff]  ;;  %v1878_v41 = vld [vmem:[#allocation5 + $0x1d8] sm:$0xff] }
  0xa1   : > { %2296 = vmatmul.mubr.f32.gmra.mxu0 %v244_v42  ;;  %2536 = vmatmul.mubr.f32.gmra.mxu1 %v1444_v43  ;;  %v495_v42 = vld [vmem:[%s8469_s7 + $0x8a0] sm:$0xff] }
  0xa2   : > { %2615 = vmatprep.subr.mxu1 %v13036_v0  ;;  %2998 = vmatprep.subr.mxu0 %v13036_v0  ;;  %v1695_v43 = vld [vmem:[%s8469_s7 + $0x2e20] sm:$0xff] }
  0xa3   : > { %2616 = vmatpush1.msra.mxu1 %v1864_v44  ;;  %2300 = vmatprep.mubr.f32.mxu0 %v270_v45  ;;  %v1877_v44 = vld [vmem:[#allocation5 + $0x1d0] sm:$0xff]  ;;  %v1891_v45 = vld [vmem:[#allocation5 + $0x240] sm:$0xff] }
  0xa4   : > { %2617 = vmatprep.subr.mxu1 %v13036_v0  ;;  %2540 = vmatprep.mubr.f32.mxu1 %v1470_v46  ;;  %v494_v46 = vld [vmem:[%s8469_s7 + $0x898] sm:$0xff] }
  0xa5   : > { %2618 = vmatpush1.msra.mxu1 %v1863_v47  ;;  %2999 = vmatpush1.msra.mxu0 %v1897_v48  ;;  %v1694_v47 = vld [vmem:[%s8469_s7 + $0x2e18] sm:$0xff]  ;;  %v520_v48 = vld [vmem:[%s8469_s7 + $0x968] sm:$0xff] }
  0xa6   : > { %2301 = vmatmul.mubr.f32.gmra.mxu0 %v269_v49  ;;  %2541 = vmatmul.mubr.f32.gmra.mxu1 %v1469_v50  ;;  %v1876_v49 = vld [vmem:[#allocation5 + $0x1c8] sm:$0xff] }
  0xa7   : > { %2619 = vmatprep.subr.mxu1 %v13036_v0  ;;  %2305 = vmatprep.mubr.f32.mxu0 %v295_v51  ;;  %v1720_v50 = vld [vmem:[%s8469_s7 + $0x2ee8] sm:$0xff]  ;;  %v1875_v51 = vld [vmem:[#allocation5 + $0x1c0] sm:$0xff] }
  0xa8   : > { %2620 = vmatpush1.msra.mxu1 %v1862_v52  ;;  %2545 = vmatprep.mubr.f32.mxu1 %v1495_v53  ;;  %v519_v52 = vld [vmem:[%s8469_s7 + $0x960] sm:$0xff] }
  0xa9   : > { %2621 = vmatprep.subr.mxu1 %v13036_v0  ;;  %3000 = vmatprep.subr.mxu0 %v13036_v0  ;;  %v1719_v53 = vld [vmem:[%s8469_s7 + $0x2ee0] sm:$0xff] }
  0xaa   : > { %2622 = vmatpush1.msra.mxu1 %v1861_v54  ;;  %2306 = vmatmul.mubr.f32.gmra.mxu0 %v294_v55  ;;  %v1874_v54 = vld [vmem:[#allocation5 + $0x1b8] sm:$0xff] }
  0xab   : > { %2546 = vmatmul.mubr.f32.gmra.mxu1 %v1494_v56  ;;  %2623 = vmatprep.subr.mxu1 %v13036_v0  ;;  %v1890_v55 = vld [vmem:[#allocation5 + $0x238] sm:$0xff]  ;;  %v545_v56 = vld [vmem:[%s8469_s7 + $0xa30] sm:$0xff] }
  0xac   : > { %2624 = vmatpush1.msra.mxu1 %v1860_v57  ;;  %3001 = vmatpush1.msra.mxu0 %v1896_v58  ;;  %v1745_v57 = vld [vmem:[%s8469_s7 + $0x2fb0] sm:$0xff] }
  0xad   : > { %2625 = vmatprep.subr.mxu1 %v13036_v0  ;;  %2310 = vmatprep.mubr.f32.mxu0 %v320_v59  ;;  %v1873_v58 = vld [vmem:[#allocation5 + $0x1b0] sm:$0xff]  ;;  %v544_v59 = vld [vmem:[%s8469_s7 + $0xa28] sm:$0xff] }
  0xae   : > { %2550 = vmatprep.mubr.f32.mxu1 %v1520_v60  ;;  %2626 = vmatpush1.msra.mxu1 %v1859_v61  ;;  %v1744_v60 = vld [vmem:[%s8469_s7 + $0x2fa8] sm:$0xff] }
  0xaf   : > { %2311 = vmatmul.mubr.f32.gmra.mxu0 %v319_v62  ;;  %2551 = vmatmul.mubr.f32.gmra.mxu1 %v1519_v63  ;;  %v1872_v61 = vld [vmem:[#allocation5 + $0x1a8] sm:$0xff]  ;;  %v570_v62 = vld [vmem:[%s8469_s7 + $0xaf8] sm:$0xff] }
  0xb0   : > { %2627 = vmatprep.subr.mxu1 %v13036_v0  ;;  %3002 = vmatprep.subr.mxu0 %v13036_v0  ;;  %v1770_v63 = vld [vmem:[%s8469_s7 + $0x3078] sm:$0xff] }
  0xb1   : > { %2628 = vmatpush1.msra.mxu1 %v1858_v1  ;;  %2315 = vmatprep.mubr.f32.mxu0 %v345_v2  ;;  %v1871_v1 = vld [vmem:[#allocation5 + $0x1a0] sm:$0xff]  ;;  %v1889_v2 = vld [vmem:[#allocation5 + $0x230] sm:$0xff] }
  0xb2   : > { %2629 = vmatprep.subr.mxu1 %v13036_v0  ;;  %2555 = vmatprep.mubr.f32.mxu1 %v1545_v3  ;;  %v569_v3 = vld [vmem:[%s8469_s7 + $0xaf0] sm:$0xff] }
  0xb3   : > { %2630 = vmatpush1.msra.mxu1 %v1857_v4  ;;  %3003 = vmatpush1.msra.mxu0 %v1895_v5  ;;  %v1769_v4 = vld [vmem:[%s8469_s7 + $0x3070] sm:$0xff]  ;;  %v595_v5 = vld [vmem:[%s8469_s7 + $0xbc0] sm:$0xff] }
  0xb4   : > { %2316 = vmatmul.mubr.f32.gmra.mxu0 %v344_v6  ;;  %2556 = vmatmul.mubr.f32.gmra.mxu1 %v1544_v7  ;;  %v1870_v6 = vld [vmem:[#allocation5 + $0x198] sm:$0xff]  ;;  %v1795_v7 = vld [vmem:[%s8469_s7 + $0x3140] sm:$0xff] }
  0xb5   : > { %2631 = vmatprep.subr.mxu1 %v13036_v0  ;;  %2320 = vmatprep.mubr.f32.mxu0 %v370_v8  ;;  %v1869_v8 = vld [vmem:[#allocation5 + $0x190] sm:$0xff] }
  0xb6   : > { %2632 = vmatpush1.msra.mxu1 %v1856_v9  ;;  %2560 = vmatprep.mubr.f32.mxu1 %v1570_v10  ;;  %v594_v9 = vld [vmem:[%s8469_s7 + $0xbb8] sm:$0xff] }
  0xb7   : > { %2633 = vmatprep.subr.mxu1 %v13036_v0  ;;  %3004 = vmatprep.subr.mxu0 %v13036_v0  ;;  %v1794_v10 = vld [vmem:[%s8469_s7 + $0x3138] sm:$0xff] }
  0xb8   : > { %2634 = vmatpush1.msra.mxu1 %v1855_v11  ;;  %2321 = vmatmul.mubr.f32.gmra.mxu0 %v369_v12  ;;  %v1868_v11 = vld [vmem:[#allocation5 + $0x188] sm:$0xff] }
  0xb9   : > { %2561 = vmatmul.mubr.f32.gmra.mxu1 %v1569_v13  ;;  %2635 = vmatprep.subr.mxu1 %v13036_v0  ;;  %v1888_v12 = vld [vmem:[#allocation5 + $0x228] sm:$0xff] }
  0xba   : > { %2636 = vmatpush1.msra.mxu1 %v1854_v14  ;;  %3005 = vmatpush1.msra.mxu0 %v1894_v15  ;;  %v620_v13 = vld [vmem:[%s8469_s7 + $0xc88] sm:$0xff]  ;;  %v1867_v14 = vld [vmem:[#allocation5 + $0x180] sm:$0xff]  ;;  %v222_v15 = vld [vmem:[%s8469_s7 + $0x18] sm:$0xff] }
  0xbb   : > { %2637 = vmatprep.subr.mxu1 %v13036_v0  ;;  %2325 = vmatprep.mubr.f32.mxu0 %v395_v16  ;;  %v619_v16 = vld [vmem:[%s8469_s7 + $0xc80] sm:$0xff] }
  0xbc   : > { %2565 = vmatprep.mubr.f32.mxu1 %v1595_v17  ;;  %2638 = vmatpush1.msra.mxu1 %v1853_v18  ;;  %v221_v17 = vld [vmem:[%s8469_s7 + $0x10] sm:$0xff]  ;;  %v1930_v18 = vld [vmem:[#allocation5 + $0x378] sm:$0xff] }
  0xbd   : > { %2326 = vmatmul.mubr.f32.gmra.mxu0 %v394_v19  ;;  %2566 = vmatmul.mubr.f32.gmra.mxu1 %v1594_v20  ;;  %v645_v19 = vld [vmem:[%s8469_s7 + $0xd50] sm:$0xff]  ;;  %v247_v20 = vld [vmem:[%s8469_s7 + $0xe0] sm:$0xff] }
  0xbe   : > { %2639 = vmatprep.subr.mxu1 %v13036_v0  ;;  %3006 = vmatprep.subr.mxu0 %v13036_v0 }
  0xbf   : > { %2640 = vmatpush1.msra.mxu1 %v1852_v21  ;;  %2330 = vmatprep.mubr.f32.mxu0 %v420_v22  ;;  %v1887_v21 = vld [vmem:[#allocation5 + $0x220] sm:$0xff]  ;;  %v644_v22 = vld [vmem:[%s8469_s7 + $0xd48] sm:$0xff] }
  0xc0   : > { %2641 = vmatprep.subr.mxu1 %v13036_v0  ;;  %2570 = vmatprep.mubr.f32.mxu1 %v1620_v23  ;;  %v246_v23 = vld [vmem:[%s8469_s7 + $0xd8] sm:$0xff] }
  0xc1   : > { %2642 = vmatpush1.msra.mxu1 %v1851_v24  ;;  %3007 = vmatpush1.msra.mxu0 %v1893_v25  ;;  %v670_v24 = vld [vmem:[%s8469_s7 + $0xe18] sm:$0xff]  ;;  %v272_v25 = vld [vmem:[%s8469_s7 + $0x1a8] sm:$0xff] }
  0xc2   : > { %2331 = vmatmul.mubr.f32.gmra.mxu0 %v419_v26  ;;  %2571 = vmatmul.mubr.f32.gmra.mxu1 %v1619_v27  ;;  %v1886_v26 = vld [vmem:[#allocation5 + $0x218] sm:$0xff]  ;;  %v1929_v27 = vld [vmem:[#allocation5 + $0x370] sm:$0xff] }
  0xc3   : > { %2643 = vmatprep.subr.mxu1 %v13036_v0  ;;  %2335 = vmatprep.mubr.f32.mxu0 %v445_v28  ;;  %v669_v28 = vld [vmem:[%s8469_s7 + $0xe10] sm:$0xff] }
  0xc4   : > { %2644 = vmatpush2.msra.mxu1 %v1882_v29  ;;  %2575 = vmatprep.mubr.f32.mxu1 %v1645_v30  ;;  %v271_v29 = vld [vmem:[%s8469_s7 + $0x1a0] sm:$0xff] }
  0xc5   : > { %2645 = vmatprep.subr.mxu1 %v13036_v0  ;;  %3008 = vmatprep.subr.mxu0 %v13036_v0  ;;  %v695_v30 = vld [vmem:[%s8469_s7 + $0xee0] sm:$0xff] }
  0xc6   : > { %2646 = vmatpush2.msra.mxu1 %v1881_v31  ;;  %2336 = vmatmul.mubr.f32.gmra.mxu0 %v444_v32  ;;  %v297_v31 = vld [vmem:[%s8469_s7 + $0x270] sm:$0xff] }
  0xc7   : > { %2576 = vmatmul.mubr.f32.gmra.mxu1 %v1644_v33  ;;  %2647 = vmatprep.subr.mxu1 %v13036_v0  ;;  %v1885_v32 = vld [vmem:[#allocation5 + $0x210] sm:$0xff]  ;;  %v1928_v33 = vld [vmem:[#allocation5 + $0x368] sm:$0xff] }
  0xc8   : > { %2648 = vmatpush2.msra.mxu1 %v1880_v34  ;;  %3009 = vmatpush1.msra.mxu0 %v1892_v35  ;;  %v694_v34 = vld [vmem:[%s8469_s7 + $0xed8] sm:$0xff]  ;;  %v296_v35 = vld [vmem:[%s8469_s7 + $0x268] sm:$0xff] }
  0xc9   : > { %2649 = vmatprep.subr.mxu1 %v13036_v0  ;;  %2340 = vmatprep.mubr.f32.mxu0 %v470_v36  ;;  %v720_v36 = vld [vmem:[%s8469_s7 + $0xfa8] sm:$0xff] }
  0xca   : > { %2580 = vmatprep.mubr.f32.mxu1 %v1670_v37  ;;  %2650 = vmatpush2.msra.mxu1 %v1879_v38  ;;  %v322_v37 = vld [vmem:[%s8469_s7 + $0x338] sm:$0xff]  ;;  %v1884_v38 = vld [vmem:[#allocation5 + $0x208] sm:$0xff] }
  0xcb   : > { %2341 = vmatmul.mubr.f32.gmra.mxu0 %v469_v39  ;;  %2581 = vmatmul.mubr.f32.gmra.mxu1 %v1669_v40  ;;  %v1927_v39 = vld [vmem:[#allocation5 + $0x360] sm:$0xff] }
  0xcc   : > { %2651 = vmatprep.subr.mxu1 %v13036_v0  ;;  %3010 = vmatprep.subr.mxu0 %v13036_v0  ;;  %v719_v40 = vld [vmem:[%s8469_s7 + $0xfa0] sm:$0xff] }
  0xcd   : > { %2652 = vmatpush2.msra.mxu1 %v1878_v41  ;;  %2345 = vmatprep.mubr.f32.mxu0 %v495_v42  ;;  %v321_v41 = vld [vmem:[%s8469_s7 + $0x330] sm:$0xff] }
  0xce   : > { %2653 = vmatprep.subr.mxu1 %v13036_v0  ;;  %2585 = vmatprep.mubr.f32.mxu1 %v1695_v43  ;;  %v745_v42 = vld [vmem:[%s8469_s7 + $0x1070] sm:$0xff]  ;;  %v347_v43 = vld [vmem:[%s8469_s7 + $0x400] sm:$0xff] }
  0xcf   : > { %2654 = vmatpush2.msra.mxu1 %v1877_v44  ;;  %3011 = vmatpush1.msra.mxu0 %v1891_v45  ;;  %v1883_v44 = vld [vmem:[#allocation5 + $0x200] sm:$0xff]  ;;  %v1926_v45 = vld [vmem:[#allocation5 + $0x358] sm:$0xff] }
  0xd0   : > { %2346 = vmatmul.mubr.f32.gmra.mxu0 %v494_v46  ;;  %2586 = vmatmul.mubr.f32.gmra.mxu1 %v1694_v47  ;;  %v744_v46 = vld [vmem:[%s8469_s7 + $0x1068] sm:$0xff]  ;;  %v346_v47 = vld [vmem:[%s8469_s7 + $0x3f8] sm:$0xff] }
  0xd1   : > { %2655 = vmatprep.subr.mxu1 %v13036_v0  ;;  %2350 = vmatprep.mubr.f32.mxu0 %v520_v48  ;;  %v770_v48 = vld [vmem:[%s8469_s7 + $0x1138] sm:$0xff] }
  0xd2   : > { %2656 = vmatpush2.msra.mxu1 %v1876_v49  ;;  %2590 = vmatprep.mubr.f32.mxu1 %v1720_v50  ;;  %v372_v49 = vld [vmem:[%s8469_s7 + $0x4c8] sm:$0xff]  ;;  %v1914_v50 = vld [vmem:[#allocation5 + $0x2f8] sm:$0xff] }
  0xd3   : > { %2657 = vmatprep.subr.mxu1 %v13036_v0  ;;  %3012 = vmatprep.subr.mxu0 %v13036_v0 }
  0xd4   : > { %2658 = vmatpush2.msra.mxu1 %v1875_v51  ;;  %2351 = vmatmul.mubr.f32.gmra.mxu0 %v519_v52  ;;  %v1925_v51 = vld [vmem:[#allocation5 + $0x350] sm:$0xff] }
  0xd5   : > { %2591 = vmatmul.mubr.f32.gmra.mxu1 %v1719_v53  ;;  %2659 = vmatprep.subr.mxu1 %v13036_v0  ;;  %v769_v52 = vld [vmem:[%s8469_s7 + $0x1130] sm:$0xff]  ;;  %v371_v53 = vld [vmem:[%s8469_s7 + $0x4c0] sm:$0xff] }
  0xd6   : > { %2660 = vmatpush2.msra.mxu1 %v1874_v54  ;;  %3013 = vmatpush1.msra.mxu0 %v1890_v55  ;;  %v795_v54 = vld [vmem:[%s8469_s7 + $0x1200] sm:$0xff]  ;;  %v397_v55 = vld [vmem:[%s8469_s7 + $0x590] sm:$0xff] }
  0xd7   : > { %2661 = vmatprep.subr.mxu1 %v13036_v0  ;;  %2355 = vmatprep.mubr.f32.mxu0 %v545_v56  ;;  %v1913_v56 = vld [vmem:[#allocation5 + $0x2f0] sm:$0xff] }
  0xd8   : > { %2595 = vmatprep.mubr.f32.mxu1 %v1745_v57  ;;  %2662 = vmatpush2.msra.mxu1 %v1873_v58  ;;  %v1924_v57 = vld [vmem:[#allocation5 + $0x348] sm:$0xff]  ;;  %v794_v58 = vld [vmem:[%s8469_s7 + $0x11f8] sm:$0xff] }
  0xd9   : > { %2356 = vmatmul.mubr.f32.gmra.mxu0 %v544_v59  ;;  %2596 = vmatmul.mubr.f32.gmra.mxu1 %v1744_v60  ;;  %v396_v59 = vld [vmem:[%s8469_s7 + $0x588] sm:$0xff] }
  0xda   : > { %2663 = vmatprep.subr.mxu1 %v13036_v0  ;;  %3014 = vmatprep.subr.mxu0 %v13036_v0  ;;  %v820_v60 = vld [vmem:[%s8469_s7 + $0x12c8] sm:$0xff] }
  0xdb   : > { %2664 = vmatpush2.msra.mxu1 %v1872_v61  ;;  %2360 = vmatprep.mubr.f32.mxu0 %v570_v62  ;;  %v422_v61 = vld [vmem:[%s8469_s7 + $0x658] sm:$0xff]  ;;  %v1912_v62 = vld [vmem:[#allocation5 + $0x2e8] sm:$0xff] }
  0xdc   : > { %2665 = vmatprep.subr.mxu1 %v13036_v0  ;;  %2600 = vmatprep.mubr.f32.mxu1 %v1770_v63  ;;  %v1923_v63 = vld [vmem:[#allocation5 + $0x340] sm:$0xff] }
  0xdd   : > { %2666 = vmatpush2.msra.mxu1 %v1871_v1  ;;  %3015 = vmatpush1.msra.mxu0 %v1889_v2  ;;  %v819_v1 = vld [vmem:[%s8469_s7 + $0x12c0] sm:$0xff]  ;;  %v421_v2 = vld [vmem:[%s8469_s7 + $0x650] sm:$0xff] }
  0xde   : > { %2361 = vmatmul.mubr.f32.gmra.mxu0 %v569_v3  ;;  %2601 = vmatmul.mubr.f32.gmra.mxu1 %v1769_v4  ;;  %v845_v3 = vld [vmem:[%s8469_s7 + $0x1390] sm:$0xff]  ;;  %v447_v4 = vld [vmem:[%s8469_s7 + $0x720] sm:$0xff] }
  0xdf   : > { %2667 = vmatprep.subr.mxu1 %v13036_v0  ;;  %2365 = vmatprep.mubr.f32.mxu0 %v595_v5  ;;  %v1911_v5 = vld [vmem:[#allocation5 + $0x2e0] sm:$0xff] }
  0xe0   : > { %2668 = vmatpush2.msra.mxu1 %v1870_v6  ;;  %2605 = vmatprep.mubr.f32.mxu1 %v1795_v7  ;;  %v1922_v6 = vld [vmem:[#allocation5 + $0x338] sm:$0xff]  ;;  %v844_v7 = vld [vmem:[%s8469_s7 + $0x1388] sm:$0xff] }
  0xe1   : > { %2669 = vmatprep.subr.mxu1 %v13036_v0  ;;  %3016 = vmatprep.subr.mxu0 %v13036_v0 }
  0xe2   : > { %2670 = vmatpush2.msra.mxu1 %v1869_v8  ;;  %2366 = vmatmul.mubr.f32.gmra.mxu0 %v594_v9  ;;  %v446_v8 = vld [vmem:[%s8469_s7 + $0x718] sm:$0xff] }
  0xe3   : > { %2606 = vmatmul.mubr.f32.gmra.mxu1 %v1794_v10  ;;  %2671 = vmatprep.subr.mxu1 %v13036_v0  ;;  %v870_v9 = vld [vmem:[%s8469_s7 + $0x1458] sm:$0xff]  ;;  %v472_v10 = vld [vmem:[%s8469_s7 + $0x7e8] sm:$0xff] }
  0xe4   : > { %2672 = vmatpush2.msra.mxu1 %v1868_v11  ;;  %3017 = vmatpush1.msra.mxu0 %v1888_v12  ;;  %v1910_v11 = vld [vmem:[#allocation5 + $0x2d8] sm:$0xff]  ;;  %v1921_v12 = vld [vmem:[#allocation5 + $0x330] sm:$0xff] }
  0xe5   : > { %2673 = vmatprep.subr.mxu1 %v13036_v0  ;;  %2370 = vmatprep.mubr.f32.mxu0 %v620_v13  ;;  %v869_v13 = vld [vmem:[%s8469_s7 + $0x1450] sm:$0xff] }
  0xe6   : > { %2674 = vmatpush2.msra.mxu1 %v1867_v14  ;;  %2675 = vmatprep.mubr.f32.mxu1 %v222_v15  ;;  %v471_v14 = vld [vmem:[%s8469_s7 + $0x7e0] sm:$0xff] }
  0xe7   : > { %2371 = vmatmul.mubr.f32.gmra.mxu0 %v619_v16  ;;  %2676 = vmatmul.mubr.f32.vlgmr.msra.gmra.mxu1 %v221_v17  ;;  %v895_v15 = vld [vmem:[%s8469_s7 + $0x1520] sm:$0xff]  ;;  %v497_v16 = vld [vmem:[%s8469_s7 + $0x8b0] sm:$0xff] }
  0xe8   : > { %3381 = vmatprep.subr.mxu1 %v13036_v0  ;;  %3018 = vmatprep.subr.mxu0 %v13036_v0  ;;  %v1909_v17 = vld [vmem:[#allocation5 + $0x2d0] sm:$0xff] }
  0xe9   : > { %3382 = vmatpush1.msra.mxu1 %v1930_v18  ;;  %2375 = vmatprep.mubr.f32.mxu0 %v645_v19  ;;  %v1920_v18 = vld [vmem:[#allocation5 + $0x328] sm:$0xff]  ;;  %v894_v19 = vld [vmem:[%s8469_s7 + $0x1518] sm:$0xff] }
  0xea   : > { %2680 = vmatprep.mubr.f32.mxu1 %v247_v20  ;;  %3019 = vmatpush1.msra.mxu0 %v1887_v21  ;;  %v496_v20 = vld [vmem:[%s8469_s7 + $0x8a8] sm:$0xff] }
  0xeb   : > { %2376 = vmatmul.mubr.f32.gmra.mxu0 %v644_v22  ;;  %2681 = vmatmul.mubr.f32.gmra.mxu1 %v246_v23  ;;  %v920_v21 = vld [vmem:[%s8469_s7 + $0x15e8] sm:$0xff]  ;;  %v522_v22 = vld [vmem:[%s8469_s7 + $0x978] sm:$0xff] }
  0xec   : > { %2380 = vmatprep.mubr.f32.mxu0 %v670_v24  ;;  %2685 = vmatprep.mubr.f32.mxu1 %v272_v25  ;;  %v1908_v23 = vld [vmem:[#allocation5 + $0x2c8] sm:$0xff]  ;;  %v1919_v24 = vld [vmem:[#allocation5 + $0x320] sm:$0xff] }
  0xed   : > { %3020 = vmatprep.subr.mxu0 %v13036_v0  ;;  %3383 = vmatprep.subr.mxu1 %v13036_v0  ;;  %v919_v25 = vld [vmem:[%s8469_s7 + $0x15e0] sm:$0xff] }
  0xee   : > { %3021 = vmatpush1.msra.mxu0 %v1886_v26  ;;  %3384 = vmatpush1.msra.mxu1 %v1929_v27  ;;  %v521_v26 = vld [vmem:[%s8469_s7 + $0x970] sm:$0xff] }
  0xef   : > { %2381 = vmatmul.mubr.f32.gmra.mxu0 %v669_v28  ;;  %2686 = vmatmul.mubr.f32.gmra.mxu1 %v271_v29  ;;  %v945_v27 = vld [vmem:[%s8469_s7 + $0x16b0] sm:$0xff]  ;;  %v547_v28 = vld [vmem:[%s8469_s7 + $0xa40] sm:$0xff] }
  0xf0   : > { %2385 = vmatprep.mubr.f32.mxu0 %v695_v30  ;;  %2690 = vmatprep.mubr.f32.mxu1 %v297_v31  ;;  %v1907_v29 = vld [vmem:[#allocation5 + $0x2c0] sm:$0xff]  ;;  %v1918_v30 = vld [vmem:[#allocation5 + $0x318] sm:$0xff]  ;;  %v944_v31 = vld [vmem:[%s8469_s7 + $0x16a8] sm:$0xff] }
  0xf1   : > { %3022 = vmatprep.subr.mxu0 %v13036_v0  ;;  %3385 = vmatprep.subr.mxu1 %v13036_v0 }
  0xf2   : > { %3023 = vmatpush1.msra.mxu0 %v1885_v32  ;;  %3386 = vmatpush1.msra.mxu1 %v1928_v33  ;;  %v546_v32 = vld [vmem:[%s8469_s7 + $0xa38] sm:$0xff] }
  0xf3   : > { %2386 = vmatmul.mubr.f32.gmra.mxu0 %v694_v34  ;;  %2691 = vmatmul.mubr.f32.gmra.mxu1 %v296_v35  ;;  %v970_v33 = vld [vmem:[%s8469_s7 + $0x1778] sm:$0xff]  ;;  %v572_v34 = vld [vmem:[%s8469_s7 + $0xb08] sm:$0xff] }
  0xf4   : > { %2390 = vmatprep.mubr.f32.mxu0 %v720_v36  ;;  %2695 = vmatprep.mubr.f32.mxu1 %v322_v37  ;;  %v1906_v35 = vld [vmem:[#allocation5 + $0x2b8] sm:$0xff]  ;;  %v1917_v36 = vld [vmem:[#allocation5 + $0x310] sm:$0xff] }
  0xf5   : > { %3024 = vmatprep.subr.mxu0 %v13036_v0  ;;  %3387 = vmatprep.subr.mxu1 %v13036_v0  ;;  %v969_v37 = vld [vmem:[%s8469_s7 + $0x1770] sm:$0xff] }
  0xf6   : > { %3025 = vmatpush1.msra.mxu0 %v1884_v38  ;;  %3388 = vmatpush1.msra.mxu1 %v1927_v39  ;;  %v571_v38 = vld [vmem:[%s8469_s7 + $0xb00] sm:$0xff] }
  0xf7   : > { %2391 = vmatmul.mubr.f32.gmra.mxu0 %v719_v40  ;;  %2696 = vmatmul.mubr.f32.gmra.mxu1 %v321_v41  ;;  %v995_v39 = vld [vmem:[%s8469_s7 + $0x1840] sm:$0xff]  ;;  %v597_v40 = vld [vmem:[%s8469_s7 + $0xbd0] sm:$0xff] }
  0xf8   : > { %2395 = vmatprep.mubr.f32.mxu0 %v745_v42  ;;  %2700 = vmatprep.mubr.f32.mxu1 %v347_v43  ;;  %v1905_v41 = vld [vmem:[#allocation5 + $0x2b0] sm:$0xff]  ;;  %v1916_v42 = vld [vmem:[#allocation5 + $0x308] sm:$0xff]  ;;  %v994_v43 = vld [vmem:[%s8469_s7 + $0x1838] sm:$0xff] }
  0xf9   : > { %3026 = vmatprep.subr.mxu0 %v13036_v0  ;;  %3389 = vmatprep.subr.mxu1 %v13036_v0 }
  0xfa   : > { %3027 = vmatpush1.msra.mxu0 %v1883_v44  ;;  %3390 = vmatpush1.msra.mxu1 %v1926_v45  ;;  %v596_v44 = vld [vmem:[%s8469_s7 + $0xbc8] sm:$0xff] }
  0xfb   : > { %2396 = vmatmul.mubr.f32.gmra.mxu0 %v744_v46  ;;  %2701 = vmatmul.mubr.f32.gmra.mxu1 %v346_v47  ;;  %v1020_v45 = vld [vmem:[%s8469_s7 + $0x1908] sm:$0xff]  ;;  %v622_v46 = vld [vmem:[%s8469_s7 + $0xc98] sm:$0xff] }
  0xfc   : > { %2400 = vmatprep.mubr.f32.mxu0 %v770_v48  ;;  %2705 = vmatprep.mubr.f32.mxu1 %v372_v49  ;;  %v1904_v47 = vld [vmem:[#allocation5 + $0x2a8] sm:$0xff]  ;;  %v1915_v48 = vld [vmem:[#allocation5 + $0x300] sm:$0xff] }
  0xfd   : > { %3028 = vmatprep.subr.mxu0 %v13036_v0  ;;  %3391 = vmatprep.subr.mxu1 %v13036_v0  ;;  %v1019_v49 = vld [vmem:[%s8469_s7 + $0x1900] sm:$0xff] }
  0xfe   : > { %3029 = vmatpush2.msra.mxu0 %v1914_v50  ;;  %3392 = vmatpush1.msra.mxu1 %v1925_v51  ;;  %v621_v50 = vld [vmem:[%s8469_s7 + $0xc90] sm:$0xff] }
  0xff   : > { %2401 = vmatmul.mubr.f32.gmra.mxu0 %v769_v52  ;;  %2706 = vmatmul.mubr.f32.gmra.mxu1 %v371_v53  ;;  %v1045_v51 = vld [vmem:[%s8469_s7 + $0x19d0] sm:$0xff]  ;;  %v647_v52 = vld [vmem:[%s8469_s7 + $0xd60] sm:$0xff] }
 0x100   : > { %2405 = vmatprep.mubr.f32.mxu0 %v795_v54  ;;  %2710 = vmatprep.mubr.f32.mxu1 %v397_v55  ;;  %v1903_v53 = vld [vmem:[#allocation5 + $0x2a0] sm:$0xff]  ;;  %v1946_v54 = vld [vmem:[#allocation5 + $0x3f8] sm:$0xff]  ;;  %v1044_v55 = vld [vmem:[%s8469_s7 + $0x19c8] sm:$0xff] }
 0x101   : > { %3030 = vmatprep.subr.mxu0 %v13036_v0  ;;  %3393 = vmatprep.subr.mxu1 %v13036_v0 }
 0x102   : > { %3031 = vmatpush2.msra.mxu0 %v1913_v56  ;;  %3394 = vmatpush1.msra.mxu1 %v1924_v57  ;;  %v646_v56 = vld [vmem:[%s8469_s7 + $0xd58] sm:$0xff] }
 0x103   : > { %2406 = vmatmul.mubr.f32.gmra.mxu0 %v794_v58  ;;  %2711 = vmatmul.mubr.f32.gmra.mxu1 %v396_v59  ;;  %v1070_v57 = vld [vmem:[%s8469_s7 + $0x1a98] sm:$0xff]  ;;  %v672_v58 = vld [vmem:[%s8469_s7 + $0xe28] sm:$0xff] }
 0x104   : > { %2410 = vmatprep.mubr.f32.mxu0 %v820_v60  ;;  %2715 = vmatprep.mubr.f32.mxu1 %v422_v61  ;;  %v1902_v59 = vld [vmem:[#allocation5 + $0x298] sm:$0xff]  ;;  %v1945_v60 = vld [vmem:[#allocation5 + $0x3f0] sm:$0xff] }
 0x105   : > { %3032 = vmatprep.subr.mxu0 %v13036_v0  ;;  %3395 = vmatprep.subr.mxu1 %v13036_v0  ;;  %v1069_v61 = vld [vmem:[%s8469_s7 + $0x1a90] sm:$0xff] }
 0x106   : > { %3033 = vmatpush2.msra.mxu0 %v1912_v62  ;;  %3396 = vmatpush1.msra.mxu1 %v1923_v63  ;;  %v671_v62 = vld [vmem:[%s8469_s7 + $0xe20] sm:$0xff] }
 0x107   : > { %2411 = vmatmul.mubr.f32.gmra.mxu0 %v819_v1  ;;  %2716 = vmatmul.mubr.f32.gmra.mxu1 %v421_v2  ;;  %v1095_v63 = vld [vmem:[%s8469_s7 + $0x1b60] sm:$0xff]  ;;  %v697_v1 = vld [vmem:[%s8469_s7 + $0xef0] sm:$0xff] }
 0x108   : > { %2415 = vmatprep.mubr.f32.mxu0 %v845_v3  ;;  %2720 = vmatprep.mubr.f32.mxu1 %v447_v4  ;;  %v1901_v2 = vld [vmem:[#allocation5 + $0x290] sm:$0xff]  ;;  %v1944_v3 = vld [vmem:[#allocation5 + $0x3e8] sm:$0xff]  ;;  %v1094_v4 = vld [vmem:[%s8469_s7 + $0x1b58] sm:$0xff] }
 0x109   : > { %3034 = vmatprep.subr.mxu0 %v13036_v0  ;;  %3397 = vmatprep.subr.mxu1 %v13036_v0 }
 0x10a   : > { %3035 = vmatpush2.msra.mxu0 %v1911_v5  ;;  %3398 = vmatpush1.msra.mxu1 %v1922_v6  ;;  %v696_v5 = vld [vmem:[%s8469_s7 + $0xee8] sm:$0xff] }
 0x10b   : > { %2416 = vmatmul.mubr.f32.gmra.mxu0 %v844_v7  ;;  %2721 = vmatmul.mubr.f32.gmra.mxu1 %v446_v8  ;;  %v1120_v6 = vld [vmem:[%s8469_s7 + $0x1c28] sm:$0xff]  ;;  %v722_v7 = vld [vmem:[%s8469_s7 + $0xfb8] sm:$0xff] }
 0x10c   : > { %2420 = vmatprep.mubr.f32.mxu0 %v870_v9  ;;  %2725 = vmatprep.mubr.f32.mxu1 %v472_v10  ;;  %v1900_v8 = vld [vmem:[#allocation5 + $0x288] sm:$0xff]  ;;  %v1943_v9 = vld [vmem:[#allocation5 + $0x3e0] sm:$0xff] }
 0x10d   : > { %3036 = vmatprep.subr.mxu0 %v13036_v0  ;;  %3399 = vmatprep.subr.mxu1 %v13036_v0  ;;  %v1119_v10 = vld [vmem:[%s8469_s7 + $0x1c20] sm:$0xff] }
 0x10e   : > { %3037 = vmatpush2.msra.mxu0 %v1910_v11  ;;  %3400 = vmatpush1.msra.mxu1 %v1921_v12  ;;  %v721_v11 = vld [vmem:[%s8469_s7 + $0xfb0] sm:$0xff] }
 0x10f   : > { %2421 = vmatmul.mubr.f32.gmra.mxu0 %v869_v13  ;;  %2726 = vmatmul.mubr.f32.gmra.mxu1 %v471_v14  ;;  %v1145_v12 = vld [vmem:[%s8469_s7 + $0x1cf0] sm:$0xff]  ;;  %v747_v13 = vld [vmem:[%s8469_s7 + $0x1080] sm:$0xff] }
 0x110   : > { %2425 = vmatprep.mubr.f32.mxu0 %v895_v15  ;;  %2730 = vmatprep.mubr.f32.mxu1 %v497_v16  ;;  %v1899_v14 = vld [vmem:[#allocation5 + $0x280] sm:$0xff]  ;;  %v1942_v15 = vld [vmem:[#allocation5 + $0x3d8] sm:$0xff]  ;;  %v1144_v16 = vld [vmem:[%s8469_s7 + $0x1ce8] sm:$0xff] }
 0x111   : > { %3038 = vmatprep.subr.mxu0 %v13036_v0  ;;  %3401 = vmatprep.subr.mxu1 %v13036_v0 }
 0x112   : > { %3039 = vmatpush2.msra.mxu0 %v1909_v17  ;;  %3402 = vmatpush1.msra.mxu1 %v1920_v18  ;;  %v746_v17 = vld [vmem:[%s8469_s7 + $0x1078] sm:$0xff] }
 0x113   : > { %2426 = vmatmul.mubr.f32.gmra.mxu0 %v894_v19  ;;  %2731 = vmatmul.mubr.f32.gmra.mxu1 %v496_v20  ;;  %v1170_v18 = vld [vmem:[%s8469_s7 + $0x1db8] sm:$0xff]  ;;  %v772_v19 = vld [vmem:[%s8469_s7 + $0x1148] sm:$0xff]  ;;  %v1941_v20 = vld [vmem:[#allocation5 + $0x3d0] sm:$0xff] }
 0x114   : > { %2430 = vmatprep.mubr.f32.mxu0 %v920_v21  ;;  %2735 = vmatprep.mubr.f32.mxu1 %v522_v22  ;;  %v1169_v21 = vld [vmem:[%s8469_s7 + $0x1db0] sm:$0xff]  ;;  %v771_v22 = vld [vmem:[%s8469_s7 + $0x1140] sm:$0xff] }
 0x115   : > { %3040 = vmatprep.subr.mxu0 %v13036_v0  ;;  %3403 = vmatprep.subr.mxu1 %v13036_v0 }
 0x116   : > { %3041 = vmatpush2.msra.mxu0 %v1908_v23  ;;  %3404 = vmatpush1.msra.mxu1 %v1919_v24  ;;  %v1195_v23 = vld [vmem:[%s8469_s7 + $0x1e80] sm:$0xff]  ;;  %v797_v24 = vld [vmem:[%s8469_s7 + $0x1210] sm:$0xff] }
 0x117   : > { %2431 = vmatmul.mubr.f32.gmra.mxu0 %v919_v25  ;;  %2736 = vmatmul.mubr.f32.gmra.mxu1 %v521_v26  ;;  %v1940_v25 = vld [vmem:[#allocation5 + $0x3c8] sm:$0xff]  ;;  %v1194_v26 = vld [vmem:[%s8469_s7 + $0x1e78] sm:$0xff] }
 0x118   : > { %2435 = vmatprep.mubr.f32.mxu0 %v945_v27  ;;  %2740 = vmatprep.mubr.f32.mxu1 %v547_v28  ;;  %v796_v27 = vld [vmem:[%s8469_s7 + $0x1208] sm:$0xff] }
 0x119   : > { %3042 = vmatprep.subr.mxu0 %v13036_v0  ;;  %3405 = vmatprep.subr.mxu1 %v13036_v0  ;;  %v1220_v28 = vld [vmem:[%s8469_s7 + $0x1f48] sm:$0xff] }
 0x11a   : > { %3043 = vmatpush2.msra.mxu0 %v1907_v29  ;;  %3406 = vmatpush1.msra.mxu1 %v1918_v30  ;;  %v822_v29 = vld [vmem:[%s8469_s7 + $0x12d8] sm:$0xff]  ;;  %v1939_v30 = vld [vmem:[#allocation5 + $0x3c0] sm:$0xff] }
 0x11b   : > { %2436 = vmatmul.mubr.f32.gmra.mxu0 %v944_v31  ;;  %2741 = vmatmul.mubr.f32.gmra.mxu1 %v546_v32  ;;  %v1219_v31 = vld [vmem:[%s8469_s7 + $0x1f40] sm:$0xff]  ;;  %v821_v32 = vld [vmem:[%s8469_s7 + $0x12d0] sm:$0xff] }
 0x11c   : > { %2440 = vmatprep.mubr.f32.mxu0 %v970_v33  ;;  %2745 = vmatprep.mubr.f32.mxu1 %v572_v34  ;;  %v1245_v33 = vld [vmem:[%s8469_s7 + $0x2010] sm:$0xff]  ;;  %v847_v34 = vld [vmem:[%s8469_s7 + $0x13a0] sm:$0xff] }
 0x11d   : > { %3044 = vmatprep.subr.mxu0 %v13036_v0  ;;  %3407 = vmatprep.subr.mxu1 %v13036_v0 }
 0x11e   : > { %3045 = vmatpush2.msra.mxu0 %v1906_v35  ;;  %3408 = vmatpush1.msra.mxu1 %v1917_v36  ;;  %v1938_v35 = vld [vmem:[#allocation5 + $0x3b8] sm:$0xff]  ;;  %v1244_v36 = vld [vmem:[%s8469_s7 + $0x2008] sm:$0xff] }
 0x11f   : > { %2441 = vmatmul.mubr.f32.gmra.mxu0 %v969_v37  ;;  %2746 = vmatmul.mubr.f32.gmra.mxu1 %v571_v38  ;;  %v846_v37 = vld [vmem:[%s8469_s7 + $0x1398] sm:$0xff] }
 0x120   : > { %2445 = vmatprep.mubr.f32.mxu0 %v995_v39  ;;  %2750 = vmatprep.mubr.f32.mxu1 %v597_v40  ;;  %v1270_v38 = vld [vmem:[%s8469_s7 + $0x20d8] sm:$0xff]  ;;  %v872_v39 = vld [vmem:[%s8469_s7 + $0x1468] sm:$0xff]  ;;  %v1937_v40 = vld [vmem:[#allocation5 + $0x3b0] sm:$0xff] }
 0x121   : > { %3046 = vmatprep.subr.mxu0 %v13036_v0  ;;  %3409 = vmatprep.subr.mxu1 %v13036_v0 }
 0x122   : > { %3047 = vmatpush2.msra.mxu0 %v1905_v41  ;;  %3410 = vmatpush1.msra.mxu1 %v1916_v42  ;;  %v1269_v41 = vld [vmem:[%s8469_s7 + $0x20d0] sm:$0xff]  ;;  %v871_v42 = vld [vmem:[%s8469_s7 + $0x1460] sm:$0xff] }
 0x123   : > { %2446 = vmatmul.mubr.f32.gmra.mxu0 %v994_v43  ;;  %2751 = vmatmul.mubr.f32.gmra.mxu1 %v596_v44  ;;  %v1295_v43 = vld [vmem:[%s8469_s7 + $0x21a0] sm:$0xff]  ;;  %v897_v44 = vld [vmem:[%s8469_s7 + $0x1530] sm:$0xff] }
 0x124   : > { %2450 = vmatprep.mubr.f32.mxu0 %v1020_v45  ;;  %2755 = vmatprep.mubr.f32.mxu1 %v622_v46  ;;  %v1936_v45 = vld [vmem:[#allocation5 + $0x3a8] sm:$0xff]  ;;  %v1294_v46 = vld [vmem:[%s8469_s7 + $0x2198] sm:$0xff] }
 0x125   : > { %3048 = vmatprep.subr.mxu0 %v13036_v0  ;;  %3411 = vmatprep.subr.mxu1 %v13036_v0 }
 0x126   : > { %3049 = vmatpush2.msra.mxu0 %v1904_v47  ;;  %3412 = vmatpush1.msra.mxu1 %v1915_v48  ;;  %v896_v47 = vld [vmem:[%s8469_s7 + $0x1528] sm:$0xff] }
 0x127   : > { %2451 = vmatmul.mubr.f32.gmra.mxu0 %v1019_v49  ;;  %2756 = vmatmul.mubr.f32.gmra.mxu1 %v621_v50  ;;  %v1320_v48 = vld [vmem:[%s8469_s7 + $0x2268] sm:$0xff]  ;;  %v922_v49 = vld [vmem:[%s8469_s7 + $0x15f8] sm:$0xff]  ;;  %v1935_v50 = vld [vmem:[#allocation5 + $0x3a0] sm:$0xff] }
 0x128   : > { %2455 = vmatprep.mubr.f32.mxu0 %v1045_v51  ;;  %2760 = vmatprep.mubr.f32.mxu1 %v647_v52  ;;  %v1319_v51 = vld [vmem:[%s8469_s7 + $0x2260] sm:$0xff]  ;;  %v921_v52 = vld [vmem:[%s8469_s7 + $0x15f0] sm:$0xff] }
 0x129   : > { %3050 = vmatprep.subr.mxu0 %v13036_v0  ;;  %3413 = vmatprep.subr.mxu1 %v13036_v0 }
 0x12a   : > { %3051 = vmatpush2.msra.mxu0 %v1903_v53  ;;  %3414 = vmatpush2.msra.mxu1 %v1946_v54  ;;  %v1345_v53 = vld [vmem:[%s8469_s7 + $0x2330] sm:$0xff]  ;;  %v947_v54 = vld [vmem:[%s8469_s7 + $0x16c0] sm:$0xff] }
 0x12b   : > { %2456 = vmatmul.mubr.f32.gmra.mxu0 %v1044_v55  ;;  %2761 = vmatmul.mubr.f32.gmra.mxu1 %v646_v56  ;;  %v1934_v55 = vld [vmem:[#allocation5 + $0x398] sm:$0xff]  ;;  %v1344_v56 = vld [vmem:[%s8469_s7 + $0x2328] sm:$0xff] }
 0x12c   : > { %2460 = vmatprep.mubr.f32.mxu0 %v1070_v57  ;;  %2765 = vmatprep.mubr.f32.mxu1 %v672_v58  ;;  %v946_v57 = vld [vmem:[%s8469_s7 + $0x16b8] sm:$0xff] }
 0x12d   : > { %3052 = vmatprep.subr.mxu0 %v13036_v0  ;;  %3415 = vmatprep.subr.mxu1 %v13036_v0  ;;  %v1370_v58 = vld [vmem:[%s8469_s7 + $0x23f8] sm:$0xff] }
 0x12e   : > { %3053 = vmatpush2.msra.mxu0 %v1902_v59  ;;  %3416 = vmatpush2.msra.mxu1 %v1945_v60  ;;  %v972_v59 = vld [vmem:[%s8469_s7 + $0x1788] sm:$0xff]  ;;  %v1933_v60 = vld [vmem:[#allocation5 + $0x390] sm:$0xff] }
 0x12f   : > { %2461 = vmatmul.mubr.f32.gmra.mxu0 %v1069_v61  ;;  %2766 = vmatmul.mubr.f32.gmra.mxu1 %v671_v62  ;;  %v1369_v61 = vld [vmem:[%s8469_s7 + $0x23f0] sm:$0xff]  ;;  %v971_v62 = vld [vmem:[%s8469_s7 + $0x1780] sm:$0xff] }
 0x130   : > { %2465 = vmatprep.mubr.f32.mxu0 %v1095_v63  ;;  %2770 = vmatprep.mubr.f32.mxu1 %v697_v1 }
 0x131   : > { %3054 = vmatprep.subr.mxu0 %v13036_v0  ;;  %3417 = vmatprep.subr.mxu1 %v13036_v0 }
 0x132   : > { %3055 = vmatpush2.msra.mxu0 %v1901_v2  ;;  %3418 = vmatpush2.msra.mxu1 %v1944_v3  ;;  %v1395_v2 = vld [vmem:[%s8469_s7 + $0x24c0] sm:$0xff]  ;;  %v997_v3 = vld [vmem:[%s8469_s7 + $0x1850] sm:$0xff] }
 0x133   : > { %2466 = vmatmul.mubr.f32.gmra.mxu0 %v1094_v4  ;;  %2771 = vmatmul.mubr.f32.gmra.mxu1 %v696_v5 }
 0x134   : > { %2470 = vmatprep.mubr.f32.mxu0 %v1120_v6  ;;  %2775 = vmatprep.mubr.f32.mxu1 %v722_v7  ;;  %v1932_v6 = vld [vmem:[#allocation5 + $0x388] sm:$0xff]  ;;  %v1394_v7 = vld [vmem:[%s8469_s7 + $0x24b8] sm:$0xff] }
 0x135   : > { %3056 = vmatprep.subr.mxu0 %v13036_v0  ;;  %3419 = vmatprep.subr.mxu1 %v13036_v0 }
 0x136   : > { %3057 = vmatpush2.msra.mxu0 %v1900_v8  ;;  %3420 = vmatpush2.msra.mxu1 %v1943_v9  ;;  %v996_v8 = vld [vmem:[%s8469_s7 + $0x1848] sm:$0xff]  ;;  %v1022_v9 = vld [vmem:[%s8469_s7 + $0x1918] sm:$0xff] }
 0x137   : > { %2471 = vmatmul.mubr.f32.gmra.mxu0 %v1119_v10  ;;  %2776 = vmatmul.mubr.f32.gmra.mxu1 %v721_v11  ;;  %v224_v10 = vld [vmem:[%s8469_s7 + $0x28] sm:$0xff] }
 0x138   : > { %2475 = vmatprep.mubr.f32.mxu0 %v1145_v12  ;;  %2780 = vmatprep.mubr.f32.mxu1 %v747_v13 }
 0x139   : > { %3058 = vmatprep.subr.mxu0 %v13036_v0  ;;  %3421 = vmatprep.subr.mxu1 %v13036_v0 }
 0x13a   : > { %3059 = vmatpush2.msra.mxu0 %v1899_v14  ;;  %3422 = vmatpush2.msra.mxu1 %v1942_v15  ;;  %v1931_v15 = vld [vmem:[#allocation5 + $0x380] sm:$0xff] }
 0x13b   : > { %2476 = vmatmul.mubr.f32.gmra.mxu0 %v1144_v16  ;;  %2781 = vmatmul.mubr.f32.gmra.mxu1 %v746_v17  ;;  %v1021_v16 = vld [vmem:[%s8469_s7 + $0x1910] sm:$0xff]  ;;  %v223_v17 = vld [vmem:[%s8469_s7 + $0x20] sm:$0xff] }
 0x13c   : > { %2480 = vmatprep.mubr.f32.mxu0 %v1170_v18  ;;  %2785 = vmatprep.mubr.f32.mxu1 %v772_v19  ;;  %v1962_v18 = vld [vmem:[#allocation5 + $0x478] sm:$0xff]  ;;  %v1047_v19 = vld [vmem:[%s8469_s7 + $0x19e0] sm:$0xff] }
 0x13d   : > { %3766 = vmatprep.subr.mxu0 %v13036_v0  ;;  %3423 = vmatprep.subr.mxu1 %v13036_v0 }
 0x13e   : > { %3424 = vmatpush2.msra.mxu1 %v1941_v20  ;;  %v249_v20 = vld [vmem:[%s8469_s7 + $0xf0] sm:$0xff] }
 0x13f   : > { %2481 = vmatmul.mubr.f32.gmra.mxu0 %v1169_v21  ;;  %2786 = vmatmul.mubr.f32.gmra.mxu1 %v771_v22 }
 0x140   : > { %2485 = vmatprep.mubr.f32.mxu0 %v1195_v23  ;;  %2790 = vmatprep.mubr.f32.mxu1 %v797_v24  ;;  %v1961_v23 = vld [vmem:[#allocation5 + $0x470] sm:$0xff]  ;;  %v1046_v24 = vld [vmem:[%s8469_s7 + $0x19d8] sm:$0xff] }
 0x141   : > { %3425 = vmatprep.subr.mxu1 %v13036_v0 }
 0x142   : > { %3426 = vmatpush2.msra.mxu1 %v1940_v25  ;;  %v248_v25 = vld [vmem:[%s8469_s7 + $0xe8] sm:$0xff] }
 0x143   : > { %2486 = vmatmul.mubr.f32.gmra.mxu0 %v1194_v26  ;;  %2791 = vmatmul.mubr.f32.gmra.mxu1 %v796_v27 }
 0x144   : > { %2490 = vmatprep.mubr.f32.mxu0 %v1220_v28  ;;  %2795 = vmatprep.mubr.f32.mxu1 %v822_v29  ;;  %v1072_v28 = vld [vmem:[%s8469_s7 + $0x1aa8] sm:$0xff]  ;;  %v274_v29 = vld [vmem:[%s8469_s7 + $0x1b8] sm:$0xff] }
 0x145   : > { %3427 = vmatprep.subr.mxu1 %v13036_v0 }
 0x146   : > { %3428 = vmatpush2.msra.mxu1 %v1939_v30 }
 0x147   : > { %2491 = vmatmul.mubr.f32.gmra.mxu0 %v1219_v31  ;;  %2796 = vmatmul.mubr.f32.gmra.mxu1 %v821_v32  ;;  %v1960_v32 = vld [vmem:[#allocation5 + $0x468] sm:$0xff] }
 0x148   : > { %2495 = vmatprep.mubr.f32.mxu0 %v1245_v33  ;;  %2800 = vmatprep.mubr.f32.mxu1 %v847_v34  ;;  %v1071_v33 = vld [vmem:[%s8469_s7 + $0x1aa0] sm:$0xff]  ;;  %v273_v34 = vld [vmem:[%s8469_s7 + $0x1b0] sm:$0xff] }
 0x149   : > { %3429 = vmatprep.subr.mxu1 %v13036_v0 }
 0x14a   : > { %3430 = vmatpush2.msra.mxu1 %v1938_v35 }
 0x14b   : > { %2496 = vmatmul.mubr.f32.gmra.mxu0 %v1244_v36  ;;  %2801 = vmatmul.mubr.f32.gmra.mxu1 %v846_v37  ;;  %v1097_v36 = vld [vmem:[%s8469_s7 + $0x1b70] sm:$0xff]  ;;  %v299_v37 = vld [vmem:[%s8469_s7 + $0x280] sm:$0xff] }
 0x14c   : > { %2500 = vmatprep.mubr.f32.mxu0 %v1270_v38  ;;  %2805 = vmatprep.mubr.f32.mxu1 %v872_v39 }
 0x14d   : > { %3431 = vmatprep.subr.mxu1 %v13036_v0 }
 0x14e   : > { %3432 = vmatpush2.msra.mxu1 %v1937_v40 }
 0x14f   : > { %2501 = vmatmul.mubr.f32.gmra.mxu0 %v1269_v41  ;;  %2806 = vmatmul.mubr.f32.gmra.mxu1 %v871_v42  ;;  %v1959_v41 = vld [vmem:[#allocation5 + $0x460] sm:$0xff]  ;;  %v1096_v42 = vld [vmem:[%s8469_s7 + $0x1b68] sm:$0xff] }
 0x150   : > { %2505 = vmatprep.mubr.f32.mxu0 %v1295_v43  ;;  %2810 = vmatprep.mubr.f32.mxu1 %v897_v44  ;;  %v298_v43 = vld [vmem:[%s8469_s7 + $0x278] sm:$0xff] }
 0x151   : > { %3433 = vmatprep.subr.mxu1 %v13036_v0  ;;  %v1122_v44 = vld [vmem:[%s8469_s7 + $0x1c38] sm:$0xff] }
 0x152   : > { %3434 = vmatpush2.msra.mxu1 %v1936_v45  ;;  %v324_v45 = vld [vmem:[%s8469_s7 + $0x348] sm:$0xff] }
 0x153   : > { %2506 = vmatmul.mubr.f32.gmra.mxu0 %v1294_v46  ;;  %2811 = vmatmul.mubr.f32.gmra.mxu1 %v896_v47 }
 0x154   : > { %2510 = vmatprep.mubr.f32.mxu0 %v1320_v48  ;;  %2815 = vmatprep.mubr.f32.mxu1 %v922_v49  ;;  %v1958_v48 = vld [vmem:[#allocation5 + $0x458] sm:$0xff]  ;;  %v1121_v49 = vld [vmem:[%s8469_s7 + $0x1c30] sm:$0xff] }
 0x155   : > { %3435 = vmatprep.subr.mxu1 %v13036_v0 }
 0x156   : > { %3436 = vmatpush2.msra.mxu1 %v1935_v50  ;;  %v323_v50 = vld [vmem:[%s8469_s7 + $0x340] sm:$0xff] }
 0x157   : > { %2511 = vmatmul.mubr.f32.gmra.mxu0 %v1319_v51  ;;  %2816 = vmatmul.mubr.f32.gmra.mxu1 %v921_v52 }
 0x158   : > { %2515 = vmatprep.mubr.f32.mxu0 %v1345_v53  ;;  %2820 = vmatprep.mubr.f32.mxu1 %v947_v54  ;;  %v1147_v53 = vld [vmem:[%s8469_s7 + $0x1d00] sm:$0xff]  ;;  %v349_v54 = vld [vmem:[%s8469_s7 + $0x410] sm:$0xff] }
 0x159   : > { %3437 = vmatprep.subr.mxu1 %v13036_v0 }
 0x15a   : > { %3438 = vmatpush2.msra.mxu1 %v1934_v55 }
 0x15b   : > { %2516 = vmatmul.mubr.f32.gmra.mxu0 %v1344_v56  ;;  %2821 = vmatmul.mubr.f32.gmra.mxu1 %v946_v57  ;;  %v1957_v57 = vld [vmem:[#allocation5 + $0x450] sm:$0xff] }
 0x15c   : > { %2520 = vmatprep.mubr.f32.mxu0 %v1370_v58  ;;  %2825 = vmatprep.mubr.f32.mxu1 %v972_v59  ;;  %v8825_v63 = vpop.f32.mrf.mxu0  ;;  %v8827_v1 = vpop.f32.mrf.mxu1  ;;  %v1146_v58 = vld [vmem:[%s8469_s7 + $0x1cf8] sm:$0xff]  ;;  %v348_v59 = vld [vmem:[%s8469_s7 + $0x408] sm:$0xff] }
 0x15d   : > { %3439 = vmatprep.subr.mxu1 %v13036_v0 }
 0x15e   : > { %v2294_v4 = vpop.f32.mrf.mxu0  ;;  %v2534_v5 = vpop.f32.mrf.mxu1  ;;  %3440 = vmatpush2.msra.mxu1 %v1933_v60 }
 0x15f   : > { %2521 = vmatmul.mubr.f32.gmra.mxu0 %v1369_v61  ;;  %2826 = vmatmul.mubr.f32.gmra.mxu1 %v971_v62  ;;  %v1172_v61 = vld [vmem:[%s8469_s7 + $0x1dc8] sm:$0xff]  ;;  %v374_v62 = vld [vmem:[%s8469_s7 + $0x4d8] sm:$0xff] }
 0x160   : > { %2525 = vmatprep.mubr.f32.mxu0 %v1395_v2  ;;  %2830 = vmatprep.mubr.f32.mxu1 %v997_v3  ;;  %v1956_v5 = vld [vmem:[#allocation5 + $0x448] sm:$0xff] }
 0x161   : > { %v8836_v11 = vpop.f32.mrf.mxu0  ;;  %v8838_v12 = vpop.f32.mrf.mxu1  ;;  %3441 = vmatprep.subr.mxu1 %v13036_v0 }
 0x162   : > { %3442 = vmatpush2.msra.mxu1 %v1932_v6  ;;  %v1171_v6 = vld [vmem:[%s8469_s7 + $0x1dc0] sm:$0xff] }
 0x163   : > { %2526 = vmatmul.mubr.f32.gmra.mxu0 %v1394_v7  ;;  %2831 = vmatmul.mubr.f32.gmra.mxu1 %v996_v8  ;;  %v2299_v13 = vpop.f32.mrf.mxu0  ;;  %v2539_v14 = vpop.f32.mrf.mxu1  ;;  %v373_v7 = vld [vmem:[%s8469_s7 + $0x4d0] sm:$0xff] }
 0x164   : > { %2835 = vmatprep.mubr.f32.mxu1 %v1022_v9  ;;  %3060 = vmatprep.mubr.f32.mxu0 %v224_v10  ;;  %v1197_v8 = vld [vmem:[%s8469_s7 + $0x1e90] sm:$0xff]  ;;  %v399_v9 = vld [vmem:[%s8469_s7 + $0x5a0] sm:$0xff] }
 0x165   : > { %3443 = vmatprep.subr.mxu1 %v13036_v0 }
 0x166   : > { %v8846_v21 = vpop.f32.mrf.mxu0  ;;  %v8848_v22 = vpop.f32.mrf.mxu1  ;;  %3444 = vmatpush2.msra.mxu1 %v1931_v15 }
 0x167   : > { %2836 = vmatmul.mubr.f32.gmra.mxu1 %v1021_v16  ;;  %3061 = vmatmul.mubr.f32.vlgmr.msra.gmra.mxu0 %v223_v17  ;;  %v1955_v16 = vld [vmem:[#allocation5 + $0x440] sm:$0xff]  ;;  %v1196_v17 = vld [vmem:[%s8469_s7 + $0x1e88] sm:$0xff] }
 0x168   : > { %3767 = vmatpush1.msra.mxu0 %v1962_v18  ;;  %2840 = vmatprep.mubr.f32.mxu1 %v1047_v19  ;;  %v2304_v26 = vpop.f32.mrf.mxu0  ;;  %v2544_v27 = vpop.f32.mrf.mxu1  ;;  %v398_v18 = vld [vmem:[%s8469_s7 + $0x598] sm:$0xff] }
 0x169   : > { %3065 = vmatprep.mubr.f32.mxu0 %v249_v20  ;;  %3768 = vmatprep.subr.mxu0 %v13036_v0  ;;  %v1222_v19 = vld [vmem:[%s8469_s7 + $0x1f58] sm:$0xff]  ;;  %v424_v20 = vld [vmem:[%s8469_s7 + $0x668] sm:$0xff]  ;;  %v1221_v26 = vld [vmem:[%s8469_s7 + $0x1f50] sm:$0xff] }
 0x16a   : > { %3769 = vmatpush1.msra.mxu0 %v1961_v23  ;;  %v8855_v30 = vpop.f32.mrf.mxu0  ;;  %4151 = vmatprep.subr.mxu1 %v13036_v0  ;;  %v423_v27 = vld [vmem:[%s8469_s7 + $0x660] sm:$0xff] }
 0x16b   : > { %2841 = vmatmul.mubr.f32.gmra.mxu1 %v1046_v24  ;;  %3066 = vmatmul.mubr.f32.gmra.mxu0 %v248_v25  ;;  %v8858_v31 = vpop.f32.mrf.mxu1  ;;  %v1954_v25 = vld [vmem:[#allocation5 + $0x438] sm:$0xff] }
 0x16c   : > { %2845 = vmatprep.mubr.f32.mxu1 %v1072_v28  ;;  %3070 = vmatprep.mubr.f32.mxu0 %v274_v29  ;;  %v2309_v35 = vpop.f32.mrf.mxu0 }
 0x16d   : > { %v2549_v38 = vpop.f32.mrf.mxu1  ;;  %3770 = vmatprep.subr.mxu0 %v13036_v0 }
 0x16e   : > { %3771 = vmatpush1.msra.mxu0 %v1960_v32  ;;  %v1247_v32 = vld [vmem:[%s8469_s7 + $0x2020] sm:$0xff]  ;;  %v448_v38 = vld [vmem:[%s8469_s7 + $0x728] sm:$0xff] }
 0x16f   : > { %2846 = vmatmul.mubr.f32.gmra.mxu1 %v1071_v33  ;;  %3071 = vmatmul.mubr.f32.gmra.mxu0 %v273_v34  ;;  %v8865_v39 = vpop.f32.mrf.mxu0  ;;  %v8867_v40 = vpop.f32.mrf.mxu1  ;;  %v449_v33 = vld [vmem:[%s8469_s7 + $0x730] sm:$0xff] }
 0x170   : > { %2850 = vmatprep.mubr.f32.mxu1 %v1097_v36  ;;  %3075 = vmatprep.mubr.f32.mxu0 %v299_v37  ;;  %v1953_v36 = vld [vmem:[#allocation5 + $0x430] sm:$0xff]  ;;  %v1246_v37 = vld [vmem:[%s8469_s7 + $0x2018] sm:$0xff] }
 0x171   : > { %v2314_v46 = vpop.f32.mrf.mxu0  ;;  %v2554_v47 = vpop.f32.mrf.mxu1  ;;  %3772 = vmatprep.subr.mxu0 %v13036_v0 }
 0x172   : > { %3773 = vmatpush1.msra.mxu0 %v1959_v41  ;;  %v1952_v47 = vld [vmem:[#allocation5 + $0x428] sm:$0xff] }
 0x173   : > { %2851 = vmatmul.mubr.f32.gmra.mxu1 %v1096_v42  ;;  %3076 = vmatmul.mubr.f32.gmra.mxu0 %v298_v43  ;;  %v1272_v43 = vld [vmem:[%s8469_s7 + $0x20e8] sm:$0xff] }
 0x174   : > { %2855 = vmatprep.mubr.f32.mxu1 %v1122_v44  ;;  %3080 = vmatprep.mubr.f32.mxu0 %v324_v45  ;;  %v8876_v51 = vpop.f32.mrf.mxu0  ;;  %v8878_v52 = vpop.f32.mrf.mxu1  ;;  %v474_v44 = vld [vmem:[%s8469_s7 + $0x7f8] sm:$0xff] }
 0x175   : > { %3774 = vmatprep.subr.mxu0 %v13036_v0 }
 0x176   : > { %v2319_v55 = vpop.f32.mrf.mxu0  ;;  %v2559_v56 = vpop.f32.mrf.mxu1  ;;  %3775 = vmatpush1.msra.mxu0 %v1958_v48  ;;  %v1271_v48 = vld [vmem:[%s8469_s7 + $0x20e0] sm:$0xff] }
 0x177   : > { %2856 = vmatmul.mubr.f32.gmra.mxu1 %v1121_v49  ;;  %3081 = vmatmul.mubr.f32.gmra.mxu0 %v323_v50  ;;  %v473_v49 = vld [vmem:[%s8469_s7 + $0x7f0] sm:$0xff]  ;;  %v499_v55 = vld [vmem:[%s8469_s7 + $0x8c0] sm:$0xff] }
 0x178   : > { %2860 = vmatprep.mubr.f32.mxu1 %v1147_v53  ;;  %3085 = vmatprep.mubr.f32.mxu0 %v349_v54  ;;  %v8885_v60 = vpop.f32.mrf.mxu0  ;;  %v1297_v54 = vld [vmem:[%s8469_s7 + $0x21b0] sm:$0xff]  ;;  %v1951_v56 = vld [vmem:[#allocation5 + $0x420] sm:$0xff] }
 0x179   : > { %v8889_v2 = vpop.f32.mrf.mxu1  ;;  %3776 = vmatprep.subr.mxu0 %v13036_v0 }
 0x17a   : > { %v2324_v3 = vpop.f32.mrf.mxu0  ;;  %3777 = vmatpush1.msra.mxu0 %v1957_v57 }
 0x17b   : > { %2861 = vmatmul.mubr.f32.gmra.mxu1 %v1146_v58  ;;  %3086 = vmatmul.mubr.f32.gmra.mxu0 %v348_v59  ;;  %v2564_v4 = vpop.f32.mrf.mxu1  ;;  %v1296_v59 = vld [vmem:[%s8469_s7 + $0x21a8] sm:$0xff] }
 0x17c   : > { %2865 = vmatprep.mubr.f32.mxu1 %v1172_v61  ;;  %3090 = vmatprep.mubr.f32.mxu0 %v374_v62  ;;  %v498_v61 = vld [vmem:[%s8469_s7 + $0x8b8] sm:$0xff]  ;;  %v524_v3 = vld [vmem:[%s8469_s7 + $0x988] sm:$0xff] }
 0x17d   : > { %v8896_v10 = vpop.f32.mrf.mxu0  ;;  %v8898_v13 = vpop.f32.mrf.mxu1  ;;  %3778 = vmatprep.subr.mxu0 %v13036_v0  ;;  %v1322_v62 = vld [vmem:[%s8469_s7 + $0x2278] sm:$0xff] }
 0x17e   : > { %13049 = vst [vmem:[#allocation12_spill] sm:$0xff] %v8898_v13  ;;  %3779 = vmatpush1.msra.mxu0 %v1956_v5  ;;  %v451_v13 = vld [vmem:[%s8469_s7 + $0x740] sm:$0xff] }
 0x17f   : > { %2866 = vmatmul.mubr.f32.gmra.mxu1 %v1171_v6  ;;  %3091 = vmatmul.mubr.f32.gmra.mxu0 %v373_v7  ;;  %v2329_v14 = vpop.f32.mrf.mxu0  ;;  %v2569_v15 = vpop.f32.mrf.mxu1  ;;  %v1950_v6 = vld [vmem:[#allocation5 + $0x418] sm:$0xff] }
 0x180   : > { %2870 = vmatprep.mubr.f32.mxu1 %v1197_v8  ;;  %3095 = vmatprep.mubr.f32.mxu0 %v399_v9  ;;  %v1321_v8 = vld [vmem:[%s8469_s7 + $0x2270] sm:$0xff]  ;;  %v523_v9 = vld [vmem:[%s8469_s7 + $0x980] sm:$0xff] }
 0x181   : > { %3780 = vmatprep.subr.mxu0 %v13036_v0  ;;  %v1347_v15 = vld [vmem:[%s8469_s7 + $0x2340] sm:$0xff] }
 0x182   : > { %v8906_v23 = vpop.f32.mrf.mxu0  ;;  %v8908_v24 = vpop.f32.mrf.mxu1  ;;  %3781 = vmatpush1.msra.mxu0 %v1955_v16  ;;  %v549_v16 = vld [vmem:[%s8469_s7 + $0xa50] sm:$0xff] }
 0x183   : > { %13050 = vst [vmem:[#allocation13_spill] sm:$0xff] %v8908_v24  ;;  %2871 = vmatmul.mubr.f32.gmra.mxu1 %v1196_v17  ;;  %3096 = vmatmul.mubr.f32.gmra.mxu0 %v398_v18  ;;  %v426_v24 = vld [vmem:[%s8469_s7 + $0x678] sm:$0xff] }
 0x184   : > { %2875 = vmatprep.mubr.f32.mxu1 %v1222_v19  ;;  %3100 = vmatprep.mubr.f32.mxu0 %v424_v20  ;;  %v2334_v28 = vpop.f32.mrf.mxu0  ;;  %v2574_v29 = vpop.f32.mrf.mxu1  ;;  %v1949_v19 = vld [vmem:[#allocation5 + $0x410] sm:$0xff]  ;;  %v1346_v20 = vld [vmem:[%s8469_s7 + $0x2338] sm:$0xff] }
 0x185   : > { %3782 = vmatprep.subr.mxu0 %v13036_v0  ;;  %v1372_v28 = vld [vmem:[%s8469_s7 + $0x2408] sm:$0xff]  ;;  %v574_v29 = vld [vmem:[%s8469_s7 + $0xb18] sm:$0xff] }
 0x186   : > { %v8915_v34 = vpop.f32.mrf.mxu0  ;;  %3783 = vmatpush1.msra.mxu0 %v1954_v25  ;;  %v548_v25 = vld [vmem:[%s8469_s7 + $0xa48] sm:$0xff] }
 0x187   : > { %2876 = vmatmul.mubr.f32.gmra.mxu1 %v1221_v26  ;;  %3101 = vmatmul.mubr.f32.gmra.mxu0 %v423_v27  ;;  %v8917_v35 = vpop.f32.mrf.mxu1 }
 0x188   : > { %13051 = vst [vmem:[#allocation14_spill] sm:$0xff] %v8917_v35  ;;  %2880 = vmatprep.mubr.f32.mxu1 %v1247_v32  ;;  %3105 = vmatprep.mubr.f32.mxu0 %v449_v33  ;;  %v2339_v41 = vpop.f32.mrf.mxu0  ;;  %v401_v35 = vld [vmem:[%s8469_s7 + $0x5b0] sm:$0xff] }
 0x189   : > { %v2579_v42 = vpop.f32.mrf.mxu1  ;;  %3784 = vmatprep.subr.mxu0 %v13036_v0  ;;  %v1397_v41 = vld [vmem:[%s8469_s7 + $0x24d0] sm:$0xff] }
 0x18a   : > { %3785 = vmatpush1.msra.mxu0 %v1953_v36  ;;  %v1948_v36 = vld [vmem:[#allocation5 + $0x408] sm:$0xff]  ;;  %v599_v42 = vld [vmem:[%s8469_s7 + $0xbe0] sm:$0xff] }
 0x18b   : > { %2881 = vmatmul.mubr.f32.gmra.mxu1 %v1246_v37  ;;  %3106 = vmatmul.mubr.f32.gmra.mxu0 %v448_v38  ;;  %v8924_v45 = vpop.f32.mrf.mxu0  ;;  %v8926_v46 = vpop.f32.mrf.mxu1  ;;  %v1371_v37 = vld [vmem:[%s8469_s7 + $0x2400] sm:$0xff]  ;;  %v573_v38 = vld [vmem:[%s8469_s7 + $0xb10] sm:$0xff] }
 0x18c   : > { %13052 = vst [vmem:[#allocation15_spill] sm:$0xff] %v8926_v46  ;;  %2885 = vmatprep.mubr.f32.mxu1 %v1272_v43  ;;  %3110 = vmatprep.mubr.f32.mxu0 %v474_v44  ;;  %v376_v46 = vld [vmem:[%s8469_s7 + $0x4e8] sm:$0xff] }
 0x18d   : > { %v2344_v50 = vpop.f32.mrf.mxu0  ;;  %v2584_v53 = vpop.f32.mrf.mxu1  ;;  %3786 = vmatprep.subr.mxu0 %v13036_v0 }
 0x18e   : > { %3787 = vmatpush1.msra.mxu0 %v1952_v47  ;;  %v1947_v47 = vld [vmem:[#allocation5 + $0x400] sm:$0xff]  ;;  %v1396_v50 = vld [vmem:[%s8469_s7 + $0x24c8] sm:$0xff]  ;;  %v598_v53 = vld [vmem:[%s8469_s7 + $0xbd8] sm:$0xff] }
 0x18f   : > { %2886 = vmatmul.mubr.f32.gmra.mxu1 %v1271_v48  ;;  %3111 = vmatmul.mubr.f32.gmra.mxu0 %v473_v49 }
 0x190   : > { %2890 = vmatprep.mubr.f32.mxu1 %v1297_v54  ;;  %3115 = vmatprep.mubr.f32.mxu0 %v499_v55  ;;  %v8933_v57 = vpop.f32.mrf.mxu0  ;;  %v8935_v58 = vpop.f32.mrf.mxu1  ;;  %v1422_v54 = vld [vmem:[%s8469_s7 + $0x2598] sm:$0xff]  ;;  %v624_v55 = vld [vmem:[%s8469_s7 + $0xca8] sm:$0xff] }
 0x191   : > { %13053 = vst [vmem:[#allocation16_spill] sm:$0xff] %v8935_v58  ;;  %3788 = vmatprep.subr.mxu0 %v13036_v0  ;;  %v351_v58 = vld [vmem:[%s8469_s7 + $0x420] sm:$0xff] }
 0x192   : > { %v2349_v4 = vpop.f32.mrf.mxu0  ;;  %v2589_v5 = vpop.f32.mrf.mxu1  ;;  %3789 = vmatpush1.msra.mxu0 %v1951_v56 }
 0x193   : > { %2891 = vmatmul.mubr.f32.gmra.mxu1 %v1296_v59  ;;  %3116 = vmatmul.mubr.f32.gmra.mxu0 %v498_v61  ;;  %v8976_v59 = vld [vmem:[#allocation7] ss:$0 sm:$0xff]  ;;  %v1421_v4 = vld [vmem:[%s8469_s7 + $0x2590] sm:$0xff] }
 0x194   : > { %2895 = vmatprep.mubr.f32.mxu1 %v1322_v62  ;;  %3120 = vmatprep.mubr.f32.mxu0 %v524_v3  ;;  %v8942_v7 = vpop.f32.mrf.mxu0  ;;  %v1978_v62 = vld [vmem:[#allocation5 + $0x4f8] sm:$0xff]  ;;  %v623_v5 = vld [vmem:[%s8469_s7 + $0xca0] sm:$0xff] }
 0x195   : > { %v8946_v14 = vpop.f32.mrf.mxu1  ;;  %3790 = vmatprep.subr.mxu0 %v13036_v0 }
 0x196   : > { %13054 = vst [vmem:[#allocation17_spill] sm:$0xff] %v8946_v14  ;;  %v2354_v17 = vpop.f32.mrf.mxu0  ;;  %3791 = vmatpush1.msra.mxu0 %v1950_v6  ;;  %v326_v14 = vld [vmem:[%s8469_s7 + $0x358] sm:$0xff] }
 0x197   : > { %2896 = vmatmul.mubr.f32.gmra.mxu1 %v1321_v8  ;;  %3121 = vmatmul.mubr.f32.gmra.mxu0 %v523_v9  ;;  %v2594_v18 = vpop.f32.mrf.mxu1  ;;  %v1447_v8 = vld [vmem:[%s8469_s7 + $0x2660] sm:$0xff]  ;;  %v649_v9 = vld [vmem:[%s8469_s7 + $0xd70] sm:$0xff] }
 0x198   : > { %2900 = vmatprep.mubr.f32.mxu1 %v1347_v15  ;;  %3125 = vmatprep.mubr.f32.mxu0 %v549_v16  ;;  %v2293_v15 = vadd.f32 %v8976_v59, %v8825_v63  ;;  %v1977_v18 = vld [vmem:[#allocation5 + $0x4f0] sm:$0xff]  ;;  %v2298_v63 = vadd.f32 %v8976_v59, %v8836_v11  ;;  %v2303_v11 = vadd.f32 %v8976_v59, %v8846_v21 }
 0x199   : > { %v8953_v26 = vpop.f32.mrf.mxu0  ;;  %v8955_v27 = vpop.f32.mrf.mxu1  ;;  %3792 = vmatprep.subr.mxu0 %v13036_v0  ;;  %v2308_v21 = vadd.f32 %v8976_v59, %v8855_v30  ;;  %v2313_v30 = vadd.f32 %v8976_v59, %v8865_v39  ;;  %v2318_v39 = vadd.f32 %v8976_v59, %v8876_v51  ;;  %v2323_v51 = vadd.f32 %v8976_v59, %v8885_v60 }
 0x19a   : > { %13055 = vst [vmem:[#allocation18_spill] sm:$0xff] %v8955_v27  ;;  %3793 = vmatpush1.msra.mxu0 %v1949_v19  ;;  %v2328_v60 = vadd.f32 %v8976_v59, %v8896_v10  ;;  %v2333_v10 = vadd.f32 %v8976_v59, %v8906_v23  ;;  %v2338_v23 = vadd.f32 %v8976_v59, %v8915_v34  ;;  %v301_v27 = vld [vmem:[%s8469_s7 + $0x290] sm:$0xff] }
 0x19b   : > { %2901 = vmatmul.mubr.f32.gmra.mxu1 %v1346_v20  ;;  %3126 = vmatmul.mubr.f32.gmra.mxu0 %v548_v25  ;;  %v2359_v32 = vpop.f32.mrf.mxu0  ;;  %v2599_v33 = vpop.f32.mrf.mxu1  ;;  %v1446_v20 = vld [vmem:[%s8469_s7 + $0x2658] sm:$0xff]  ;;  %v648_v25 = vld [vmem:[%s8469_s7 + $0xd68] sm:$0xff]  ;;  %v2343_v34 = vadd.f32 %v8976_v59, %v8924_v45  ;;  %v2348_v45 = vadd.f32 %v8976_v59, %v8933_v57  ;;  %v2353_v57 = vadd.f32 %v8976_v59, %v8942_v7 }
 0x19c   : > { %2905 = vmatprep.mubr.f32.mxu1 %v1372_v28  ;;  %3130 = vmatprep.mubr.f32.mxu0 %v574_v29  ;;  %v1472_v32 = vld [vmem:[%s8469_s7 + $0x2728] sm:$0xff]  ;;  %v674_v33 = vld [vmem:[%s8469_s7 + $0xe38] sm:$0xff]  ;;  %v2358_v7 = vadd.f32 %v8976_v59, %v8953_v26 }
 0x19d   : > { %3794 = vmatprep.subr.mxu0 %v13036_v0 }
 0x19e   : > { %v8965_v43 = vpop.f32.mrf.mxu0  ;;  %v8967_v44 = vpop.f32.mrf.mxu1  ;;  %3795 = vmatpush1.msra.mxu0 %v1948_v36 }
 0x19f   : > { %13056 = vst [vmem:[#allocation19_spill] sm:$0xff] %v8967_v44  ;;  %2906 = vmatmul.mubr.f32.gmra.mxu1 %v1371_v37  ;;  %3131 = vmatmul.mubr.f32.gmra.mxu0 %v573_v38  ;;  %v1976_v38 = vld [vmem:[#allocation5 + $0x4e8] sm:$0xff]  ;;  %v2363_v26 = vadd.f32 %v8976_v59, %v8965_v43  ;;  %v1099_v44 = vld [vmem:[%s8469_s7 + $0x1b80] sm:$0xff] }
 0x1a0   : > { %v2364_v48 = vpop.f32.mrf.mxu0  ;;  %v2604_v49 = vpop.f32.mrf.mxu1  ;;  %2910 = vmatprep.mubr.f32.mxu1 %v1397_v41  ;;  %3135 = vmatprep.mubr.f32.mxu0 %v599_v42  ;;  %v1471_v42 = vld [vmem:[%s8469_s7 + $0x2720] sm:$0xff] }
 0x1a1   : > { %3796 = vmatprep.subr.mxu0 %v13036_v0 }
 0x1a2   : > { %v8974_v56 = vpop.f32.mrf.mxu0  ;;  %3797 = vmatpush1.msra.mxu0 %v1947_v47  ;;  %v673_v47 = vld [vmem:[%s8469_s7 + $0xe30] sm:$0xff] }
 0x1a3   : > { %v8978_v61 = vpop.f32.mrf.mxu1  ;;  %2911 = vmatmul.mubr.f32.gmra.mxu1 %v1396_v50  ;;  %3136 = vmatmul.mubr.f32.gmra.mxu0 %v598_v53  ;;  %v1497_v50 = vld [vmem:[%s8469_s7 + $0x27f0] sm:$0xff]  ;;  %v699_v53 = vld [vmem:[%s8469_s7 + $0xf00] sm:$0xff]  ;;  %v2368_v43 = vadd.f32 %v8976_v59, %v8974_v56 }
 0x1a4   : > { %13057 = vst [vmem:[#allocation20_spill] sm:$0xff] %v8978_v61  ;;  %v2369_v3 = vpop.f32.mrf.mxu0  ;;  %2915 = vmatprep.mubr.f32.mxu1 %v1422_v54  ;;  %3140 = vmatprep.mubr.f32.mxu0 %v624_v55  ;;  %v13058_v61 = vmov 0.0  }
 0x1a5   : > { %v2609_v6 = vpop.f32.mrf.mxu1  ;;  %3798 = vmatprep.subr.mxu0 %v13036_v0 }
 0x1a6   : > { %3799 = vmatpush2.msra.mxu0 %v1978_v62  ;;  %v1975_v62 = vld [vmem:[#allocation5 + $0x4e0] sm:$0xff] }
 0x1a7   : > { %v8987_v16 = vpop.f32.mrf.mxu0  ;;  %v2677_v17 = vpop.f32.mrf.mxu1  ;;  %2916 = vmatmul.mubr.f32.gmra.mxu1 %v1421_v4  ;;  %3141 = vmatmul.mubr.f32.gmra.mxu0 %v623_v5  ;;  %v1496_v4 = vld [vmem:[%s8469_s7 + $0x27e8] sm:$0xff]  ;;  %v698_v5 = vld [vmem:[%s8469_s7 + $0xef8] sm:$0xff] }
 0x1a8   : > { %v8989_v19 = vadd.f32 %v2677_v17, %v2293_v15  ;;  %2920 = vmatprep.mubr.f32.mxu1 %v1447_v8  ;;  %3145 = vmatprep.mubr.f32.mxu0 %v649_v9  ;;  %v1522_v9 = vld [vmem:[%s8469_s7 + $0x28b8] sm:$0xff]  ;;  %v724_v15 = vld [vmem:[%s8469_s7 + $0xfc8] sm:$0xff]  ;;  %v2373_v56 = vadd.f32 %v8976_v59, %v8987_v16 }
 0x1a9   : > { %v2374_v28 = vpop.f32.mrf.mxu0  ;;  %v2679_v29 = vpop.f32.mrf.mxu1  ;;  %3800 = vmatprep.subr.mxu0 %v13036_v0  ;;  %v1074_v16 = vld [vmem:[%s8469_s7 + $0x1ab8] sm:$0xff] }
 0x1aa   : > { %3801 = vmatpush2.msra.mxu0 %v1977_v18  ;;  %v1521_v28 = vld [vmem:[%s8469_s7 + $0x28b0] sm:$0xff]  ;;  %v723_v29 = vld [vmem:[%s8469_s7 + $0xfc0] sm:$0xff] }
 0x1ab   : > { %v8998_v36 = vpop.f32.mrf.mxu0  ;;  %v2682_v37 = vpop.f32.mrf.mxu1  ;;  %2921 = vmatmul.mubr.f32.gmra.mxu1 %v1446_v20  ;;  %3146 = vmatmul.mubr.f32.gmra.mxu0 %v648_v25  ;;  %v1974_v20 = vld [vmem:[#allocation5 + $0x4d8] sm:$0xff] }
 0x1ac   : > { %v9000_v41 = vadd.f32 %v2682_v37, %v2298_v63  ;;  %2925 = vmatprep.mubr.f32.mxu1 %v1472_v32  ;;  %3150 = vmatprep.mubr.f32.mxu0 %v674_v33  ;;  %v1547_v63 = vld [vmem:[%s8469_s7 + $0x2980] sm:$0xff]  ;;  %v749_v37 = vld [vmem:[%s8469_s7 + $0x1090] sm:$0xff] }
 0x1ad   : > { %v2379_v48 = vpop.f32.mrf.mxu0  ;;  %v2684_v49 = vpop.f32.mrf.mxu1  ;;  %3802 = vmatprep.subr.mxu0 %v13036_v0 }
 0x1ae   : > { %3803 = vmatpush2.msra.mxu0 %v1976_v38  ;;  %v1546_v49 = vld [vmem:[%s8469_s7 + $0x2978] sm:$0xff] }
 0x1af   : > { %v9009_v54 = vpop.f32.mrf.mxu0  ;;  %v2687_v55 = vpop.f32.mrf.mxu1  ;;  %2926 = vmatmul.mubr.f32.gmra.mxu1 %v1471_v42  ;;  %3151 = vmatmul.mubr.f32.gmra.mxu0 %v673_v47  ;;  %v1973_v47 = vld [vmem:[#allocation5 + $0x4d0] sm:$0xff] }
 0x1b0   : > { %v9011_v3 = vadd.f32 %v2687_v55, %v2303_v11  ;;  %2930 = vmatprep.mubr.f32.mxu1 %v1497_v50  ;;  %3155 = vmatprep.mubr.f32.mxu0 %v699_v53  ;;  %v748_v50 = vld [vmem:[%s8469_s7 + $0x1088] sm:$0xff] }
 0x1b1   : > { %v2384_v6 = vpop.f32.mrf.mxu0  ;;  %v2689_v8 = vpop.f32.mrf.mxu1  ;;  %3804 = vmatprep.subr.mxu0 %v13036_v0  ;;  %v1572_v55 = vld [vmem:[%s8469_s7 + $0x2a48] sm:$0xff] }
 0x1b2   : > { %3805 = vmatpush2.msra.mxu0 %v1975_v62  ;;  %v774_v62 = vld [vmem:[%s8469_s7 + $0x1158] sm:$0xff]  ;;  %v1972_v6 = vld [vmem:[#allocation5 + $0x4c8] sm:$0xff] }
 0x1b3   : > { %v9020_v17 = vpop.f32.mrf.mxu0  ;;  %v2692_v18 = vpop.f32.mrf.mxu1  ;;  %2931 = vmatmul.mubr.f32.gmra.mxu1 %v1496_v4  ;;  %3156 = vmatmul.mubr.f32.gmra.mxu0 %v698_v5 }
 0x1b4   : > { %v9022_v25 = vadd.f32 %v2692_v18, %v2308_v21  ;;  %2935 = vmatprep.mubr.f32.mxu1 %v1522_v9  ;;  %3160 = vmatprep.mubr.f32.mxu0 %v724_v15  ;;  %v1571_v9 = vld [vmem:[%s8469_s7 + $0x2a40] sm:$0xff]  ;;  %v773_v15 = vld [vmem:[%s8469_s7 + $0x1150] sm:$0xff] }
 0x1b5   : > { %v2389_v32 = vpop.f32.mrf.mxu0  ;;  %v2694_v33 = vpop.f32.mrf.mxu1  ;;  %3806 = vmatprep.subr.mxu0 %v13036_v0 }
 0x1b6   : > { %3807 = vmatpush2.msra.mxu0 %v1974_v20  ;;  %v1597_v20 = vld [vmem:[%s8469_s7 + $0x2b10] sm:$0xff]  ;;  %v1971_v33 = vld [vmem:[#allocation5 + $0x4c0] sm:$0xff] }
 0x1b7   : > { %v9031_v38 = vpop.f32.mrf.mxu0  ;;  %v2697_v42 = vpop.f32.mrf.mxu1  ;;  %2936 = vmatmul.mubr.f32.gmra.mxu1 %v1521_v28  ;;  %3161 = vmatmul.mubr.f32.gmra.mxu0 %v723_v29  ;;  %v799_v28 = vld [vmem:[%s8469_s7 + $0x1220] sm:$0xff] }
 0x1b8   : > { %v9033_v48 = vadd.f32 %v2697_v42, %v2313_v30  ;;  %2940 = vmatprep.mubr.f32.mxu1 %v1547_v63  ;;  %3165 = vmatprep.mubr.f32.mxu0 %v749_v37  ;;  %v1596_v37 = vld [vmem:[%s8469_s7 + $0x2b08] sm:$0xff]  ;;  %v798_v30 = vld [vmem:[%s8469_s7 + $0x1218] sm:$0xff] }
 0x1b9   : > { %v2394_v53 = vpop.f32.mrf.mxu0  ;;  %v2699_v11 = vpop.f32.mrf.mxu1  ;;  %3808 = vmatprep.subr.mxu0 %v13036_v0 }
 0x1ba   : > { %3809 = vmatpush2.msra.mxu0 %v1973_v47 }
 0x1bb   : > { %v9042_v4 = vpop.f32.mrf.mxu0  ;;  %v2702_v5 = vpop.f32.mrf.mxu1  ;;  %2941 = vmatmul.mubr.f32.gmra.mxu1 %v1546_v49  ;;  %3166 = vmatmul.mubr.f32.gmra.mxu0 %v748_v50  ;;  %v1622_v49 = vld [vmem:[%s8469_s7 + $0x2bd8] sm:$0xff]  ;;  %v824_v50 = vld [vmem:[%s8469_s7 + $0x12e8] sm:$0xff] }
 0x1bc   : > { %v9044_v8 = vadd.f32 %v2702_v5, %v2318_v39  ;;  %2945 = vmatprep.mubr.f32.mxu1 %v1572_v55  ;;  %3170 = vmatprep.mubr.f32.mxu0 %v774_v62  ;;  %v1970_v55 = vld [vmem:[#allocation5 + $0x4b8] sm:$0xff]  ;;  %v1621_v39 = vld [vmem:[%s8469_s7 + $0x2bd0] sm:$0xff]  ;;  %v823_v5 = vld [vmem:[%s8469_s7 + $0x12e0] sm:$0xff] }
 0x1bd   : > { %v2399_v21 = vpop.f32.mrf.mxu0  ;;  %v2704_v18 = vpop.f32.mrf.mxu1  ;;  %3810 = vmatprep.subr.mxu0 %v13036_v0 }
 0x1be   : > { %3811 = vmatpush2.msra.mxu0 %v1972_v6  ;;  %v849_v21 = vld [vmem:[%s8469_s7 + $0x13b0] sm:$0xff] }
 0x1bf   : > { %v9053_v29 = vpop.f32.mrf.mxu0  ;;  %v2707_v32 = vpop.f32.mrf.mxu1  ;;  %2946 = vmatmul.mubr.f32.gmra.mxu1 %v1571_v9  ;;  %3171 = vmatmul.mubr.f32.gmra.mxu0 %v773_v15  ;;  %v1647_v15 = vld [vmem:[%s8469_s7 + $0x2ca0] sm:$0xff] }
 0x1c0   : > { %v9055_v63 = vadd.f32 %v2707_v32, %v2323_v51  ;;  %2950 = vmatprep.mubr.f32.mxu1 %v1597_v20  ;;  %3175 = vmatprep.mubr.f32.mxu0 %v799_v28  ;;  %v1969_v28 = vld [vmem:[#allocation5 + $0x4b0] sm:$0xff]  ;;  %v1646_v32 = vld [vmem:[%s8469_s7 + $0x2c98] sm:$0xff] }
 0x1c1   : > { %v2404_v42 = vpop.f32.mrf.mxu0  ;;  %v2709_v47 = vpop.f32.mrf.mxu1  ;;  %3812 = vmatprep.subr.mxu0 %v13036_v0 }
 0x1c2   : > { %3813 = vmatpush2.msra.mxu0 %v1971_v33  ;;  %v848_v33 = vld [vmem:[%s8469_s7 + $0x13a8] sm:$0xff]  ;;  %v874_v47 = vld [vmem:[%s8469_s7 + $0x1478] sm:$0xff] }
 0x1c3   : > { %v9064_v53 = vpop.f32.mrf.mxu0  ;;  %v2712_v11 = vpop.f32.mrf.mxu1  ;;  %2951 = vmatmul.mubr.f32.gmra.mxu1 %v1596_v37  ;;  %3176 = vmatmul.mubr.f32.gmra.mxu0 %v798_v30  ;;  %v1672_v42 = vld [vmem:[%s8469_s7 + $0x2d68] sm:$0xff] }
 0x1c4   : > { %v9066_v62 = vadd.f32 %v2712_v11, %v2328_v60  ;;  %2955 = vmatprep.mubr.f32.mxu1 %v1622_v49  ;;  %3180 = vmatprep.mubr.f32.mxu0 %v824_v50  ;;  %v1968_v60 = vld [vmem:[#allocation5 + $0x4a8] sm:$0xff] }
 0x1c5   : > { %v2409_v6 = vpop.f32.mrf.mxu0  ;;  %v2714_v9 = vpop.f32.mrf.mxu1  ;;  %3814 = vmatprep.subr.mxu0 %v13036_v0 }
 0x1c6   : > { %3815 = vmatpush2.msra.mxu0 %v1970_v55  ;;  %v1671_v55 = vld [vmem:[%s8469_s7 + $0x2d60] sm:$0xff]  ;;  %v1697_v9 = vld [vmem:[%s8469_s7 + $0x2e30] sm:$0xff] }
 0x1c7   : > { %v9075_v18 = vpop.f32.mrf.mxu0  ;;  %v2717_v20 = vpop.f32.mrf.mxu1  ;;  %2956 = vmatmul.mubr.f32.gmra.mxu1 %v1621_v39  ;;  %3181 = vmatmul.mubr.f32.gmra.mxu0 %v823_v5  ;;  %v873_v39 = vld [vmem:[%s8469_s7 + $0x1470] sm:$0xff] }
 0x1c8   : > { %v9077_v51 = vadd.f32 %v2717_v20, %v2333_v10  ;;  %2960 = vmatprep.mubr.f32.mxu1 %v1647_v15  ;;  %3185 = vmatprep.mubr.f32.mxu0 %v849_v21  ;;  %v899_v15 = vld [vmem:[%s8469_s7 + $0x1540] sm:$0xff] }
 0x1c9   : > { %v2414_v37 = vpop.f32.mrf.mxu0  ;;  %v2719_v30 = vpop.f32.mrf.mxu1  ;;  %3816 = vmatprep.subr.mxu0 %v13036_v0  ;;  %v1967_v20 = vld [vmem:[#allocation5 + $0x4a0] sm:$0xff] }
 0x1ca   : > { %3817 = vmatpush2.msra.mxu0 %v1969_v28 }
 0x1cb   : > { %v9086_v49 = vpop.f32.mrf.mxu0  ;;  %v2722_v50 = vpop.f32.mrf.mxu1  ;;  %2961 = vmatmul.mubr.f32.gmra.mxu1 %v1646_v32  ;;  %3186 = vmatmul.mubr.f32.gmra.mxu0 %v848_v33  ;;  %v1696_v32 = vld [vmem:[%s8469_s7 + $0x2e28] sm:$0xff]  ;;  %v898_v33 = vld [vmem:[%s8469_s7 + $0x1538] sm:$0xff] }
 0x1cc   : > { %v9088_v11 = vadd.f32 %v2722_v50, %v2338_v23  ;;  %2965 = vmatprep.mubr.f32.mxu1 %v1672_v42  ;;  %3190 = vmatprep.mubr.f32.mxu0 %v874_v47  ;;  %v1722_v42 = vld [vmem:[%s8469_s7 + $0x2ef8] sm:$0xff]  ;;  %v924_v47 = vld [vmem:[%s8469_s7 + $0x1608] sm:$0xff] }
 0x1cd   : > { %v2419_v5 = vpop.f32.mrf.mxu0  ;;  %v2724_v6 = vpop.f32.mrf.mxu1  ;;  %3818 = vmatprep.subr.mxu0 %v13036_v0 }
 0x1ce   : > { %3819 = vmatpush2.msra.mxu0 %v1968_v60  ;;  %v1966_v60 = vld [vmem:[#allocation5 + $0x498] sm:$0xff]  ;;  %v923_v5 = vld [vmem:[%s8469_s7 + $0x1600] sm:$0xff] }
 0x1cf   : > { %v9097_v21 = vpop.f32.mrf.mxu0  ;;  %v2727_v10 = vpop.f32.mrf.mxu1  ;;  %2966 = vmatmul.mubr.f32.gmra.mxu1 %v1671_v55  ;;  %3191 = vmatmul.mubr.f32.gmra.mxu0 %v873_v39  ;;  %v1721_v39 = vld [vmem:[%s8469_s7 + $0x2ef0] sm:$0xff] }
 0x1d0   : > { %v9099_v28 = vadd.f32 %v2727_v10, %v2343_v34  ;;  %2970 = vmatprep.mubr.f32.mxu1 %v1697_v9  ;;  %3195 = vmatprep.mubr.f32.mxu0 %v899_v15  ;;  %v1747_v15 = vld [vmem:[%s8469_s7 + $0x2fc0] sm:$0xff]  ;;  %v949_v34 = vld [vmem:[%s8469_s7 + $0x16d0] sm:$0xff] }
 0x1d1   : > { %v2424_v37 = vpop.f32.mrf.mxu0  ;;  %v2729_v30 = vpop.f32.mrf.mxu1  ;;  %3820 = vmatprep.subr.mxu0 %v13036_v0 }
 0x1d2   : > { %3821 = vmatpush2.msra.mxu0 %v1967_v20  ;;  %v1746_v37 = vld [vmem:[%s8469_s7 + $0x2fb8] sm:$0xff]  ;;  %v948_v30 = vld [vmem:[%s8469_s7 + $0x16c8] sm:$0xff] }
 0x1d3   : > { %v9108_v23 = vpop.f32.mrf.mxu0  ;;  %v2732_v50 = vpop.f32.mrf.mxu1  ;;  %2971 = vmatmul.mubr.f32.gmra.mxu1 %v1696_v32  ;;  %3196 = vmatmul.mubr.f32.gmra.mxu0 %v898_v33  ;;  %v1965_v32 = vld [vmem:[#allocation5 + $0x490] sm:$0xff] }
 0x1d4   : > { %v9110_v55 = vadd.f32 %v2732_v50, %v2348_v45  ;;  %2975 = vmatprep.mubr.f32.mxu1 %v1722_v42  ;;  %3200 = vmatprep.mubr.f32.mxu0 %v924_v47  ;;  %v1772_v45 = vld [vmem:[%s8469_s7 + $0x3088] sm:$0xff]  ;;  %v974_v50 = vld [vmem:[%s8469_s7 + $0x1798] sm:$0xff] }
 0x1d5   : > { %v2429_v6 = vpop.f32.mrf.mxu0  ;;  %v2734_v9 = vpop.f32.mrf.mxu1  ;;  %3822 = vmatprep.subr.mxu0 %v13036_v0 }
 0x1d6   : > { %3823 = vmatpush2.msra.mxu0 %v1966_v60  ;;  %v1771_v9 = vld [vmem:[%s8469_s7 + $0x3080] sm:$0xff] }
 0x1d7   : > { %v9119_v10 = vpop.f32.mrf.mxu0  ;;  %v2737_v20 = vpop.f32.mrf.mxu1  ;;  %2976 = vmatmul.mubr.f32.gmra.mxu1 %v1721_v39  ;;  %3201 = vmatmul.mubr.f32.gmra.mxu0 %v923_v5  ;;  %v1964_v5 = vld [vmem:[#allocation5 + $0x488] sm:$0xff] }
 0x1d8   : > { %v9121_v33 = vadd.f32 %v2737_v20, %v2353_v57  ;;  %2980 = vmatprep.mubr.f32.mxu1 %v1747_v15  ;;  %3205 = vmatprep.mubr.f32.mxu0 %v949_v34  ;;  %v973_v15 = vld [vmem:[%s8469_s7 + $0x1790] sm:$0xff] }
 0x1d9   : > { %v2434_v42 = vpop.f32.mrf.mxu0  ;;  %v2739_v47 = vpop.f32.mrf.mxu1  ;;  %3824 = vmatprep.subr.mxu0 %v13036_v0  ;;  %v1797_v20 = vld [vmem:[%s8469_s7 + $0x3150] sm:$0xff] }
 0x1da   : > { %3825 = vmatpush2.msra.mxu0 %v1965_v32  ;;  %v999_v42 = vld [vmem:[%s8469_s7 + $0x1860] sm:$0xff]  ;;  %v1796_v47 = vld [vmem:[%s8469_s7 + $0x3148] sm:$0xff] }
 0x1db   : > { %v9130_v60 = vpop.f32.mrf.mxu0  ;;  %v2742_v39 = vpop.f32.mrf.mxu1  ;;  %2981 = vmatmul.mubr.f32.gmra.mxu1 %v1746_v37  ;;  %3206 = vmatmul.mubr.f32.gmra.mxu0 %v948_v30 }
 0x1dc   : > { %v9132_v6 = vadd.f32 %v2742_v39, %v2358_v7  ;;  %2985 = vmatprep.mubr.f32.mxu1 %v1772_v45  ;;  %3210 = vmatprep.mubr.f32.mxu0 %v974_v50  ;;  %v998_v45 = vld [vmem:[%s8469_s7 + $0x1858] sm:$0xff]  ;;  %v1963_v50 = vld [vmem:[#allocation5 + $0x480] sm:$0xff] }
 0x1dd   : > { %v2439_v34 = vpop.f32.mrf.mxu0  ;;  %v2744_v57 = vpop.f32.mrf.mxu1  ;;  %3826 = vmatprep.subr.mxu0 %v13036_v0 }
 0x1de   : > { %3827 = vmatpush2.msra.mxu0 %v1964_v5  ;;  %v1024_v34 = vld [vmem:[%s8469_s7 + $0x1928] sm:$0xff]  ;;  %v226_v57 = vld [vmem:[%s8469_s7 + $0x38] sm:$0xff] }
 0x1df   : > { %v9141_v32 = vpop.f32.mrf.mxu0  ;;  %v2747_v37 = vpop.f32.mrf.mxu1  ;;  %2986 = vmatmul.mubr.f32.gmra.mxu1 %v1771_v9  ;;  %3211 = vmatmul.mubr.f32.gmra.mxu0 %v973_v15 }
 0x1e0   : > { %v9143_v30 = vadd.f32 %v2747_v37, %v2363_v26  ;;  %2990 = vmatprep.mubr.f32.mxu1 %v1797_v20  ;;  %3215 = vmatprep.mubr.f32.mxu0 %v999_v42  ;;  %v1023_v20 = vld [vmem:[%s8469_s7 + $0x1920] sm:$0xff]  ;;  %v225_v42 = vld [vmem:[%s8469_s7 + $0x30] sm:$0xff] }
 0x1e1   : > { %v2444_v7 = vpop.f32.mrf.mxu0  ;;  %v2749_v39 = vpop.f32.mrf.mxu1  ;;  %3828 = vmatprep.subr.mxu0 %v13036_v0 }
 0x1e2   : > { %3829 = vmatpush2.msra.mxu0 %v1963_v50  ;;  %v1994_v7 = vld [vmem:[#allocation5 + $0x578] sm:$0xff]  ;;  %v1049_v39 = vld [vmem:[%s8469_s7 + $0x19f0] sm:$0xff] }
 0x1e3   : > { %v9152_v5 = vpop.f32.mrf.mxu0  ;;  %v2752_v9 = vpop.f32.mrf.mxu1  ;;  %2991 = vmatmul.mubr.f32.gmra.mxu1 %v1796_v47  ;;  %3216 = vmatmul.mubr.f32.gmra.mxu0 %v998_v45  ;;  %v251_v47 = vld [vmem:[%s8469_s7 + $0x100] sm:$0xff] }
 0x1e4   : > { %v9154_v15 = vadd.f32 %v2752_v9, %v2368_v43  ;;  %3220 = vmatprep.mubr.f32.mxu0 %v1024_v34  ;;  %3445 = vmatprep.mubr.f32.mxu1 %v226_v57  ;;  %v1993_v34 = vld [vmem:[#allocation5 + $0x570] sm:$0xff]  ;;  %v1048_v43 = vld [vmem:[%s8469_s7 + $0x19e8] sm:$0xff]  ;;  %v250_v9 = vld [vmem:[%s8469_s7 + $0xf8] sm:$0xff] }
 0x1e5   : > { %v2449_v26 = vpop.f32.mrf.mxu0  ;;  %v2754_v37 = vpop.f32.mrf.mxu1  ;;  %4536 = vmatprep.subr.mxu0 %v13036_v0  ;;  %v276_v0 = vld [vmem:[%s8469_s7 + $0x1c8] sm:$0xff] }
 0x1e7   : > { %v9163_v45 = vpop.f32.mrf.mxu0  ;;  %v2757_v50 = vpop.f32.mrf.mxu1  ;;  %3221 = vmatmul.mubr.f32.gmra.mxu0 %v1023_v20  ;;  %3446 = vmatmul.mubr.f32.vlgmr.msra.gmra.mxu1 %v225_v42  ;;  %v2378_v20 = vadd.f32 %v8976_v59, %v8998_v36  ;;  %v2383_v36 = vadd.f32 %v8976_v59, %v9009_v54  ;;  %v2388_v54 = vadd.f32 %v8976_v59, %v9020_v17 }
 0x1e8   : > { %v9165_v57 = vadd.f32 %v2757_v50, %v2373_v56  ;;  %4152 = vmatpush1.msra.mxu1 %v1994_v7  ;;  %3225 = vmatprep.mubr.f32.mxu0 %v1049_v39  ;;  %v1992_v39 = vld [vmem:[#allocation5 + $0x568] sm:$0xff]  ;;  %v275_v50 = vld [vmem:[%s8469_s7 + $0x1c0] sm:$0xff]  ;;  %v2393_v17 = vadd.f32 %v8976_v59, %v9031_v38  ;;  %v2398_v38 = vadd.f32 %v8976_v59, %v9042_v4 }
 0x1e9   : > { %v2454_v26 = vpop.f32.mrf.mxu0  ;;  %v2759_v37 = vpop.f32.mrf.mxu1  ;;  %3450 = vmatprep.mubr.f32.mxu1 %v251_v47  ;;  %4153 = vmatprep.subr.mxu1 %v13058_v61  ;;  %v1073_v47 = vld [vmem:[%s8469_s7 + $0x1ab0] sm:$0xff]  ;;  %v2403_v4 = vadd.f32 %v8976_v59, %v9053_v29  ;;  %v2408_v29 = vadd.f32 %v8976_v59, %v9064_v53  ;;  %v2413_v53 = vadd.f32 %v8976_v59, %v9075_v18 }
 0x1ea   : > { %4154 = vmatpush1.msra.mxu1 %v1993_v34  ;;  %v2418_v18 = vadd.f32 %v8976_v59, %v9086_v49  ;;  %v2423_v49 = vadd.f32 %v8976_v59, %v9097_v21  ;;  %v2428_v21 = vadd.f32 %v8976_v59, %v9108_v23  ;;  %v2433_v23 = vadd.f32 %v8976_v59, %v9119_v10 }
 0x1eb   : > { %v9174_v42 = vpop.f32.mrf.mxu0  ;;  %v2762_v7 = vpop.f32.mrf.mxu1  ;;  %3226 = vmatmul.mubr.f32.gmra.mxu0 %v1048_v43  ;;  %3451 = vmatmul.mubr.f32.gmra.mxu1 %v250_v9  ;;  %v2438_v10 = vadd.f32 %v8976_v59, %v9130_v60  ;;  %v9315_v59 = vld [vmem:[#allocation7] ss:$0 sm:$0xff] }
 0x1ec   : > { %v9176_v56 = vadd.f32 %v2762_v7, %v2378_v20  ;;  %3230 = vmatprep.mubr.f32.mxu0 %v1074_v16  ;;  %3455 = vmatprep.mubr.f32.mxu1 %v276_v0  ;;  %v1991_v0 = vld [vmem:[#allocation5 + $0x560] sm:$0xff]  ;;  %v1098_v16 = vld [vmem:[%s8469_s7 + $0x1b78] sm:$0xff]  ;;  %v300_v20 = vld [vmem:[%s8469_s7 + $0x288] sm:$0xff]  ;;  %v2443_v60 = vadd.f32 %v9315_v59, %v9141_v32  ;;  %v2448_v32 = vadd.f32 %v9315_v59, %v9152_v5 }
 0x1ed   : > { %v2459_v26 = vpop.f32.mrf.mxu0  ;;  %v2764_v37 = vpop.f32.mrf.mxu1  ;;  %4155 = vmatprep.subr.mxu1 %v13058_v61  ;;  %v2453_v5 = vadd.f32 %v9315_v59, %v9163_v45  ;;  %v1474_v45 = vld [vmem:[%s8469_s7 + $0x2738] sm:$0xff] }
 0x1ee   : > { %4156 = vmatpush1.msra.mxu1 %v1992_v39  ;;  %v1124_v37 = vld [vmem:[%s8469_s7 + $0x1c48] sm:$0xff] }
 0x1ef   : > { %v9185_v34 = vpop.f32.mrf.mxu0  ;;  %v2767_v43 = vpop.f32.mrf.mxu1  ;;  %3231 = vmatmul.mubr.f32.gmra.mxu0 %v1073_v47  ;;  %3456 = vmatmul.mubr.f32.gmra.mxu1 %v275_v50  ;;  %v1123_v50 = vld [vmem:[%s8469_s7 + $0x1c40] sm:$0xff] }
 0x1f0   : > { %v9187_v9 = vadd.f32 %v2767_v43, %v2383_v36  ;;  %3235 = vmatprep.mubr.f32.mxu0 %v1099_v44  ;;  %3460 = vmatprep.mubr.f32.mxu1 %v301_v27  ;;  %v1990_v27 = vld [vmem:[#allocation5 + $0x558] sm:$0xff]  ;;  %v325_v36 = vld [vmem:[%s8469_s7 + $0x350] sm:$0xff] }
 0x1f1   : > { %v2464_v7 = vpop.f32.mrf.mxu0  ;;  %v2769_v26 = vpop.f32.mrf.mxu1  ;;  %4157 = vmatprep.subr.mxu1 %v13058_v61 }
 0x1f2   : > { %4158 = vmatpush1.msra.mxu1 %v1991_v0  ;;  %v1149_v26 = vld [vmem:[%s8469_s7 + $0x1d10] sm:$0xff] }
 0x1f3   : > { %v9196_v39 = vpop.f32.mrf.mxu0  ;;  %v2772_v44 = vpop.f32.mrf.mxu1  ;;  %3236 = vmatmul.mubr.f32.gmra.mxu0 %v1098_v16  ;;  %3461 = vmatmul.mubr.f32.gmra.mxu1 %v300_v20 }
 0x1f4   : > { %v9198_v47 = vadd.f32 %v2772_v44, %v2388_v54  ;;  %3240 = vmatprep.mubr.f32.mxu0 %v1124_v37  ;;  %3465 = vmatprep.mubr.f32.mxu1 %v326_v14  ;;  %v1989_v14 = vld [vmem:[#allocation5 + $0x550] sm:$0xff]  ;;  %v1148_v37 = vld [vmem:[%s8469_s7 + $0x1d08] sm:$0xff]  ;;  %v350_v54 = vld [vmem:[%s8469_s7 + $0x418] sm:$0xff] }
 0x1f5   : > { %v2469_v43 = vpop.f32.mrf.mxu0  ;;  %v2774_v7 = vpop.f32.mrf.mxu1  ;;  %4159 = vmatprep.subr.mxu1 %v13058_v61 }
 0x1f6   : > { %4160 = vmatpush1.msra.mxu1 %v1990_v27  ;;  %v1174_v7 = vld [vmem:[%s8469_s7 + $0x1dd8] sm:$0xff] }
 0x1f7   : > { %v9207_v0 = vpop.f32.mrf.mxu0  ;;  %v2777_v16 = vpop.f32.mrf.mxu1  ;;  %3241 = vmatmul.mubr.f32.gmra.mxu0 %v1123_v50  ;;  %3466 = vmatmul.mubr.f32.gmra.mxu1 %v325_v36 }
 0x1f8   : > { %v9209_v20 = vadd.f32 %v2777_v16, %v2393_v17  ;;  %3245 = vmatprep.mubr.f32.mxu0 %v1149_v26  ;;  %3470 = vmatprep.mubr.f32.mxu1 %v351_v58  ;;  %v1988_v58 = vld [vmem:[#allocation5 + $0x548] sm:$0xff]  ;;  %v1173_v26 = vld [vmem:[%s8469_s7 + $0x1dd0] sm:$0xff]  ;;  %v375_v17 = vld [vmem:[%s8469_s7 + $0x4e0] sm:$0xff] }
 0x1f9   : > { %v2474_v44 = vpop.f32.mrf.mxu0  ;;  %v2779_v43 = vpop.f32.mrf.mxu1  ;;  %4161 = vmatprep.subr.mxu1 %v13058_v61 }
 0x1fa   : > { %4162 = vmatpush1.msra.mxu1 %v1989_v14  ;;  %v1199_v43 = vld [vmem:[%s8469_s7 + $0x1ea0] sm:$0xff] }
 0x1fb   : > { %v9218_v27 = vpop.f32.mrf.mxu0  ;;  %v2782_v50 = vpop.f32.mrf.mxu1  ;;  %3246 = vmatmul.mubr.f32.gmra.mxu0 %v1148_v37  ;;  %3471 = vmatmul.mubr.f32.gmra.mxu1 %v350_v54 }
 0x1fc   : > { %v9220_v36 = vadd.f32 %v2782_v50, %v2398_v38  ;;  %3250 = vmatprep.mubr.f32.mxu0 %v1174_v7  ;;  %3475 = vmatprep.mubr.f32.mxu1 %v376_v46  ;;  %v1987_v46 = vld [vmem:[#allocation5 + $0x540] sm:$0xff]  ;;  %v1198_v7 = vld [vmem:[%s8469_s7 + $0x1e98] sm:$0xff]  ;;  %v400_v38 = vld [vmem:[%s8469_s7 + $0x5a8] sm:$0xff] }
 0x1fd   : > { %v2479_v16 = vpop.f32.mrf.mxu0  ;;  %v2784_v44 = vpop.f32.mrf.mxu1  ;;  %4163 = vmatprep.subr.mxu1 %v13058_v61 }
 0x1fe   : > { %4164 = vmatpush1.msra.mxu1 %v1988_v58  ;;  %v1224_v44 = vld [vmem:[%s8469_s7 + $0x1f68] sm:$0xff] }
 0x1ff   : > { %v9229_v14 = vpop.f32.mrf.mxu0  ;;  %v2787_v37 = vpop.f32.mrf.mxu1  ;;  %3251 = vmatmul.mubr.f32.gmra.mxu0 %v1173_v26  ;;  %3476 = vmatmul.mubr.f32.gmra.mxu1 %v375_v17 }
 0x200   : > { %v9231_v54 = vadd.f32 %v2787_v37, %v2403_v4  ;;  %3255 = vmatprep.mubr.f32.mxu0 %v1199_v43  ;;  %3480 = vmatprep.mubr.f32.mxu1 %v401_v35  ;;  %v1986_v35 = vld [vmem:[#allocation5 + $0x538] sm:$0xff]  ;;  %v1223_v43 = vld [vmem:[%s8469_s7 + $0x1f60] sm:$0xff]  ;;  %v425_v4 = vld [vmem:[%s8469_s7 + $0x670] sm:$0xff] }
 0x201   : > { %v2484_v50 = vpop.f32.mrf.mxu0  ;;  %v2789_v16 = vpop.f32.mrf.mxu1  ;;  %4165 = vmatprep.subr.mxu1 %v13058_v61 }
 0x202   : > { %4166 = vmatpush1.msra.mxu1 %v1987_v46  ;;  %v1249_v16 = vld [vmem:[%s8469_s7 + $0x2030] sm:$0xff] }
 0x203   : > { %v9240_v58 = vpop.f32.mrf.mxu0  ;;  %v2792_v26 = vpop.f32.mrf.mxu1  ;;  %3256 = vmatmul.mubr.f32.gmra.mxu0 %v1198_v7  ;;  %3481 = vmatmul.mubr.f32.gmra.mxu1 %v400_v38 }
 0x204   : > { %v9242_v17 = vadd.f32 %v2792_v26, %v2408_v29  ;;  %3260 = vmatprep.mubr.f32.mxu0 %v1224_v44  ;;  %3485 = vmatprep.mubr.f32.mxu1 %v426_v24  ;;  %v1985_v24 = vld [vmem:[#allocation5 + $0x530] sm:$0xff]  ;;  %v1248_v44 = vld [vmem:[%s8469_s7 + $0x2028] sm:$0xff]  ;;  %v450_v29 = vld [vmem:[%s8469_s7 + $0x738] sm:$0xff] }
 0x205   : > { %v2489_v37 = vpop.f32.mrf.mxu0  ;;  %v2794_v50 = vpop.f32.mrf.mxu1  ;;  %4167 = vmatprep.subr.mxu1 %v13058_v61 }
 0x206   : > { %13059 = vst [vmem:[#allocation21_spill] sm:$0xff] %v9242_v17  ;;  %4168 = vmatpush1.msra.mxu1 %v1986_v35  ;;  %v1274_v50 = vld [vmem:[%s8469_s7 + $0x20f8] sm:$0xff]  ;;  %v476_v17 = vld [vmem:[%s8469_s7 + $0x808] sm:$0xff] }
 0x207   : > { %v9251_v46 = vpop.f32.mrf.mxu0  ;;  %v2797_v7 = vpop.f32.mrf.mxu1  ;;  %3261 = vmatmul.mubr.f32.gmra.mxu0 %v1223_v43  ;;  %3486 = vmatmul.mubr.f32.gmra.mxu1 %v425_v4 }
 0x208   : > { %v9253_v38 = vadd.f32 %v2797_v7, %v2413_v53  ;;  %3265 = vmatprep.mubr.f32.mxu0 %v1249_v16  ;;  %3490 = vmatprep.mubr.f32.mxu1 %v451_v13  ;;  %v1984_v13 = vld [vmem:[#allocation5 + $0x528] sm:$0xff]  ;;  %v1273_v16 = vld [vmem:[%s8469_s7 + $0x20f0] sm:$0xff]  ;;  %v475_v53 = vld [vmem:[%s8469_s7 + $0x800] sm:$0xff] }
 0x209   : > { %v2494_v26 = vpop.f32.mrf.mxu0  ;;  %v2799_v37 = vpop.f32.mrf.mxu1  ;;  %4169 = vmatprep.subr.mxu1 %v13058_v61 }
 0x20a   : > { %13060 = vst [vmem:[#allocation22_spill] sm:$0xff] %v9253_v38  ;;  %4170 = vmatpush1.msra.mxu1 %v1985_v24  ;;  %v1299_v37 = vld [vmem:[%s8469_s7 + $0x21c0] sm:$0xff]  ;;  %v501_v38 = vld [vmem:[%s8469_s7 + $0x8d0] sm:$0xff] }
 0x20b   : > { %v9262_v35 = vpop.f32.mrf.mxu0  ;;  %v2802_v43 = vpop.f32.mrf.mxu1  ;;  %3266 = vmatmul.mubr.f32.gmra.mxu0 %v1248_v44  ;;  %3491 = vmatmul.mubr.f32.gmra.mxu1 %v450_v29 }
 0x20c   : > { %v9264_v4 = vadd.f32 %v2802_v43, %v2418_v18  ;;  %3270 = vmatprep.mubr.f32.mxu0 %v1274_v50  ;;  %3495 = vmatprep.mubr.f32.mxu1 %v476_v17  ;;  %v1983_v17 = vld [vmem:[#allocation5 + $0x520] sm:$0xff]  ;;  %v1298_v50 = vld [vmem:[%s8469_s7 + $0x21b8] sm:$0xff]  ;;  %v500_v18 = vld [vmem:[%s8469_s7 + $0x8c8] sm:$0xff] }
 0x20d   : > { %v2499_v7 = vpop.f32.mrf.mxu0  ;;  %v2804_v26 = vpop.f32.mrf.mxu1  ;;  %4171 = vmatprep.subr.mxu1 %v13058_v61 }
 0x20e   : > { %13061 = vst [vmem:[#allocation23_spill] sm:$0xff] %v9264_v4  ;;  %4172 = vmatpush1.msra.mxu1 %v1984_v13  ;;  %v1324_v26 = vld [vmem:[%s8469_s7 + $0x2288] sm:$0xff]  ;;  %v526_v4 = vld [vmem:[%s8469_s7 + $0x998] sm:$0xff] }
 0x20f   : > { %v9273_v24 = vpop.f32.mrf.mxu0  ;;  %v2807_v44 = vpop.f32.mrf.mxu1  ;;  %3271 = vmatmul.mubr.f32.gmra.mxu0 %v1273_v16  ;;  %3496 = vmatmul.mubr.f32.gmra.mxu1 %v475_v53 }
 0x210   : > { %v9275_v29 = vadd.f32 %v2807_v44, %v2423_v49  ;;  %3275 = vmatprep.mubr.f32.mxu0 %v1299_v37  ;;  %3500 = vmatprep.mubr.f32.mxu1 %v501_v38  ;;  %v1982_v38 = vld [vmem:[#allocation5 + $0x518] sm:$0xff]  ;;  %v1323_v37 = vld [vmem:[%s8469_s7 + $0x2280] sm:$0xff]  ;;  %v525_v49 = vld [vmem:[%s8469_s7 + $0x990] sm:$0xff] }
 0x211   : > { %v2504_v43 = vpop.f32.mrf.mxu0  ;;  %v2809_v7 = vpop.f32.mrf.mxu1  ;;  %4173 = vmatprep.subr.mxu1 %v13058_v61 }
 0x212   : > { %13062 = vst [vmem:[#allocation24_spill] sm:$0xff] %v9275_v29  ;;  %4174 = vmatpush1.msra.mxu1 %v1983_v17  ;;  %v1349_v7 = vld [vmem:[%s8469_s7 + $0x2350] sm:$0xff]  ;;  %v551_v29 = vld [vmem:[%s8469_s7 + $0xa60] sm:$0xff] }
 0x213   : > { %v9284_v13 = vpop.f32.mrf.mxu0  ;;  %v2812_v16 = vpop.f32.mrf.mxu1  ;;  %3276 = vmatmul.mubr.f32.gmra.mxu0 %v1298_v50  ;;  %3501 = vmatmul.mubr.f32.gmra.mxu1 %v500_v18 }
 0x214   : > { %v9286_v53 = vadd.f32 %v2812_v16, %v2428_v21  ;;  %3280 = vmatprep.mubr.f32.mxu0 %v1324_v26  ;;  %3505 = vmatprep.mubr.f32.mxu1 %v526_v4  ;;  %v1981_v4 = vld [vmem:[#allocation5 + $0x510] sm:$0xff]  ;;  %v1348_v26 = vld [vmem:[%s8469_s7 + $0x2348] sm:$0xff]  ;;  %v550_v21 = vld [vmem:[%s8469_s7 + $0xa58] sm:$0xff] }
 0x215   : > { %v2509_v44 = vpop.f32.mrf.mxu0  ;;  %v2814_v43 = vpop.f32.mrf.mxu1  ;;  %4175 = vmatprep.subr.mxu1 %v13058_v61 }
 0x216   : > { %13063 = vst [vmem:[#allocation25_spill] sm:$0xff] %v9286_v53  ;;  %4176 = vmatpush1.msra.mxu1 %v1982_v38  ;;  %v1374_v43 = vld [vmem:[%s8469_s7 + $0x2418] sm:$0xff]  ;;  %v576_v53 = vld [vmem:[%s8469_s7 + $0xb28] sm:$0xff] }
 0x217   : > { %v9295_v17 = vpop.f32.mrf.mxu0  ;;  %v2817_v50 = vpop.f32.mrf.mxu1  ;;  %3281 = vmatmul.mubr.f32.gmra.mxu0 %v1323_v37  ;;  %3506 = vmatmul.mubr.f32.gmra.mxu1 %v525_v49 }
 0x218   : > { %v9297_v18 = vadd.f32 %v2817_v50, %v2433_v23  ;;  %3285 = vmatprep.mubr.f32.mxu0 %v1349_v7  ;;  %3510 = vmatprep.mubr.f32.mxu1 %v551_v29  ;;  %v1980_v29 = vld [vmem:[#allocation5 + $0x508] sm:$0xff]  ;;  %v1373_v7 = vld [vmem:[%s8469_s7 + $0x2410] sm:$0xff]  ;;  %v575_v23 = vld [vmem:[%s8469_s7 + $0xb20] sm:$0xff] }
 0x219   : > { %v2514_v16 = vpop.f32.mrf.mxu0  ;;  %v2819_v44 = vpop.f32.mrf.mxu1  ;;  %4177 = vmatprep.subr.mxu1 %v13058_v61 }
 0x21a   : > { %13064 = vst [vmem:[#allocation26_spill] sm:$0xff] %v9297_v18  ;;  %4178 = vmatpush1.msra.mxu1 %v1981_v4  ;;  %v1399_v44 = vld [vmem:[%s8469_s7 + $0x24e0] sm:$0xff]  ;;  %v601_v18 = vld [vmem:[%s8469_s7 + $0xbf0] sm:$0xff] }
 0x21b   : > { %v9306_v38 = vpop.f32.mrf.mxu0  ;;  %v2822_v37 = vpop.f32.mrf.mxu1  ;;  %3286 = vmatmul.mubr.f32.gmra.mxu0 %v1348_v26  ;;  %3511 = vmatmul.mubr.f32.gmra.mxu1 %v550_v21  ;;  %v1979_v26 = vld [vmem:[#allocation5 + $0x500] sm:$0xff] }
 0x21c   : > { %v9308_v49 = vadd.f32 %v2822_v37, %v2438_v10  ;;  %3290 = vmatprep.mubr.f32.mxu0 %v1374_v43  ;;  %3515 = vmatprep.mubr.f32.mxu1 %v576_v53  ;;  %v1398_v43 = vld [vmem:[%s8469_s7 + $0x24d8] sm:$0xff]  ;;  %v600_v10 = vld [vmem:[%s8469_s7 + $0xbe8] sm:$0xff] }
 0x21d   : > { %v2519_v50 = vpop.f32.mrf.mxu0  ;;  %v2824_v16 = vpop.f32.mrf.mxu1  ;;  %4179 = vmatprep.subr.mxu1 %v13058_v61 }
 0x21e   : > { %13065 = vst [vmem:[#allocation27_spill] sm:$0xff] %v9308_v49  ;;  %4180 = vmatpush1.msra.mxu1 %v1980_v29  ;;  %v1424_v16 = vld [vmem:[%s8469_s7 + $0x25a8] sm:$0xff]  ;;  %v626_v49 = vld [vmem:[%s8469_s7 + $0xcb8] sm:$0xff] }
 0x21f   : > { %v9319_v4 = vpop.f32.mrf.mxu0  ;;  %v2827_v53 = vpop.f32.mrf.mxu1  ;;  %3291 = vmatmul.mubr.f32.gmra.mxu0 %v1373_v7  ;;  %3516 = vmatmul.mubr.f32.gmra.mxu1 %v575_v23 }
 0x220   : > { %v9321_v21 = vadd.f32 %v2827_v53, %v2443_v60  ;;  %3295 = vmatprep.mubr.f32.mxu0 %v1399_v44  ;;  %3520 = vmatprep.mubr.f32.mxu1 %v601_v18  ;;  %v2010_v18 = vld [vmem:[#allocation5 + $0x5f8] sm:$0xff]  ;;  %v1423_v44 = vld [vmem:[%s8469_s7 + $0x25a0] sm:$0xff]  ;;  %v625_v60 = vld [vmem:[%s8469_s7 + $0xcb0] sm:$0xff] }
 0x221   : > { %v2524_v37 = vpop.f32.mrf.mxu0  ;;  %v2829_v50 = vpop.f32.mrf.mxu1  ;;  %4181 = vmatprep.subr.mxu1 %v13058_v61 }
 0x222   : > { %13066 = vst [vmem:[#allocation28_spill] sm:$0xff] %v9321_v21  ;;  %4182 = vmatpush1.msra.mxu1 %v1979_v26  ;;  %v1449_v50 = vld [vmem:[%s8469_s7 + $0x2670] sm:$0xff]  ;;  %v651_v21 = vld [vmem:[%s8469_s7 + $0xd80] sm:$0xff] }
 0x223   : > { %v9330_v29 = vpop.f32.mrf.mxu0  ;;  %v2832_v7 = vpop.f32.mrf.mxu1  ;;  %3296 = vmatmul.mubr.f32.gmra.mxu0 %v1398_v43  ;;  %3521 = vmatmul.mubr.f32.gmra.mxu1 %v600_v10 }
 0x224   : > { %v9332_v23 = vadd.f32 %v2832_v7, %v2448_v32  ;;  %3300 = vmatprep.mubr.f32.mxu0 %v1424_v16  ;;  %3525 = vmatprep.mubr.f32.mxu1 %v626_v49  ;;  %v2009_v49 = vld [vmem:[#allocation5 + $0x5f0] sm:$0xff]  ;;  %v1448_v32 = vld [vmem:[%s8469_s7 + $0x2668] sm:$0xff]  ;;  %v650_v7 = vld [vmem:[%s8469_s7 + $0xd78] sm:$0xff] }
 0x225   : > { %v2529_v53 = vpop.f32.mrf.mxu0  ;;  %v2834_v37 = vpop.f32.mrf.mxu1  ;;  %4183 = vmatprep.subr.mxu1 %v13058_v61 }
 0x226   : > { %4184 = vmatpush2.msra.mxu1 %v2010_v18  ;;  %v676_v18 = vld [vmem:[%s8469_s7 + $0xe48] sm:$0xff] }
 0x227   : > { %v2837_v26 = vpop.f32.mrf.mxu1  ;;  %v3062_v43 = vpop.f32.mrf.mxu0  ;;  %3301 = vmatmul.mubr.f32.gmra.mxu0 %v1423_v44  ;;  %3526 = vmatmul.mubr.f32.gmra.mxu1 %v625_v60  ;;  %v2458_v44 = vadd.f32 %v9315_v59, %v9174_v42  ;;  %v1499_v42 = vld [vmem:[%s8469_s7 + $0x2800] sm:$0xff] }
 0x228   : > { %v9341_v10 = vadd.f32 %v2837_v26, %v2453_v5  ;;  %v9344_v16 = vadd.f32 %v3062_v43, %v8989_v19  ;;  %3305 = vmatprep.mubr.f32.mxu0 %v1449_v50  ;;  %3530 = vmatprep.mubr.f32.mxu1 %v651_v21  ;;  %v2008_v21 = vld [vmem:[#allocation5 + $0x5e8] sm:$0xff]  ;;  %v1473_v26 = vld [vmem:[%s8469_s7 + $0x2730] sm:$0xff]  ;;  %v675_v43 = vld [vmem:[%s8469_s7 + $0xe40] sm:$0xff] }
 0x229   : > { %v2839_v53 = vpop.f32.mrf.mxu1  ;;  %v3064_v37 = vpop.f32.mrf.mxu0  ;;  %4185 = vmatprep.subr.mxu1 %v13058_v61 }
 0x22a   : > { %4186 = vmatpush2.msra.mxu1 %v2009_v49  ;;  %v701_v49 = vld [vmem:[%s8469_s7 + $0xf10] sm:$0xff] }
 0x22b   : > { %v2842_v19 = vpop.f32.mrf.mxu1  ;;  %v3067_v60 = vpop.f32.mrf.mxu0  ;;  %3306 = vmatmul.mubr.f32.gmra.mxu0 %v1448_v32  ;;  %3531 = vmatmul.mubr.f32.gmra.mxu1 %v650_v7  ;;  %v2463_v32 = vadd.f32 %v9315_v59, %v9185_v34  ;;  %v1524_v34 = vld [vmem:[%s8469_s7 + $0x28c8] sm:$0xff] }
 0x22c   : > { %v9353_v50 = vadd.f32 %v2842_v19, %v2458_v44  ;;  %v9356_v5 = vadd.f32 %v3067_v60, %v9000_v41  ;;  %3310 = vmatprep.mubr.f32.mxu0 %v1474_v45  ;;  %3535 = vmatprep.mubr.f32.mxu1 %v676_v18  ;;  %v2007_v45 = vld [vmem:[#allocation5 + $0x5e0] sm:$0xff]  ;;  %v1498_v19 = vld [vmem:[%s8469_s7 + $0x27f8] sm:$0xff]  ;;  %v700_v60 = vld [vmem:[%s8469_s7 + $0xf08] sm:$0xff] }
 0x22d   : > { %v2844_v53 = vpop.f32.mrf.mxu1  ;;  %v3069_v37 = vpop.f32.mrf.mxu0  ;;  %4187 = vmatprep.subr.mxu1 %v13058_v61 }
 0x22e   : > { %4188 = vmatpush2.msra.mxu1 %v2008_v21  ;;  %v726_v21 = vld [vmem:[%s8469_s7 + $0xfd8] sm:$0xff] }
 0x22f   : > { %v2847_v41 = vpop.f32.mrf.mxu1  ;;  %v3072_v7 = vpop.f32.mrf.mxu0  ;;  %3311 = vmatmul.mubr.f32.gmra.mxu0 %v1473_v26  ;;  %3536 = vmatmul.mubr.f32.gmra.mxu1 %v675_v43  ;;  %v2468_v26 = vadd.f32 %v9315_v59, %v9196_v39  ;;  %v1549_v39 = vld [vmem:[%s8469_s7 + $0x2990] sm:$0xff] }
 0x230   : > { %v9365_v18 = vadd.f32 %v2847_v41, %v2463_v32  ;;  %v9368_v44 = vadd.f32 %v3072_v7, %v9011_v3  ;;  %3315 = vmatprep.mubr.f32.mxu0 %v1499_v42  ;;  %3540 = vmatprep.mubr.f32.mxu1 %v701_v49  ;;  %v2006_v42 = vld [vmem:[#allocation5 + $0x5d8] sm:$0xff]  ;;  %v1523_v41 = vld [vmem:[%s8469_s7 + $0x28c0] sm:$0xff]  ;;  %v725_v7 = vld [vmem:[%s8469_s7 + $0xfd0] sm:$0xff] }
 0x231   : > { %v2849_v53 = vpop.f32.mrf.mxu1  ;;  %v3074_v37 = vpop.f32.mrf.mxu0  ;;  %4189 = vmatprep.subr.mxu1 %v13058_v61 }
 0x232   : > { %4190 = vmatpush2.msra.mxu1 %v2007_v45  ;;  %v751_v45 = vld [vmem:[%s8469_s7 + $0x10a0] sm:$0xff] }
 0x233   : > { %v2852_v3 = vpop.f32.mrf.mxu1  ;;  %v3077_v43 = vpop.f32.mrf.mxu0  ;;  %3316 = vmatmul.mubr.f32.gmra.mxu0 %v1498_v19  ;;  %3541 = vmatmul.mubr.f32.gmra.mxu1 %v700_v60  ;;  %v2473_v19 = vadd.f32 %v9315_v59, %v9207_v0  ;;  %v1574_v0 = vld [vmem:[%s8469_s7 + $0x2a58] sm:$0xff] }
 0x234   : > { %v9377_v49 = vadd.f32 %v2852_v3, %v2468_v26  ;;  %v9380_v32 = vadd.f32 %v3077_v43, %v9022_v25  ;;  %3320 = vmatprep.mubr.f32.mxu0 %v1524_v34  ;;  %3545 = vmatprep.mubr.f32.mxu1 %v726_v21  ;;  %v2005_v34 = vld [vmem:[#allocation5 + $0x5d0] sm:$0xff]  ;;  %v1548_v3 = vld [vmem:[%s8469_s7 + $0x2988] sm:$0xff]  ;;  %v750_v43 = vld [vmem:[%s8469_s7 + $0x1098] sm:$0xff] }
 0x235   : > { %v2854_v53 = vpop.f32.mrf.mxu1  ;;  %v3079_v37 = vpop.f32.mrf.mxu0  ;;  %4191 = vmatprep.subr.mxu1 %v13058_v61 }
 0x236   : > { %4192 = vmatpush2.msra.mxu1 %v2006_v42  ;;  %v776_v42 = vld [vmem:[%s8469_s7 + $0x1168] sm:$0xff] }
 0x237   : > { %v2857_v25 = vpop.f32.mrf.mxu1  ;;  %v3082_v60 = vpop.f32.mrf.mxu0  ;;  %3321 = vmatmul.mubr.f32.gmra.mxu0 %v1523_v41  ;;  %3546 = vmatmul.mubr.f32.gmra.mxu1 %v725_v7  ;;  %v2478_v41 = vadd.f32 %v9315_v59, %v9218_v27  ;;  %v1599_v27 = vld [vmem:[%s8469_s7 + $0x2b20] sm:$0xff] }
 0x238   : > { %v9389_v21 = vadd.f32 %v2857_v25, %v2473_v19  ;;  %v9392_v26 = vadd.f32 %v3082_v60, %v9033_v48  ;;  %3325 = vmatprep.mubr.f32.mxu0 %v1549_v39  ;;  %3550 = vmatprep.mubr.f32.mxu1 %v751_v45  ;;  %v2004_v39 = vld [vmem:[#allocation5 + $0x5c8] sm:$0xff]  ;;  %v1573_v25 = vld [vmem:[%s8469_s7 + $0x2a50] sm:$0xff]  ;;  %v775_v60 = vld [vmem:[%s8469_s7 + $0x1160] sm:$0xff] }
 0x239   : > { %v2859_v53 = vpop.f32.mrf.mxu1  ;;  %v3084_v37 = vpop.f32.mrf.mxu0  ;;  %4193 = vmatprep.subr.mxu1 %v13058_v61 }
 0x23a   : > { %4194 = vmatpush2.msra.mxu1 %v2005_v34  ;;  %v801_v34 = vld [vmem:[%s8469_s7 + $0x1230] sm:$0xff] }
 0x23b   : > { %v2862_v48 = vpop.f32.mrf.mxu1  ;;  %v3087_v7 = vpop.f32.mrf.mxu0  ;;  %3326 = vmatmul.mubr.f32.gmra.mxu0 %v1548_v3  ;;  %3551 = vmatmul.mubr.f32.gmra.mxu1 %v750_v43  ;;  %v2483_v3 = vadd.f32 %v9315_v59, %v9229_v14  ;;  %v1624_v14 = vld [vmem:[%s8469_s7 + $0x2be8] sm:$0xff] }
 0x23c   : > { %v9401_v45 = vadd.f32 %v2862_v48, %v2478_v41  ;;  %v9404_v19 = vadd.f32 %v3087_v7, %v9044_v8  ;;  %3330 = vmatprep.mubr.f32.mxu0 %v1574_v0  ;;  %3555 = vmatprep.mubr.f32.mxu1 %v776_v42  ;;  %v2003_v0 = vld [vmem:[#allocation5 + $0x5c0] sm:$0xff]  ;;  %v1598_v48 = vld [vmem:[%s8469_s7 + $0x2b18] sm:$0xff]  ;;  %v800_v7 = vld [vmem:[%s8469_s7 + $0x1228] sm:$0xff] }
 0x23d   : > { %v2864_v53 = vpop.f32.mrf.mxu1  ;;  %v3089_v37 = vpop.f32.mrf.mxu0  ;;  %4195 = vmatprep.subr.mxu1 %v13058_v61 }
 0x23e   : > { %4196 = vmatpush2.msra.mxu1 %v2004_v39  ;;  %v826_v39 = vld [vmem:[%s8469_s7 + $0x12f8] sm:$0xff] }
 0x23f   : > { %v2867_v8 = vpop.f32.mrf.mxu1  ;;  %v3092_v43 = vpop.f32.mrf.mxu0  ;;  %3331 = vmatmul.mubr.f32.gmra.mxu0 %v1573_v25  ;;  %3556 = vmatmul.mubr.f32.gmra.mxu1 %v775_v60  ;;  %v2488_v25 = vadd.f32 %v9315_v59, %v9240_v58  ;;  %v1649_v58 = vld [vmem:[%s8469_s7 + $0x2cb0] sm:$0xff] }
 0x240   : > { %v9413_v42 = vadd.f32 %v2867_v8, %v2483_v3  ;;  %v9416_v41 = vadd.f32 %v3092_v43, %v9055_v63  ;;  %3335 = vmatprep.mubr.f32.mxu0 %v1599_v27  ;;  %3560 = vmatprep.mubr.f32.mxu1 %v801_v34  ;;  %v2002_v27 = vld [vmem:[#allocation5 + $0x5b8] sm:$0xff]  ;;  %v1623_v8 = vld [vmem:[%s8469_s7 + $0x2be0] sm:$0xff]  ;;  %v825_v43 = vld [vmem:[%s8469_s7 + $0x12f0] sm:$0xff] }
 0x241   : > { %v2869_v53 = vpop.f32.mrf.mxu1  ;;  %v3094_v37 = vpop.f32.mrf.mxu0  ;;  %4197 = vmatprep.subr.mxu1 %v13058_v61 }
 0x242   : > { %4198 = vmatpush2.msra.mxu1 %v2003_v0  ;;  %v851_v0 = vld [vmem:[%s8469_s7 + $0x13c0] sm:$0xff] }
 0x243   : > { %v2872_v63 = vpop.f32.mrf.mxu1  ;;  %v3097_v60 = vpop.f32.mrf.mxu0  ;;  %3336 = vmatmul.mubr.f32.gmra.mxu0 %v1598_v48  ;;  %3561 = vmatmul.mubr.f32.gmra.mxu1 %v800_v7  ;;  %v2493_v48 = vadd.f32 %v9315_v59, %v9251_v46  ;;  %v1674_v46 = vld [vmem:[%s8469_s7 + $0x2d78] sm:$0xff] }
 0x244   : > { %v9425_v34 = vadd.f32 %v2872_v63, %v2488_v25  ;;  %v9428_v3 = vadd.f32 %v3097_v60, %v9066_v62  ;;  %3340 = vmatprep.mubr.f32.mxu0 %v1624_v14  ;;  %3565 = vmatprep.mubr.f32.mxu1 %v826_v39  ;;  %v2001_v14 = vld [vmem:[#allocation5 + $0x5b0] sm:$0xff]  ;;  %v1648_v63 = vld [vmem:[%s8469_s7 + $0x2ca8] sm:$0xff]  ;;  %v850_v60 = vld [vmem:[%s8469_s7 + $0x13b8] sm:$0xff] }
 0x245   : > { %v2874_v53 = vpop.f32.mrf.mxu1  ;;  %v3099_v37 = vpop.f32.mrf.mxu0  ;;  %4199 = vmatprep.subr.mxu1 %v13058_v61 }
 0x246   : > { %4200 = vmatpush2.msra.mxu1 %v2002_v27  ;;  %v876_v27 = vld [vmem:[%s8469_s7 + $0x1488] sm:$0xff] }
 0x247   : > { %v2877_v62 = vpop.f32.mrf.mxu1  ;;  %v3102_v7 = vpop.f32.mrf.mxu0  ;;  %3341 = vmatmul.mubr.f32.gmra.mxu0 %v1623_v8  ;;  %3566 = vmatmul.mubr.f32.gmra.mxu1 %v825_v43  ;;  %v2498_v8 = vadd.f32 %v9315_v59, %v9262_v35  ;;  %v1699_v35 = vld [vmem:[%s8469_s7 + $0x2e40] sm:$0xff] }
 0x248   : > { %v9437_v39 = vadd.f32 %v2877_v62, %v2493_v48  ;;  %v9440_v25 = vadd.f32 %v3102_v7, %v9077_v51  ;;  %3345 = vmatprep.mubr.f32.mxu0 %v1649_v58  ;;  %3570 = vmatprep.mubr.f32.mxu1 %v851_v0  ;;  %v2000_v58 = vld [vmem:[#allocation5 + $0x5a8] sm:$0xff]  ;;  %v1673_v62 = vld [vmem:[%s8469_s7 + $0x2d70] sm:$0xff]  ;;  %v875_v7 = vld [vmem:[%s8469_s7 + $0x1480] sm:$0xff] }
 0x249   : > { %v2879_v53 = vpop.f32.mrf.mxu1  ;;  %v3104_v37 = vpop.f32.mrf.mxu0  ;;  %4201 = vmatprep.subr.mxu1 %v13058_v61 }
 0x24a   : > { %4202 = vmatpush2.msra.mxu1 %v2001_v14  ;;  %v901_v14 = vld [vmem:[%s8469_s7 + $0x1550] sm:$0xff] }
 0x24b   : > { %v2882_v51 = vpop.f32.mrf.mxu1  ;;  %v3107_v43 = vpop.f32.mrf.mxu0  ;;  %3346 = vmatmul.mubr.f32.gmra.mxu0 %v1648_v63  ;;  %3571 = vmatmul.mubr.f32.gmra.mxu1 %v850_v60  ;;  %v2503_v63 = vadd.f32 %v9315_v59, %v9273_v24  ;;  %v1724_v24 = vld [vmem:[%s8469_s7 + $0x2f08] sm:$0xff] }
 0x24c   : > { %v9449_v0 = vadd.f32 %v2882_v51, %v2498_v8  ;;  %v9452_v48 = vadd.f32 %v3107_v43, %v9088_v11  ;;  %3350 = vmatprep.mubr.f32.mxu0 %v1674_v46  ;;  %3575 = vmatprep.mubr.f32.mxu1 %v876_v27  ;;  %v1999_v46 = vld [vmem:[#allocation5 + $0x5a0] sm:$0xff]  ;;  %v1698_v51 = vld [vmem:[%s8469_s7 + $0x2e38] sm:$0xff]  ;;  %v900_v43 = vld [vmem:[%s8469_s7 + $0x1548] sm:$0xff] }
 0x24d   : > { %v2884_v53 = vpop.f32.mrf.mxu1  ;;  %v3109_v37 = vpop.f32.mrf.mxu0  ;;  %4203 = vmatprep.subr.mxu1 %v13058_v61 }
 0x24e   : > { %4204 = vmatpush2.msra.mxu1 %v2000_v58  ;;  %v926_v58 = vld [vmem:[%s8469_s7 + $0x1618] sm:$0xff] }
 0x24f   : > { %v2887_v11 = vpop.f32.mrf.mxu1  ;;  %v3112_v60 = vpop.f32.mrf.mxu0  ;;  %3351 = vmatmul.mubr.f32.gmra.mxu0 %v1673_v62  ;;  %3576 = vmatmul.mubr.f32.gmra.mxu1 %v875_v7  ;;  %v2508_v62 = vadd.f32 %v9315_v59, %v9284_v13  ;;  %v1749_v13 = vld [vmem:[%s8469_s7 + $0x2fd0] sm:$0xff] }
 0x250   : > { %v9461_v27 = vadd.f32 %v2887_v11, %v2503_v63  ;;  %v9464_v8 = vadd.f32 %v3112_v60, %v9099_v28  ;;  %3355 = vmatprep.mubr.f32.mxu0 %v1699_v35  ;;  %3580 = vmatprep.mubr.f32.mxu1 %v901_v14  ;;  %v1998_v35 = vld [vmem:[#allocation5 + $0x598] sm:$0xff]  ;;  %v1723_v11 = vld [vmem:[%s8469_s7 + $0x2f00] sm:$0xff]  ;;  %v925_v60 = vld [vmem:[%s8469_s7 + $0x1610] sm:$0xff] }
 0x251   : > { %v2889_v53 = vpop.f32.mrf.mxu1  ;;  %v3114_v37 = vpop.f32.mrf.mxu0  ;;  %4205 = vmatprep.subr.mxu1 %v13058_v61 }
 0x252   : > { %4206 = vmatpush2.msra.mxu1 %v1999_v46  ;;  %v951_v46 = vld [vmem:[%s8469_s7 + $0x16e0] sm:$0xff] }
 0x253   : > { %v2892_v28 = vpop.f32.mrf.mxu1  ;;  %v3117_v7 = vpop.f32.mrf.mxu0  ;;  %3356 = vmatmul.mubr.f32.gmra.mxu0 %v1698_v51  ;;  %3581 = vmatmul.mubr.f32.gmra.mxu1 %v900_v43  ;;  %v2513_v51 = vadd.f32 %v9315_v59, %v9295_v17  ;;  %v1774_v17 = vld [vmem:[%s8469_s7 + $0x3098] sm:$0xff] }
 0x254   : > { %v9473_v14 = vadd.f32 %v2892_v28, %v2508_v62  ;;  %v9476_v63 = vadd.f32 %v3117_v7, %v9110_v55  ;;  %3360 = vmatprep.mubr.f32.mxu0 %v1724_v24  ;;  %3585 = vmatprep.mubr.f32.mxu1 %v926_v58  ;;  %v1997_v24 = vld [vmem:[#allocation5 + $0x590] sm:$0xff]  ;;  %v1748_v28 = vld [vmem:[%s8469_s7 + $0x2fc8] sm:$0xff]  ;;  %v950_v7 = vld [vmem:[%s8469_s7 + $0x16d8] sm:$0xff] }
 0x255   : > { %v2894_v53 = vpop.f32.mrf.mxu1  ;;  %v3119_v37 = vpop.f32.mrf.mxu0  ;;  %4207 = vmatprep.subr.mxu1 %v13058_v61 }
 0x256   : > { %4208 = vmatpush2.msra.mxu1 %v1998_v35  ;;  %v976_v35 = vld [vmem:[%s8469_s7 + $0x17a8] sm:$0xff] }
 0x257   : > { %v2897_v55 = vpop.f32.mrf.mxu1  ;;  %v3122_v43 = vpop.f32.mrf.mxu0  ;;  %3361 = vmatmul.mubr.f32.gmra.mxu0 %v1723_v11  ;;  %3586 = vmatmul.mubr.f32.gmra.mxu1 %v925_v60  ;;  %v2518_v11 = vadd.f32 %v9315_v59, %v9306_v38 }
 0x258   : > { %v9485_v58 = vadd.f32 %v2897_v55, %v2513_v51  ;;  %v9488_v62 = vadd.f32 %v3122_v43, %v9121_v33  ;;  %3365 = vmatprep.mubr.f32.mxu0 %v1749_v13  ;;  %3590 = vmatprep.mubr.f32.mxu1 %v951_v46  ;;  %v1996_v13 = vld [vmem:[#allocation5 + $0x588] sm:$0xff]  ;;  %v1773_v55 = vld [vmem:[%s8469_s7 + $0x3090] sm:$0xff]  ;;  %v975_v43 = vld [vmem:[%s8469_s7 + $0x17a0] sm:$0xff] }
 0x259   : > { %v2899_v53 = vpop.f32.mrf.mxu1  ;;  %v3124_v37 = vpop.f32.mrf.mxu0  ;;  %4209 = vmatprep.subr.mxu1 %v13058_v61 }
 0x25a   : > { %4210 = vmatpush2.msra.mxu1 %v1997_v24  ;;  %v1799_v37 = vld [vmem:[%s8469_s7 + $0x3160] sm:$0xff]  ;;  %v1001_v24 = vld [vmem:[%s8469_s7 + $0x1870] sm:$0xff] }
 0x25b   : > { %v2902_v33 = vpop.f32.mrf.mxu1  ;;  %v3127_v60 = vpop.f32.mrf.mxu0  ;;  %3366 = vmatmul.mubr.f32.gmra.mxu0 %v1748_v28  ;;  %3591 = vmatmul.mubr.f32.gmra.mxu1 %v950_v7  ;;  %v2523_v28 = vadd.f32 %v9315_v59, %v9319_v4 }
 0x25c   : > { %v9497_v46 = vadd.f32 %v2902_v33, %v2518_v11  ;;  %v9500_v51 = vadd.f32 %v3127_v60, %v9132_v6  ;;  %3370 = vmatprep.mubr.f32.mxu0 %v1774_v17  ;;  %3595 = vmatprep.mubr.f32.mxu1 %v976_v35  ;;  %v1798_v11 = vld [vmem:[%s8469_s7 + $0x3158] sm:$0xff]  ;;  %v1000_v33 = vld [vmem:[%s8469_s7 + $0x1868] sm:$0xff]  ;;  %v1995_v60 = vld [vmem:[#allocation5 + $0x580] sm:$0xff] }
 0x25d   : > { %v2904_v53 = vpop.f32.mrf.mxu1  ;;  %v3129_v38 = vpop.f32.mrf.mxu0  ;;  %4211 = vmatprep.subr.mxu1 %v13058_v61 }
 0x25e   : > { %4212 = vmatpush2.msra.mxu1 %v1996_v13  ;;  %v1026_v38 = vld [vmem:[%s8469_s7 + $0x1938] sm:$0xff]  ;;  %v228_v13 = vld [vmem:[%s8469_s7 + $0x48] sm:$0xff] }
 0x25f   : > { %v2907_v6 = vpop.f32.mrf.mxu1  ;;  %v3132_v7 = vpop.f32.mrf.mxu0  ;;  %3371 = vmatmul.mubr.f32.gmra.mxu0 %v1773_v55  ;;  %3596 = vmatmul.mubr.f32.gmra.mxu1 %v975_v43  ;;  %v2528_v55 = vadd.f32 %v9315_v59, %v9330_v29  ;;  %v2026_v29 = vld [vmem:[#allocation5 + $0x678] sm:$0xff] }
 0x260   : > { %v9509_v17 = vadd.f32 %v2907_v6, %v2523_v28  ;;  %v9512_v35 = vadd.f32 %v3132_v7, %v9143_v30  ;;  %3375 = vmatprep.mubr.f32.mxu0 %v1799_v37  ;;  %3600 = vmatprep.mubr.f32.mxu1 %v1001_v24  ;;  %v1025_v28 = vld [vmem:[%s8469_s7 + $0x1930] sm:$0xff]  ;;  %v227_v6 = vld [vmem:[%s8469_s7 + $0x40] sm:$0xff] }
 0x261   : > { %v2909_v53 = vpop.f32.mrf.mxu1  ;;  %v3134_v4 = vpop.f32.mrf.mxu0  ;;  %4213 = vmatprep.subr.mxu1 %v13058_v61 }
 0x262   : > { %4214 = vmatpush2.msra.mxu1 %v1995_v60  ;;  %v1051_v60 = vld [vmem:[%s8469_s7 + $0x1a00] sm:$0xff] }
 0x263   : > { %v2912_v30 = vpop.f32.mrf.mxu1  ;;  %v3137_v43 = vpop.f32.mrf.mxu0  ;;  %3376 = vmatmul.mubr.f32.gmra.mxu0 %v1798_v11  ;;  %3601 = vmatmul.mubr.f32.gmra.mxu1 %v1000_v33  ;;  %v2533_v11 = vadd.f32 %v9315_v59, %v8827_v1  ;;  %v253_v33 = vld [vmem:[%s8469_s7 + $0x110] sm:$0xff]  ;;  %v1076_v1 = vld [vmem:[%s8469_s7 + $0x1ac8] sm:$0xff] }
 0x264   : > { %v9521_v37 = vadd.f32 %v2912_v30, %v2528_v55  ;;  %v9524_v24 = vadd.f32 %v3137_v43, %v9154_v15  ;;  %3605 = vmatprep.mubr.f32.mxu1 %v1026_v38  ;;  %3830 = vmatprep.mubr.f32.mxu0 %v228_v13  ;;  %v2025_v38 = vld [vmem:[#allocation5 + $0x670] sm:$0xff]  ;;  %v1050_v30 = vld [vmem:[%s8469_s7 + $0x19f8] sm:$0xff]  ;;  %v252_v43 = vld [vmem:[%s8469_s7 + $0x108] sm:$0xff] }
 0x265   : > { %v2914_v7 = vpop.f32.mrf.mxu1  ;;  %v3139_v53 = vpop.f32.mrf.mxu0  ;;  %4921 = vmatprep.subr.mxu1 %v13058_v61 }
 0x266   : > { %13067 = vst [vmem:[#allocation29_spill] sm:$0xff] %v9524_v24  ;;  %v278_v24 = vld [vmem:[%s8469_s7 + $0x1d8] sm:$0xff] }
 0x267   : > { %v2917_v15 = vpop.f32.mrf.mxu1  ;;  %v3142_v4 = vpop.f32.mrf.mxu0  ;;  %3606 = vmatmul.mubr.f32.gmra.mxu1 %v1025_v28  ;;  %3831 = vmatmul.mubr.f32.vlgmr.msra.gmra.mxu0 %v227_v6  ;;  %v2538_v28 = vadd.f32 %v9315_v59, %v8838_v12  ;;  %v1101_v12 = vld [vmem:[%s8469_s7 + $0x1b90] sm:$0xff] }
 0x268   : > { %v9533_v13 = vadd.f32 %v2917_v15, %v2533_v11  ;;  %v9536_v55 = vadd.f32 %v3142_v4, %v9165_v57  ;;  %4537 = vmatpush1.msra.mxu0 %v2026_v29  ;;  %3610 = vmatprep.mubr.f32.mxu1 %v1051_v60  ;;  %v2024_v29 = vld [vmem:[#allocation5 + $0x668] sm:$0xff]  ;;  %v277_v15 = vld [vmem:[%s8469_s7 + $0x1d0] sm:$0xff] }
 0x269   : > { %v2919_v7 = vpop.f32.mrf.mxu1  ;;  %v3144_v53 = vpop.f32.mrf.mxu0  ;;  %3835 = vmatprep.mubr.f32.mxu0 %v253_v33  ;;  %4538 = vmatprep.subr.mxu0 %v13058_v61  ;;  %v1075_v33 = vld [vmem:[%s8469_s7 + $0x1ac0] sm:$0xff] }
 0x26a   : > { %4539 = vmatpush1.msra.mxu0 %v2025_v38  ;;  %v303_v38 = vld [vmem:[%s8469_s7 + $0x2a0] sm:$0xff] }
 0x26b   : > { %v2922_v57 = vpop.f32.mrf.mxu1  ;;  %v3147_v6 = vpop.f32.mrf.mxu0  ;;  %3611 = vmatmul.mubr.f32.gmra.mxu1 %v1050_v30  ;;  %3836 = vmatmul.mubr.f32.gmra.mxu0 %v252_v43  ;;  %v2543_v30 = vadd.f32 %v9315_v59, %v8848_v22  ;;  %v1126_v22 = vld [vmem:[%s8469_s7 + $0x1c58] sm:$0xff] }
 0x26c   : > { %v9545_v60 = vadd.f32 %v2922_v57, %v2538_v28  ;;  %v9548_v11 = vadd.f32 %v3147_v6, %v9176_v56  ;;  %3615 = vmatprep.mubr.f32.mxu1 %v1076_v1  ;;  %3840 = vmatprep.mubr.f32.mxu0 %v278_v24  ;;  %v2023_v24 = vld [vmem:[#allocation5 + $0x660] sm:$0xff]  ;;  %v1100_v28 = vld [vmem:[%s8469_s7 + $0x1b88] sm:$0xff]  ;;  %v302_v57 = vld [vmem:[%s8469_s7 + $0x298] sm:$0xff] }
 0x26d   : > { %v2924_v4 = vpop.f32.mrf.mxu1  ;;  %v3149_v7 = vpop.f32.mrf.mxu0  ;;  %4540 = vmatprep.subr.mxu0 %v13058_v61 }
 0x26e   : > { %4541 = vmatpush1.msra.mxu0 %v2024_v29  ;;  %v328_v29 = vld [vmem:[%s8469_s7 + $0x368] sm:$0xff]  ;;  %v2022_v7 = vld [vmem:[#allocation5 + $0x658] sm:$0xff] }
 0x26f   : > { %v2927_v56 = vpop.f32.mrf.mxu1  ;;  %v3152_v43 = vpop.f32.mrf.mxu0  ;;  %3616 = vmatmul.mubr.f32.gmra.mxu1 %v1075_v33  ;;  %3841 = vmatmul.mubr.f32.gmra.mxu0 %v277_v15  ;;  %v2548_v33 = vadd.f32 %v9315_v59, %v8858_v31  ;;  %v1151_v31 = vld [vmem:[%s8469_s7 + $0x1d20] sm:$0xff] }
 0x270   : > { %v9557_v53 = vadd.f32 %v2927_v56, %v2543_v30  ;;  %v9560_v1 = vadd.f32 %v3152_v43, %v9187_v9  ;;  %3620 = vmatprep.mubr.f32.mxu1 %v1101_v12  ;;  %3845 = vmatprep.mubr.f32.mxu0 %v303_v38  ;;  %v1125_v30 = vld [vmem:[%s8469_s7 + $0x1c50] sm:$0xff]  ;;  %v327_v56 = vld [vmem:[%s8469_s7 + $0x360] sm:$0xff] }
 0x271   : > { %v2929_v6 = vpop.f32.mrf.mxu1  ;;  %v3154_v4 = vpop.f32.mrf.mxu0  ;;  %4542 = vmatprep.subr.mxu0 %v13058_v61 }
 0x272   : > { %4543 = vmatpush1.msra.mxu0 %v2023_v24  ;;  %v353_v24 = vld [vmem:[%s8469_s7 + $0x430] sm:$0xff] }
 0x273   : > { %v2932_v9 = vpop.f32.mrf.mxu1  ;;  %v3157_v15 = vpop.f32.mrf.mxu0  ;;  %3621 = vmatmul.mubr.f32.gmra.mxu1 %v1100_v28  ;;  %3846 = vmatmul.mubr.f32.gmra.mxu0 %v302_v57  ;;  %v2553_v28 = vadd.f32 %v9315_v59, %v8867_v40  ;;  %v2021_v4 = vld [vmem:[#allocation5 + $0x650] sm:$0xff]  ;;  %v1176_v40 = vld [vmem:[%s8469_s7 + $0x1de8] sm:$0xff] }
 0x274   : > { %v9569_v12 = vadd.f32 %v2932_v9, %v2548_v33  ;;  %v9572_v38 = vadd.f32 %v3157_v15, %v9198_v47  ;;  %3625 = vmatprep.mubr.f32.mxu1 %v1126_v22  ;;  %3850 = vmatprep.mubr.f32.mxu0 %v328_v29  ;;  %v1150_v33 = vld [vmem:[%s8469_s7 + $0x1d18] sm:$0xff]  ;;  %v352_v9 = vld [vmem:[%s8469_s7 + $0x428] sm:$0xff] }
 0x275   : > { %v2934_v43 = vpop.f32.mrf.mxu1  ;;  %v3159_v6 = vpop.f32.mrf.mxu0  ;;  %4544 = vmatprep.subr.mxu0 %v13058_v61 }
 0x276   : > { %4545 = vmatpush1.msra.mxu0 %v2022_v7  ;;  %v378_v7 = vld [vmem:[%s8469_s7 + $0x4f8] sm:$0xff]  ;;  %v2020_v6 = vld [vmem:[#allocation5 + $0x648] sm:$0xff] }
 0x277   : > { %v2937_v47 = vpop.f32.mrf.mxu1  ;;  %v3162_v57 = vpop.f32.mrf.mxu0  ;;  %3626 = vmatmul.mubr.f32.gmra.mxu1 %v1125_v30  ;;  %3851 = vmatmul.mubr.f32.gmra.mxu0 %v327_v56  ;;  %v2558_v30 = vadd.f32 %v9315_v59, %v8878_v52  ;;  %v1201_v52 = vld [vmem:[%s8469_s7 + $0x1eb0] sm:$0xff] }
 0x278   : > { %v9581_v22 = vadd.f32 %v2937_v47, %v2553_v28  ;;  %v9584_v29 = vadd.f32 %v3162_v57, %v9209_v20  ;;  %3630 = vmatprep.mubr.f32.mxu1 %v1151_v31  ;;  %3855 = vmatprep.mubr.f32.mxu0 %v353_v24  ;;  %v1175_v28 = vld [vmem:[%s8469_s7 + $0x1de0] sm:$0xff]  ;;  %v377_v47 = vld [vmem:[%s8469_s7 + $0x4f0] sm:$0xff] }
 0x279   : > { %v2939_v15 = vpop.f32.mrf.mxu1  ;;  %v3164_v43 = vpop.f32.mrf.mxu0  ;;  %4546 = vmatprep.subr.mxu0 %v13058_v61 }
 0x27a   : > { %4547 = vmatpush1.msra.mxu0 %v2021_v4  ;;  %v403_v4 = vld [vmem:[%s8469_s7 + $0x5c0] sm:$0xff] }
 0x27b   : > { %v2942_v20 = vpop.f32.mrf.mxu1  ;;  %v3167_v56 = vpop.f32.mrf.mxu0  ;;  %3631 = vmatmul.mubr.f32.gmra.mxu1 %v1150_v33  ;;  %3856 = vmatmul.mubr.f32.gmra.mxu0 %v352_v9  ;;  %v2563_v33 = vadd.f32 %v9315_v59, %v8889_v2  ;;  %v2019_v43 = vld [vmem:[#allocation5 + $0x640] sm:$0xff]  ;;  %v1226_v2 = vld [vmem:[%s8469_s7 + $0x1f78] sm:$0xff] }
 0x27c   : > { %v9593_v31 = vadd.f32 %v2942_v20, %v2558_v30  ;;  %v9596_v24 = vadd.f32 %v3167_v56, %v9220_v36  ;;  %3635 = vmatprep.mubr.f32.mxu1 %v1176_v40  ;;  %3860 = vmatprep.mubr.f32.mxu0 %v378_v7  ;;  %v1200_v30 = vld [vmem:[%s8469_s7 + $0x1ea8] sm:$0xff]  ;;  %v402_v20 = vld [vmem:[%s8469_s7 + $0x5b8] sm:$0xff] }
 0x27d   : > { %v2944_v57 = vpop.f32.mrf.mxu1  ;;  %v3169_v15 = vpop.f32.mrf.mxu0  ;;  %4548 = vmatprep.subr.mxu0 %v13058_v61 }
 0x27e   : > { %4549 = vmatpush1.msra.mxu0 %v2020_v6  ;;  %v428_v6 = vld [vmem:[%s8469_s7 + $0x688] sm:$0xff] }
 0x27f   : > { %v2947_v36 = vpop.f32.mrf.mxu1  ;;  %v3172_v9 = vpop.f32.mrf.mxu0  ;;  %3636 = vmatmul.mubr.f32.gmra.mxu1 %v1175_v28  ;;  %3861 = vmatmul.mubr.f32.gmra.mxu0 %v377_v47  ;;  %v13069_v28 = vld [vmem:[#allocation12_spill] sm:$0xff] }
 0x280   : > { %v9605_v40 = vadd.f32 %v2947_v36, %v2563_v33  ;;  %v9608_v7 = vadd.f32 %v3172_v9, %v9231_v54  ;;  %3640 = vmatprep.mubr.f32.mxu1 %v1201_v52  ;;  %3865 = vmatprep.mubr.f32.mxu0 %v403_v4  ;;  %v2568_v47 = vadd.f32 %v9315_v59, %v13069_v28  ;;  %v2018_v52 = vld [vmem:[#allocation5 + $0x638] sm:$0xff]  ;;  %v13071_v33 = vld [vmem:[#allocation21_spill] sm:$0xff]  ;;  %v1251_v28 = vld [vmem:[%s8469_s7 + $0x2040] sm:$0xff] }
 0x281   : > { %v2949_v56 = vpop.f32.mrf.mxu1  ;;  %v3174_v57 = vpop.f32.mrf.mxu0  ;;  %4550 = vmatprep.subr.mxu0 %v13058_v61  ;;  %v1225_v9 = vld [vmem:[%s8469_s7 + $0x1f70] sm:$0xff] }
 0x282   : > { %13068 = vst [vmem:[#allocation30_spill] sm:$0xff] %v9608_v7  ;;  %4551 = vmatpush1.msra.mxu0 %v2019_v43  ;;  %v427_v56 = vld [vmem:[%s8469_s7 + $0x680] sm:$0xff]  ;;  %v453_v43 = vld [vmem:[%s8469_s7 + $0x750] sm:$0xff] }
 0x283   : > { %v2952_v54 = vpop.f32.mrf.mxu1  ;;  %v3177_v15 = vpop.f32.mrf.mxu0  ;;  %3641 = vmatmul.mubr.f32.gmra.mxu1 %v1200_v30  ;;  %3866 = vmatmul.mubr.f32.gmra.mxu0 %v402_v20  ;;  %v13073_v30 = vld [vmem:[#allocation13_spill] sm:$0xff] }
 0x284   : > { %v9617_v4 = vadd.f32 %v2952_v54, %v2568_v47  ;;  %v9620_v36 = vadd.f32 %v3177_v15, %v13071_v33  ;;  %3645 = vmatprep.mubr.f32.mxu1 %v1226_v2  ;;  %3870 = vmatprep.mubr.f32.mxu0 %v428_v6  ;;  %v2573_v20 = vadd.f32 %v9315_v59, %v13073_v30  ;;  %v2017_v2 = vld [vmem:[#allocation5 + $0x630] sm:$0xff]  ;;  %v1250_v33 = vld [vmem:[%s8469_s7 + $0x2038] sm:$0xff]  ;;  %v1276_v30 = vld [vmem:[%s8469_s7 + $0x2108] sm:$0xff] }
 0x285   : > { %v2954_v57 = vpop.f32.mrf.mxu1  ;;  %v3179_v7 = vpop.f32.mrf.mxu0  ;;  %4552 = vmatprep.subr.mxu0 %v13058_v61  ;;  %v13075_v15 = vld [vmem:[#allocation22_spill] sm:$0xff] }
 0x286   : > { %13070 = vst [vmem:[#allocation12_spill] sm:$0xff] %v9617_v4  ;;  %13072 = vst [vmem:[#allocation21_spill] sm:$0xff] %v9620_v36  ;;  %4553 = vmatpush1.msra.mxu0 %v2018_v52  ;;  %v452_v57 = vld [vmem:[%s8469_s7 + $0x748] sm:$0xff]  ;;  %v478_v52 = vld [vmem:[%s8469_s7 + $0x818] sm:$0xff] }
 0x287   : > { %v2957_v47 = vpop.f32.mrf.mxu1  ;;  %v3182_v54 = vpop.f32.mrf.mxu0  ;;  %3646 = vmatmul.mubr.f32.gmra.mxu1 %v1225_v9  ;;  %3871 = vmatmul.mubr.f32.gmra.mxu0 %v427_v56  ;;  %v13077_v9 = vld [vmem:[#allocation14_spill] sm:$0xff] }
 0x288   : > { %v9629_v6 = vadd.f32 %v2957_v47, %v2573_v20  ;;  %v9632_v7 = vadd.f32 %v3182_v54, %v13075_v15  ;;  %3650 = vmatprep.mubr.f32.mxu1 %v1251_v28  ;;  %3875 = vmatprep.mubr.f32.mxu0 %v453_v43  ;;  %v2578_v56 = vadd.f32 %v9315_v59, %v13077_v9  ;;  %v2016_v28 = vld [vmem:[#allocation5 + $0x628] sm:$0xff]  ;;  %v1275_v54 = vld [vmem:[%s8469_s7 + $0x2100] sm:$0xff]  ;;  %v477_v15 = vld [vmem:[%s8469_s7 + $0x810] sm:$0xff] }
 0x289   : > { %v2959_v36 = vpop.f32.mrf.mxu1  ;;  %v3184_v4 = vpop.f32.mrf.mxu0  ;;  %4554 = vmatprep.subr.mxu0 %v13058_v61  ;;  %v1301_v9 = vld [vmem:[%s8469_s7 + $0x21d0] sm:$0xff] }
 0x28a   : > { %13074 = vst [vmem:[#allocation13_spill] sm:$0xff] %v9629_v6  ;;  %13076 = vst [vmem:[#allocation22_spill] sm:$0xff] %v9632_v7  ;;  %4555 = vmatpush1.msra.mxu0 %v2017_v2  ;;  %v13079_v36 = vld [vmem:[#allocation23_spill] sm:$0xff] }
 0x28b   : > { %v2962_v20 = vpop.f32.mrf.mxu1  ;;  %v3187_v47 = vpop.f32.mrf.mxu0  ;;  %3651 = vmatmul.mubr.f32.gmra.mxu1 %v1250_v33  ;;  %3876 = vmatmul.mubr.f32.gmra.mxu0 %v452_v57  ;;  %v503_v2 = vld [vmem:[%s8469_s7 + $0x8e0] sm:$0xff] }
 0x28c   : > { %v9641_v43 = vadd.f32 %v2962_v20, %v2578_v56  ;;  %v9644_v4 = vadd.f32 %v3187_v47, %v13079_v36  ;;  %3655 = vmatprep.mubr.f32.mxu1 %v1276_v30  ;;  %3880 = vmatprep.mubr.f32.mxu0 %v478_v52  ;;  %v13081_v33 = vld [vmem:[#allocation15_spill] sm:$0xff]  ;;  %v1300_v47 = vld [vmem:[%s8469_s7 + $0x21c8] sm:$0xff] }
 0x28d   : > { %v2964_v7 = vpop.f32.mrf.mxu1  ;;  %v3189_v6 = vpop.f32.mrf.mxu0  ;;  %4556 = vmatprep.subr.mxu0 %v13058_v61  ;;  %v2583_v57 = vadd.f32 %v9315_v59, %v13081_v33  ;;  %v2015_v30 = vld [vmem:[#allocation5 + $0x620] sm:$0xff]  ;;  %v502_v36 = vld [vmem:[%s8469_s7 + $0x8d8] sm:$0xff] }
 0x28e   : > { %13078 = vst [vmem:[#allocation14_spill] sm:$0xff] %v9641_v43  ;;  %13080 = vst [vmem:[#allocation23_spill] sm:$0xff] %v9644_v4  ;;  %4557 = vmatpush1.msra.mxu0 %v2016_v28  ;;  %v13083_v7 = vld [vmem:[#allocation24_spill] sm:$0xff]  ;;  %v1326_v59 = vld [vmem:[%s8469_s7 + $0x2298] sm:$0xff] }
 0x28f   : > { %v2967_v56 = vpop.f32.mrf.mxu1  ;;  %v3192_v20 = vpop.f32.mrf.mxu0  ;;  %3656 = vmatmul.mubr.f32.gmra.mxu1 %v1275_v54  ;;  %3881 = vmatmul.mubr.f32.gmra.mxu0 %v477_v15  ;;  %v528_v28 = vld [vmem:[%s8469_s7 + $0x9a8] sm:$0xff]  ;;  %v9663_v54 = vld [vmem:[#allocation7] ss:$0 sm:$0xff] }
 0x290   : > { %v9653_v52 = vadd.f32 %v2967_v56, %v2583_v57  ;;  %v9656_v6 = vadd.f32 %v3192_v20, %v13083_v7  ;;  %3660 = vmatprep.mubr.f32.mxu1 %v1301_v9  ;;  %3885 = vmatprep.mubr.f32.mxu0 %v503_v2  ;;  %v13085_v15 = vld [vmem:[#allocation16_spill] sm:$0xff]  ;;  %v13087_v57 = vld [vmem:[#allocation25_spill] sm:$0xff] }
 0x291   : > { %v2969_v4 = vpop.f32.mrf.mxu1  ;;  %v3194_v43 = vpop.f32.mrf.mxu0  ;;  %4558 = vmatprep.subr.mxu0 %v13058_v61  ;;  %v2588_v33 = vadd.f32 %v9663_v54, %v13085_v15  ;;  %v1325_v20 = vld [vmem:[%s8469_s7 + $0x2290] sm:$0xff]  ;;  %v527_v7 = vld [vmem:[%s8469_s7 + $0x9a0] sm:$0xff] }
 0x292   : > { %13082 = vst [vmem:[#allocation15_spill] sm:$0xff] %v9653_v52  ;;  %13084 = vst [vmem:[#allocation24_spill] sm:$0xff] %v9656_v6  ;;  %4559 = vmatpush1.msra.mxu0 %v2015_v30  ;;  %v2014_v4 = vld [vmem:[#allocation5 + $0x618] sm:$0xff]  ;;  %v1351_v15 = vld [vmem:[%s8469_s7 + $0x2360] sm:$0xff] }
 0x293   : > { %v2972_v9 = vpop.f32.mrf.mxu1  ;;  %v3197_v2 = vpop.f32.mrf.mxu0  ;;  %3661 = vmatmul.mubr.f32.gmra.mxu1 %v1300_v47  ;;  %3886 = vmatmul.mubr.f32.gmra.mxu0 %v502_v36  ;;  %v553_v30 = vld [vmem:[%s8469_s7 + $0xa70] sm:$0xff] }
 0x294   : > { %v9667_v43 = vadd.f32 %v2972_v9, %v2588_v33  ;;  %v9670_v56 = vadd.f32 %v3197_v2, %v13087_v57  ;;  %3665 = vmatprep.mubr.f32.mxu1 %v1326_v59  ;;  %3890 = vmatprep.mubr.f32.mxu0 %v528_v28  ;;  %v13089_v47 = vld [vmem:[#allocation17_spill] sm:$0xff]  ;;  %v1350_v2 = vld [vmem:[%s8469_s7 + $0x2358] sm:$0xff] }
 0x295   : > { %v2974_v6 = vpop.f32.mrf.mxu1  ;;  %v3199_v52 = vpop.f32.mrf.mxu0  ;;  %4560 = vmatprep.subr.mxu0 %v13058_v61  ;;  %v2593_v36 = vadd.f32 %v9663_v54, %v13089_v47  ;;  %v2013_v59 = vld [vmem:[#allocation5 + $0x610] sm:$0xff]  ;;  %v552_v57 = vld [vmem:[%s8469_s7 + $0xa68] sm:$0xff] }
 0x296   : > { %13086 = vst [vmem:[#allocation16_spill] sm:$0xff] %v9667_v43  ;;  %13088 = vst [vmem:[#allocation25_spill] sm:$0xff] %v9670_v56  ;;  %4561 = vmatpush1.msra.mxu0 %v2014_v4  ;;  %v13091_v6 = vld [vmem:[#allocation26_spill] sm:$0xff]  ;;  %v1376_v47 = vld [vmem:[%s8469_s7 + $0x2428] sm:$0xff] }
 0x297   : > { %v2977_v33 = vpop.f32.mrf.mxu1  ;;  %v3202_v9 = vpop.f32.mrf.mxu0  ;;  %3666 = vmatmul.mubr.f32.gmra.mxu1 %v1325_v20  ;;  %3891 = vmatmul.mubr.f32.gmra.mxu0 %v527_v7  ;;  %v578_v4 = vld [vmem:[%s8469_s7 + $0xb38] sm:$0xff] }
 0x298   : > { %v9679_v28 = vadd.f32 %v2977_v33, %v2593_v36  ;;  %v9682_v52 = vadd.f32 %v3202_v9, %v13091_v6  ;;  %3670 = vmatprep.mubr.f32.mxu1 %v1351_v15  ;;  %3895 = vmatprep.mubr.f32.mxu0 %v553_v30  ;;  %v13093_v20 = vld [vmem:[#allocation18_spill] sm:$0xff]  ;;  %v2012_v15 = vld [vmem:[#allocation5 + $0x608] sm:$0xff]  ;;  %v1375_v9 = vld [vmem:[%s8469_s7 + $0x2420] sm:$0xff] }
 0x299   : > { %v2979_v56 = vpop.f32.mrf.mxu1  ;;  %v3204_v43 = vpop.f32.mrf.mxu0  ;;  %4562 = vmatprep.subr.mxu0 %v13058_v61  ;;  %v2598_v7 = vadd.f32 %v9663_v54, %v13093_v20  ;;  %v577_v6 = vld [vmem:[%s8469_s7 + $0xb30] sm:$0xff] }
 0x29a   : > { %13090 = vst [vmem:[#allocation17_spill] sm:$0xff] %v9679_v28  ;;  %13092 = vst [vmem:[#allocation26_spill] sm:$0xff] %v9682_v52  ;;  %4563 = vmatpush1.msra.mxu0 %v2013_v59  ;;  %v13095_v56 = vld [vmem:[#allocation27_spill] sm:$0xff]  ;;  %v1401_v20 = vld [vmem:[%s8469_s7 + $0x24f0] sm:$0xff] }
 0x29b   : > { %v2982_v36 = vpop.f32.mrf.mxu1  ;;  %v3207_v33 = vpop.f32.mrf.mxu0  ;;  %3671 = vmatmul.mubr.f32.gmra.mxu1 %v1350_v2  ;;  %3896 = vmatmul.mubr.f32.gmra.mxu0 %v552_v57  ;;  %v603_v59 = vld [vmem:[%s8469_s7 + $0xc00] sm:$0xff] }
 0x29c   : > { %v9691_v30 = vadd.f32 %v2982_v36, %v2598_v7  ;;  %v9694_v43 = vadd.f32 %v3207_v33, %v13095_v56  ;;  %3675 = vmatprep.mubr.f32.mxu1 %v1376_v47  ;;  %3900 = vmatprep.mubr.f32.mxu0 %v578_v4  ;;  %v13097_v2 = vld [vmem:[#allocation19_spill] sm:$0xff]  ;;  %v1400_v33 = vld [vmem:[%s8469_s7 + $0x24e8] sm:$0xff] }
 0x29d   : > { %v2984_v52 = vpop.f32.mrf.mxu1  ;;  %v3209_v28 = vpop.f32.mrf.mxu0  ;;  %4564 = vmatprep.subr.mxu0 %v13058_v61  ;;  %v2603_v57 = vadd.f32 %v9663_v54, %v13097_v2  ;;  %v2011_v47 = vld [vmem:[#allocation5 + $0x600] sm:$0xff]  ;;  %v602_v56 = vld [vmem:[%s8469_s7 + $0xbf8] sm:$0xff] }
 0x29e   : > { %13094 = vst [vmem:[#allocation18_spill] sm:$0xff] %v9691_v30  ;;  %13096 = vst [vmem:[#allocation27_spill] sm:$0xff] %v9694_v43  ;;  %4565 = vmatpush1.msra.mxu0 %v2012_v15  ;;  %v13098_v52 = vld [vmem:[#allocation28_spill] sm:$0xff]  ;;  %v1426_v2 = vld [vmem:[%s8469_s7 + $0x25b8] sm:$0xff] }
 0x29f   : > { %v2987_v7 = vpop.f32.mrf.mxu1  ;;  %v3212_v36 = vpop.f32.mrf.mxu0  ;;  %3676 = vmatmul.mubr.f32.gmra.mxu1 %v1375_v9  ;;  %3901 = vmatmul.mubr.f32.gmra.mxu0 %v577_v6  ;;  %v628_v15 = vld [vmem:[%s8469_s7 + $0xcc8] sm:$0xff] }
 0x2a0   : > { %v9703_v4 = vadd.f32 %v2987_v7, %v2603_v57  ;;  %v9706_v28 = vadd.f32 %v3212_v36, %v13098_v52  ;;  %3680 = vmatprep.mubr.f32.mxu1 %v1401_v20  ;;  %3905 = vmatprep.mubr.f32.mxu0 %v603_v59  ;;  %v13099_v9 = vld [vmem:[#allocation20_spill] sm:$0xff]  ;;  %v2042_v20 = vld [vmem:[#allocation5 + $0x6f8] sm:$0xff] }
 0x2a1   : > { %v2989_v43 = vpop.f32.mrf.mxu1  ;;  %v3214_v30 = vpop.f32.mrf.mxu0  ;;  %4566 = vmatprep.subr.mxu0 %v13058_v61  ;;  %v2608_v6 = vadd.f32 %v9663_v54, %v13099_v9  ;;  %v627_v36 = vld [vmem:[%s8469_s7 + $0xcc0] sm:$0xff] }
 0x2a2   : > { %4567 = vmatpush1.msra.mxu0 %v2011_v47  ;;  %v1425_v43 = vld [vmem:[%s8469_s7 + $0x25b0] sm:$0xff]  ;;  %v1451_v9 = vld [vmem:[%s8469_s7 + $0x2680] sm:$0xff] }
 0x2a3   : > { %v2992_v57 = vpop.f32.mrf.mxu1  ;;  %v3217_v7 = vpop.f32.mrf.mxu0  ;;  %3681 = vmatmul.mubr.f32.gmra.mxu1 %v1400_v33  ;;  %3906 = vmatmul.mubr.f32.gmra.mxu0 %v602_v56  ;;  %v653_v47 = vld [vmem:[%s8469_s7 + $0xd90] sm:$0xff] }
 0x2a4   : > { %v9715_v59 = vadd.f32 %v2992_v57, %v2608_v6  ;;  %v9718_v30 = vadd.f32 %v3217_v7, %v9332_v23  ;;  %3685 = vmatprep.mubr.f32.mxu1 %v1426_v2  ;;  %3910 = vmatprep.mubr.f32.mxu0 %v628_v15  ;;  %v2041_v23 = vld [vmem:[#allocation5 + $0x6f0] sm:$0xff]  ;;  %v1450_v6 = vld [vmem:[%s8469_s7 + $0x2678] sm:$0xff]  ;;  %v652_v57 = vld [vmem:[%s8469_s7 + $0xd88] sm:$0xff] }
 0x2a5   : > { %v2994_v52 = vpop.f32.mrf.mxu1  ;;  %v3219_v54 = vpop.f32.mrf.mxu0  ;;  %4568 = vmatprep.subr.mxu0 %v13058_v61 }
 0x2a6   : > { %4569 = vmatpush2.msra.mxu0 %v2042_v20  ;;  %v1476_v20 = vld [vmem:[%s8469_s7 + $0x2748] sm:$0xff]  ;;  %v678_v54 = vld [vmem:[%s8469_s7 + $0xe58] sm:$0xff] }
 0x2a7   : > { %v3222_v33 = vpop.f32.mrf.mxu0  ;;  %v3447_v56 = vpop.f32.mrf.mxu1  ;;  %3686 = vmatmul.mubr.f32.gmra.mxu1 %v1425_v43  ;;  %3911 = vmatmul.mubr.f32.gmra.mxu0 %v627_v36 }
 0x2a8   : > { %v9726_v2 = vadd.f32 %v3222_v33, %v9341_v10  ;;  %v9729_v15 = vadd.f32 %v3447_v56, %v9344_v16  ;;  %3690 = vmatprep.mubr.f32.mxu1 %v1451_v9  ;;  %3915 = vmatprep.mubr.f32.mxu0 %v653_v47  ;;  %v2040_v16 = vld [vmem:[#allocation5 + $0x6e8] sm:$0xff]  ;;  %v1475_v47 = vld [vmem:[%s8469_s7 + $0x2740] sm:$0xff]  ;;  %v677_v33 = vld [vmem:[%s8469_s7 + $0xe50] sm:$0xff] }
 0x2a9   : > { %v3224_v7 = vpop.f32.mrf.mxu0  ;;  %v3449_v52 = vpop.f32.mrf.mxu1  ;;  %4570 = vmatprep.subr.mxu0 %v13058_v61 }
 0x2aa   : > { %4571 = vmatpush2.msra.mxu0 %v2041_v23  ;;  %v1501_v23 = vld [vmem:[%s8469_s7 + $0x2810] sm:$0xff]  ;;  %v703_v52 = vld [vmem:[%s8469_s7 + $0xf20] sm:$0xff] }
 0x2ab   : > { %v3227_v10 = vpop.f32.mrf.mxu0  ;;  %v3452_v43 = vpop.f32.mrf.mxu1  ;;  %3691 = vmatmul.mubr.f32.gmra.mxu1 %v1450_v6  ;;  %3916 = vmatmul.mubr.f32.gmra.mxu0 %v652_v57 }
 0x2ac   : > { %v9737_v36 = vadd.f32 %v3227_v10, %v9353_v50  ;;  %v9740_v9 = vadd.f32 %v3452_v43, %v9356_v5  ;;  %3695 = vmatprep.mubr.f32.mxu1 %v1476_v20  ;;  %3920 = vmatprep.mubr.f32.mxu0 %v678_v54  ;;  %v2039_v5 = vld [vmem:[#allocation5 + $0x6e0] sm:$0xff]  ;;  %v1500_v54 = vld [vmem:[%s8469_s7 + $0x2808] sm:$0xff]  ;;  %v702_v10 = vld [vmem:[%s8469_s7 + $0xf18] sm:$0xff] }
 0x2ad   : > { %v3229_v56 = vpop.f32.mrf.mxu0  ;;  %v3454_v7 = vpop.f32.mrf.mxu1  ;;  %4572 = vmatprep.subr.mxu0 %v13058_v61 }
 0x2ae   : > { %4573 = vmatpush2.msra.mxu0 %v2040_v16  ;;  %v1526_v16 = vld [vmem:[%s8469_s7 + $0x28d8] sm:$0xff]  ;;  %v728_v7 = vld [vmem:[%s8469_s7 + $0xfe8] sm:$0xff] }
 0x2af   : > { %v3232_v50 = vpop.f32.mrf.mxu0  ;;  %v3457_v6 = vpop.f32.mrf.mxu1  ;;  %3696 = vmatmul.mubr.f32.gmra.mxu1 %v1475_v47  ;;  %3921 = vmatmul.mubr.f32.gmra.mxu0 %v677_v33 }
 0x2b0   : > { %v9748_v57 = vadd.f32 %v3232_v50, %v9365_v18  ;;  %v9751_v20 = vadd.f32 %v3457_v6, %v9368_v44  ;;  %3700 = vmatprep.mubr.f32.mxu1 %v1501_v23  ;;  %3925 = vmatprep.mubr.f32.mxu0 %v703_v52  ;;  %v2038_v44 = vld [vmem:[#allocation5 + $0x6d8] sm:$0xff]  ;;  %v1525_v52 = vld [vmem:[%s8469_s7 + $0x28d0] sm:$0xff]  ;;  %v727_v50 = vld [vmem:[%s8469_s7 + $0xfe0] sm:$0xff] }
 0x2b1   : > { %v3234_v43 = vpop.f32.mrf.mxu0  ;;  %v3459_v56 = vpop.f32.mrf.mxu1  ;;  %4574 = vmatprep.subr.mxu0 %v13058_v61 }
 0x2b2   : > { %4575 = vmatpush2.msra.mxu0 %v2039_v5  ;;  %v1551_v5 = vld [vmem:[%s8469_s7 + $0x29a0] sm:$0xff]  ;;  %v753_v56 = vld [vmem:[%s8469_s7 + $0x10b0] sm:$0xff] }
 0x2b3   : > { %v3237_v18 = vpop.f32.mrf.mxu0  ;;  %v3462_v47 = vpop.f32.mrf.mxu1  ;;  %3701 = vmatmul.mubr.f32.gmra.mxu1 %v1500_v54  ;;  %3926 = vmatmul.mubr.f32.gmra.mxu0 %v702_v10 }
 0x2b4   : > { %v9759_v33 = vadd.f32 %v3237_v18, %v9377_v49  ;;  %v9762_v23 = vadd.f32 %v3462_v47, %v9380_v32  ;;  %3705 = vmatprep.mubr.f32.mxu1 %v1526_v16  ;;  %3930 = vmatprep.mubr.f32.mxu0 %v728_v7  ;;  %v2037_v32 = vld [vmem:[#allocation5 + $0x6d0] sm:$0xff]  ;;  %v1550_v7 = vld [vmem:[%s8469_s7 + $0x2998] sm:$0xff]  ;;  %v752_v18 = vld [vmem:[%s8469_s7 + $0x10a8] sm:$0xff] }
 0x2b5   : > { %v3239_v6 = vpop.f32.mrf.mxu0  ;;  %v3464_v43 = vpop.f32.mrf.mxu1  ;;  %4576 = vmatprep.subr.mxu0 %v13058_v61 }
 0x2b6   : > { %4577 = vmatpush2.msra.mxu0 %v2038_v44  ;;  %v1576_v44 = vld [vmem:[%s8469_s7 + $0x2a68] sm:$0xff]  ;;  %v778_v43 = vld [vmem:[%s8469_s7 + $0x1178] sm:$0xff] }
 0x2b7   : > { %v3242_v49 = vpop.f32.mrf.mxu0  ;;  %v3467_v54 = vpop.f32.mrf.mxu1  ;;  %3706 = vmatmul.mubr.f32.gmra.mxu1 %v1525_v52  ;;  %3931 = vmatmul.mubr.f32.gmra.mxu0 %v727_v50 }
 0x2b8   : > { %v9770_v10 = vadd.f32 %v3242_v49, %v9389_v21  ;;  %v9773_v16 = vadd.f32 %v3467_v54, %v9392_v26  ;;  %3710 = vmatprep.mubr.f32.mxu1 %v1551_v5  ;;  %3935 = vmatprep.mubr.f32.mxu0 %v753_v56  ;;  %v2036_v26 = vld [vmem:[#allocation5 + $0x6c8] sm:$0xff]  ;;  %v1575_v56 = vld [vmem:[%s8469_s7 + $0x2a60] sm:$0xff]  ;;  %v777_v49 = vld [vmem:[%s8469_s7 + $0x1170] sm:$0xff] }
 0x2b9   : > { %v3244_v47 = vpop.f32.mrf.mxu0  ;;  %v3469_v6 = vpop.f32.mrf.mxu1  ;;  %4578 = vmatprep.subr.mxu0 %v13058_v61 }
 0x2ba   : > { %4579 = vmatpush2.msra.mxu0 %v2037_v32  ;;  %v1601_v32 = vld [vmem:[%s8469_s7 + $0x2b30] sm:$0xff]  ;;  %v803_v6 = vld [vmem:[%s8469_s7 + $0x1240] sm:$0xff] }
 0x2bb   : > { %v3247_v21 = vpop.f32.mrf.mxu0  ;;  %v3472_v52 = vpop.f32.mrf.mxu1  ;;  %3711 = vmatmul.mubr.f32.gmra.mxu1 %v1550_v7  ;;  %3936 = vmatmul.mubr.f32.gmra.mxu0 %v752_v18 }
 0x2bc   : > { %v9781_v50 = vadd.f32 %v3247_v21, %v9401_v45  ;;  %v9784_v5 = vadd.f32 %v3472_v52, %v9404_v19  ;;  %3715 = vmatprep.mubr.f32.mxu1 %v1576_v44  ;;  %3940 = vmatprep.mubr.f32.mxu0 %v778_v43  ;;  %v2035_v19 = vld [vmem:[#allocation5 + $0x6c0] sm:$0xff]  ;;  %v1600_v43 = vld [vmem:[%s8469_s7 + $0x2b28] sm:$0xff]  ;;  %v802_v21 = vld [vmem:[%s8469_s7 + $0x1238] sm:$0xff] }
 0x2bd   : > { %v3249_v54 = vpop.f32.mrf.mxu0  ;;  %v3474_v47 = vpop.f32.mrf.mxu1  ;;  %4580 = vmatprep.subr.mxu0 %v13058_v61 }
 0x2be   : > { %4581 = vmatpush2.msra.mxu0 %v2036_v26  ;;  %v1626_v26 = vld [vmem:[%s8469_s7 + $0x2bf8] sm:$0xff]  ;;  %v828_v47 = vld [vmem:[%s8469_s7 + $0x1308] sm:$0xff] }
 0x2bf   : > { %v3252_v45 = vpop.f32.mrf.mxu0  ;;  %v3477_v7 = vpop.f32.mrf.mxu1  ;;  %3716 = vmatmul.mubr.f32.gmra.mxu1 %v1575_v56  ;;  %3941 = vmatmul.mubr.f32.gmra.mxu0 %v777_v49 }
 0x2c0   : > { %v9792_v18 = vadd.f32 %v3252_v45, %v9413_v42  ;;  %v9795_v44 = vadd.f32 %v3477_v7, %v9416_v41  ;;  %3720 = vmatprep.mubr.f32.mxu1 %v1601_v32  ;;  %3945 = vmatprep.mubr.f32.mxu0 %v803_v6  ;;  %v2034_v41 = vld [vmem:[#allocation5 + $0x6b8] sm:$0xff]  ;;  %v1625_v6 = vld [vmem:[%s8469_s7 + $0x2bf0] sm:$0xff]  ;;  %v827_v45 = vld [vmem:[%s8469_s7 + $0x1300] sm:$0xff] }
 0x2c1   : > { %v3254_v52 = vpop.f32.mrf.mxu0  ;;  %v3479_v54 = vpop.f32.mrf.mxu1  ;;  %4582 = vmatprep.subr.mxu0 %v13058_v61 }
 0x2c2   : > { %4583 = vmatpush2.msra.mxu0 %v2035_v19  ;;  %v1651_v19 = vld [vmem:[%s8469_s7 + $0x2cc0] sm:$0xff]  ;;  %v853_v54 = vld [vmem:[%s8469_s7 + $0x13d0] sm:$0xff] }
 0x2c3   : > { %v3257_v42 = vpop.f32.mrf.mxu0  ;;  %v3482_v56 = vpop.f32.mrf.mxu1  ;;  %3721 = vmatmul.mubr.f32.gmra.mxu1 %v1600_v43  ;;  %3946 = vmatmul.mubr.f32.gmra.mxu0 %v802_v21 }
 0x2c4   : > { %v9803_v49 = vadd.f32 %v3257_v42, %v9425_v34  ;;  %v9806_v32 = vadd.f32 %v3482_v56, %v9428_v3  ;;  %3725 = vmatprep.mubr.f32.mxu1 %v1626_v26  ;;  %3950 = vmatprep.mubr.f32.mxu0 %v828_v47  ;;  %v2033_v3 = vld [vmem:[#allocation5 + $0x6b0] sm:$0xff]  ;;  %v1650_v47 = vld [vmem:[%s8469_s7 + $0x2cb8] sm:$0xff]  ;;  %v852_v42 = vld [vmem:[%s8469_s7 + $0x13c8] sm:$0xff] }
 0x2c5   : > { %v3259_v7 = vpop.f32.mrf.mxu0  ;;  %v3484_v52 = vpop.f32.mrf.mxu1  ;;  %4584 = vmatprep.subr.mxu0 %v13058_v61 }
 0x2c6   : > { %4585 = vmatpush2.msra.mxu0 %v2034_v41  ;;  %v1676_v41 = vld [vmem:[%s8469_s7 + $0x2d88] sm:$0xff]  ;;  %v878_v52 = vld [vmem:[%s8469_s7 + $0x1498] sm:$0xff] }
 0x2c7   : > { %v3262_v34 = vpop.f32.mrf.mxu0  ;;  %v3487_v43 = vpop.f32.mrf.mxu1  ;;  %3726 = vmatmul.mubr.f32.gmra.mxu1 %v1625_v6  ;;  %3951 = vmatmul.mubr.f32.gmra.mxu0 %v827_v45 }
 0x2c8   : > { %v9814_v21 = vadd.f32 %v3262_v34, %v9437_v39  ;;  %v9817_v26 = vadd.f32 %v3487_v43, %v9440_v25  ;;  %3730 = vmatprep.mubr.f32.mxu1 %v1651_v19  ;;  %3955 = vmatprep.mubr.f32.mxu0 %v853_v54  ;;  %v2032_v25 = vld [vmem:[#allocation5 + $0x6a8] sm:$0xff]  ;;  %v1675_v54 = vld [vmem:[%s8469_s7 + $0x2d80] sm:$0xff]  ;;  %v877_v34 = vld [vmem:[%s8469_s7 + $0x1490] sm:$0xff] }
 0x2c9   : > { %v3264_v56 = vpop.f32.mrf.mxu0  ;;  %v3489_v7 = vpop.f32.mrf.mxu1  ;;  %4586 = vmatprep.subr.mxu0 %v13058_v61 }
 0x2ca   : > { %4587 = vmatpush2.msra.mxu0 %v2033_v3  ;;  %v1701_v3 = vld [vmem:[%s8469_s7 + $0x2e50] sm:$0xff]  ;;  %v903_v7 = vld [vmem:[%s8469_s7 + $0x1560] sm:$0xff] }
 0x2cb   : > { %v3267_v39 = vpop.f32.mrf.mxu0  ;;  %v3492_v6 = vpop.f32.mrf.mxu1  ;;  %3731 = vmatmul.mubr.f32.gmra.mxu1 %v1650_v47  ;;  %3956 = vmatmul.mubr.f32.gmra.mxu0 %v852_v42 }
 0x2cc   : > { %v9825_v45 = vadd.f32 %v3267_v39, %v9449_v0  ;;  %v9828_v19 = vadd.f32 %v3492_v6, %v9452_v48  ;;  %3735 = vmatprep.mubr.f32.mxu1 %v1676_v41  ;;  %3960 = vmatprep.mubr.f32.mxu0 %v878_v52  ;;  %v2031_v48 = vld [vmem:[#allocation5 + $0x6a0] sm:$0xff]  ;;  %v1700_v52 = vld [vmem:[%s8469_s7 + $0x2e48] sm:$0xff]  ;;  %v902_v39 = vld [vmem:[%s8469_s7 + $0x1558] sm:$0xff] }
 0x2cd   : > { %v3269_v43 = vpop.f32.mrf.mxu0  ;;  %v3494_v56 = vpop.f32.mrf.mxu1  ;;  %4588 = vmatprep.subr.mxu0 %v13058_v61 }
 0x2ce   : > { %4589 = vmatpush2.msra.mxu0 %v2032_v25  ;;  %v1726_v25 = vld [vmem:[%s8469_s7 + $0x2f18] sm:$0xff]  ;;  %v928_v56 = vld [vmem:[%s8469_s7 + $0x1628] sm:$0xff] }
 0x2cf   : > { %v3272_v0 = vpop.f32.mrf.mxu0  ;;  %v3497_v47 = vpop.f32.mrf.mxu1  ;;  %3736 = vmatmul.mubr.f32.gmra.mxu1 %v1675_v54  ;;  %3961 = vmatmul.mubr.f32.gmra.mxu0 %v877_v34 }
 0x2d0   : > { %v9836_v42 = vadd.f32 %v3272_v0, %v9461_v27  ;;  %v9839_v41 = vadd.f32 %v3497_v47, %v9464_v8  ;;  %3740 = vmatprep.mubr.f32.mxu1 %v1701_v3  ;;  %3965 = vmatprep.mubr.f32.mxu0 %v903_v7  ;;  %v2030_v8 = vld [vmem:[#allocation5 + $0x698] sm:$0xff]  ;;  %v1725_v7 = vld [vmem:[%s8469_s7 + $0x2f10] sm:$0xff]  ;;  %v927_v0 = vld [vmem:[%s8469_s7 + $0x1620] sm:$0xff] }
 0x2d1   : > { %v3274_v6 = vpop.f32.mrf.mxu0  ;;  %v3499_v43 = vpop.f32.mrf.mxu1  ;;  %4590 = vmatprep.subr.mxu0 %v13058_v61 }
 0x2d2   : > { %4591 = vmatpush2.msra.mxu0 %v2031_v48  ;;  %v1751_v48 = vld [vmem:[%s8469_s7 + $0x2fe0] sm:$0xff]  ;;  %v953_v43 = vld [vmem:[%s8469_s7 + $0x16f0] sm:$0xff] }
 0x2d3   : > { %v3277_v27 = vpop.f32.mrf.mxu0  ;;  %v3502_v54 = vpop.f32.mrf.mxu1  ;;  %3741 = vmatmul.mubr.f32.gmra.mxu1 %v1700_v52  ;;  %3966 = vmatmul.mubr.f32.gmra.mxu0 %v902_v39 }
 0x2d4   : > { %v9847_v34 = vadd.f32 %v3277_v27, %v9473_v14  ;;  %v9850_v3 = vadd.f32 %v3502_v54, %v9476_v63  ;;  %3745 = vmatprep.mubr.f32.mxu1 %v1726_v25  ;;  %3970 = vmatprep.mubr.f32.mxu0 %v928_v56  ;;  %v2029_v63 = vld [vmem:[#allocation5 + $0x690] sm:$0xff]  ;;  %v1750_v56 = vld [vmem:[%s8469_s7 + $0x2fd8] sm:$0xff]  ;;  %v952_v27 = vld [vmem:[%s8469_s7 + $0x16e8] sm:$0xff] }
 0x2d5   : > { %v3279_v47 = vpop.f32.mrf.mxu0  ;;  %v3504_v6 = vpop.f32.mrf.mxu1  ;;  %4592 = vmatprep.subr.mxu0 %v13058_v61 }
 0x2d6   : > { %4593 = vmatpush2.msra.mxu0 %v2030_v8  ;;  %v1776_v8 = vld [vmem:[%s8469_s7 + $0x30a8] sm:$0xff]  ;;  %v978_v6 = vld [vmem:[%s8469_s7 + $0x17b8] sm:$0xff] }
 0x2d7   : > { %v3282_v14 = vpop.f32.mrf.mxu0  ;;  %v3507_v52 = vpop.f32.mrf.mxu1  ;;  %3746 = vmatmul.mubr.f32.gmra.mxu1 %v1725_v7  ;;  %3971 = vmatmul.mubr.f32.gmra.mxu0 %v927_v0 }
 0x2d8   : > { %v9858_v39 = vadd.f32 %v3282_v14, %v9485_v58  ;;  %v9861_v25 = vadd.f32 %v3507_v52, %v9488_v62  ;;  %3750 = vmatprep.mubr.f32.mxu1 %v1751_v48  ;;  %3975 = vmatprep.mubr.f32.mxu0 %v953_v43  ;;  %v2028_v62 = vld [vmem:[#allocation5 + $0x688] sm:$0xff]  ;;  %v1775_v43 = vld [vmem:[%s8469_s7 + $0x30a0] sm:$0xff]  ;;  %v977_v14 = vld [vmem:[%s8469_s7 + $0x17b0] sm:$0xff] }
 0x2d9   : > { %v3284_v54 = vpop.f32.mrf.mxu0  ;;  %v3509_v47 = vpop.f32.mrf.mxu1  ;;  %4594 = vmatprep.subr.mxu0 %v13058_v61 }
 0x2da   : > { %4595 = vmatpush2.msra.mxu0 %v2029_v63  ;;  %v1801_v63 = vld [vmem:[%s8469_s7 + $0x3170] sm:$0xff]  ;;  %v1003_v47 = vld [vmem:[%s8469_s7 + $0x1880] sm:$0xff] }
 0x2db   : > { %v3287_v58 = vpop.f32.mrf.mxu0  ;;  %v3512_v7 = vpop.f32.mrf.mxu1  ;;  %3751 = vmatmul.mubr.f32.gmra.mxu1 %v1750_v56  ;;  %3976 = vmatmul.mubr.f32.gmra.mxu0 %v952_v27 }
 0x2dc   : > { %v9869_v0 = vadd.f32 %v3287_v58, %v9497_v46  ;;  %v9872_v48 = vadd.f32 %v3512_v7, %v9500_v51  ;;  %3755 = vmatprep.mubr.f32.mxu1 %v1776_v8  ;;  %3980 = vmatprep.mubr.f32.mxu0 %v978_v6  ;;  %v1800_v8 = vld [vmem:[%s8469_s7 + $0x3168] sm:$0xff]  ;;  %v1002_v6 = vld [vmem:[%s8469_s7 + $0x1878] sm:$0xff]  ;;  %v2027_v58 = vld [vmem:[#allocation5 + $0x680] sm:$0xff] }
 0x2dd   : > { %v3289_v52 = vpop.f32.mrf.mxu0  ;;  %v3514_v54 = vpop.f32.mrf.mxu1  ;;  %4596 = vmatprep.subr.mxu0 %v13058_v61 }
 0x2de   : > { %4597 = vmatpush2.msra.mxu0 %v2028_v62  ;;  %v1028_v62 = vld [vmem:[%s8469_s7 + $0x1948] sm:$0xff]  ;;  %v230_v54 = vld [vmem:[%s8469_s7 + $0x58] sm:$0xff] }
 0x2df   : > { %v3292_v46 = vpop.f32.mrf.mxu0  ;;  %v3517_v56 = vpop.f32.mrf.mxu1  ;;  %3756 = vmatmul.mubr.f32.gmra.mxu1 %v1775_v43  ;;  %3981 = vmatmul.mubr.f32.gmra.mxu0 %v977_v14  ;;  %v13101_v14 = vld [vmem:[#allocation29_spill] sm:$0xff] }
 0x2e0   : > { %v9880_v51 = vadd.f32 %v3292_v46, %v9509_v17  ;;  %v9883_v27 = vadd.f32 %v3517_v56, %v9512_v35  ;;  %3760 = vmatprep.mubr.f32.mxu1 %v1801_v63  ;;  %3985 = vmatprep.mubr.f32.mxu0 %v1003_v47  ;;  %v1027_v47 = vld [vmem:[%s8469_s7 + $0x1940] sm:$0xff]  ;;  %v229_v46 = vld [vmem:[%s8469_s7 + $0x50] sm:$0xff] }
 0x2e1   : > { %v3294_v7 = vpop.f32.mrf.mxu0  ;;  %v3519_v52 = vpop.f32.mrf.mxu1  ;;  %4598 = vmatprep.subr.mxu0 %v13058_v61 }
 0x2e2   : > { %4599 = vmatpush2.msra.mxu0 %v2027_v58  ;;  %v2058_v58 = vld [vmem:[#allocation5 + $0x778] sm:$0xff]  ;;  %v1053_v52 = vld [vmem:[%s8469_s7 + $0x1a10] sm:$0xff] }
 0x2e3   : > { %v3297_v17 = vpop.f32.mrf.mxu0  ;;  %v3522_v43 = vpop.f32.mrf.mxu1  ;;  %3761 = vmatmul.mubr.f32.gmra.mxu1 %v1800_v8  ;;  %3986 = vmatmul.mubr.f32.gmra.mxu0 %v1002_v6  ;;  %v255_v8 = vld [vmem:[%s8469_s7 + $0x120] sm:$0xff] }
 0x2e4   : > { %v9891_v35 = vadd.f32 %v3297_v17, %v9521_v37  ;;  %v9894_v63 = vadd.f32 %v3522_v43, %v13101_v14  ;;  %3990 = vmatprep.mubr.f32.mxu0 %v1028_v62  ;;  %4215 = vmatprep.mubr.f32.mxu1 %v230_v54  ;;  %v2057_v17 = vld [vmem:[#allocation5 + $0x770] sm:$0xff]  ;;  %v1052_v43 = vld [vmem:[%s8469_s7 + $0x1a08] sm:$0xff]  ;;  %v254_v14 = vld [vmem:[%s8469_s7 + $0x118] sm:$0xff] }
 0x2e5   : > { %v3299_v56 = vpop.f32.mrf.mxu0  ;;  %v3524_v7 = vpop.f32.mrf.mxu1  ;;  %5306 = vmatprep.subr.mxu0 %v13058_v61 }
 0x2e6   : > { %13100 = vst [vmem:[#allocation19_spill] sm:$0xff] %v9891_v35  ;;  %13102 = vst [vmem:[#allocation28_spill] sm:$0xff] %v9894_v63  ;;  %v1078_v63 = vld [vmem:[%s8469_s7 + $0x1ad8] sm:$0xff]  ;;  %v280_v35 = vld [vmem:[%s8469_s7 + $0x1e8] sm:$0xff] }
 0x2e7   : > { %v3302_v37 = vpop.f32.mrf.mxu0  ;;  %v3527_v6 = vpop.f32.mrf.mxu1  ;;  %3991 = vmatmul.mubr.f32.gmra.mxu0 %v1027_v47  ;;  %4216 = vmatmul.mubr.f32.vlgmr.msra.gmra.mxu1 %v229_v46 }
 0x2e8   : > { %v9902_v62 = vadd.f32 %v3302_v37, %v9533_v13  ;;  %v9905_v54 = vadd.f32 %v3527_v6, %v9536_v55  ;;  %4922 = vmatpush1.msra.mxu1 %v2058_v58  ;;  %3995 = vmatprep.mubr.f32.mxu0 %v1053_v52  ;;  %v2056_v55 = vld [vmem:[#allocation5 + $0x768] sm:$0xff]  ;;  %v1077_v52 = vld [vmem:[%s8469_s7 + $0x1ad0] sm:$0xff] }
 0x2e9   : > { %v3304_v56 = vpop.f32.mrf.mxu0  ;;  %v3529_v7 = vpop.f32.mrf.mxu1  ;;  %4220 = vmatprep.mubr.f32.mxu1 %v255_v8  ;;  %4923 = vmatprep.subr.mxu1 %v13058_v61  ;;  %v279_v8 = vld [vmem:[%s8469_s7 + $0x1e0] sm:$0xff] }
 0x2ea   : > { %4924 = vmatpush1.msra.mxu1 %v2057_v17  ;;  %v1103_v17 = vld [vmem:[%s8469_s7 + $0x1ba0] sm:$0xff]  ;;  %v305_v56 = vld [vmem:[%s8469_s7 + $0x2b0] sm:$0xff]  ;;  %v304_v7 = vld [vmem:[%s8469_s7 + $0x2a8] sm:$0xff] }
 0x2eb   : > { %v3307_v13 = vpop.f32.mrf.mxu0  ;;  %v3532_v47 = vpop.f32.mrf.mxu1  ;;  %3996 = vmatmul.mubr.f32.gmra.mxu0 %v1052_v43  ;;  %4221 = vmatmul.mubr.f32.gmra.mxu1 %v254_v14  ;;  %v1102_v14 = vld [vmem:[%s8469_s7 + $0x1b98] sm:$0xff] }
 0x2ec   : > { %v9913_v46 = vadd.f32 %v3307_v13, %v9545_v60  ;;  %v9916_v58 = vadd.f32 %v3532_v47, %v9548_v11  ;;  %4000 = vmatprep.mubr.f32.mxu0 %v1078_v63  ;;  %4225 = vmatprep.mubr.f32.mxu1 %v280_v35  ;;  %v2055_v11 = vld [vmem:[#allocation5 + $0x760] sm:$0xff] }
 0x2ed   : > { %v3309_v37 = vpop.f32.mrf.mxu0  ;;  %v3534_v6 = vpop.f32.mrf.mxu1  ;;  %4925 = vmatprep.subr.mxu1 %v13058_v61 }
 0x2ee   : > { %4926 = vmatpush1.msra.mxu1 %v2056_v55  ;;  %v1128_v55 = vld [vmem:[%s8469_s7 + $0x1c68] sm:$0xff]  ;;  %v330_v37 = vld [vmem:[%s8469_s7 + $0x378] sm:$0xff] }
 0x2ef   : > { %v3312_v60 = vpop.f32.mrf.mxu0  ;;  %v3537_v43 = vpop.f32.mrf.mxu1  ;;  %4001 = vmatmul.mubr.f32.gmra.mxu0 %v1077_v52  ;;  %4226 = vmatmul.mubr.f32.gmra.mxu1 %v279_v8 }
 0x2f0   : > { %v9924_v35 = vadd.f32 %v3312_v60, %v9557_v53  ;;  %v9927_v63 = vadd.f32 %v3537_v43, %v9560_v1  ;;  %4005 = vmatprep.mubr.f32.mxu0 %v1103_v17  ;;  %4230 = vmatprep.mubr.f32.mxu1 %v305_v56  ;;  %v2054_v1 = vld [vmem:[#allocation5 + $0x758] sm:$0xff]  ;;  %v1127_v17 = vld [vmem:[%s8469_s7 + $0x1c60] sm:$0xff]  ;;  %v329_v56 = vld [vmem:[%s8469_s7 + $0x370] sm:$0xff] }
 0x2f1   : > { %v3314_v13 = vpop.f32.mrf.mxu0  ;;  %v3539_v47 = vpop.f32.mrf.mxu1  ;;  %4927 = vmatprep.subr.mxu1 %v13058_v61 }
 0x2f2   : > { %4928 = vmatpush1.msra.mxu1 %v2055_v11  ;;  %v1153_v11 = vld [vmem:[%s8469_s7 + $0x1d30] sm:$0xff]  ;;  %v355_v13 = vld [vmem:[%s8469_s7 + $0x440] sm:$0xff] }
 0x2f3   : > { %v3317_v53 = vpop.f32.mrf.mxu0  ;;  %v3542_v52 = vpop.f32.mrf.mxu1  ;;  %4006 = vmatmul.mubr.f32.gmra.mxu0 %v1102_v14  ;;  %4231 = vmatmul.mubr.f32.gmra.mxu1 %v304_v7 }
 0x2f4   : > { %v9935_v8 = vadd.f32 %v3317_v53, %v9569_v12  ;;  %v9938_v6 = vadd.f32 %v3542_v52, %v9572_v38  ;;  %4010 = vmatprep.mubr.f32.mxu0 %v1128_v55  ;;  %4235 = vmatprep.mubr.f32.mxu1 %v330_v37  ;;  %v2053_v38 = vld [vmem:[#allocation5 + $0x750] sm:$0xff]  ;;  %v1152_v55 = vld [vmem:[%s8469_s7 + $0x1d28] sm:$0xff]  ;;  %v354_v37 = vld [vmem:[%s8469_s7 + $0x438] sm:$0xff] }
 0x2f5   : > { %v3319_v60 = vpop.f32.mrf.mxu0  ;;  %v3544_v43 = vpop.f32.mrf.mxu1  ;;  %4929 = vmatprep.subr.mxu1 %v13058_v61 }
 0x2f6   : > { %4930 = vmatpush1.msra.mxu1 %v2054_v1  ;;  %v1178_v1 = vld [vmem:[%s8469_s7 + $0x1df8] sm:$0xff]  ;;  %v380_v60 = vld [vmem:[%s8469_s7 + $0x508] sm:$0xff] }
 0x2f7   : > { %v3322_v12 = vpop.f32.mrf.mxu0  ;;  %v3547_v14 = vpop.f32.mrf.mxu1  ;;  %4011 = vmatmul.mubr.f32.gmra.mxu0 %v1127_v17  ;;  %4236 = vmatmul.mubr.f32.gmra.mxu1 %v329_v56 }
 0x2f8   : > { %v9946_v7 = vadd.f32 %v3322_v12, %v9581_v22  ;;  %v9949_v47 = vadd.f32 %v3547_v14, %v9584_v29  ;;  %4015 = vmatprep.mubr.f32.mxu0 %v1153_v11  ;;  %4240 = vmatprep.mubr.f32.mxu1 %v355_v13  ;;  %v2052_v29 = vld [vmem:[#allocation5 + $0x748] sm:$0xff]  ;;  %v1177_v11 = vld [vmem:[%s8469_s7 + $0x1df0] sm:$0xff]  ;;  %v379_v13 = vld [vmem:[%s8469_s7 + $0x500] sm:$0xff] }
 0x2f9   : > { %v3324_v53 = vpop.f32.mrf.mxu0  ;;  %v3549_v52 = vpop.f32.mrf.mxu1  ;;  %4931 = vmatprep.subr.mxu1 %v13058_v61 }
 0x2fa   : > { %4932 = vmatpush1.msra.mxu1 %v2053_v38  ;;  %v1203_v38 = vld [vmem:[%s8469_s7 + $0x1ec0] sm:$0xff]  ;;  %v405_v53 = vld [vmem:[%s8469_s7 + $0x5d0] sm:$0xff] }
 0x2fb   : > { %v3327_v22 = vpop.f32.mrf.mxu0  ;;  %v3552_v17 = vpop.f32.mrf.mxu1  ;;  %4016 = vmatmul.mubr.f32.gmra.mxu0 %v1152_v55  ;;  %4241 = vmatmul.mubr.f32.gmra.mxu1 %v354_v37  ;;  %v13104_v52 = vld [vmem:[#allocation30_spill] sm:$0xff] }
 0x2fc   : > { %v9957_v56 = vadd.f32 %v3327_v22, %v9593_v31  ;;  %v9960_v43 = vadd.f32 %v3552_v17, %v9596_v24  ;;  %4020 = vmatprep.mubr.f32.mxu0 %v1178_v1  ;;  %4245 = vmatprep.mubr.f32.mxu1 %v380_v60  ;;  %v2051_v24 = vld [vmem:[#allocation5 + $0x740] sm:$0xff]  ;;  %v1202_v60 = vld [vmem:[%s8469_s7 + $0x1eb8] sm:$0xff]  ;;  %v404_v22 = vld [vmem:[%s8469_s7 + $0x5c8] sm:$0xff] }
 0x2fd   : > { %v3329_v12 = vpop.f32.mrf.mxu0  ;;  %v3554_v14 = vpop.f32.mrf.mxu1  ;;  %4933 = vmatprep.subr.mxu1 %v13058_v61 }
 0x2fe   : > { %4934 = vmatpush1.msra.mxu1 %v2052_v29  ;;  %v1228_v29 = vld [vmem:[%s8469_s7 + $0x1f88] sm:$0xff]  ;;  %v430_v14 = vld [vmem:[%s8469_s7 + $0x698] sm:$0xff] }
 0x2ff   : > { %v3332_v31 = vpop.f32.mrf.mxu0  ;;  %v3557_v55 = vpop.f32.mrf.mxu1  ;;  %4021 = vmatmul.mubr.f32.gmra.mxu0 %v1177_v11  ;;  %4246 = vmatmul.mubr.f32.gmra.mxu1 %v379_v13  ;;  %v2050_v13 = vld [vmem:[#allocation5 + $0x738] sm:$0xff] }
 0x300   : > { %v9968_v37 = vadd.f32 %v3332_v31, %v9605_v40  ;;  %v9971_v1 = vadd.f32 %v3557_v55, %v13104_v52  ;;  %4025 = vmatprep.mubr.f32.mxu0 %v1203_v38  ;;  %4250 = vmatprep.mubr.f32.mxu1 %v405_v53  ;;  %v13106_v38 = vld [vmem:[#allocation12_spill] sm:$0xff]  ;;  %v13108_v31 = vld [vmem:[#allocation21_spill] sm:$0xff] }
 0x301   : > { %v3334_v17 = vpop.f32.mrf.mxu0  ;;  %v3559_v12 = vpop.f32.mrf.mxu1  ;;  %4935 = vmatprep.subr.mxu1 %v13058_v61  ;;  %v1227_v52 = vld [vmem:[%s8469_s7 + $0x1f80] sm:$0xff] }
 0x302   : > { %13103 = vst [vmem:[#allocation20_spill] sm:$0xff] %v9968_v37  ;;  %13105 = vst [vmem:[#allocation29_spill] sm:$0xff] %v9971_v1  ;;  %4936 = vmatpush1.msra.mxu1 %v2051_v24  ;;  %v429_v17 = vld [vmem:[%s8469_s7 + $0x690] sm:$0xff]  ;;  %v455_v37 = vld [vmem:[%s8469_s7 + $0x760] sm:$0xff] }
 0x303   : > { %v3337_v40 = vpop.f32.mrf.mxu0  ;;  %v3562_v11 = vpop.f32.mrf.mxu1  ;;  %4026 = vmatmul.mubr.f32.gmra.mxu0 %v1202_v60  ;;  %4251 = vmatmul.mubr.f32.gmra.mxu1 %v404_v22  ;;  %v1253_v24 = vld [vmem:[%s8469_s7 + $0x2050] sm:$0xff] }
 0x304   : > { %v9979_v53 = vadd.f32 %v3337_v40, %v13106_v38  ;;  %v9982_v55 = vadd.f32 %v3562_v11, %v13108_v31  ;;  %4030 = vmatprep.mubr.f32.mxu0 %v1228_v29  ;;  %4255 = vmatprep.mubr.f32.mxu1 %v430_v14  ;;  %v2049_v40 = vld [vmem:[#allocation5 + $0x730] sm:$0xff]  ;;  %v454_v31 = vld [vmem:[%s8469_s7 + $0x758] sm:$0xff] }
 0x305   : > { %v3339_v12 = vpop.f32.mrf.mxu0  ;;  %v3564_v1 = vpop.f32.mrf.mxu1  ;;  %4937 = vmatprep.subr.mxu1 %v13058_v61  ;;  %v13110_v29 = vld [vmem:[#allocation13_spill] sm:$0xff]  ;;  %v13112_v11 = vld [vmem:[#allocation22_spill] sm:$0xff] }
 0x306   : > { %13107 = vst [vmem:[#allocation30_spill] sm:$0xff] %v9979_v53  ;;  %13109 = vst [vmem:[#allocation12_spill] sm:$0xff] %v9982_v55  ;;  %4938 = vmatpush1.msra.mxu1 %v2050_v13  ;;  %v1252_v1 = vld [vmem:[%s8469_s7 + $0x2048] sm:$0xff]  ;;  %v1278_v13 = vld [vmem:[%s8469_s7 + $0x2118] sm:$0xff] }
 0x307   : > { %v3342_v60 = vpop.f32.mrf.mxu0  ;;  %v3567_v22 = vpop.f32.mrf.mxu1  ;;  %4031 = vmatmul.mubr.f32.gmra.mxu0 %v1227_v52  ;;  %4256 = vmatmul.mubr.f32.gmra.mxu1 %v429_v17  ;;  %v480_v53 = vld [vmem:[%s8469_s7 + $0x828] sm:$0xff] }
 0x308   : > { %v9990_v14 = vadd.f32 %v3342_v60, %v13110_v29  ;;  %v9993_v38 = vadd.f32 %v3567_v22, %v13112_v11  ;;  %4035 = vmatprep.mubr.f32.mxu0 %v1253_v24  ;;  %4260 = vmatprep.mubr.f32.mxu1 %v455_v37  ;;  %v2048_v60 = vld [vmem:[#allocation5 + $0x728] sm:$0xff]  ;;  %v13114_v24 = vld [vmem:[#allocation14_spill] sm:$0xff]  ;;  %v13116_v22 = vld [vmem:[#allocation23_spill] sm:$0xff] }
 0x309   : > { %v3344_v12 = vpop.f32.mrf.mxu0  ;;  %v3569_v55 = vpop.f32.mrf.mxu1  ;;  %4939 = vmatprep.subr.mxu1 %v13058_v61  ;;  %v479_v11 = vld [vmem:[%s8469_s7 + $0x820] sm:$0xff] }
 0x30a   : > { %13111 = vst [vmem:[#allocation21_spill] sm:$0xff] %v9990_v14  ;;  %13113 = vst [vmem:[#allocation13_spill] sm:$0xff] %v9993_v38  ;;  %4940 = vmatpush1.msra.mxu1 %v2049_v40  ;;  %v1277_v55 = vld [vmem:[%s8469_s7 + $0x2110] sm:$0xff]  ;;  %v1303_v40 = vld [vmem:[%s8469_s7 + $0x21e0] sm:$0xff] }
 0x30b   : > { %v3347_v52 = vpop.f32.mrf.mxu0  ;;  %v3572_v17 = vpop.f32.mrf.mxu1  ;;  %4036 = vmatmul.mubr.f32.gmra.mxu0 %v1252_v1  ;;  %4261 = vmatmul.mubr.f32.gmra.mxu1 %v454_v31  ;;  %v505_v14 = vld [vmem:[%s8469_s7 + $0x8f0] sm:$0xff] }
 0x30c   : > { %v10001_v37 = vadd.f32 %v3347_v52, %v13114_v24  ;;  %v10004_v29 = vadd.f32 %v3572_v17, %v13116_v22  ;;  %4040 = vmatprep.mubr.f32.mxu0 %v1278_v13  ;;  %4265 = vmatprep.mubr.f32.mxu1 %v480_v53  ;;  %v2047_v52 = vld [vmem:[#allocation5 + $0x720] sm:$0xff]  ;;  %v504_v22 = vld [vmem:[%s8469_s7 + $0x8e8] sm:$0xff] }
 0x30d   : > { %v3349_v12 = vpop.f32.mrf.mxu0  ;;  %v3574_v38 = vpop.f32.mrf.mxu1  ;;  %4941 = vmatprep.subr.mxu1 %v13058_v61  ;;  %v13118_v13 = vld [vmem:[#allocation15_spill] sm:$0xff]  ;;  %v13120_v17 = vld [vmem:[#allocation24_spill] sm:$0xff] }
 0x30e   : > { %13115 = vst [vmem:[#allocation22_spill] sm:$0xff] %v10001_v37  ;;  %13117 = vst [vmem:[#allocation14_spill] sm:$0xff] %v10004_v29  ;;  %4942 = vmatpush1.msra.mxu1 %v2048_v60  ;;  %v1302_v38 = vld [vmem:[%s8469_s7 + $0x21d8] sm:$0xff]  ;;  %v1328_v60 = vld [vmem:[%s8469_s7 + $0x22a8] sm:$0xff] }
 0x30f   : > { %v3352_v1 = vpop.f32.mrf.mxu0  ;;  %v3577_v31 = vpop.f32.mrf.mxu1  ;;  %4041 = vmatmul.mubr.f32.gmra.mxu0 %v1277_v55  ;;  %4266 = vmatmul.mubr.f32.gmra.mxu1 %v479_v11  ;;  %v530_v37 = vld [vmem:[%s8469_s7 + $0x9b8] sm:$0xff] }
 0x310   : > { %v10012_v53 = vadd.f32 %v3352_v1, %v13118_v13  ;;  %v10015_v24 = vadd.f32 %v3577_v31, %v13120_v17  ;;  %4045 = vmatprep.mubr.f32.mxu0 %v1303_v40  ;;  %4270 = vmatprep.mubr.f32.mxu1 %v505_v14  ;;  %v2046_v1 = vld [vmem:[#allocation5 + $0x718] sm:$0xff]  ;;  %v13122_v40 = vld [vmem:[#allocation16_spill] sm:$0xff]  ;;  %v13124_v31 = vld [vmem:[#allocation25_spill] sm:$0xff] }
 0x311   : > { %v3354_v12 = vpop.f32.mrf.mxu0  ;;  %v3579_v29 = vpop.f32.mrf.mxu1  ;;  %4943 = vmatprep.subr.mxu1 %v13058_v61  ;;  %v529_v17 = vld [vmem:[%s8469_s7 + $0x9b0] sm:$0xff] }
 0x312   : > { %13119 = vst [vmem:[#allocation23_spill] sm:$0xff] %v10012_v53  ;;  %13121 = vst [vmem:[#allocation15_spill] sm:$0xff] %v10015_v24  ;;  %4944 = vmatpush1.msra.mxu1 %v2047_v52  ;;  %v1327_v29 = vld [vmem:[%s8469_s7 + $0x22a0] sm:$0xff]  ;;  %v1353_v52 = vld [vmem:[%s8469_s7 + $0x2370] sm:$0xff] }
 0x313   : > { %v3357_v55 = vpop.f32.mrf.mxu0  ;;  %v3582_v11 = vpop.f32.mrf.mxu1  ;;  %4046 = vmatmul.mubr.f32.gmra.mxu0 %v1302_v38  ;;  %4271 = vmatmul.mubr.f32.gmra.mxu1 %v504_v22  ;;  %v555_v53 = vld [vmem:[%s8469_s7 + $0xa80] sm:$0xff] }
 0x314   : > { %v10023_v14 = vadd.f32 %v3357_v55, %v13122_v40  ;;  %v10026_v13 = vadd.f32 %v3582_v11, %v13124_v31  ;;  %4050 = vmatprep.mubr.f32.mxu0 %v1328_v60  ;;  %4275 = vmatprep.mubr.f32.mxu1 %v530_v37  ;;  %v2045_v55 = vld [vmem:[#allocation5 + $0x710] sm:$0xff]  ;;  %v554_v31 = vld [vmem:[%s8469_s7 + $0xa78] sm:$0xff] }
 0x315   : > { %v3359_v12 = vpop.f32.mrf.mxu0  ;;  %v3584_v24 = vpop.f32.mrf.mxu1  ;;  %4945 = vmatprep.subr.mxu1 %v13058_v61  ;;  %v13126_v60 = vld [vmem:[#allocation17_spill] sm:$0xff]  ;;  %v13128_v11 = vld [vmem:[#allocation26_spill] sm:$0xff] }
 0x316   : > { %13123 = vst [vmem:[#allocation24_spill] sm:$0xff] %v10023_v14  ;;  %13125 = vst [vmem:[#allocation16_spill] sm:$0xff] %v10026_v13  ;;  %4946 = vmatpush1.msra.mxu1 %v2046_v1  ;;  %v1352_v24 = vld [vmem:[%s8469_s7 + $0x2368] sm:$0xff]  ;;  %v1378_v1 = vld [vmem:[%s8469_s7 + $0x2438] sm:$0xff] }
 0x317   : > { %v3362_v38 = vpop.f32.mrf.mxu0  ;;  %v3587_v22 = vpop.f32.mrf.mxu1  ;;  %4051 = vmatmul.mubr.f32.gmra.mxu0 %v1327_v29  ;;  %4276 = vmatmul.mubr.f32.gmra.mxu1 %v529_v17  ;;  %v580_v14 = vld [vmem:[%s8469_s7 + $0xb48] sm:$0xff] }
 0x318   : > { %v10034_v37 = vadd.f32 %v3362_v38, %v13126_v60  ;;  %v10037_v40 = vadd.f32 %v3587_v22, %v13128_v11  ;;  %4055 = vmatprep.mubr.f32.mxu0 %v1353_v52  ;;  %4280 = vmatprep.mubr.f32.mxu1 %v555_v53  ;;  %v2044_v38 = vld [vmem:[#allocation5 + $0x708] sm:$0xff]  ;;  %v13130_v52 = vld [vmem:[#allocation18_spill] sm:$0xff]  ;;  %v13131_v22 = vld [vmem:[#allocation27_spill] sm:$0xff] }
 0x319   : > { %v3364_v12 = vpop.f32.mrf.mxu0  ;;  %v3589_v13 = vpop.f32.mrf.mxu1  ;;  %4947 = vmatprep.subr.mxu1 %v13058_v61  ;;  %v579_v11 = vld [vmem:[%s8469_s7 + $0xb40] sm:$0xff] }
 0x31a   : > { %13127 = vst [vmem:[#allocation25_spill] sm:$0xff] %v10034_v37  ;;  %13129 = vst [vmem:[#allocation17_spill] sm:$0xff] %v10037_v40  ;;  %4948 = vmatpush1.msra.mxu1 %v2045_v55  ;;  %v1377_v13 = vld [vmem:[%s8469_s7 + $0x2430] sm:$0xff]  ;;  %v1403_v55 = vld [vmem:[%s8469_s7 + $0x2500] sm:$0xff] }
 0x31b   : > { %v3367_v29 = vpop.f32.mrf.mxu0  ;;  %v3592_v17 = vpop.f32.mrf.mxu1  ;;  %4056 = vmatmul.mubr.f32.gmra.mxu0 %v1352_v24  ;;  %4281 = vmatmul.mubr.f32.gmra.mxu1 %v554_v31  ;;  %v605_v37 = vld [vmem:[%s8469_s7 + $0xc10] sm:$0xff] }
 0x31c   : > { %v10045_v53 = vadd.f32 %v3367_v29, %v13130_v52  ;;  %v10048_v60 = vadd.f32 %v3592_v17, %v13131_v22  ;;  %4060 = vmatprep.mubr.f32.mxu0 %v1378_v1  ;;  %4285 = vmatprep.mubr.f32.mxu1 %v580_v14  ;;  %v2043_v29 = vld [vmem:[#allocation5 + $0x700] sm:$0xff]  ;;  %v604_v17 = vld [vmem:[%s8469_s7 + $0xc08] sm:$0xff] }
 0x31d   : > { %v3369_v12 = vpop.f32.mrf.mxu0  ;;  %v3594_v40 = vpop.f32.mrf.mxu1  ;;  %4949 = vmatprep.subr.mxu1 %v13058_v61 }
 0x31e   : > { %4950 = vmatpush1.msra.mxu1 %v2044_v38  ;;  %v1402_v40 = vld [vmem:[%s8469_s7 + $0x24f8] sm:$0xff]  ;;  %v1428_v38 = vld [vmem:[%s8469_s7 + $0x25c8] sm:$0xff] }
 0x31f   : > { %v3372_v24 = vpop.f32.mrf.mxu0  ;;  %v3597_v31 = vpop.f32.mrf.mxu1  ;;  %4061 = vmatmul.mubr.f32.gmra.mxu0 %v1377_v13  ;;  %4286 = vmatmul.mubr.f32.gmra.mxu1 %v579_v11  ;;  %v630_v12 = vld [vmem:[%s8469_s7 + $0xcd8] sm:$0xff] }
 0x320   : > { %v10056_v14 = vadd.f32 %v3372_v24, %v9703_v4  ;;  %v10059_v1 = vadd.f32 %v3597_v31, %v9706_v28  ;;  %4065 = vmatprep.mubr.f32.mxu0 %v1403_v55  ;;  %4290 = vmatprep.mubr.f32.mxu1 %v605_v37  ;;  %v2074_v28 = vld [vmem:[#allocation5 + $0x7f8] sm:$0xff]  ;;  %v1427_v55 = vld [vmem:[%s8469_s7 + $0x25c0] sm:$0xff]  ;;  %v629_v24 = vld [vmem:[%s8469_s7 + $0xcd0] sm:$0xff] }
 0x321   : > { %v3374_v52 = vpop.f32.mrf.mxu0  ;;  %v3599_v22 = vpop.f32.mrf.mxu1  ;;  %4951 = vmatprep.subr.mxu1 %v13058_v61 }
 0x322   : > { %4952 = vmatpush1.msra.mxu1 %v2043_v29  ;;  %v1453_v29 = vld [vmem:[%s8469_s7 + $0x2690] sm:$0xff]  ;;  %v655_v22 = vld [vmem:[%s8469_s7 + $0xda0] sm:$0xff] }
 0x323   : > { %v3377_v4 = vpop.f32.mrf.mxu0  ;;  %v3602_v13 = vpop.f32.mrf.mxu1  ;;  %4066 = vmatmul.mubr.f32.gmra.mxu0 %v1402_v40  ;;  %4291 = vmatmul.mubr.f32.gmra.mxu1 %v604_v17 }
 0x324   : > { %v10067_v37 = vadd.f32 %v3377_v4, %v9715_v59  ;;  %v10070_v11 = vadd.f32 %v3602_v13, %v9718_v30  ;;  %4070 = vmatprep.mubr.f32.mxu0 %v1428_v38  ;;  %4295 = vmatprep.mubr.f32.mxu1 %v630_v12  ;;  %v2073_v30 = vld [vmem:[#allocation5 + $0x7f0] sm:$0xff]  ;;  %v1452_v12 = vld [vmem:[%s8469_s7 + $0x2688] sm:$0xff]  ;;  %v654_v4 = vld [vmem:[%s8469_s7 + $0xd98] sm:$0xff] }
 0x325   : > { %v3379_v31 = vpop.f32.mrf.mxu0  ;;  %v3604_v52 = vpop.f32.mrf.mxu1  ;;  %4953 = vmatprep.subr.mxu1 %v13058_v61 }
 0x326   : > { %4954 = vmatpush2.msra.mxu1 %v2074_v28  ;;  %v1478_v28 = vld [vmem:[%s8469_s7 + $0x2758] sm:$0xff]  ;;  %v680_v52 = vld [vmem:[%s8469_s7 + $0xe68] sm:$0xff] }
 0x327   : > { %v3607_v59 = vpop.f32.mrf.mxu1  ;;  %v3832_v40 = vpop.f32.mrf.mxu0  ;;  %4071 = vmatmul.mubr.f32.gmra.mxu0 %v1427_v55  ;;  %4296 = vmatmul.mubr.f32.gmra.mxu1 %v629_v24 }
 0x328   : > { %v10078_v17 = vadd.f32 %v3607_v59, %v9726_v2  ;;  %v10081_v38 = vadd.f32 %v3832_v40, %v9729_v15  ;;  %4075 = vmatprep.mubr.f32.mxu0 %v1453_v29  ;;  %4300 = vmatprep.mubr.f32.mxu1 %v655_v22  ;;  %v2072_v15 = vld [vmem:[#allocation5 + $0x7e8] sm:$0xff]  ;;  %v1477_v22 = vld [vmem:[%s8469_s7 + $0x2750] sm:$0xff]  ;;  %v679_v59 = vld [vmem:[%s8469_s7 + $0xe60] sm:$0xff] }
 0x329   : > { %v3609_v13 = vpop.f32.mrf.mxu1  ;;  %v3834_v31 = vpop.f32.mrf.mxu0  ;;  %4955 = vmatprep.subr.mxu1 %v13058_v61 }
 0x32a   : > { %4956 = vmatpush2.msra.mxu1 %v2073_v30  ;;  %v1503_v30 = vld [vmem:[%s8469_s7 + $0x2820] sm:$0xff]  ;;  %v705_v31 = vld [vmem:[%s8469_s7 + $0xf30] sm:$0xff] }
 0x32b   : > { %v3612_v2 = vpop.f32.mrf.mxu1  ;;  %v3837_v55 = vpop.f32.mrf.mxu0  ;;  %4076 = vmatmul.mubr.f32.gmra.mxu0 %v1452_v12  ;;  %4301 = vmatmul.mubr.f32.gmra.mxu1 %v654_v4 }
 0x32c   : > { %v10089_v24 = vadd.f32 %v3612_v2, %v9737_v36  ;;  %v10092_v29 = vadd.f32 %v3837_v55, %v9740_v9  ;;  %4080 = vmatprep.mubr.f32.mxu0 %v1478_v28  ;;  %4305 = vmatprep.mubr.f32.mxu1 %v680_v52  ;;  %v2071_v9 = vld [vmem:[#allocation5 + $0x7e0] sm:$0xff]  ;;  %v1502_v52 = vld [vmem:[%s8469_s7 + $0x2818] sm:$0xff]  ;;  %v704_v2 = vld [vmem:[%s8469_s7 + $0xf28] sm:$0xff] }
 0x32d   : > { %v3614_v40 = vpop.f32.mrf.mxu1  ;;  %v3839_v13 = vpop.f32.mrf.mxu0  ;;  %4957 = vmatprep.subr.mxu1 %v13058_v61 }
 0x32e   : > { %4958 = vmatpush2.msra.mxu1 %v2072_v15  ;;  %v1528_v15 = vld [vmem:[%s8469_s7 + $0x28e8] sm:$0xff]  ;;  %v730_v13 = vld [vmem:[%s8469_s7 + $0xff8] sm:$0xff] }
 0x32f   : > { %v3617_v36 = vpop.f32.mrf.mxu1  ;;  %v3842_v12 = vpop.f32.mrf.mxu0  ;;  %4081 = vmatmul.mubr.f32.gmra.mxu0 %v1477_v22  ;;  %4306 = vmatmul.mubr.f32.gmra.mxu1 %v679_v59 }
 0x330   : > { %v10100_v4 = vadd.f32 %v3617_v36, %v9748_v57  ;;  %v10103_v28 = vadd.f32 %v3842_v12, %v9751_v20  ;;  %4085 = vmatprep.mubr.f32.mxu0 %v1503_v30  ;;  %4310 = vmatprep.mubr.f32.mxu1 %v705_v31  ;;  %v2070_v20 = vld [vmem:[#allocation5 + $0x7d8] sm:$0xff]  ;;  %v1527_v31 = vld [vmem:[%s8469_s7 + $0x28e0] sm:$0xff]  ;;  %v729_v36 = vld [vmem:[%s8469_s7 + $0xff0] sm:$0xff] }
 0x331   : > { %v3619_v55 = vpop.f32.mrf.mxu1  ;;  %v3844_v40 = vpop.f32.mrf.mxu0  ;;  %4959 = vmatprep.subr.mxu1 %v13058_v61 }
 0x332   : > { %4960 = vmatpush2.msra.mxu1 %v2071_v9  ;;  %v1553_v9 = vld [vmem:[%s8469_s7 + $0x29b0] sm:$0xff]  ;;  %v755_v40 = vld [vmem:[%s8469_s7 + $0x10c0] sm:$0xff] }
 0x333   : > { %v3622_v57 = vpop.f32.mrf.mxu1  ;;  %v3847_v22 = vpop.f32.mrf.mxu0  ;;  %4086 = vmatmul.mubr.f32.gmra.mxu0 %v1502_v52  ;;  %4311 = vmatmul.mubr.f32.gmra.mxu1 %v704_v2 }
 0x334   : > { %v10111_v59 = vadd.f32 %v3622_v57, %v9759_v33  ;;  %v10114_v30 = vadd.f32 %v3847_v22, %v9762_v23  ;;  %4090 = vmatprep.mubr.f32.mxu0 %v1528_v15  ;;  %4315 = vmatprep.mubr.f32.mxu1 %v730_v13  ;;  %v2069_v23 = vld [vmem:[#allocation5 + $0x7d0] sm:$0xff]  ;;  %v1552_v13 = vld [vmem:[%s8469_s7 + $0x29a8] sm:$0xff]  ;;  %v754_v57 = vld [vmem:[%s8469_s7 + $0x10b8] sm:$0xff] }
 0x335   : > { %v3624_v12 = vpop.f32.mrf.mxu1  ;;  %v3849_v55 = vpop.f32.mrf.mxu0  ;;  %4961 = vmatprep.subr.mxu1 %v13058_v61 }
 0x336   : > { %4962 = vmatpush2.msra.mxu1 %v2070_v20  ;;  %v1578_v20 = vld [vmem:[%s8469_s7 + $0x2a78] sm:$0xff]  ;;  %v780_v55 = vld [vmem:[%s8469_s7 + $0x1188] sm:$0xff] }
 0x337   : > { %v3627_v33 = vpop.f32.mrf.mxu1  ;;  %v3852_v52 = vpop.f32.mrf.mxu0  ;;  %4091 = vmatmul.mubr.f32.gmra.mxu0 %v1527_v31  ;;  %4316 = vmatmul.mubr.f32.gmra.mxu1 %v729_v36 }
 0x338   : > { %v10122_v2 = vadd.f32 %v3627_v33, %v9770_v10  ;;  %v10125_v15 = vadd.f32 %v3852_v52, %v9773_v16  ;;  %4095 = vmatprep.mubr.f32.mxu0 %v1553_v9  ;;  %4320 = vmatprep.mubr.f32.mxu1 %v755_v40  ;;  %v2068_v16 = vld [vmem:[#allocation5 + $0x7c8] sm:$0xff]  ;;  %v1577_v40 = vld [vmem:[%s8469_s7 + $0x2a70] sm:$0xff]  ;;  %v779_v33 = vld [vmem:[%s8469_s7 + $0x1180] sm:$0xff] }
 0x339   : > { %v3629_v22 = vpop.f32.mrf.mxu1  ;;  %v3854_v12 = vpop.f32.mrf.mxu0  ;;  %4963 = vmatprep.subr.mxu1 %v13058_v61 }
 0x33a   : > { %4964 = vmatpush2.msra.mxu1 %v2069_v23  ;;  %v1603_v23 = vld [vmem:[%s8469_s7 + $0x2b40] sm:$0xff]  ;;  %v805_v12 = vld [vmem:[%s8469_s7 + $0x1250] sm:$0xff] }
 0x33b   : > { %v3632_v10 = vpop.f32.mrf.mxu1  ;;  %v3857_v31 = vpop.f32.mrf.mxu0  ;;  %4096 = vmatmul.mubr.f32.gmra.mxu0 %v1552_v13  ;;  %4321 = vmatmul.mubr.f32.gmra.mxu1 %v754_v57 }
 0x33c   : > { %v10133_v36 = vadd.f32 %v3632_v10, %v9781_v50  ;;  %v10136_v9 = vadd.f32 %v3857_v31, %v9784_v5  ;;  %4100 = vmatprep.mubr.f32.mxu0 %v1578_v20  ;;  %4325 = vmatprep.mubr.f32.mxu1 %v780_v55  ;;  %v2067_v5 = vld [vmem:[#allocation5 + $0x7c0] sm:$0xff]  ;;  %v1602_v55 = vld [vmem:[%s8469_s7 + $0x2b38] sm:$0xff]  ;;  %v804_v10 = vld [vmem:[%s8469_s7 + $0x1248] sm:$0xff] }
 0x33d   : > { %v3634_v52 = vpop.f32.mrf.mxu1  ;;  %v3859_v22 = vpop.f32.mrf.mxu0  ;;  %4965 = vmatprep.subr.mxu1 %v13058_v61 }
 0x33e   : > { %4966 = vmatpush2.msra.mxu1 %v2068_v16  ;;  %v1628_v16 = vld [vmem:[%s8469_s7 + $0x2c08] sm:$0xff]  ;;  %v830_v22 = vld [vmem:[%s8469_s7 + $0x1318] sm:$0xff] }
 0x33f   : > { %v3637_v50 = vpop.f32.mrf.mxu1  ;;  %v3862_v13 = vpop.f32.mrf.mxu0  ;;  %4101 = vmatmul.mubr.f32.gmra.mxu0 %v1577_v40  ;;  %4326 = vmatmul.mubr.f32.gmra.mxu1 %v779_v33 }
 0x340   : > { %v10144_v57 = vadd.f32 %v3637_v50, %v9792_v18  ;;  %v10147_v20 = vadd.f32 %v3862_v13, %v9795_v44  ;;  %4105 = vmatprep.mubr.f32.mxu0 %v1603_v23  ;;  %4330 = vmatprep.mubr.f32.mxu1 %v805_v12  ;;  %v2066_v44 = vld [vmem:[#allocation5 + $0x7b8] sm:$0xff]  ;;  %v1627_v12 = vld [vmem:[%s8469_s7 + $0x2c00] sm:$0xff]  ;;  %v829_v50 = vld [vmem:[%s8469_s7 + $0x1310] sm:$0xff] }
 0x341   : > { %v3639_v31 = vpop.f32.mrf.mxu1  ;;  %v3864_v52 = vpop.f32.mrf.mxu0  ;;  %4967 = vmatprep.subr.mxu1 %v13058_v61 }
 0x342   : > { %4968 = vmatpush2.msra.mxu1 %v2067_v5  ;;  %v1653_v5 = vld [vmem:[%s8469_s7 + $0x2cd0] sm:$0xff]  ;;  %v855_v52 = vld [vmem:[%s8469_s7 + $0x13e0] sm:$0xff] }
 0x343   : > { %v3642_v18 = vpop.f32.mrf.mxu1  ;;  %v3867_v40 = vpop.f32.mrf.mxu0  ;;  %4106 = vmatmul.mubr.f32.gmra.mxu0 %v1602_v55  ;;  %4331 = vmatmul.mubr.f32.gmra.mxu1 %v804_v10 }
 0x344   : > { %v10155_v33 = vadd.f32 %v3642_v18, %v9803_v49  ;;  %v10158_v23 = vadd.f32 %v3867_v40, %v9806_v32  ;;  %4110 = vmatprep.mubr.f32.mxu0 %v1628_v16  ;;  %4335 = vmatprep.mubr.f32.mxu1 %v830_v22  ;;  %v2065_v32 = vld [vmem:[#allocation5 + $0x7b0] sm:$0xff]  ;;  %v1652_v22 = vld [vmem:[%s8469_s7 + $0x2cc8] sm:$0xff]  ;;  %v854_v18 = vld [vmem:[%s8469_s7 + $0x13d8] sm:$0xff] }
 0x345   : > { %v3644_v13 = vpop.f32.mrf.mxu1  ;;  %v3869_v31 = vpop.f32.mrf.mxu0  ;;  %4969 = vmatprep.subr.mxu1 %v13058_v61 }
 0x346   : > { %4970 = vmatpush2.msra.mxu1 %v2066_v44  ;;  %v1678_v44 = vld [vmem:[%s8469_s7 + $0x2d98] sm:$0xff]  ;;  %v880_v31 = vld [vmem:[%s8469_s7 + $0x14a8] sm:$0xff] }
 0x347   : > { %v3647_v49 = vpop.f32.mrf.mxu1  ;;  %v3872_v55 = vpop.f32.mrf.mxu0  ;;  %4111 = vmatmul.mubr.f32.gmra.mxu0 %v1627_v12  ;;  %4336 = vmatmul.mubr.f32.gmra.mxu1 %v829_v50 }
 0x348   : > { %v10166_v10 = vadd.f32 %v3647_v49, %v9814_v21  ;;  %v10169_v16 = vadd.f32 %v3872_v55, %v9817_v26  ;;  %4115 = vmatprep.mubr.f32.mxu0 %v1653_v5  ;;  %4340 = vmatprep.mubr.f32.mxu1 %v855_v52  ;;  %v2064_v26 = vld [vmem:[#allocation5 + $0x7a8] sm:$0xff]  ;;  %v1677_v52 = vld [vmem:[%s8469_s7 + $0x2d90] sm:$0xff]  ;;  %v879_v49 = vld [vmem:[%s8469_s7 + $0x14a0] sm:$0xff] }
 0x349   : > { %v3649_v40 = vpop.f32.mrf.mxu1  ;;  %v3874_v13 = vpop.f32.mrf.mxu0  ;;  %4971 = vmatprep.subr.mxu1 %v13058_v61 }
 0x34a   : > { %4972 = vmatpush2.msra.mxu1 %v2065_v32  ;;  %v1703_v32 = vld [vmem:[%s8469_s7 + $0x2e60] sm:$0xff]  ;;  %v905_v13 = vld [vmem:[%s8469_s7 + $0x1570] sm:$0xff] }
 0x34b   : > { %v3652_v21 = vpop.f32.mrf.mxu1  ;;  %v3877_v12 = vpop.f32.mrf.mxu0  ;;  %4116 = vmatmul.mubr.f32.gmra.mxu0 %v1652_v22  ;;  %4341 = vmatmul.mubr.f32.gmra.mxu1 %v854_v18 }
 0x34c   : > { %v10177_v50 = vadd.f32 %v3652_v21, %v9825_v45  ;;  %v10180_v5 = vadd.f32 %v3877_v12, %v9828_v19  ;;  %4120 = vmatprep.mubr.f32.mxu0 %v1678_v44  ;;  %4345 = vmatprep.mubr.f32.mxu1 %v880_v31  ;;  %v2063_v19 = vld [vmem:[#allocation5 + $0x7a0] sm:$0xff]  ;;  %v1702_v31 = vld [vmem:[%s8469_s7 + $0x2e58] sm:$0xff]  ;;  %v904_v21 = vld [vmem:[%s8469_s7 + $0x1568] sm:$0xff] }
 0x34d   : > { %v3654_v55 = vpop.f32.mrf.mxu1  ;;  %v3879_v40 = vpop.f32.mrf.mxu0  ;;  %4973 = vmatprep.subr.mxu1 %v13058_v61 }
 0x34e   : > { %4974 = vmatpush2.msra.mxu1 %v2064_v26  ;;  %v1728_v26 = vld [vmem:[%s8469_s7 + $0x2f28] sm:$0xff]  ;;  %v930_v40 = vld [vmem:[%s8469_s7 + $0x1638] sm:$0xff] }
 0x34f   : > { %v3657_v45 = vpop.f32.mrf.mxu1  ;;  %v3882_v22 = vpop.f32.mrf.mxu0  ;;  %4121 = vmatmul.mubr.f32.gmra.mxu0 %v1677_v52  ;;  %4346 = vmatmul.mubr.f32.gmra.mxu1 %v879_v49 }
 0x350   : > { %v10188_v18 = vadd.f32 %v3657_v45, %v9836_v42  ;;  %v10191_v44 = vadd.f32 %v3882_v22, %v9839_v41  ;;  %4125 = vmatprep.mubr.f32.mxu0 %v1703_v32  ;;  %4350 = vmatprep.mubr.f32.mxu1 %v905_v13  ;;  %v2062_v41 = vld [vmem:[#allocation5 + $0x798] sm:$0xff]  ;;  %v1727_v13 = vld [vmem:[%s8469_s7 + $0x2f20] sm:$0xff]  ;;  %v929_v45 = vld [vmem:[%s8469_s7 + $0x1630] sm:$0xff] }
 0x351   : > { %v3659_v12 = vpop.f32.mrf.mxu1  ;;  %v3884_v55 = vpop.f32.mrf.mxu0  ;;  %4975 = vmatprep.subr.mxu1 %v13058_v61 }
 0x352   : > { %4976 = vmatpush2.msra.mxu1 %v2063_v19  ;;  %v1753_v19 = vld [vmem:[%s8469_s7 + $0x2ff0] sm:$0xff]  ;;  %v955_v55 = vld [vmem:[%s8469_s7 + $0x1700] sm:$0xff] }
 0x353   : > { %v3662_v42 = vpop.f32.mrf.mxu1  ;;  %v3887_v52 = vpop.f32.mrf.mxu0  ;;  %4126 = vmatmul.mubr.f32.gmra.mxu0 %v1702_v31  ;;  %4351 = vmatmul.mubr.f32.gmra.mxu1 %v904_v21 }
 0x354   : > { %v10199_v49 = vadd.f32 %v3662_v42, %v9847_v34  ;;  %v10202_v32 = vadd.f32 %v3887_v52, %v9850_v3  ;;  %4130 = vmatprep.mubr.f32.mxu0 %v1728_v26  ;;  %4355 = vmatprep.mubr.f32.mxu1 %v930_v40  ;;  %v2061_v3 = vld [vmem:[#allocation5 + $0x790] sm:$0xff]  ;;  %v1752_v40 = vld [vmem:[%s8469_s7 + $0x2fe8] sm:$0xff]  ;;  %v954_v42 = vld [vmem:[%s8469_s7 + $0x16f8] sm:$0xff] }
 0x355   : > { %v3664_v22 = vpop.f32.mrf.mxu1  ;;  %v3889_v12 = vpop.f32.mrf.mxu0  ;;  %4977 = vmatprep.subr.mxu1 %v13058_v61 }
 0x356   : > { %4978 = vmatpush2.msra.mxu1 %v2062_v41  ;;  %v1778_v41 = vld [vmem:[%s8469_s7 + $0x30b8] sm:$0xff]  ;;  %v980_v12 = vld [vmem:[%s8469_s7 + $0x17c8] sm:$0xff] }
 0x357   : > { %v3667_v34 = vpop.f32.mrf.mxu1  ;;  %v3892_v31 = vpop.f32.mrf.mxu0  ;;  %4131 = vmatmul.mubr.f32.gmra.mxu0 %v1727_v13  ;;  %4356 = vmatmul.mubr.f32.gmra.mxu1 %v929_v45 }
 0x358   : > { %v10210_v21 = vadd.f32 %v3667_v34, %v9858_v39  ;;  %v10213_v26 = vadd.f32 %v3892_v31, %v9861_v25  ;;  %4135 = vmatprep.mubr.f32.mxu0 %v1753_v19  ;;  %4360 = vmatprep.mubr.f32.mxu1 %v955_v55  ;;  %v2060_v25 = vld [vmem:[#allocation5 + $0x788] sm:$0xff]  ;;  %v1777_v55 = vld [vmem:[%s8469_s7 + $0x30b0] sm:$0xff]  ;;  %v979_v34 = vld [vmem:[%s8469_s7 + $0x17c0] sm:$0xff] }
 0x359   : > { %v3669_v52 = vpop.f32.mrf.mxu1  ;;  %v3894_v22 = vpop.f32.mrf.mxu0  ;;  %4979 = vmatprep.subr.mxu1 %v13058_v61 }
 0x35a   : > { %4980 = vmatpush2.msra.mxu1 %v2061_v3  ;;  %v1803_v3 = vld [vmem:[%s8469_s7 + $0x3180] sm:$0xff]  ;;  %v1005_v22 = vld [vmem:[%s8469_s7 + $0x1890] sm:$0xff] }
 0x35b   : > { %v3672_v39 = vpop.f32.mrf.mxu1  ;;  %v3897_v13 = vpop.f32.mrf.mxu0  ;;  %4136 = vmatmul.mubr.f32.gmra.mxu0 %v1752_v40  ;;  %4361 = vmatmul.mubr.f32.gmra.mxu1 %v954_v42 }
 0x35c   : > { %v10221_v45 = vadd.f32 %v3672_v39, %v9869_v0  ;;  %v10224_v19 = vadd.f32 %v3897_v13, %v9872_v48  ;;  %4140 = vmatprep.mubr.f32.mxu0 %v1778_v41  ;;  %4365 = vmatprep.mubr.f32.mxu1 %v980_v12  ;;  %v1802_v41 = vld [vmem:[%s8469_s7 + $0x3178] sm:$0xff]  ;;  %v1004_v12 = vld [vmem:[%s8469_s7 + $0x1888] sm:$0xff]  ;;  %v2059_v39 = vld [vmem:[#allocation5 + $0x780] sm:$0xff] }
 0x35d   : > { %v3674_v31 = vpop.f32.mrf.mxu1  ;;  %v3899_v52 = vpop.f32.mrf.mxu0  ;;  %4981 = vmatprep.subr.mxu1 %v13058_v61 }
 0x35e   : > { %4982 = vmatpush2.msra.mxu1 %v2060_v25  ;;  %v1030_v25 = vld [vmem:[%s8469_s7 + $0x1958] sm:$0xff]  ;;  %v232_v52 = vld [vmem:[%s8469_s7 + $0x68] sm:$0xff] }
 0x35f   : > { %v3677_v0 = vpop.f32.mrf.mxu1  ;;  %v3902_v40 = vpop.f32.mrf.mxu0  ;;  %4141 = vmatmul.mubr.f32.gmra.mxu0 %v1777_v55  ;;  %4366 = vmatmul.mubr.f32.gmra.mxu1 %v979_v34 }
 0x360   : > { %v10232_v48 = vadd.f32 %v3677_v0, %v9880_v51  ;;  %v10235_v42 = vadd.f32 %v3902_v40, %v9883_v27  ;;  %4145 = vmatprep.mubr.f32.mxu0 %v1803_v3  ;;  %4370 = vmatprep.mubr.f32.mxu1 %v1005_v22  ;;  %v13133_v27 = vld [vmem:[#allocation19_spill] sm:$0xff]  ;;  %v13135_v3 = vld [vmem:[#allocation28_spill] sm:$0xff]  ;;  %v1029_v0 = vld [vmem:[%s8469_s7 + $0x1950] sm:$0xff] }
 0x361   : > { %v3679_v13 = vpop.f32.mrf.mxu1  ;;  %v3904_v31 = vpop.f32.mrf.mxu0  ;;  %4983 = vmatprep.subr.mxu1 %v13058_v61  ;;  %v231_v40 = vld [vmem:[%s8469_s7 + $0x60] sm:$0xff] }
 0x362   : > { %13132 = vst [vmem:[#allocation26_spill] sm:$0xff] %v10235_v42  ;;  %4984 = vmatpush2.msra.mxu1 %v2059_v39  ;;  %v2090_v39 = vld [vmem:[#allocation5 + $0x878] sm:$0xff]  ;;  %v1055_v42 = vld [vmem:[%s8469_s7 + $0x1a20] sm:$0xff] }
 0x363   : > { %v3682_v51 = vpop.f32.mrf.mxu1  ;;  %v3907_v55 = vpop.f32.mrf.mxu0  ;;  %4146 = vmatmul.mubr.f32.gmra.mxu0 %v1802_v41  ;;  %4371 = vmatmul.mubr.f32.gmra.mxu1 %v1004_v12  ;;  %v257_v41 = vld [vmem:[%s8469_s7 + $0x130] sm:$0xff] }
 0x364   : > { %v10243_v34 = vadd.f32 %v3682_v51, %v13133_v27  ;;  %v10246_v22 = vadd.f32 %v3907_v55, %v13135_v3  ;;  %4375 = vmatprep.mubr.f32.mxu1 %v1030_v25  ;;  %4600 = vmatprep.mubr.f32.mxu0 %v232_v52  ;;  %v2089_v55 = vld [vmem:[#allocation5 + $0x870] sm:$0xff]  ;;  %v1054_v27 = vld [vmem:[%s8469_s7 + $0x1a18] sm:$0xff]  ;;  %v256_v3 = vld [vmem:[%s8469_s7 + $0x128] sm:$0xff] }
 0x365   : > { %v3684_v13 = vpop.f32.mrf.mxu1  ;;  %v3909_v31 = vpop.f32.mrf.mxu0  ;;  %5691 = vmatprep.subr.mxu1 %v13058_v61 }
 0x366   : > { %13134 = vst [vmem:[#allocation18_spill] sm:$0xff] %v10243_v34  ;;  %13136 = vst [vmem:[#allocation27_spill] sm:$0xff] %v10246_v22  ;;  %v1080_v22 = vld [vmem:[%s8469_s7 + $0x1ae8] sm:$0xff]  ;;  %v282_v34 = vld [vmem:[%s8469_s7 + $0x1f8] sm:$0xff] }
 0x367   : > { %v3687_v12 = vpop.f32.mrf.mxu1  ;;  %v3912_v51 = vpop.f32.mrf.mxu0  ;;  %4376 = vmatmul.mubr.f32.gmra.mxu1 %v1029_v0  ;;  %4601 = vmatmul.mubr.f32.vlgmr.msra.gmra.mxu0 %v231_v40 }
 0x368   : > { %v10254_v25 = vadd.f32 %v3687_v12, %v9902_v62  ;;  %v10257_v52 = vadd.f32 %v3912_v51, %v9905_v54  ;;  %5307 = vmatpush1.msra.mxu0 %v2090_v39  ;;  %4380 = vmatprep.mubr.f32.mxu1 %v1055_v42  ;;  %v2088_v54 = vld [vmem:[#allocation5 + $0x868] sm:$0xff]  ;;  %v1079_v39 = vld [vmem:[%s8469_s7 + $0x1ae0] sm:$0xff] }
 0x369   : > { %v3689_v13 = vpop.f32.mrf.mxu1  ;;  %v3914_v31 = vpop.f32.mrf.mxu0  ;;  %4605 = vmatprep.mubr.f32.mxu0 %v257_v41  ;;  %5308 = vmatprep.subr.mxu0 %v13058_v61  ;;  %v281_v41 = vld [vmem:[%s8469_s7 + $0x1f0] sm:$0xff] }
 0x36a   : > { %5309 = vmatpush1.msra.mxu0 %v2089_v55  ;;  %v1105_v55 = vld [vmem:[%s8469_s7 + $0x1bb0] sm:$0xff]  ;;  %v307_v13 = vld [vmem:[%s8469_s7 + $0x2c0] sm:$0xff]  ;;  %v306_v31 = vld [vmem:[%s8469_s7 + $0x2b8] sm:$0xff] }
 0x36b   : > { %v3692_v62 = vpop.f32.mrf.mxu1  ;;  %v3917_v0 = vpop.f32.mrf.mxu0  ;;  %4381 = vmatmul.mubr.f32.gmra.mxu1 %v1054_v27  ;;  %4606 = vmatmul.mubr.f32.gmra.mxu0 %v256_v3  ;;  %v1104_v3 = vld [vmem:[%s8469_s7 + $0x1ba8] sm:$0xff] }
 0x36c   : > { %v10265_v42 = vadd.f32 %v3692_v62, %v9913_v46  ;;  %v10268_v40 = vadd.f32 %v3917_v0, %v9916_v58  ;;  %4385 = vmatprep.mubr.f32.mxu1 %v1080_v22  ;;  %4610 = vmatprep.mubr.f32.mxu0 %v282_v34  ;;  %v2087_v58 = vld [vmem:[#allocation5 + $0x860] sm:$0xff] }
 0x36d   : > { %v3694_v12 = vpop.f32.mrf.mxu1  ;;  %v3919_v51 = vpop.f32.mrf.mxu0  ;;  %5310 = vmatprep.subr.mxu0 %v13058_v61 }
 0x36e   : > { %5311 = vmatpush1.msra.mxu0 %v2088_v54  ;;  %v1130_v54 = vld [vmem:[%s8469_s7 + $0x1c78] sm:$0xff]  ;;  %v332_v12 = vld [vmem:[%s8469_s7 + $0x388] sm:$0xff] }
 0x36f   : > { %v3697_v46 = vpop.f32.mrf.mxu1  ;;  %v3922_v27 = vpop.f32.mrf.mxu0  ;;  %4386 = vmatmul.mubr.f32.gmra.mxu1 %v1079_v39  ;;  %4611 = vmatmul.mubr.f32.gmra.mxu0 %v281_v41 }
 0x370   : > { %v10276_v34 = vadd.f32 %v3697_v46, %v9924_v35  ;;  %v10279_v22 = vadd.f32 %v3922_v27, %v9927_v63  ;;  %4390 = vmatprep.mubr.f32.mxu1 %v1105_v55  ;;  %4615 = vmatprep.mubr.f32.mxu0 %v307_v13  ;;  %v2086_v63 = vld [vmem:[#allocation5 + $0x858] sm:$0xff]  ;;  %v1129_v55 = vld [vmem:[%s8469_s7 + $0x1c70] sm:$0xff]  ;;  %v331_v13 = vld [vmem:[%s8469_s7 + $0x380] sm:$0xff] }
 0x371   : > { %v3699_v62 = vpop.f32.mrf.mxu1  ;;  %v3924_v0 = vpop.f32.mrf.mxu0  ;;  %5312 = vmatprep.subr.mxu0 %v13058_v61 }
 0x372   : > { %5313 = vmatpush1.msra.mxu0 %v2087_v58  ;;  %v1155_v58 = vld [vmem:[%s8469_s7 + $0x1d40] sm:$0xff]  ;;  %v357_v62 = vld [vmem:[%s8469_s7 + $0x450] sm:$0xff] }
 0x373   : > { %v3702_v35 = vpop.f32.mrf.mxu1  ;;  %v3927_v39 = vpop.f32.mrf.mxu0  ;;  %4391 = vmatmul.mubr.f32.gmra.mxu1 %v1104_v3  ;;  %4616 = vmatmul.mubr.f32.gmra.mxu0 %v306_v31 }
 0x374   : > { %v10287_v41 = vadd.f32 %v3702_v35, %v9935_v8  ;;  %v10290_v51 = vadd.f32 %v3927_v39, %v9938_v6  ;;  %4395 = vmatprep.mubr.f32.mxu1 %v1130_v54  ;;  %4620 = vmatprep.mubr.f32.mxu0 %v332_v12  ;;  %v2085_v6 = vld [vmem:[#allocation5 + $0x850] sm:$0xff]  ;;  %v1154_v54 = vld [vmem:[%s8469_s7 + $0x1d38] sm:$0xff]  ;;  %v356_v12 = vld [vmem:[%s8469_s7 + $0x448] sm:$0xff] }
 0x375   : > { %v3704_v46 = vpop.f32.mrf.mxu1  ;;  %v3929_v27 = vpop.f32.mrf.mxu0  ;;  %5314 = vmatprep.subr.mxu0 %v13058_v61 }
 0x376   : > { %5315 = vmatpush1.msra.mxu0 %v2086_v63  ;;  %v1180_v63 = vld [vmem:[%s8469_s7 + $0x1e08] sm:$0xff]  ;;  %v382_v46 = vld [vmem:[%s8469_s7 + $0x518] sm:$0xff] }
 0x377   : > { %v3707_v8 = vpop.f32.mrf.mxu1  ;;  %v3932_v3 = vpop.f32.mrf.mxu0  ;;  %4396 = vmatmul.mubr.f32.gmra.mxu1 %v1129_v55  ;;  %4621 = vmatmul.mubr.f32.gmra.mxu0 %v331_v13 }
 0x378   : > { %v10298_v31 = vadd.f32 %v3707_v8, %v9946_v7  ;;  %v10301_v0 = vadd.f32 %v3932_v3, %v9949_v47  ;;  %4400 = vmatprep.mubr.f32.mxu1 %v1155_v58  ;;  %4625 = vmatprep.mubr.f32.mxu0 %v357_v62  ;;  %v2084_v47 = vld [vmem:[#allocation5 + $0x848] sm:$0xff]  ;;  %v1179_v58 = vld [vmem:[%s8469_s7 + $0x1e00] sm:$0xff]  ;;  %v381_v62 = vld [vmem:[%s8469_s7 + $0x510] sm:$0xff] }
 0x379   : > { %v3709_v35 = vpop.f32.mrf.mxu1  ;;  %v3934_v39 = vpop.f32.mrf.mxu0  ;;  %5316 = vmatprep.subr.mxu0 %v13058_v61 }
 0x37a   : > { %5317 = vmatpush1.msra.mxu0 %v2085_v6  ;;  %v1205_v6 = vld [vmem:[%s8469_s7 + $0x1ed0] sm:$0xff]  ;;  %v407_v35 = vld [vmem:[%s8469_s7 + $0x5e0] sm:$0xff] }
 0x37b   : > { %v3712_v7 = vpop.f32.mrf.mxu1  ;;  %v3937_v55 = vpop.f32.mrf.mxu0  ;;  %4401 = vmatmul.mubr.f32.gmra.mxu1 %v1154_v54  ;;  %4626 = vmatmul.mubr.f32.gmra.mxu0 %v356_v12  ;;  %v13138_v12 = vld [vmem:[#allocation20_spill] sm:$0xff] }
 0x37c   : > { %v10309_v13 = vadd.f32 %v3712_v7, %v9957_v56  ;;  %v10312_v27 = vadd.f32 %v3937_v55, %v9960_v43  ;;  %4405 = vmatprep.mubr.f32.mxu1 %v1180_v63  ;;  %4630 = vmatprep.mubr.f32.mxu0 %v382_v46  ;;  %v2083_v43 = vld [vmem:[#allocation5 + $0x840] sm:$0xff]  ;;  %v13140_v63 = vld [vmem:[#allocation29_spill] sm:$0xff]  ;;  %v406_v55 = vld [vmem:[%s8469_s7 + $0x5d8] sm:$0xff] }
 0x37d   : > { %v3714_v8 = vpop.f32.mrf.mxu1  ;;  %v3939_v3 = vpop.f32.mrf.mxu0  ;;  %5318 = vmatprep.subr.mxu0 %v13058_v61  ;;  %v1204_v7 = vld [vmem:[%s8469_s7 + $0x1ec8] sm:$0xff] }
 0x37e   : > { %13137 = vst [vmem:[#allocation19_spill] sm:$0xff] %v10312_v27  ;;  %5319 = vmatpush1.msra.mxu0 %v2084_v47  ;;  %v1230_v47 = vld [vmem:[%s8469_s7 + $0x1f98] sm:$0xff]  ;;  %v432_v27 = vld [vmem:[%s8469_s7 + $0x6a8] sm:$0xff] }
 0x37f   : > { %v3717_v56 = vpop.f32.mrf.mxu1  ;;  %v3942_v54 = vpop.f32.mrf.mxu0  ;;  %4406 = vmatmul.mubr.f32.gmra.mxu1 %v1179_v58  ;;  %4631 = vmatmul.mubr.f32.gmra.mxu0 %v381_v62 }
 0x380   : > { %v10320_v39 = vadd.f32 %v3717_v56, %v13138_v12  ;;  %v10323_v46 = vadd.f32 %v3942_v54, %v13140_v63  ;;  %4410 = vmatprep.mubr.f32.mxu1 %v1205_v6  ;;  %4635 = vmatprep.mubr.f32.mxu0 %v407_v35  ;;  %v2082_v56 = vld [vmem:[#allocation5 + $0x838] sm:$0xff]  ;;  %v13144_v54 = vld [vmem:[#allocation12_spill] sm:$0xff]  ;;  %v1229_v63 = vld [vmem:[%s8469_s7 + $0x1f90] sm:$0xff] }
 0x381   : > { %v3719_v8 = vpop.f32.mrf.mxu1  ;;  %v3944_v3 = vpop.f32.mrf.mxu0  ;;  %5320 = vmatprep.subr.mxu0 %v13058_v61  ;;  %v13142_v6 = vld [vmem:[#allocation30_spill] sm:$0xff] }
 0x382   : > { %13139 = vst [vmem:[#allocation28_spill] sm:$0xff] %v10320_v39  ;;  %13141 = vst [vmem:[#allocation20_spill] sm:$0xff] %v10323_v46  ;;  %5321 = vmatpush1.msra.mxu0 %v2083_v43  ;;  %v431_v8 = vld [vmem:[%s8469_s7 + $0x6a0] sm:$0xff]  ;;  %v457_v39 = vld [vmem:[%s8469_s7 + $0x770] sm:$0xff] }
 0x383   : > { %v3722_v58 = vpop.f32.mrf.mxu1  ;;  %v3947_v62 = vpop.f32.mrf.mxu0  ;;  %4411 = vmatmul.mubr.f32.gmra.mxu1 %v1204_v7  ;;  %4636 = vmatmul.mubr.f32.gmra.mxu0 %v406_v55  ;;  %v1255_v43 = vld [vmem:[%s8469_s7 + $0x2060] sm:$0xff] }
 0x384   : > { %v10331_v35 = vadd.f32 %v3722_v58, %v13142_v6  ;;  %v10334_v12 = vadd.f32 %v3947_v62, %v13144_v54  ;;  %4415 = vmatprep.mubr.f32.mxu1 %v1230_v47  ;;  %4640 = vmatprep.mubr.f32.mxu0 %v432_v27  ;;  %v2081_v58 = vld [vmem:[#allocation5 + $0x830] sm:$0xff]  ;;  %v456_v54 = vld [vmem:[%s8469_s7 + $0x768] sm:$0xff] }
 0x385   : > { %v3724_v3 = vpop.f32.mrf.mxu1  ;;  %v3949_v46 = vpop.f32.mrf.mxu0  ;;  %5322 = vmatprep.subr.mxu0 %v13058_v61  ;;  %v13146_v47 = vld [vmem:[#allocation21_spill] sm:$0xff] }
 0x386   : > { %13143 = vst [vmem:[#allocation29_spill] sm:$0xff] %v10331_v35  ;;  %13145 = vst [vmem:[#allocation30_spill] sm:$0xff] %v10334_v12  ;;  %5323 = vmatpush1.msra.mxu0 %v2082_v56  ;;  %v13148_v62 = vld [vmem:[#allocation13_spill] sm:$0xff]  ;;  %v1254_v46 = vld [vmem:[%s8469_s7 + $0x2058] sm:$0xff] }
 0x387   : > { %v3727_v7 = vpop.f32.mrf.mxu1  ;;  %v3952_v55 = vpop.f32.mrf.mxu0  ;;  %4416 = vmatmul.mubr.f32.gmra.mxu1 %v1229_v63  ;;  %4641 = vmatmul.mubr.f32.gmra.mxu0 %v431_v8  ;;  %v1280_v56 = vld [vmem:[%s8469_s7 + $0x2128] sm:$0xff]  ;;  %v482_v35 = vld [vmem:[%s8469_s7 + $0x838] sm:$0xff] }
 0x388   : > { %v10342_v27 = vadd.f32 %v3727_v7, %v13146_v47  ;;  %v10345_v6 = vadd.f32 %v3952_v55, %v13148_v62  ;;  %4420 = vmatprep.mubr.f32.mxu1 %v1255_v43  ;;  %4645 = vmatprep.mubr.f32.mxu0 %v457_v39  ;;  %v2080_v7 = vld [vmem:[#allocation5 + $0x828] sm:$0xff]  ;;  %v13150_v43 = vld [vmem:[#allocation22_spill] sm:$0xff] }
 0x389   : > { %v3729_v3 = vpop.f32.mrf.mxu1  ;;  %v3954_v12 = vpop.f32.mrf.mxu0  ;;  %5324 = vmatprep.subr.mxu0 %v13058_v61  ;;  %v13152_v55 = vld [vmem:[#allocation14_spill] sm:$0xff] }
 0x38a   : > { %13147 = vst [vmem:[#allocation12_spill] sm:$0xff] %v10342_v27  ;;  %13149 = vst [vmem:[#allocation21_spill] sm:$0xff] %v10345_v6  ;;  %5325 = vmatpush1.msra.mxu0 %v2081_v58  ;;  %v1279_v12 = vld [vmem:[%s8469_s7 + $0x2120] sm:$0xff]  ;;  %v481_v62 = vld [vmem:[%s8469_s7 + $0x830] sm:$0xff] }
 0x38b   : > { %v3732_v63 = vpop.f32.mrf.mxu1  ;;  %v3957_v8 = vpop.f32.mrf.mxu0  ;;  %4421 = vmatmul.mubr.f32.gmra.mxu1 %v1254_v46  ;;  %4646 = vmatmul.mubr.f32.gmra.mxu0 %v456_v54  ;;  %v1305_v58 = vld [vmem:[%s8469_s7 + $0x21f0] sm:$0xff]  ;;  %v507_v27 = vld [vmem:[%s8469_s7 + $0x900] sm:$0xff] }
 0x38c   : > { %v10353_v39 = vadd.f32 %v3732_v63, %v13150_v43  ;;  %v10356_v47 = vadd.f32 %v3957_v8, %v13152_v55  ;;  %4425 = vmatprep.mubr.f32.mxu1 %v1280_v56  ;;  %4650 = vmatprep.mubr.f32.mxu0 %v482_v35  ;;  %v2079_v63 = vld [vmem:[#allocation5 + $0x820] sm:$0xff]  ;;  %v506_v55 = vld [vmem:[%s8469_s7 + $0x8f8] sm:$0xff] }
 0x38d   : > { %v3734_v3 = vpop.f32.mrf.mxu1  ;;  %v3959_v6 = vpop.f32.mrf.mxu0  ;;  %5326 = vmatprep.subr.mxu0 %v13058_v61  ;;  %v13154_v56 = vld [vmem:[#allocation23_spill] sm:$0xff] }
 0x38e   : > { %13151 = vst [vmem:[#allocation13_spill] sm:$0xff] %v10353_v39  ;;  %13153 = vst [vmem:[#allocation22_spill] sm:$0xff] %v10356_v47  ;;  %5327 = vmatpush1.msra.mxu0 %v2080_v7  ;;  %v13156_v8 = vld [vmem:[#allocation15_spill] sm:$0xff]  ;;  %v1304_v6 = vld [vmem:[%s8469_s7 + $0x21e8] sm:$0xff] }
 0x38f   : > { %v3737_v46 = vpop.f32.mrf.mxu1  ;;  %v3962_v54 = vpop.f32.mrf.mxu0  ;;  %4426 = vmatmul.mubr.f32.gmra.mxu1 %v1279_v12  ;;  %4651 = vmatmul.mubr.f32.gmra.mxu0 %v481_v62  ;;  %v1330_v7 = vld [vmem:[%s8469_s7 + $0x22b8] sm:$0xff]  ;;  %v532_v39 = vld [vmem:[%s8469_s7 + $0x9c8] sm:$0xff] }
 0x390   : > { %v10364_v35 = vadd.f32 %v3737_v46, %v13154_v56  ;;  %v10367_v43 = vadd.f32 %v3962_v54, %v13156_v8  ;;  %4430 = vmatprep.mubr.f32.mxu1 %v1305_v58  ;;  %4655 = vmatprep.mubr.f32.mxu0 %v507_v27  ;;  %v2078_v46 = vld [vmem:[#allocation5 + $0x818] sm:$0xff]  ;;  %v13158_v58 = vld [vmem:[#allocation24_spill] sm:$0xff] }
 0x391   : > { %v3739_v3 = vpop.f32.mrf.mxu1  ;;  %v3964_v47 = vpop.f32.mrf.mxu0  ;;  %5328 = vmatprep.subr.mxu0 %v13058_v61  ;;  %v13160_v54 = vld [vmem:[#allocation16_spill] sm:$0xff] }
 0x392   : > { %13155 = vst [vmem:[#allocation14_spill] sm:$0xff] %v10364_v35  ;;  %13157 = vst [vmem:[#allocation23_spill] sm:$0xff] %v10367_v43  ;;  %5329 = vmatpush1.msra.mxu0 %v2079_v63  ;;  %v1329_v47 = vld [vmem:[%s8469_s7 + $0x22b0] sm:$0xff]  ;;  %v531_v8 = vld [vmem:[%s8469_s7 + $0x9c0] sm:$0xff] }
 0x393   : > { %v3742_v12 = vpop.f32.mrf.mxu1  ;;  %v3967_v62 = vpop.f32.mrf.mxu0  ;;  %4431 = vmatmul.mubr.f32.gmra.mxu1 %v1304_v6  ;;  %4656 = vmatmul.mubr.f32.gmra.mxu0 %v506_v55  ;;  %v1355_v63 = vld [vmem:[%s8469_s7 + $0x2380] sm:$0xff]  ;;  %v557_v35 = vld [vmem:[%s8469_s7 + $0xa90] sm:$0xff] }
 0x394   : > { %v10375_v27 = vadd.f32 %v3742_v12, %v13158_v58  ;;  %v10378_v56 = vadd.f32 %v3967_v62, %v13160_v54  ;;  %4435 = vmatprep.mubr.f32.mxu1 %v1330_v7  ;;  %4660 = vmatprep.mubr.f32.mxu0 %v532_v39  ;;  %v2077_v12 = vld [vmem:[#allocation5 + $0x810] sm:$0xff]  ;;  %v556_v54 = vld [vmem:[%s8469_s7 + $0xa88] sm:$0xff] }
 0x395   : > { %v3744_v3 = vpop.f32.mrf.mxu1  ;;  %v3969_v43 = vpop.f32.mrf.mxu0  ;;  %5330 = vmatprep.subr.mxu0 %v13058_v61  ;;  %v13162_v7 = vld [vmem:[#allocation25_spill] sm:$0xff] }
 0x396   : > { %13159 = vst [vmem:[#allocation15_spill] sm:$0xff] %v10375_v27  ;;  %13161 = vst [vmem:[#allocation24_spill] sm:$0xff] %v10378_v56  ;;  %5331 = vmatpush1.msra.mxu0 %v2078_v46  ;;  %v13163_v62 = vld [vmem:[#allocation17_spill] sm:$0xff]  ;;  %v1354_v43 = vld [vmem:[%s8469_s7 + $0x2378] sm:$0xff] }
 0x397   : > { %v3747_v6 = vpop.f32.mrf.mxu1  ;;  %v3972_v55 = vpop.f32.mrf.mxu0  ;;  %4436 = vmatmul.mubr.f32.gmra.mxu1 %v1329_v47  ;;  %4661 = vmatmul.mubr.f32.gmra.mxu0 %v531_v8  ;;  %v1380_v46 = vld [vmem:[%s8469_s7 + $0x2448] sm:$0xff]  ;;  %v582_v27 = vld [vmem:[%s8469_s7 + $0xb58] sm:$0xff] }
 0x398   : > { %v10386_v39 = vadd.f32 %v3747_v6, %v13162_v7  ;;  %v10389_v58 = vadd.f32 %v3972_v55, %v13163_v62  ;;  %4440 = vmatprep.mubr.f32.mxu1 %v1355_v63  ;;  %4665 = vmatprep.mubr.f32.mxu0 %v557_v35  ;;  %v2076_v6 = vld [vmem:[#allocation5 + $0x808] sm:$0xff]  ;;  %v581_v55 = vld [vmem:[%s8469_s7 + $0xb50] sm:$0xff] }
 0x399   : > { %v3749_v3 = vpop.f32.mrf.mxu1  ;;  %v3974_v56 = vpop.f32.mrf.mxu0  ;;  %5332 = vmatprep.subr.mxu0 %v13058_v61 }
 0x39a   : > { %5333 = vmatpush1.msra.mxu0 %v2077_v12  ;;  %v1379_v56 = vld [vmem:[%s8469_s7 + $0x2440] sm:$0xff]  ;;  %v1405_v12 = vld [vmem:[%s8469_s7 + $0x2510] sm:$0xff] }
 0x39b   : > { %v3752_v47 = vpop.f32.mrf.mxu1  ;;  %v3977_v8 = vpop.f32.mrf.mxu0  ;;  %4441 = vmatmul.mubr.f32.gmra.mxu1 %v1354_v43  ;;  %4666 = vmatmul.mubr.f32.gmra.mxu0 %v556_v54  ;;  %v607_v3 = vld [vmem:[%s8469_s7 + $0xc20] sm:$0xff] }
 0x39c   : > { %v10397_v35 = vadd.f32 %v3752_v47, %v10045_v53  ;;  %v10400_v63 = vadd.f32 %v3977_v8, %v10048_v60  ;;  %4445 = vmatprep.mubr.f32.mxu1 %v1380_v46  ;;  %4670 = vmatprep.mubr.f32.mxu0 %v582_v27  ;;  %v2075_v60 = vld [vmem:[#allocation5 + $0x800] sm:$0xff]  ;;  %v1404_v46 = vld [vmem:[%s8469_s7 + $0x2508] sm:$0xff]  ;;  %v606_v47 = vld [vmem:[%s8469_s7 + $0xc18] sm:$0xff] }
 0x39d   : > { %v3754_v7 = vpop.f32.mrf.mxu1  ;;  %v3979_v62 = vpop.f32.mrf.mxu0  ;;  %5334 = vmatprep.subr.mxu0 %v13058_v61 }
 0x39e   : > { %5335 = vmatpush1.msra.mxu0 %v2076_v6  ;;  %v1430_v6 = vld [vmem:[%s8469_s7 + $0x25d8] sm:$0xff]  ;;  %v632_v62 = vld [vmem:[%s8469_s7 + $0xce8] sm:$0xff] }
 0x39f   : > { %v3757_v53 = vpop.f32.mrf.mxu1  ;;  %v3982_v43 = vpop.f32.mrf.mxu0  ;;  %4446 = vmatmul.mubr.f32.gmra.mxu1 %v1379_v56  ;;  %4671 = vmatmul.mubr.f32.gmra.mxu0 %v581_v55 }
 0x3a0   : > { %v10408_v27 = vadd.f32 %v3757_v53, %v10056_v14  ;;  %v10411_v54 = vadd.f32 %v3982_v43, %v10059_v1  ;;  %4450 = vmatprep.mubr.f32.mxu1 %v1405_v12  ;;  %4675 = vmatprep.mubr.f32.mxu0 %v607_v3  ;;  %v2106_v1 = vld [vmem:[#allocation5 + $0x8f8] sm:$0xff]  ;;  %v1429_v3 = vld [vmem:[%s8469_s7 + $0x25d0] sm:$0xff]  ;;  %v631_v53 = vld [vmem:[%s8469_s7 + $0xce0] sm:$0xff] }
 0x3a1   : > { %v3759_v8 = vpop.f32.mrf.mxu1  ;;  %v3984_v7 = vpop.f32.mrf.mxu0  ;;  %5336 = vmatprep.subr.mxu0 %v13058_v61 }
 0x3a2   : > { %5337 = vmatpush1.msra.mxu0 %v2075_v60  ;;  %v1455_v60 = vld [vmem:[%s8469_s7 + $0x26a0] sm:$0xff]  ;;  %v657_v7 = vld [vmem:[%s8469_s7 + $0xdb0] sm:$0xff] }
 0x3a3   : > { %v3762_v14 = vpop.f32.mrf.mxu1  ;;  %v3987_v56 = vpop.f32.mrf.mxu0  ;;  %4451 = vmatmul.mubr.f32.gmra.mxu1 %v1404_v46  ;;  %4676 = vmatmul.mubr.f32.gmra.mxu0 %v606_v47 }
 0x3a4   : > { %v10419_v55 = vadd.f32 %v3762_v14, %v10067_v37  ;;  %v10422_v12 = vadd.f32 %v3987_v56, %v10070_v11  ;;  %4455 = vmatprep.mubr.f32.mxu1 %v1430_v6  ;;  %4680 = vmatprep.mubr.f32.mxu0 %v632_v62  ;;  %v2105_v11 = vld [vmem:[#allocation5 + $0x8f0] sm:$0xff]  ;;  %v1454_v62 = vld [vmem:[%s8469_s7 + $0x2698] sm:$0xff]  ;;  %v656_v14 = vld [vmem:[%s8469_s7 + $0xda8] sm:$0xff] }
 0x3a5   : > { %v3764_v43 = vpop.f32.mrf.mxu1  ;;  %v3989_v8 = vpop.f32.mrf.mxu0  ;;  %5338 = vmatprep.subr.mxu0 %v13058_v61 }
 0x3a6   : > { %5339 = vmatpush2.msra.mxu0 %v2106_v1  ;;  %v1480_v1 = vld [vmem:[%s8469_s7 + $0x2768] sm:$0xff]  ;;  %v682_v8 = vld [vmem:[%s8469_s7 + $0xe78] sm:$0xff] }
 0x3a7   : > { %v3992_v37 = vpop.f32.mrf.mxu0  ;;  %v4217_v46 = vpop.f32.mrf.mxu1  ;;  %4456 = vmatmul.mubr.f32.gmra.mxu1 %v1429_v3  ;;  %4681 = vmatmul.mubr.f32.gmra.mxu0 %v631_v53 }
 0x3a8   : > { %v10430_v47 = vadd.f32 %v3992_v37, %v10078_v17  ;;  %v10433_v6 = vadd.f32 %v4217_v46, %v10081_v38  ;;  %4460 = vmatprep.mubr.f32.mxu1 %v1455_v60  ;;  %4685 = vmatprep.mubr.f32.mxu0 %v657_v7  ;;  %v2104_v38 = vld [vmem:[#allocation5 + $0x8e8] sm:$0xff]  ;;  %v1479_v7 = vld [vmem:[%s8469_s7 + $0x2760] sm:$0xff]  ;;  %v681_v37 = vld [vmem:[%s8469_s7 + $0xe70] sm:$0xff] }
 0x3a9   : > { %v3994_v56 = vpop.f32.mrf.mxu0  ;;  %v4219_v43 = vpop.f32.mrf.mxu1  ;;  %5340 = vmatprep.subr.mxu0 %v13058_v61 }
 0x3aa   : > { %5341 = vmatpush2.msra.mxu0 %v2105_v11  ;;  %v1505_v11 = vld [vmem:[%s8469_s7 + $0x2830] sm:$0xff]  ;;  %v707_v43 = vld [vmem:[%s8469_s7 + $0xf40] sm:$0xff] }
 0x3ab   : > { %v3997_v17 = vpop.f32.mrf.mxu0  ;;  %v4222_v3 = vpop.f32.mrf.mxu1  ;;  %4461 = vmatmul.mubr.f32.gmra.mxu1 %v1454_v62  ;;  %4686 = vmatmul.mubr.f32.gmra.mxu0 %v656_v14 }
 0x3ac   : > { %v10441_v53 = vadd.f32 %v3997_v17, %v10089_v24  ;;  %v10444_v60 = vadd.f32 %v4222_v3, %v10092_v29  ;;  %4465 = vmatprep.mubr.f32.mxu1 %v1480_v1  ;;  %4690 = vmatprep.mubr.f32.mxu0 %v682_v8  ;;  %v2103_v29 = vld [vmem:[#allocation5 + $0x8e0] sm:$0xff]  ;;  %v1504_v8 = vld [vmem:[%s8469_s7 + $0x2828] sm:$0xff]  ;;  %v706_v17 = vld [vmem:[%s8469_s7 + $0xf38] sm:$0xff] }
 0x3ad   : > { %v3999_v46 = vpop.f32.mrf.mxu0  ;;  %v4224_v56 = vpop.f32.mrf.mxu1  ;;  %5342 = vmatprep.subr.mxu0 %v13058_v61 }
 0x3ae   : > { %5343 = vmatpush2.msra.mxu0 %v2104_v38  ;;  %v1530_v38 = vld [vmem:[%s8469_s7 + $0x28f8] sm:$0xff]  ;;  %v732_v56 = vld [vmem:[%s8469_s7 + $0x1008] sm:$0xff] }
 0x3af   : > { %v4002_v24 = vpop.f32.mrf.mxu0  ;;  %v4227_v62 = vpop.f32.mrf.mxu1  ;;  %4466 = vmatmul.mubr.f32.gmra.mxu1 %v1479_v7  ;;  %4691 = vmatmul.mubr.f32.gmra.mxu0 %v681_v37 }
 0x3b0   : > { %v10452_v14 = vadd.f32 %v4002_v24, %v10100_v4  ;;  %v10455_v1 = vadd.f32 %v4227_v62, %v10103_v28  ;;  %4470 = vmatprep.mubr.f32.mxu1 %v1505_v11  ;;  %4695 = vmatprep.mubr.f32.mxu0 %v707_v43  ;;  %v2102_v28 = vld [vmem:[#allocation5 + $0x8d8] sm:$0xff]  ;;  %v1529_v43 = vld [vmem:[%s8469_s7 + $0x28f0] sm:$0xff]  ;;  %v731_v24 = vld [vmem:[%s8469_s7 + $0x1000] sm:$0xff] }
 0x3b1   : > { %v4004_v3 = vpop.f32.mrf.mxu0  ;;  %v4229_v46 = vpop.f32.mrf.mxu1  ;;  %5344 = vmatprep.subr.mxu0 %v13058_v61 }
 0x3b2   : > { %5345 = vmatpush2.msra.mxu0 %v2103_v29  ;;  %v1555_v29 = vld [vmem:[%s8469_s7 + $0x29c0] sm:$0xff]  ;;  %v757_v46 = vld [vmem:[%s8469_s7 + $0x10d0] sm:$0xff] }
 0x3b3   : > { %v4007_v4 = vpop.f32.mrf.mxu0  ;;  %v4232_v7 = vpop.f32.mrf.mxu1  ;;  %4471 = vmatmul.mubr.f32.gmra.mxu1 %v1504_v8  ;;  %4696 = vmatmul.mubr.f32.gmra.mxu0 %v706_v17 }
 0x3b4   : > { %v10463_v37 = vadd.f32 %v4007_v4, %v10111_v59  ;;  %v10466_v11 = vadd.f32 %v4232_v7, %v10114_v30  ;;  %4475 = vmatprep.mubr.f32.mxu1 %v1530_v38  ;;  %4700 = vmatprep.mubr.f32.mxu0 %v732_v56  ;;  %v2101_v30 = vld [vmem:[#allocation5 + $0x8d0] sm:$0xff]  ;;  %v1554_v56 = vld [vmem:[%s8469_s7 + $0x29b8] sm:$0xff]  ;;  %v756_v4 = vld [vmem:[%s8469_s7 + $0x10c8] sm:$0xff] }
 0x3b5   : > { %v4009_v62 = vpop.f32.mrf.mxu0  ;;  %v4234_v3 = vpop.f32.mrf.mxu1  ;;  %5346 = vmatprep.subr.mxu0 %v13058_v61 }
 0x3b6   : > { %5347 = vmatpush2.msra.mxu0 %v2102_v28  ;;  %v1580_v28 = vld [vmem:[%s8469_s7 + $0x2a88] sm:$0xff]  ;;  %v782_v3 = vld [vmem:[%s8469_s7 + $0x1198] sm:$0xff] }
 0x3b7   : > { %v4012_v59 = vpop.f32.mrf.mxu0  ;;  %v4237_v8 = vpop.f32.mrf.mxu1  ;;  %4476 = vmatmul.mubr.f32.gmra.mxu1 %v1529_v43  ;;  %4701 = vmatmul.mubr.f32.gmra.mxu0 %v731_v24 }
 0x3b8   : > { %v10474_v17 = vadd.f32 %v4012_v59, %v10122_v2  ;;  %v10477_v38 = vadd.f32 %v4237_v8, %v10125_v15  ;;  %4480 = vmatprep.mubr.f32.mxu1 %v1555_v29  ;;  %4705 = vmatprep.mubr.f32.mxu0 %v757_v46  ;;  %v2100_v15 = vld [vmem:[#allocation5 + $0x8c8] sm:$0xff]  ;;  %v1579_v46 = vld [vmem:[%s8469_s7 + $0x2a80] sm:$0xff]  ;;  %v781_v59 = vld [vmem:[%s8469_s7 + $0x1190] sm:$0xff] }
 0x3b9   : > { %v4014_v7 = vpop.f32.mrf.mxu0  ;;  %v4239_v62 = vpop.f32.mrf.mxu1  ;;  %5348 = vmatprep.subr.mxu0 %v13058_v61 }
 0x3ba   : > { %5349 = vmatpush2.msra.mxu0 %v2101_v30  ;;  %v1605_v30 = vld [vmem:[%s8469_s7 + $0x2b50] sm:$0xff]  ;;  %v807_v62 = vld [vmem:[%s8469_s7 + $0x1260] sm:$0xff] }
 0x3bb   : > { %v4017_v2 = vpop.f32.mrf.mxu0  ;;  %v4242_v43 = vpop.f32.mrf.mxu1  ;;  %4481 = vmatmul.mubr.f32.gmra.mxu1 %v1554_v56  ;;  %4706 = vmatmul.mubr.f32.gmra.mxu0 %v756_v4 }
 0x3bc   : > { %v10485_v24 = vadd.f32 %v4017_v2, %v10133_v36  ;;  %v10488_v29 = vadd.f32 %v4242_v43, %v10136_v9  ;;  %4485 = vmatprep.mubr.f32.mxu1 %v1580_v28  ;;  %4710 = vmatprep.mubr.f32.mxu0 %v782_v3  ;;  %v2099_v9 = vld [vmem:[#allocation5 + $0x8c0] sm:$0xff]  ;;  %v1604_v3 = vld [vmem:[%s8469_s7 + $0x2b48] sm:$0xff]  ;;  %v806_v2 = vld [vmem:[%s8469_s7 + $0x1258] sm:$0xff] }
 0x3bd   : > { %v4019_v8 = vpop.f32.mrf.mxu0  ;;  %v4244_v7 = vpop.f32.mrf.mxu1  ;;  %5350 = vmatprep.subr.mxu0 %v13058_v61 }
 0x3be   : > { %5351 = vmatpush2.msra.mxu0 %v2100_v15  ;;  %v1630_v15 = vld [vmem:[%s8469_s7 + $0x2c18] sm:$0xff]  ;;  %v832_v7 = vld [vmem:[%s8469_s7 + $0x1328] sm:$0xff] }
 0x3bf   : > { %v4022_v36 = vpop.f32.mrf.mxu0  ;;  %v4247_v56 = vpop.f32.mrf.mxu1  ;;  %4486 = vmatmul.mubr.f32.gmra.mxu1 %v1579_v46  ;;  %4711 = vmatmul.mubr.f32.gmra.mxu0 %v781_v59 }
 0x3c0   : > { %v10496_v4 = vadd.f32 %v4022_v36, %v10144_v57  ;;  %v10499_v28 = vadd.f32 %v4247_v56, %v10147_v20  ;;  %4490 = vmatprep.mubr.f32.mxu1 %v1605_v30  ;;  %4715 = vmatprep.mubr.f32.mxu0 %v807_v62  ;;  %v2098_v20 = vld [vmem:[#allocation5 + $0x8b8] sm:$0xff]  ;;  %v1629_v62 = vld [vmem:[%s8469_s7 + $0x2c10] sm:$0xff]  ;;  %v831_v36 = vld [vmem:[%s8469_s7 + $0x1320] sm:$0xff] }
 0x3c1   : > { %v4024_v43 = vpop.f32.mrf.mxu0  ;;  %v4249_v8 = vpop.f32.mrf.mxu1  ;;  %5352 = vmatprep.subr.mxu0 %v13058_v61 }
 0x3c2   : > { %5353 = vmatpush2.msra.mxu0 %v2099_v9  ;;  %v1655_v9 = vld [vmem:[%s8469_s7 + $0x2ce0] sm:$0xff]  ;;  %v857_v8 = vld [vmem:[%s8469_s7 + $0x13f0] sm:$0xff] }
 0x3c3   : > { %v4027_v57 = vpop.f32.mrf.mxu0  ;;  %v4252_v46 = vpop.f32.mrf.mxu1  ;;  %4491 = vmatmul.mubr.f32.gmra.mxu1 %v1604_v3  ;;  %4716 = vmatmul.mubr.f32.gmra.mxu0 %v806_v2 }
 0x3c4   : > { %v10507_v59 = vadd.f32 %v4027_v57, %v10155_v33  ;;  %v10510_v30 = vadd.f32 %v4252_v46, %v10158_v23  ;;  %4495 = vmatprep.mubr.f32.mxu1 %v1630_v15  ;;  %4720 = vmatprep.mubr.f32.mxu0 %v832_v7  ;;  %v2097_v23 = vld [vmem:[#allocation5 + $0x8b0] sm:$0xff]  ;;  %v1654_v7 = vld [vmem:[%s8469_s7 + $0x2cd8] sm:$0xff]  ;;  %v856_v57 = vld [vmem:[%s8469_s7 + $0x13e8] sm:$0xff] }
 0x3c5   : > { %v4029_v56 = vpop.f32.mrf.mxu0  ;;  %v4254_v43 = vpop.f32.mrf.mxu1  ;;  %5354 = vmatprep.subr.mxu0 %v13058_v61 }
 0x3c6   : > { %5355 = vmatpush2.msra.mxu0 %v2098_v20  ;;  %v1680_v20 = vld [vmem:[%s8469_s7 + $0x2da8] sm:$0xff]  ;;  %v882_v43 = vld [vmem:[%s8469_s7 + $0x14b8] sm:$0xff] }
 0x3c7   : > { %v4032_v33 = vpop.f32.mrf.mxu0  ;;  %v4257_v3 = vpop.f32.mrf.mxu1  ;;  %4496 = vmatmul.mubr.f32.gmra.mxu1 %v1629_v62  ;;  %4721 = vmatmul.mubr.f32.gmra.mxu0 %v831_v36 }
 0x3c8   : > { %v10518_v2 = vadd.f32 %v4032_v33, %v10166_v10  ;;  %v10521_v15 = vadd.f32 %v4257_v3, %v10169_v16  ;;  %4500 = vmatprep.mubr.f32.mxu1 %v1655_v9  ;;  %4725 = vmatprep.mubr.f32.mxu0 %v857_v8  ;;  %v2096_v16 = vld [vmem:[#allocation5 + $0x8a8] sm:$0xff]  ;;  %v1679_v8 = vld [vmem:[%s8469_s7 + $0x2da0] sm:$0xff]  ;;  %v881_v33 = vld [vmem:[%s8469_s7 + $0x14b0] sm:$0xff] }
 0x3c9   : > { %v4034_v46 = vpop.f32.mrf.mxu0  ;;  %v4259_v56 = vpop.f32.mrf.mxu1  ;;  %5356 = vmatprep.subr.mxu0 %v13058_v61 }
 0x3ca   : > { %5357 = vmatpush2.msra.mxu0 %v2097_v23  ;;  %v1705_v23 = vld [vmem:[%s8469_s7 + $0x2e70] sm:$0xff]  ;;  %v907_v56 = vld [vmem:[%s8469_s7 + $0x1580] sm:$0xff] }
 0x3cb   : > { %v4037_v10 = vpop.f32.mrf.mxu0  ;;  %v4262_v62 = vpop.f32.mrf.mxu1  ;;  %4501 = vmatmul.mubr.f32.gmra.mxu1 %v1654_v7  ;;  %4726 = vmatmul.mubr.f32.gmra.mxu0 %v856_v57 }
 0x3cc   : > { %v10529_v36 = vadd.f32 %v4037_v10, %v10177_v50  ;;  %v10532_v9 = vadd.f32 %v4262_v62, %v10180_v5  ;;  %4505 = vmatprep.mubr.f32.mxu1 %v1680_v20  ;;  %4730 = vmatprep.mubr.f32.mxu0 %v882_v43  ;;  %v2095_v5 = vld [vmem:[#allocation5 + $0x8a0] sm:$0xff]  ;;  %v1704_v43 = vld [vmem:[%s8469_s7 + $0x2e68] sm:$0xff]  ;;  %v906_v10 = vld [vmem:[%s8469_s7 + $0x1578] sm:$0xff] }
 0x3cd   : > { %v4039_v3 = vpop.f32.mrf.mxu0  ;;  %v4264_v46 = vpop.f32.mrf.mxu1  ;;  %5358 = vmatprep.subr.mxu0 %v13058_v61 }
 0x3ce   : > { %5359 = vmatpush2.msra.mxu0 %v2096_v16  ;;  %v1730_v16 = vld [vmem:[%s8469_s7 + $0x2f38] sm:$0xff]  ;;  %v932_v46 = vld [vmem:[%s8469_s7 + $0x1648] sm:$0xff] }
 0x3cf   : > { %v4042_v50 = vpop.f32.mrf.mxu0  ;;  %v4267_v7 = vpop.f32.mrf.mxu1  ;;  %4506 = vmatmul.mubr.f32.gmra.mxu1 %v1679_v8  ;;  %4731 = vmatmul.mubr.f32.gmra.mxu0 %v881_v33 }
 0x3d0   : > { %v10540_v57 = vadd.f32 %v4042_v50, %v10188_v18  ;;  %v10543_v20 = vadd.f32 %v4267_v7, %v10191_v44  ;;  %4510 = vmatprep.mubr.f32.mxu1 %v1705_v23  ;;  %4735 = vmatprep.mubr.f32.mxu0 %v907_v56  ;;  %v2094_v44 = vld [vmem:[#allocation5 + $0x898] sm:$0xff]  ;;  %v1729_v56 = vld [vmem:[%s8469_s7 + $0x2f30] sm:$0xff]  ;;  %v931_v50 = vld [vmem:[%s8469_s7 + $0x1640] sm:$0xff] }
 0x3d1   : > { %v4044_v62 = vpop.f32.mrf.mxu0  ;;  %v4269_v3 = vpop.f32.mrf.mxu1  ;;  %5360 = vmatprep.subr.mxu0 %v13058_v61 }
 0x3d2   : > { %5361 = vmatpush2.msra.mxu0 %v2095_v5  ;;  %v1755_v5 = vld [vmem:[%s8469_s7 + $0x3000] sm:$0xff]  ;;  %v957_v3 = vld [vmem:[%s8469_s7 + $0x1710] sm:$0xff] }
 0x3d3   : > { %v4047_v18 = vpop.f32.mrf.mxu0  ;;  %v4272_v8 = vpop.f32.mrf.mxu1  ;;  %4511 = vmatmul.mubr.f32.gmra.mxu1 %v1704_v43  ;;  %4736 = vmatmul.mubr.f32.gmra.mxu0 %v906_v10 }
 0x3d4   : > { %v10551_v33 = vadd.f32 %v4047_v18, %v10199_v49  ;;  %v10554_v23 = vadd.f32 %v4272_v8, %v10202_v32  ;;  %4515 = vmatprep.mubr.f32.mxu1 %v1730_v16  ;;  %4740 = vmatprep.mubr.f32.mxu0 %v932_v46  ;;  %v2093_v32 = vld [vmem:[#allocation5 + $0x890] sm:$0xff]  ;;  %v1754_v46 = vld [vmem:[%s8469_s7 + $0x2ff8] sm:$0xff]  ;;  %v956_v18 = vld [vmem:[%s8469_s7 + $0x1708] sm:$0xff] }
 0x3d5   : > { %v4049_v7 = vpop.f32.mrf.mxu0  ;;  %v4274_v62 = vpop.f32.mrf.mxu1  ;;  %5362 = vmatprep.subr.mxu0 %v13058_v61 }
 0x3d6   : > { %5363 = vmatpush2.msra.mxu0 %v2094_v44  ;;  %v1780_v44 = vld [vmem:[%s8469_s7 + $0x30c8] sm:$0xff]  ;;  %v982_v62 = vld [vmem:[%s8469_s7 + $0x17d8] sm:$0xff] }
 0x3d7   : > { %v4052_v49 = vpop.f32.mrf.mxu0  ;;  %v4277_v43 = vpop.f32.mrf.mxu1  ;;  %4516 = vmatmul.mubr.f32.gmra.mxu1 %v1729_v56  ;;  %4741 = vmatmul.mubr.f32.gmra.mxu0 %v931_v50 }
 0x3d8   : > { %v10562_v10 = vadd.f32 %v4052_v49, %v10210_v21  ;;  %v10565_v16 = vadd.f32 %v4277_v43, %v10213_v26  ;;  %4520 = vmatprep.mubr.f32.mxu1 %v1755_v5  ;;  %4745 = vmatprep.mubr.f32.mxu0 %v957_v3  ;;  %v2092_v26 = vld [vmem:[#allocation5 + $0x888] sm:$0xff]  ;;  %v1779_v3 = vld [vmem:[%s8469_s7 + $0x30c0] sm:$0xff]  ;;  %v981_v49 = vld [vmem:[%s8469_s7 + $0x17d0] sm:$0xff] }
 0x3d9   : > { %v4054_v8 = vpop.f32.mrf.mxu0  ;;  %v4279_v7 = vpop.f32.mrf.mxu1  ;;  %5364 = vmatprep.subr.mxu0 %v13058_v61 }
 0x3da   : > { %5365 = vmatpush2.msra.mxu0 %v2093_v32  ;;  %v1805_v32 = vld [vmem:[%s8469_s7 + $0x3190] sm:$0xff]  ;;  %v1007_v7 = vld [vmem:[%s8469_s7 + $0x18a0] sm:$0xff] }
 0x3db   : > { %v4057_v21 = vpop.f32.mrf.mxu0  ;;  %v4282_v56 = vpop.f32.mrf.mxu1  ;;  %4521 = vmatmul.mubr.f32.gmra.mxu1 %v1754_v46  ;;  %4746 = vmatmul.mubr.f32.gmra.mxu0 %v956_v18  ;;  %v13165_v18 = vld [vmem:[#allocation26_spill] sm:$0xff] }
 0x3dc   : > { %v10573_v50 = vadd.f32 %v4057_v21, %v10221_v45  ;;  %v10576_v5 = vadd.f32 %v4282_v56, %v10224_v19  ;;  %4525 = vmatprep.mubr.f32.mxu1 %v1780_v44  ;;  %4750 = vmatprep.mubr.f32.mxu0 %v982_v62  ;;  %v1804_v62 = vld [vmem:[%s8469_s7 + $0x3188] sm:$0xff]  ;;  %v1006_v21 = vld [vmem:[%s8469_s7 + $0x1898] sm:$0xff]  ;;  %v2091_v56 = vld [vmem:[#allocation5 + $0x880] sm:$0xff] }
 0x3dd   : > { %v4059_v43 = vpop.f32.mrf.mxu0  ;;  %v4284_v8 = vpop.f32.mrf.mxu1  ;;  %5366 = vmatprep.subr.mxu0 %v13058_v61 }
 0x3de   : > { %13164 = vst [vmem:[#allocation16_spill] sm:$0xff] %v10576_v5  ;;  %5367 = vmatpush2.msra.mxu0 %v2092_v26  ;;  %v1032_v26 = vld [vmem:[%s8469_s7 + $0x1968] sm:$0xff]  ;;  %v234_v5 = vld [vmem:[%s8469_s7 + $0x78] sm:$0xff] }
 0x3df   : > { %v4062_v45 = vpop.f32.mrf.mxu0  ;;  %v4287_v46 = vpop.f32.mrf.mxu1  ;;  %4526 = vmatmul.mubr.f32.gmra.mxu1 %v1779_v3  ;;  %4751 = vmatmul.mubr.f32.gmra.mxu0 %v981_v49  ;;  %v13167_v49 = vld [vmem:[#allocation18_spill] sm:$0xff] }
 0x3e0   : > { %v10584_v19 = vadd.f32 %v4062_v45, %v10232_v48  ;;  %v10587_v44 = vadd.f32 %v4287_v46, %v13165_v18  ;;  %4530 = vmatprep.mubr.f32.mxu1 %v1805_v32  ;;  %4755 = vmatprep.mubr.f32.mxu0 %v1007_v7  ;;  %v13169_v7 = vld [vmem:[#allocation27_spill] sm:$0xff]  ;;  %v233_v18 = vld [vmem:[%s8469_s7 + $0x70] sm:$0xff] }
 0x3e1   : > { %v4064_v43 = vpop.f32.mrf.mxu0  ;;  %v4289_v8 = vpop.f32.mrf.mxu1  ;;  %5368 = vmatprep.subr.mxu0 %v13058_v61  ;;  %v1031_v46 = vld [vmem:[%s8469_s7 + $0x1960] sm:$0xff] }
 0x3e2   : > { %13166 = vst [vmem:[#allocation25_spill] sm:$0xff] %v10587_v44  ;;  %5369 = vmatpush2.msra.mxu0 %v2091_v56  ;;  %v2122_v56 = vld [vmem:[#allocation5 + $0x978] sm:$0xff]  ;;  %v1057_v44 = vld [vmem:[%s8469_s7 + $0x1a30] sm:$0xff] }
 0x3e3   : > { %v4067_v48 = vpop.f32.mrf.mxu0  ;;  %v4292_v3 = vpop.f32.mrf.mxu1  ;;  %4531 = vmatmul.mubr.f32.gmra.mxu1 %v1804_v62  ;;  %4756 = vmatmul.mubr.f32.gmra.mxu0 %v1006_v21  ;;  %v259_v62 = vld [vmem:[%s8469_s7 + $0x140] sm:$0xff] }
 0x3e4   : > { %v10595_v32 = vadd.f32 %v4067_v48, %v13167_v49  ;;  %v10598_v45 = vadd.f32 %v4292_v3, %v13169_v7  ;;  %4760 = vmatprep.mubr.f32.mxu0 %v1032_v26  ;;  %4985 = vmatprep.mubr.f32.mxu1 %v234_v5  ;;  %v2121_v3 = vld [vmem:[#allocation5 + $0x970] sm:$0xff]  ;;  %v1056_v49 = vld [vmem:[%s8469_s7 + $0x1a28] sm:$0xff]  ;;  %v258_v7 = vld [vmem:[%s8469_s7 + $0x138] sm:$0xff] }
 0x3e5   : > { %v4069_v43 = vpop.f32.mrf.mxu0  ;;  %v4294_v8 = vpop.f32.mrf.mxu1  ;;  %6076 = vmatprep.subr.mxu0 %v13058_v61 }
 0x3e6   : > { %13168 = vst [vmem:[#allocation17_spill] sm:$0xff] %v10595_v32  ;;  %13170 = vst [vmem:[#allocation26_spill] sm:$0xff] %v10598_v45  ;;  %v1082_v45 = vld [vmem:[%s8469_s7 + $0x1af8] sm:$0xff]  ;;  %v284_v32 = vld [vmem:[%s8469_s7 + $0x208] sm:$0xff] }
 0x3e7   : > { %v4072_v21 = vpop.f32.mrf.mxu0  ;;  %v4297_v48 = vpop.f32.mrf.mxu1  ;;  %4761 = vmatmul.mubr.f32.gmra.mxu0 %v1031_v46  ;;  %4986 = vmatmul.mubr.f32.vlgmr.msra.gmra.mxu1 %v233_v18 }
 0x3e8   : > { %v10606_v5 = vadd.f32 %v4072_v21, %v10254_v25  ;;  %v10609_v26 = vadd.f32 %v4297_v48, %v10257_v52  ;;  %5692 = vmatpush1.msra.mxu1 %v2122_v56  ;;  %4765 = vmatprep.mubr.f32.mxu0 %v1057_v44  ;;  %v2120_v52 = vld [vmem:[#allocation5 + $0x968] sm:$0xff]  ;;  %v1081_v56 = vld [vmem:[%s8469_s7 + $0x1af0] sm:$0xff] }
 0x3e9   : > { %v4074_v43 = vpop.f32.mrf.mxu0  ;;  %v4299_v8 = vpop.f32.mrf.mxu1  ;;  %4990 = vmatprep.mubr.f32.mxu1 %v259_v62  ;;  %5693 = vmatprep.subr.mxu1 %v13058_v61  ;;  %v283_v62 = vld [vmem:[%s8469_s7 + $0x200] sm:$0xff] }
 0x3ea   : > { %5694 = vmatpush1.msra.mxu1 %v2121_v3  ;;  %v1107_v3 = vld [vmem:[%s8469_s7 + $0x1bc0] sm:$0xff]  ;;  %v309_v43 = vld [vmem:[%s8469_s7 + $0x2d0] sm:$0xff]  ;;  %v308_v8 = vld [vmem:[%s8469_s7 + $0x2c8] sm:$0xff] }
 0x3eb   : > { %v4077_v25 = vpop.f32.mrf.mxu0  ;;  %v4302_v46 = vpop.f32.mrf.mxu1  ;;  %4766 = vmatmul.mubr.f32.gmra.mxu0 %v1056_v49  ;;  %4991 = vmatmul.mubr.f32.gmra.mxu1 %v258_v7  ;;  %v1106_v7 = vld [vmem:[%s8469_s7 + $0x1bb8] sm:$0xff] }
 0x3ec   : > { %v10617_v44 = vadd.f32 %v4077_v25, %v10265_v42  ;;  %v10620_v18 = vadd.f32 %v4302_v46, %v10268_v40  ;;  %4770 = vmatprep.mubr.f32.mxu0 %v1082_v45  ;;  %4995 = vmatprep.mubr.f32.mxu1 %v284_v32  ;;  %v2119_v40 = vld [vmem:[#allocation5 + $0x960] sm:$0xff] }
 0x3ed   : > { %v4079_v21 = vpop.f32.mrf.mxu0  ;;  %v4304_v48 = vpop.f32.mrf.mxu1  ;;  %5695 = vmatprep.subr.mxu1 %v13058_v61 }
 0x3ee   : > { %5696 = vmatpush1.msra.mxu1 %v2120_v52  ;;  %v1132_v52 = vld [vmem:[%s8469_s7 + $0x1c88] sm:$0xff]  ;;  %v334_v21 = vld [vmem:[%s8469_s7 + $0x398] sm:$0xff] }
 0x3ef   : > { %v4082_v42 = vpop.f32.mrf.mxu0  ;;  %v4307_v49 = vpop.f32.mrf.mxu1  ;;  %4771 = vmatmul.mubr.f32.gmra.mxu0 %v1081_v56  ;;  %4996 = vmatmul.mubr.f32.gmra.mxu1 %v283_v62 }
 0x3f0   : > { %v10628_v32 = vadd.f32 %v4082_v42, %v10276_v34  ;;  %v10631_v45 = vadd.f32 %v4307_v49, %v10279_v22  ;;  %4775 = vmatprep.mubr.f32.mxu0 %v1107_v3  ;;  %5000 = vmatprep.mubr.f32.mxu1 %v309_v43  ;;  %v2118_v22 = vld [vmem:[#allocation5 + $0x958] sm:$0xff]  ;;  %v1131_v3 = vld [vmem:[%s8469_s7 + $0x1c80] sm:$0xff]  ;;  %v333_v43 = vld [vmem:[%s8469_s7 + $0x390] sm:$0xff] }
 0x3f1   : > { %v4084_v25 = vpop.f32.mrf.mxu0  ;;  %v4309_v46 = vpop.f32.mrf.mxu1  ;;  %5697 = vmatprep.subr.mxu1 %v13058_v61 }
 0x3f2   : > { %5698 = vmatpush1.msra.mxu1 %v2119_v40  ;;  %v1157_v40 = vld [vmem:[%s8469_s7 + $0x1d50] sm:$0xff]  ;;  %v359_v25 = vld [vmem:[%s8469_s7 + $0x460] sm:$0xff] }
 0x3f3   : > { %v4087_v34 = vpop.f32.mrf.mxu0  ;;  %v4312_v56 = vpop.f32.mrf.mxu1  ;;  %4776 = vmatmul.mubr.f32.gmra.mxu0 %v1106_v7  ;;  %5001 = vmatmul.mubr.f32.gmra.mxu1 %v308_v8 }
 0x3f4   : > { %v10639_v62 = vadd.f32 %v4087_v34, %v10287_v41  ;;  %v10642_v48 = vadd.f32 %v4312_v56, %v10290_v51  ;;  %4780 = vmatprep.mubr.f32.mxu0 %v1132_v52  ;;  %5005 = vmatprep.mubr.f32.mxu1 %v334_v21  ;;  %v2117_v51 = vld [vmem:[#allocation5 + $0x950] sm:$0xff]  ;;  %v1156_v52 = vld [vmem:[%s8469_s7 + $0x1d48] sm:$0xff]  ;;  %v358_v21 = vld [vmem:[%s8469_s7 + $0x458] sm:$0xff] }
 0x3f5   : > { %v4089_v42 = vpop.f32.mrf.mxu0  ;;  %v4314_v49 = vpop.f32.mrf.mxu1  ;;  %5699 = vmatprep.subr.mxu1 %v13058_v61 }
 0x3f6   : > { %5700 = vmatpush1.msra.mxu1 %v2118_v22  ;;  %v1182_v22 = vld [vmem:[%s8469_s7 + $0x1e18] sm:$0xff]  ;;  %v384_v42 = vld [vmem:[%s8469_s7 + $0x528] sm:$0xff] }
 0x3f7   : > { %v4092_v41 = vpop.f32.mrf.mxu0  ;;  %v4317_v7 = vpop.f32.mrf.mxu1  ;;  %4781 = vmatmul.mubr.f32.gmra.mxu0 %v1131_v3  ;;  %5006 = vmatmul.mubr.f32.gmra.mxu1 %v333_v43  ;;  %v13172_v49 = vld [vmem:[#allocation19_spill] sm:$0xff] }
 0x3f8   : > { %v10650_v8 = vadd.f32 %v4092_v41, %v10298_v31  ;;  %v10653_v46 = vadd.f32 %v4317_v7, %v10301_v0  ;;  %4785 = vmatprep.mubr.f32.mxu0 %v1157_v40  ;;  %5010 = vmatprep.mubr.f32.mxu1 %v359_v25  ;;  %v2116_v0 = vld [vmem:[#allocation5 + $0x948] sm:$0xff]  ;;  %v1181_v25 = vld [vmem:[%s8469_s7 + $0x1e10] sm:$0xff]  ;;  %v383_v41 = vld [vmem:[%s8469_s7 + $0x520] sm:$0xff] }
 0x3f9   : > { %v4094_v34 = vpop.f32.mrf.mxu0  ;;  %v4319_v56 = vpop.f32.mrf.mxu1  ;;  %5701 = vmatprep.subr.mxu1 %v13058_v61 }
 0x3fa   : > { %5702 = vmatpush1.msra.mxu1 %v2117_v51  ;;  %v1207_v51 = vld [vmem:[%s8469_s7 + $0x1ee0] sm:$0xff]  ;;  %v409_v56 = vld [vmem:[%s8469_s7 + $0x5f0] sm:$0xff] }
 0x3fb   : > { %v4097_v31 = vpop.f32.mrf.mxu0  ;;  %v4322_v3 = vpop.f32.mrf.mxu1  ;;  %4786 = vmatmul.mubr.f32.gmra.mxu0 %v1156_v52  ;;  %5011 = vmatmul.mubr.f32.gmra.mxu1 %v358_v21  ;;  %v2115_v21 = vld [vmem:[#allocation5 + $0x940] sm:$0xff] }
 0x3fc   : > { %v10661_v43 = vadd.f32 %v4097_v31, %v10309_v13  ;;  %v10664_v40 = vadd.f32 %v4322_v3, %v13172_v49  ;;  %4790 = vmatprep.mubr.f32.mxu0 %v1182_v22  ;;  %5015 = vmatprep.mubr.f32.mxu1 %v384_v42  ;;  %v13174_v22 = vld [vmem:[#allocation28_spill] sm:$0xff]  ;;  %v1206_v49 = vld [vmem:[%s8469_s7 + $0x1ed8] sm:$0xff] }
 0x3fd   : > { %v4099_v7 = vpop.f32.mrf.mxu0  ;;  %v4324_v34 = vpop.f32.mrf.mxu1  ;;  %5703 = vmatprep.subr.mxu1 %v13058_v61  ;;  %v13176_v31 = vld [vmem:[#allocation20_spill] sm:$0xff] }
 0x3fe   : > { %13171 = vst [vmem:[#allocation18_spill] sm:$0xff] %v10661_v43  ;;  %13173 = vst [vmem:[#allocation27_spill] sm:$0xff] %v10664_v40  ;;  %5704 = vmatpush1.msra.mxu1 %v2116_v0  ;;  %v408_v7 = vld [vmem:[%s8469_s7 + $0x5e8] sm:$0xff]  ;;  %v434_v43 = vld [vmem:[%s8469_s7 + $0x6b8] sm:$0xff] }
 0x3ff   : > { %v4102_v13 = vpop.f32.mrf.mxu0  ;;  %v4327_v52 = vpop.f32.mrf.mxu1  ;;  %4791 = vmatmul.mubr.f32.gmra.mxu0 %v1181_v25  ;;  %5016 = vmatmul.mubr.f32.gmra.mxu1 %v383_v41  ;;  %v1232_v0 = vld [vmem:[%s8469_s7 + $0x1fa8] sm:$0xff] }
 0x400   : > { %v10672_v42 = vadd.f32 %v4102_v13, %v13174_v22  ;;  %v10675_v3 = vadd.f32 %v4327_v52, %v13176_v31  ;;  %4795 = vmatprep.mubr.f32.mxu0 %v1207_v51  ;;  %5020 = vmatprep.mubr.f32.mxu1 %v409_v56  ;;  %v2114_v13 = vld [vmem:[#allocation5 + $0x938] sm:$0xff]  ;;  %v13178_v51 = vld [vmem:[#allocation29_spill] sm:$0xff] }
 0x401   : > { %v4104_v34 = vpop.f32.mrf.mxu0  ;;  %v4329_v40 = vpop.f32.mrf.mxu1  ;;  %5705 = vmatprep.subr.mxu1 %v13058_v61  ;;  %v13180_v52 = vld [vmem:[#allocation30_spill] sm:$0xff] }
 0x402   : > { %13175 = vst [vmem:[#allocation19_spill] sm:$0xff] %v10672_v42  ;;  %13177 = vst [vmem:[#allocation28_spill] sm:$0xff] %v10675_v3  ;;  %5706 = vmatpush1.msra.mxu1 %v2115_v21  ;;  %v1231_v40 = vld [vmem:[%s8469_s7 + $0x1fa0] sm:$0xff]  ;;  %v433_v31 = vld [vmem:[%s8469_s7 + $0x6b0] sm:$0xff] }
 0x403   : > { %v4107_v25 = vpop.f32.mrf.mxu0  ;;  %v4332_v41 = vpop.f32.mrf.mxu1  ;;  %4796 = vmatmul.mubr.f32.gmra.mxu0 %v1206_v49  ;;  %5021 = vmatmul.mubr.f32.gmra.mxu1 %v408_v7  ;;  %v1257_v21 = vld [vmem:[%s8469_s7 + $0x2070] sm:$0xff]  ;;  %v459_v42 = vld [vmem:[%s8469_s7 + $0x780] sm:$0xff] }
 0x404   : > { %v10683_v56 = vadd.f32 %v4107_v25, %v13178_v51  ;;  %v10686_v22 = vadd.f32 %v4332_v41, %v13180_v52  ;;  %4800 = vmatprep.mubr.f32.mxu0 %v1232_v0  ;;  %5025 = vmatprep.mubr.f32.mxu1 %v434_v43  ;;  %v2113_v25 = vld [vmem:[#allocation5 + $0x930] sm:$0xff]  ;;  %v13182_v0 = vld [vmem:[#allocation12_spill] sm:$0xff]  ;;  %v458_v52 = vld [vmem:[%s8469_s7 + $0x778] sm:$0xff] }
 0x405   : > { %v4109_v34 = vpop.f32.mrf.mxu0  ;;  %v4334_v3 = vpop.f32.mrf.mxu1  ;;  %5707 = vmatprep.subr.mxu1 %v13058_v61  ;;  %v13184_v41 = vld [vmem:[#allocation21_spill] sm:$0xff] }
 0x406   : > { %13179 = vst [vmem:[#allocation20_spill] sm:$0xff] %v10683_v56  ;;  %13181 = vst [vmem:[#allocation29_spill] sm:$0xff] %v10686_v22  ;;  %5708 = vmatpush1.msra.mxu1 %v2114_v13  ;;  %v1256_v3 = vld [vmem:[%s8469_s7 + $0x2068] sm:$0xff]  ;;  %v1282_v13 = vld [vmem:[%s8469_s7 + $0x2138] sm:$0xff] }
 0x407   : > { %v4112_v49 = vpop.f32.mrf.mxu0  ;;  %v4337_v7 = vpop.f32.mrf.mxu1  ;;  %4801 = vmatmul.mubr.f32.gmra.mxu0 %v1231_v40  ;;  %5026 = vmatmul.mubr.f32.gmra.mxu1 %v433_v31  ;;  %v484_v56 = vld [vmem:[%s8469_s7 + $0x848] sm:$0xff] }
 0x408   : > { %v10694_v43 = vadd.f32 %v4112_v49, %v13182_v0  ;;  %v10697_v51 = vadd.f32 %v4337_v7, %v13184_v41  ;;  %4805 = vmatprep.mubr.f32.mxu0 %v1257_v21  ;;  %5030 = vmatprep.mubr.f32.mxu1 %v459_v42  ;;  %v2112_v49 = vld [vmem:[#allocation5 + $0x928] sm:$0xff]  ;;  %v13188_v7 = vld [vmem:[#allocation22_spill] sm:$0xff]  ;;  %v483_v41 = vld [vmem:[%s8469_s7 + $0x840] sm:$0xff] }
 0x409   : > { %v4114_v34 = vpop.f32.mrf.mxu0  ;;  %v4339_v22 = vpop.f32.mrf.mxu1  ;;  %5709 = vmatprep.subr.mxu1 %v13058_v61  ;;  %v13186_v21 = vld [vmem:[#allocation13_spill] sm:$0xff] }
 0x40a   : > { %13183 = vst [vmem:[#allocation30_spill] sm:$0xff] %v10694_v43  ;;  %13185 = vst [vmem:[#allocation12_spill] sm:$0xff] %v10697_v51  ;;  %5710 = vmatpush1.msra.mxu1 %v2113_v25  ;;  %v1281_v22 = vld [vmem:[%s8469_s7 + $0x2130] sm:$0xff]  ;;  %v1307_v25 = vld [vmem:[%s8469_s7 + $0x2200] sm:$0xff] }
 0x40b   : > { %v4117_v40 = vpop.f32.mrf.mxu0  ;;  %v4342_v31 = vpop.f32.mrf.mxu1  ;;  %4806 = vmatmul.mubr.f32.gmra.mxu0 %v1256_v3  ;;  %5031 = vmatmul.mubr.f32.gmra.mxu1 %v458_v52  ;;  %v509_v43 = vld [vmem:[%s8469_s7 + $0x910] sm:$0xff] }
 0x40c   : > { %v10705_v42 = vadd.f32 %v4117_v40, %v13186_v21  ;;  %v10708_v0 = vadd.f32 %v4342_v31, %v13188_v7  ;;  %4810 = vmatprep.mubr.f32.mxu0 %v1282_v13  ;;  %5035 = vmatprep.mubr.f32.mxu1 %v484_v56  ;;  %v2111_v40 = vld [vmem:[#allocation5 + $0x920] sm:$0xff]  ;;  %v13190_v13 = vld [vmem:[#allocation14_spill] sm:$0xff]  ;;  %v508_v7 = vld [vmem:[%s8469_s7 + $0x908] sm:$0xff] }
 0x40d   : > { %v4119_v34 = vpop.f32.mrf.mxu0  ;;  %v4344_v51 = vpop.f32.mrf.mxu1  ;;  %5711 = vmatprep.subr.mxu1 %v13058_v61  ;;  %v13192_v31 = vld [vmem:[#allocation23_spill] sm:$0xff] }
 0x40e   : > { %13187 = vst [vmem:[#allocation21_spill] sm:$0xff] %v10705_v42  ;;  %13189 = vst [vmem:[#allocation13_spill] sm:$0xff] %v10708_v0  ;;  %5712 = vmatpush1.msra.mxu1 %v2112_v49  ;;  %v1306_v51 = vld [vmem:[%s8469_s7 + $0x21f8] sm:$0xff]  ;;  %v1332_v49 = vld [vmem:[%s8469_s7 + $0x22c8] sm:$0xff] }
 0x40f   : > { %v4122_v3 = vpop.f32.mrf.mxu0  ;;  %v4347_v52 = vpop.f32.mrf.mxu1  ;;  %4811 = vmatmul.mubr.f32.gmra.mxu0 %v1281_v22  ;;  %5036 = vmatmul.mubr.f32.gmra.mxu1 %v483_v41  ;;  %v534_v42 = vld [vmem:[%s8469_s7 + $0x9d8] sm:$0xff] }
 0x410   : > { %v10716_v56 = vadd.f32 %v4122_v3, %v13190_v13  ;;  %v10719_v21 = vadd.f32 %v4347_v52, %v13192_v31  ;;  %4815 = vmatprep.mubr.f32.mxu0 %v1307_v25  ;;  %5040 = vmatprep.mubr.f32.mxu1 %v509_v43  ;;  %v2110_v3 = vld [vmem:[#allocation5 + $0x918] sm:$0xff]  ;;  %v13195_v52 = vld [vmem:[#allocation24_spill] sm:$0xff]  ;;  %v533_v31 = vld [vmem:[%s8469_s7 + $0x9d0] sm:$0xff] }
 0x411   : > { %v4124_v34 = vpop.f32.mrf.mxu0  ;;  %v4349_v0 = vpop.f32.mrf.mxu1  ;;  %5713 = vmatprep.subr.mxu1 %v13058_v61  ;;  %v13194_v25 = vld [vmem:[#allocation15_spill] sm:$0xff] }
 0x412   : > { %13191 = vst [vmem:[#allocation22_spill] sm:$0xff] %v10716_v56  ;;  %13193 = vst [vmem:[#allocation14_spill] sm:$0xff] %v10719_v21  ;;  %5714 = vmatpush1.msra.mxu1 %v2111_v40  ;;  %v1331_v0 = vld [vmem:[%s8469_s7 + $0x22c0] sm:$0xff]  ;;  %v1357_v40 = vld [vmem:[%s8469_s7 + $0x2390] sm:$0xff] }
 0x413   : > { %v4127_v22 = vpop.f32.mrf.mxu0  ;;  %v4352_v41 = vpop.f32.mrf.mxu1  ;;  %4816 = vmatmul.mubr.f32.gmra.mxu0 %v1306_v51  ;;  %5041 = vmatmul.mubr.f32.gmra.mxu1 %v508_v7  ;;  %v559_v56 = vld [vmem:[%s8469_s7 + $0xaa0] sm:$0xff] }
 0x414   : > { %v10727_v43 = vadd.f32 %v4127_v22, %v13194_v25  ;;  %v10730_v13 = vadd.f32 %v4352_v41, %v13195_v52  ;;  %4820 = vmatprep.mubr.f32.mxu0 %v1332_v49  ;;  %5045 = vmatprep.mubr.f32.mxu1 %v534_v42  ;;  %v2109_v22 = vld [vmem:[#allocation5 + $0x910] sm:$0xff]  ;;  %v558_v41 = vld [vmem:[%s8469_s7 + $0xa98] sm:$0xff] }
 0x415   : > { %v4129_v34 = vpop.f32.mrf.mxu0  ;;  %v4354_v21 = vpop.f32.mrf.mxu1  ;;  %5715 = vmatprep.subr.mxu1 %v13058_v61 }
 0x416   : > { %5716 = vmatpush1.msra.mxu1 %v2110_v3  ;;  %v1356_v21 = vld [vmem:[%s8469_s7 + $0x2388] sm:$0xff]  ;;  %v1382_v3 = vld [vmem:[%s8469_s7 + $0x2458] sm:$0xff] }
 0x417   : > { %v4132_v51 = vpop.f32.mrf.mxu0  ;;  %v4357_v7 = vpop.f32.mrf.mxu1  ;;  %4821 = vmatmul.mubr.f32.gmra.mxu0 %v1331_v0  ;;  %5046 = vmatmul.mubr.f32.gmra.mxu1 %v533_v31  ;;  %v584_v34 = vld [vmem:[%s8469_s7 + $0xb68] sm:$0xff] }
 0x418   : > { %v10738_v42 = vadd.f32 %v4132_v51, %v10386_v39  ;;  %v10741_v49 = vadd.f32 %v4357_v7, %v10389_v58  ;;  %4825 = vmatprep.mubr.f32.mxu0 %v1357_v40  ;;  %5050 = vmatprep.mubr.f32.mxu1 %v559_v56  ;;  %v2108_v58 = vld [vmem:[#allocation5 + $0x908] sm:$0xff]  ;;  %v1381_v40 = vld [vmem:[%s8469_s7 + $0x2450] sm:$0xff]  ;;  %v583_v51 = vld [vmem:[%s8469_s7 + $0xb60] sm:$0xff] }
 0x419   : > { %v4134_v25 = vpop.f32.mrf.mxu0  ;;  %v4359_v52 = vpop.f32.mrf.mxu1  ;;  %5717 = vmatprep.subr.mxu1 %v13058_v61 }
 0x41a   : > { %5718 = vmatpush1.msra.mxu1 %v2109_v22  ;;  %v1407_v22 = vld [vmem:[%s8469_s7 + $0x2520] sm:$0xff]  ;;  %v609_v52 = vld [vmem:[%s8469_s7 + $0xc30] sm:$0xff] }
 0x41b   : > { %v4137_v39 = vpop.f32.mrf.mxu0  ;;  %v4362_v0 = vpop.f32.mrf.mxu1  ;;  %4826 = vmatmul.mubr.f32.gmra.mxu0 %v1356_v21  ;;  %5051 = vmatmul.mubr.f32.gmra.mxu1 %v558_v41 }
 0x41c   : > { %v10749_v56 = vadd.f32 %v4137_v39, %v10397_v35  ;;  %v10752_v31 = vadd.f32 %v4362_v0, %v10400_v63  ;;  %4830 = vmatprep.mubr.f32.mxu0 %v1382_v3  ;;  %5055 = vmatprep.mubr.f32.mxu1 %v584_v34  ;;  %v2107_v63 = vld [vmem:[#allocation5 + $0x900] sm:$0xff]  ;;  %v1406_v34 = vld [vmem:[%s8469_s7 + $0x2518] sm:$0xff]  ;;  %v608_v39 = vld [vmem:[%s8469_s7 + $0xc28] sm:$0xff] }
 0x41d   : > { %v4139_v7 = vpop.f32.mrf.mxu0  ;;  %v4364_v25 = vpop.f32.mrf.mxu1  ;;  %5719 = vmatprep.subr.mxu1 %v13058_v61 }
 0x41e   : > { %5720 = vmatpush1.msra.mxu1 %v2108_v58  ;;  %v1432_v58 = vld [vmem:[%s8469_s7 + $0x25e8] sm:$0xff]  ;;  %v634_v25 = vld [vmem:[%s8469_s7 + $0xcf8] sm:$0xff] }
 0x41f   : > { %v4142_v35 = vpop.f32.mrf.mxu0  ;;  %v4367_v21 = vpop.f32.mrf.mxu1  ;;  %4831 = vmatmul.mubr.f32.gmra.mxu0 %v1381_v40  ;;  %5056 = vmatmul.mubr.f32.gmra.mxu1 %v583_v51 }
 0x420   : > { %v10760_v41 = vadd.f32 %v4142_v35, %v10408_v27  ;;  %v10763_v3 = vadd.f32 %v4367_v21, %v10411_v54  ;;  %4835 = vmatprep.mubr.f32.mxu0 %v1407_v22  ;;  %5060 = vmatprep.mubr.f32.mxu1 %v609_v52  ;;  %v2138_v54 = vld [vmem:[#allocation5 + $0x9f8] sm:$0xff]  ;;  %v1431_v52 = vld [vmem:[%s8469_s7 + $0x25e0] sm:$0xff]  ;;  %v633_v35 = vld [vmem:[%s8469_s7 + $0xcf0] sm:$0xff] }
 0x421   : > { %v4144_v0 = vpop.f32.mrf.mxu0  ;;  %v4369_v7 = vpop.f32.mrf.mxu1  ;;  %5721 = vmatprep.subr.mxu1 %v13058_v61 }
 0x422   : > { %5722 = vmatpush1.msra.mxu1 %v2107_v63  ;;  %v1457_v63 = vld [vmem:[%s8469_s7 + $0x26b0] sm:$0xff]  ;;  %v659_v7 = vld [vmem:[%s8469_s7 + $0xdc0] sm:$0xff] }
 0x423   : > { %v4147_v27 = vpop.f32.mrf.mxu0  ;;  %v4372_v40 = vpop.f32.mrf.mxu1  ;;  %4836 = vmatmul.mubr.f32.gmra.mxu0 %v1406_v34  ;;  %5061 = vmatmul.mubr.f32.gmra.mxu1 %v608_v39 }
 0x424   : > { %v10771_v51 = vadd.f32 %v4147_v27, %v10419_v55  ;;  %v10774_v22 = vadd.f32 %v4372_v40, %v10422_v12  ;;  %4840 = vmatprep.mubr.f32.mxu0 %v1432_v58  ;;  %5065 = vmatprep.mubr.f32.mxu1 %v634_v25  ;;  %v2137_v12 = vld [vmem:[#allocation5 + $0x9f0] sm:$0xff]  ;;  %v1456_v25 = vld [vmem:[%s8469_s7 + $0x26a8] sm:$0xff]  ;;  %v658_v27 = vld [vmem:[%s8469_s7 + $0xdb8] sm:$0xff] }
 0x425   : > { %v4149_v21 = vpop.f32.mrf.mxu0  ;;  %v4374_v0 = vpop.f32.mrf.mxu1  ;;  %5723 = vmatprep.subr.mxu1 %v13058_v61 }
 0x426   : > { %5724 = vmatpush2.msra.mxu1 %v2138_v54  ;;  %v1482_v54 = vld [vmem:[%s8469_s7 + $0x2778] sm:$0xff]  ;;  %v684_v0 = vld [vmem:[%s8469_s7 + $0xe88] sm:$0xff] }
 0x427   : > { %v4377_v55 = vpop.f32.mrf.mxu1  ;;  %v4602_v34 = vpop.f32.mrf.mxu0  ;;  %4841 = vmatmul.mubr.f32.gmra.mxu0 %v1431_v52  ;;  %5066 = vmatmul.mubr.f32.gmra.mxu1 %v633_v35 }
 0x428   : > { %v10782_v39 = vadd.f32 %v4377_v55, %v10430_v47  ;;  %v10785_v58 = vadd.f32 %v4602_v34, %v10433_v6  ;;  %4845 = vmatprep.mubr.f32.mxu0 %v1457_v63  ;;  %5070 = vmatprep.mubr.f32.mxu1 %v659_v7  ;;  %v2136_v6 = vld [vmem:[#allocation5 + $0x9e8] sm:$0xff]  ;;  %v1481_v7 = vld [vmem:[%s8469_s7 + $0x2770] sm:$0xff]  ;;  %v683_v55 = vld [vmem:[%s8469_s7 + $0xe80] sm:$0xff] }
 0x429   : > { %v4379_v40 = vpop.f32.mrf.mxu1  ;;  %v4604_v21 = vpop.f32.mrf.mxu0  ;;  %5725 = vmatprep.subr.mxu1 %v13058_v61 }
 0x42a   : > { %5726 = vmatpush2.msra.mxu1 %v2137_v12  ;;  %v1507_v12 = vld [vmem:[%s8469_s7 + $0x2840] sm:$0xff]  ;;  %v709_v21 = vld [vmem:[%s8469_s7 + $0xf50] sm:$0xff] }
 0x42b   : > { %v4382_v47 = vpop.f32.mrf.mxu1  ;;  %v4607_v52 = vpop.f32.mrf.mxu0  ;;  %4846 = vmatmul.mubr.f32.gmra.mxu0 %v1456_v25  ;;  %5071 = vmatmul.mubr.f32.gmra.mxu1 %v658_v27 }
 0x42c   : > { %v10793_v35 = vadd.f32 %v4382_v47, %v10441_v53  ;;  %v10796_v63 = vadd.f32 %v4607_v52, %v10444_v60  ;;  %4850 = vmatprep.mubr.f32.mxu0 %v1482_v54  ;;  %5075 = vmatprep.mubr.f32.mxu1 %v684_v0  ;;  %v2135_v60 = vld [vmem:[#allocation5 + $0x9e0] sm:$0xff]  ;;  %v1506_v0 = vld [vmem:[%s8469_s7 + $0x2838] sm:$0xff]  ;;  %v708_v47 = vld [vmem:[%s8469_s7 + $0xf48] sm:$0xff] }
 0x42d   : > { %v4384_v34 = vpop.f32.mrf.mxu1  ;;  %v4609_v40 = vpop.f32.mrf.mxu0  ;;  %5727 = vmatprep.subr.mxu1 %v13058_v61 }
 0x42e   : > { %5728 = vmatpush2.msra.mxu1 %v2136_v6  ;;  %v1532_v6 = vld [vmem:[%s8469_s7 + $0x2908] sm:$0xff]  ;;  %v734_v40 = vld [vmem:[%s8469_s7 + $0x1018] sm:$0xff] }
 0x42f   : > { %v4387_v53 = vpop.f32.mrf.mxu1  ;;  %v4612_v25 = vpop.f32.mrf.mxu0  ;;  %4851 = vmatmul.mubr.f32.gmra.mxu0 %v1481_v7  ;;  %5076 = vmatmul.mubr.f32.gmra.mxu1 %v683_v55 }
 0x430   : > { %v10804_v27 = vadd.f32 %v4387_v53, %v10452_v14  ;;  %v10807_v54 = vadd.f32 %v4612_v25, %v10455_v1  ;;  %4855 = vmatprep.mubr.f32.mxu0 %v1507_v12  ;;  %5080 = vmatprep.mubr.f32.mxu1 %v709_v21  ;;  %v2134_v1 = vld [vmem:[#allocation5 + $0x9d8] sm:$0xff]  ;;  %v1531_v21 = vld [vmem:[%s8469_s7 + $0x2900] sm:$0xff]  ;;  %v733_v53 = vld [vmem:[%s8469_s7 + $0x1010] sm:$0xff] }
 0x431   : > { %v4389_v52 = vpop.f32.mrf.mxu1  ;;  %v4614_v34 = vpop.f32.mrf.mxu0  ;;  %5729 = vmatprep.subr.mxu1 %v13058_v61 }
 0x432   : > { %5730 = vmatpush2.msra.mxu1 %v2135_v60  ;;  %v1557_v60 = vld [vmem:[%s8469_s7 + $0x29d0] sm:$0xff]  ;;  %v759_v34 = vld [vmem:[%s8469_s7 + $0x10e0] sm:$0xff] }
 0x433   : > { %v4392_v14 = vpop.f32.mrf.mxu1  ;;  %v4617_v7 = vpop.f32.mrf.mxu0  ;;  %4856 = vmatmul.mubr.f32.gmra.mxu0 %v1506_v0  ;;  %5081 = vmatmul.mubr.f32.gmra.mxu1 %v708_v47 }
 0x434   : > { %v10815_v55 = vadd.f32 %v4392_v14, %v10463_v37  ;;  %v10818_v12 = vadd.f32 %v4617_v7, %v10466_v11  ;;  %4860 = vmatprep.mubr.f32.mxu0 %v1532_v6  ;;  %5085 = vmatprep.mubr.f32.mxu1 %v734_v40  ;;  %v2133_v11 = vld [vmem:[#allocation5 + $0x9d0] sm:$0xff]  ;;  %v1556_v40 = vld [vmem:[%s8469_s7 + $0x29c8] sm:$0xff]  ;;  %v758_v14 = vld [vmem:[%s8469_s7 + $0x10d8] sm:$0xff] }
 0x435   : > { %v4394_v25 = vpop.f32.mrf.mxu1  ;;  %v4619_v52 = vpop.f32.mrf.mxu0  ;;  %5731 = vmatprep.subr.mxu1 %v13058_v61 }
 0x436   : > { %5732 = vmatpush2.msra.mxu1 %v2134_v1  ;;  %v1582_v1 = vld [vmem:[%s8469_s7 + $0x2a98] sm:$0xff]  ;;  %v784_v52 = vld [vmem:[%s8469_s7 + $0x11a8] sm:$0xff] }
 0x437   : > { %v4397_v37 = vpop.f32.mrf.mxu1  ;;  %v4622_v0 = vpop.f32.mrf.mxu0  ;;  %4861 = vmatmul.mubr.f32.gmra.mxu0 %v1531_v21  ;;  %5086 = vmatmul.mubr.f32.gmra.mxu1 %v733_v53 }
 0x438   : > { %v10826_v47 = vadd.f32 %v4397_v37, %v10474_v17  ;;  %v10829_v6 = vadd.f32 %v4622_v0, %v10477_v38  ;;  %4865 = vmatprep.mubr.f32.mxu0 %v1557_v60  ;;  %5090 = vmatprep.mubr.f32.mxu1 %v759_v34  ;;  %v2132_v38 = vld [vmem:[#allocation5 + $0x9c8] sm:$0xff]  ;;  %v1581_v34 = vld [vmem:[%s8469_s7 + $0x2a90] sm:$0xff]  ;;  %v783_v37 = vld [vmem:[%s8469_s7 + $0x11a0] sm:$0xff] }
 0x439   : > { %v4399_v7 = vpop.f32.mrf.mxu1  ;;  %v4624_v25 = vpop.f32.mrf.mxu0  ;;  %5733 = vmatprep.subr.mxu1 %v13058_v61 }
 0x43a   : > { %5734 = vmatpush2.msra.mxu1 %v2133_v11  ;;  %v1607_v11 = vld [vmem:[%s8469_s7 + $0x2b60] sm:$0xff]  ;;  %v809_v25 = vld [vmem:[%s8469_s7 + $0x1270] sm:$0xff] }
 0x43b   : > { %v4402_v17 = vpop.f32.mrf.mxu1  ;;  %v4627_v21 = vpop.f32.mrf.mxu0  ;;  %4866 = vmatmul.mubr.f32.gmra.mxu0 %v1556_v40  ;;  %5091 = vmatmul.mubr.f32.gmra.mxu1 %v758_v14 }
 0x43c   : > { %v10837_v53 = vadd.f32 %v4402_v17, %v10485_v24  ;;  %v10840_v60 = vadd.f32 %v4627_v21, %v10488_v29  ;;  %4870 = vmatprep.mubr.f32.mxu0 %v1582_v1  ;;  %5095 = vmatprep.mubr.f32.mxu1 %v784_v52  ;;  %v2131_v29 = vld [vmem:[#allocation5 + $0x9c0] sm:$0xff]  ;;  %v1606_v52 = vld [vmem:[%s8469_s7 + $0x2b58] sm:$0xff]  ;;  %v808_v17 = vld [vmem:[%s8469_s7 + $0x1268] sm:$0xff] }
 0x43d   : > { %v4404_v0 = vpop.f32.mrf.mxu1  ;;  %v4629_v7 = vpop.f32.mrf.mxu0  ;;  %5735 = vmatprep.subr.mxu1 %v13058_v61 }
 0x43e   : > { %5736 = vmatpush2.msra.mxu1 %v2132_v38  ;;  %v1632_v38 = vld [vmem:[%s8469_s7 + $0x2c28] sm:$0xff]  ;;  %v834_v7 = vld [vmem:[%s8469_s7 + $0x1338] sm:$0xff] }
 0x43f   : > { %v4407_v24 = vpop.f32.mrf.mxu1  ;;  %v4632_v40 = vpop.f32.mrf.mxu0  ;;  %4871 = vmatmul.mubr.f32.gmra.mxu0 %v1581_v34  ;;  %5096 = vmatmul.mubr.f32.gmra.mxu1 %v783_v37 }
 0x440   : > { %v10848_v14 = vadd.f32 %v4407_v24, %v10496_v4  ;;  %v10851_v1 = vadd.f32 %v4632_v40, %v10499_v28  ;;  %4875 = vmatprep.mubr.f32.mxu0 %v1607_v11  ;;  %5100 = vmatprep.mubr.f32.mxu1 %v809_v25  ;;  %v2130_v28 = vld [vmem:[#allocation5 + $0x9b8] sm:$0xff]  ;;  %v1631_v25 = vld [vmem:[%s8469_s7 + $0x2c20] sm:$0xff]  ;;  %v833_v24 = vld [vmem:[%s8469_s7 + $0x1330] sm:$0xff] }
 0x441   : > { %v4409_v21 = vpop.f32.mrf.mxu1  ;;  %v4634_v0 = vpop.f32.mrf.mxu0  ;;  %5737 = vmatprep.subr.mxu1 %v13058_v61 }
 0x442   : > { %5738 = vmatpush2.msra.mxu1 %v2131_v29  ;;  %v1657_v29 = vld [vmem:[%s8469_s7 + $0x2cf0] sm:$0xff]  ;;  %v859_v0 = vld [vmem:[%s8469_s7 + $0x1400] sm:$0xff] }
 0x443   : > { %v4412_v4 = vpop.f32.mrf.mxu1  ;;  %v4637_v34 = vpop.f32.mrf.mxu0  ;;  %4876 = vmatmul.mubr.f32.gmra.mxu0 %v1606_v52  ;;  %5101 = vmatmul.mubr.f32.gmra.mxu1 %v808_v17 }
 0x444   : > { %v10859_v37 = vadd.f32 %v4412_v4, %v10507_v59  ;;  %v10862_v11 = vadd.f32 %v4637_v34, %v10510_v30  ;;  %4880 = vmatprep.mubr.f32.mxu0 %v1632_v38  ;;  %5105 = vmatprep.mubr.f32.mxu1 %v834_v7  ;;  %v2129_v30 = vld [vmem:[#allocation5 + $0x9b0] sm:$0xff]  ;;  %v1656_v7 = vld [vmem:[%s8469_s7 + $0x2ce8] sm:$0xff]  ;;  %v858_v4 = vld [vmem:[%s8469_s7 + $0x13f8] sm:$0xff] }
 0x445   : > { %v4414_v40 = vpop.f32.mrf.mxu1  ;;  %v4639_v21 = vpop.f32.mrf.mxu0  ;;  %5739 = vmatprep.subr.mxu1 %v13058_v61 }
 0x446   : > { %5740 = vmatpush2.msra.mxu1 %v2130_v28  ;;  %v1682_v28 = vld [vmem:[%s8469_s7 + $0x2db8] sm:$0xff]  ;;  %v884_v21 = vld [vmem:[%s8469_s7 + $0x14c8] sm:$0xff] }
 0x447   : > { %v4417_v59 = vpop.f32.mrf.mxu1  ;;  %v4642_v52 = vpop.f32.mrf.mxu0  ;;  %4881 = vmatmul.mubr.f32.gmra.mxu0 %v1631_v25  ;;  %5106 = vmatmul.mubr.f32.gmra.mxu1 %v833_v24 }
 0x448   : > { %v10870_v17 = vadd.f32 %v4417_v59, %v10518_v2  ;;  %v10873_v38 = vadd.f32 %v4642_v52, %v10521_v15  ;;  %4885 = vmatprep.mubr.f32.mxu0 %v1657_v29  ;;  %5110 = vmatprep.mubr.f32.mxu1 %v859_v0  ;;  %v2128_v15 = vld [vmem:[#allocation5 + $0x9a8] sm:$0xff]  ;;  %v1681_v0 = vld [vmem:[%s8469_s7 + $0x2db0] sm:$0xff]  ;;  %v883_v59 = vld [vmem:[%s8469_s7 + $0x14c0] sm:$0xff] }
 0x449   : > { %v4419_v34 = vpop.f32.mrf.mxu1  ;;  %v4644_v40 = vpop.f32.mrf.mxu0  ;;  %5741 = vmatprep.subr.mxu1 %v13058_v61 }
 0x44a   : > { %5742 = vmatpush2.msra.mxu1 %v2129_v30  ;;  %v1707_v30 = vld [vmem:[%s8469_s7 + $0x2e80] sm:$0xff]  ;;  %v909_v40 = vld [vmem:[%s8469_s7 + $0x1590] sm:$0xff] }
 0x44b   : > { %v4422_v2 = vpop.f32.mrf.mxu1  ;;  %v4647_v25 = vpop.f32.mrf.mxu0  ;;  %4886 = vmatmul.mubr.f32.gmra.mxu0 %v1656_v7  ;;  %5111 = vmatmul.mubr.f32.gmra.mxu1 %v858_v4 }
 0x44c   : > { %v10881_v24 = vadd.f32 %v4422_v2, %v10529_v36  ;;  %v10884_v29 = vadd.f32 %v4647_v25, %v10532_v9  ;;  %4890 = vmatprep.mubr.f32.mxu0 %v1682_v28  ;;  %5115 = vmatprep.mubr.f32.mxu1 %v884_v21  ;;  %v2127_v9 = vld [vmem:[#allocation5 + $0x9a0] sm:$0xff]  ;;  %v1706_v21 = vld [vmem:[%s8469_s7 + $0x2e78] sm:$0xff]  ;;  %v908_v2 = vld [vmem:[%s8469_s7 + $0x1588] sm:$0xff] }
 0x44d   : > { %v4424_v52 = vpop.f32.mrf.mxu1  ;;  %v4649_v34 = vpop.f32.mrf.mxu0  ;;  %5743 = vmatprep.subr.mxu1 %v13058_v61 }
 0x44e   : > { %5744 = vmatpush2.msra.mxu1 %v2128_v15  ;;  %v1732_v15 = vld [vmem:[%s8469_s7 + $0x2f48] sm:$0xff]  ;;  %v934_v34 = vld [vmem:[%s8469_s7 + $0x1658] sm:$0xff] }
 0x44f   : > { %v4427_v36 = vpop.f32.mrf.mxu1  ;;  %v4652_v7 = vpop.f32.mrf.mxu0  ;;  %4891 = vmatmul.mubr.f32.gmra.mxu0 %v1681_v0  ;;  %5116 = vmatmul.mubr.f32.gmra.mxu1 %v883_v59 }
 0x450   : > { %v10892_v4 = vadd.f32 %v4427_v36, %v10540_v57  ;;  %v10895_v28 = vadd.f32 %v4652_v7, %v10543_v20  ;;  %4895 = vmatprep.mubr.f32.mxu0 %v1707_v30  ;;  %5120 = vmatprep.mubr.f32.mxu1 %v909_v40  ;;  %v2126_v20 = vld [vmem:[#allocation5 + $0x998] sm:$0xff]  ;;  %v1731_v40 = vld [vmem:[%s8469_s7 + $0x2f40] sm:$0xff]  ;;  %v933_v36 = vld [vmem:[%s8469_s7 + $0x1650] sm:$0xff] }
 0x451   : > { %v4429_v25 = vpop.f32.mrf.mxu1  ;;  %v4654_v52 = vpop.f32.mrf.mxu0  ;;  %5745 = vmatprep.subr.mxu1 %v13058_v61 }
 0x452   : > { %5746 = vmatpush2.msra.mxu1 %v2127_v9  ;;  %v1757_v9 = vld [vmem:[%s8469_s7 + $0x3010] sm:$0xff]  ;;  %v959_v52 = vld [vmem:[%s8469_s7 + $0x1720] sm:$0xff] }
 0x453   : > { %v4432_v57 = vpop.f32.mrf.mxu1  ;;  %v4657_v0 = vpop.f32.mrf.mxu0  ;;  %4896 = vmatmul.mubr.f32.gmra.mxu0 %v1706_v21  ;;  %5121 = vmatmul.mubr.f32.gmra.mxu1 %v908_v2 }
 0x454   : > { %v10903_v59 = vadd.f32 %v4432_v57, %v10551_v33  ;;  %v10906_v30 = vadd.f32 %v4657_v0, %v10554_v23  ;;  %4900 = vmatprep.mubr.f32.mxu0 %v1732_v15  ;;  %5125 = vmatprep.mubr.f32.mxu1 %v934_v34  ;;  %v2125_v23 = vld [vmem:[#allocation5 + $0x990] sm:$0xff]  ;;  %v1756_v34 = vld [vmem:[%s8469_s7 + $0x3008] sm:$0xff]  ;;  %v958_v57 = vld [vmem:[%s8469_s7 + $0x1718] sm:$0xff] }
 0x455   : > { %v4434_v7 = vpop.f32.mrf.mxu1  ;;  %v4659_v25 = vpop.f32.mrf.mxu0  ;;  %5747 = vmatprep.subr.mxu1 %v13058_v61 }
 0x456   : > { %5748 = vmatpush2.msra.mxu1 %v2126_v20  ;;  %v1782_v20 = vld [vmem:[%s8469_s7 + $0x30d8] sm:$0xff]  ;;  %v984_v25 = vld [vmem:[%s8469_s7 + $0x17e8] sm:$0xff] }
 0x457   : > { %v4437_v33 = vpop.f32.mrf.mxu1  ;;  %v4662_v21 = vpop.f32.mrf.mxu0  ;;  %4901 = vmatmul.mubr.f32.gmra.mxu0 %v1731_v40  ;;  %5126 = vmatmul.mubr.f32.gmra.mxu1 %v933_v36 }
 0x458   : > { %v10914_v2 = vadd.f32 %v4437_v33, %v10562_v10  ;;  %v10917_v15 = vadd.f32 %v4662_v21, %v10565_v16  ;;  %4905 = vmatprep.mubr.f32.mxu0 %v1757_v9  ;;  %5130 = vmatprep.mubr.f32.mxu1 %v959_v52  ;;  %v2124_v16 = vld [vmem:[#allocation5 + $0x988] sm:$0xff]  ;;  %v1781_v33 = vld [vmem:[%s8469_s7 + $0x30d0] sm:$0xff]  ;;  %v983_v21 = vld [vmem:[%s8469_s7 + $0x17e0] sm:$0xff] }
 0x459   : > { %v4439_v0 = vpop.f32.mrf.mxu1  ;;  %v4664_v7 = vpop.f32.mrf.mxu0  ;;  %5749 = vmatprep.subr.mxu1 %v13058_v61  ;;  %v13197_v9 = vld [vmem:[#allocation16_spill] sm:$0xff] }
 0x45a   : > { %13196 = vst [vmem:[#allocation23_spill] sm:$0xff] %v10917_v15  ;;  %5750 = vmatpush2.msra.mxu1 %v2125_v23  ;;  %v1807_v23 = vld [vmem:[%s8469_s7 + $0x31a0] sm:$0xff]  ;;  %v1009_v15 = vld [vmem:[%s8469_s7 + $0x18b0] sm:$0xff] }
 0x45b   : > { %v4442_v10 = vpop.f32.mrf.mxu1  ;;  %v4667_v40 = vpop.f32.mrf.mxu0  ;;  %4906 = vmatmul.mubr.f32.gmra.mxu0 %v1756_v34  ;;  %5131 = vmatmul.mubr.f32.gmra.mxu1 %v958_v57 }
 0x45c   : > { %v10925_v36 = vadd.f32 %v4442_v10, %v10573_v50  ;;  %v10928_v52 = vadd.f32 %v4667_v40, %v13197_v9  ;;  %4910 = vmatprep.mubr.f32.mxu0 %v1782_v20  ;;  %5135 = vmatprep.mubr.f32.mxu1 %v984_v25  ;;  %v13199_v20 = vld [vmem:[#allocation25_spill] sm:$0xff]  ;;  %v1806_v10 = vld [vmem:[%s8469_s7 + $0x3198] sm:$0xff]  ;;  %v2123_v9 = vld [vmem:[#allocation5 + $0x980] sm:$0xff] }
 0x45d   : > { %v4444_v0 = vpop.f32.mrf.mxu1  ;;  %v4669_v7 = vpop.f32.mrf.mxu0  ;;  %5751 = vmatprep.subr.mxu1 %v13058_v61  ;;  %v1008_v40 = vld [vmem:[%s8469_s7 + $0x18a8] sm:$0xff] }
 0x45e   : > { %13198 = vst [vmem:[#allocation15_spill] sm:$0xff] %v10928_v52  ;;  %5752 = vmatpush2.msra.mxu1 %v2124_v16  ;;  %v1034_v16 = vld [vmem:[%s8469_s7 + $0x1978] sm:$0xff]  ;;  %v236_v52 = vld [vmem:[%s8469_s7 + $0x88] sm:$0xff] }
 0x45f   : > { %v4447_v50 = vpop.f32.mrf.mxu1  ;;  %v4672_v34 = vpop.f32.mrf.mxu0  ;;  %4911 = vmatmul.mubr.f32.gmra.mxu0 %v1781_v33  ;;  %5136 = vmatmul.mubr.f32.gmra.mxu1 %v983_v21  ;;  %v13201_v21 = vld [vmem:[#allocation17_spill] sm:$0xff] }
 0x460   : > { %v10936_v57 = vadd.f32 %v4447_v50, %v10584_v19  ;;  %v10939_v25 = vadd.f32 %v4672_v34, %v13199_v20  ;;  %4915 = vmatprep.mubr.f32.mxu0 %v1807_v23  ;;  %5140 = vmatprep.mubr.f32.mxu1 %v1009_v15  ;;  %v13203_v23 = vld [vmem:[#allocation26_spill] sm:$0xff]  ;;  %v235_v20 = vld [vmem:[%s8469_s7 + $0x80] sm:$0xff] }
 0x461   : > { %v4449_v0 = vpop.f32.mrf.mxu1  ;;  %v4674_v7 = vpop.f32.mrf.mxu0  ;;  %5753 = vmatprep.subr.mxu1 %v13058_v61  ;;  %v1033_v34 = vld [vmem:[%s8469_s7 + $0x1970] sm:$0xff] }
 0x462   : > { %13200 = vst [vmem:[#allocation24_spill] sm:$0xff] %v10939_v25  ;;  %5754 = vmatpush2.msra.mxu1 %v2123_v9  ;;  %v2154_v9 = vld [vmem:[#allocation5 + $0xa78] sm:$0xff]  ;;  %v1059_v25 = vld [vmem:[%s8469_s7 + $0x1a40] sm:$0xff] }
 0x463   : > { %v4452_v19 = vpop.f32.mrf.mxu1  ;;  %v4677_v33 = vpop.f32.mrf.mxu0  ;;  %4916 = vmatmul.mubr.f32.gmra.mxu0 %v1806_v10  ;;  %5141 = vmatmul.mubr.f32.gmra.mxu1 %v1008_v40  ;;  %v261_v10 = vld [vmem:[%s8469_s7 + $0x150] sm:$0xff] }
 0x464   : > { %v10947_v15 = vadd.f32 %v4452_v19, %v13201_v21  ;;  %v10950_v50 = vadd.f32 %v4677_v33, %v13203_v23  ;;  %5145 = vmatprep.mubr.f32.mxu1 %v1034_v16  ;;  %5370 = vmatprep.mubr.f32.mxu0 %v236_v52  ;;  %v2153_v33 = vld [vmem:[#allocation5 + $0xa70] sm:$0xff]  ;;  %v1058_v21 = vld [vmem:[%s8469_s7 + $0x1a38] sm:$0xff]  ;;  %v260_v23 = vld [vmem:[%s8469_s7 + $0x148] sm:$0xff] }
 0x465   : > { %v4454_v0 = vpop.f32.mrf.mxu1  ;;  %v4679_v7 = vpop.f32.mrf.mxu0  ;;  %6461 = vmatprep.subr.mxu1 %v13058_v61 }
 0x466   : > { %13202 = vst [vmem:[#allocation16_spill] sm:$0xff] %v10947_v15  ;;  %13204 = vst [vmem:[#allocation25_spill] sm:$0xff] %v10950_v50  ;;  %v1084_v50 = vld [vmem:[%s8469_s7 + $0x1b08] sm:$0xff]  ;;  %v286_v15 = vld [vmem:[%s8469_s7 + $0x218] sm:$0xff] }
 0x467   : > { %v4457_v40 = vpop.f32.mrf.mxu1  ;;  %v4682_v19 = vpop.f32.mrf.mxu0  ;;  %5146 = vmatmul.mubr.f32.gmra.mxu1 %v1033_v34  ;;  %5371 = vmatmul.mubr.f32.vlgmr.msra.gmra.mxu0 %v235_v20 }
 0x468   : > { %v10958_v52 = vadd.f32 %v4457_v40, %v10606_v5  ;;  %v10961_v16 = vadd.f32 %v4682_v19, %v10609_v26  ;;  %6077 = vmatpush1.msra.mxu0 %v2154_v9  ;;  %5150 = vmatprep.mubr.f32.mxu1 %v1059_v25  ;;  %v2152_v26 = vld [vmem:[#allocation5 + $0xa68] sm:$0xff]  ;;  %v1083_v9 = vld [vmem:[%s8469_s7 + $0x1b00] sm:$0xff] }
 0x469   : > { %v4459_v0 = vpop.f32.mrf.mxu1  ;;  %v4684_v7 = vpop.f32.mrf.mxu0  ;;  %5375 = vmatprep.mubr.f32.mxu0 %v261_v10  ;;  %6078 = vmatprep.subr.mxu0 %v13058_v61  ;;  %v285_v10 = vld [vmem:[%s8469_s7 + $0x210] sm:$0xff] }
 0x46a   : > { %6079 = vmatpush1.msra.mxu0 %v2153_v33  ;;  %v1109_v33 = vld [vmem:[%s8469_s7 + $0x1bd0] sm:$0xff]  ;;  %v311_v0 = vld [vmem:[%s8469_s7 + $0x2e0] sm:$0xff]  ;;  %v310_v7 = vld [vmem:[%s8469_s7 + $0x2d8] sm:$0xff] }
 0x46b   : > { %v4462_v5 = vpop.f32.mrf.mxu1  ;;  %v4687_v34 = vpop.f32.mrf.mxu0  ;;  %5151 = vmatmul.mubr.f32.gmra.mxu1 %v1058_v21  ;;  %5376 = vmatmul.mubr.f32.gmra.mxu0 %v260_v23  ;;  %v1108_v23 = vld [vmem:[%s8469_s7 + $0x1bc8] sm:$0xff] }
 0x46c   : > { %v10969_v25 = vadd.f32 %v4462_v5, %v10617_v44  ;;  %v10972_v20 = vadd.f32 %v4687_v34, %v10620_v18  ;;  %5155 = vmatprep.mubr.f32.mxu1 %v1084_v50  ;;  %5380 = vmatprep.mubr.f32.mxu0 %v286_v15  ;;  %v2151_v18 = vld [vmem:[#allocation5 + $0xa60] sm:$0xff] }
 0x46d   : > { %v4464_v40 = vpop.f32.mrf.mxu1  ;;  %v4689_v19 = vpop.f32.mrf.mxu0  ;;  %6080 = vmatprep.subr.mxu0 %v13058_v61 }
 0x46e   : > { %6081 = vmatpush1.msra.mxu0 %v2152_v26  ;;  %v1134_v26 = vld [vmem:[%s8469_s7 + $0x1c98] sm:$0xff]  ;;  %v336_v40 = vld [vmem:[%s8469_s7 + $0x3a8] sm:$0xff] }
 0x46f   : > { %v4467_v44 = vpop.f32.mrf.mxu1  ;;  %v4692_v21 = vpop.f32.mrf.mxu0  ;;  %5156 = vmatmul.mubr.f32.gmra.mxu1 %v1083_v9  ;;  %5381 = vmatmul.mubr.f32.gmra.mxu0 %v285_v10 }
 0x470   : > { %v10980_v15 = vadd.f32 %v4467_v44, %v10628_v32  ;;  %v10983_v50 = vadd.f32 %v4692_v21, %v10631_v45  ;;  %5160 = vmatprep.mubr.f32.mxu1 %v1109_v33  ;;  %5385 = vmatprep.mubr.f32.mxu0 %v311_v0  ;;  %v2150_v45 = vld [vmem:[#allocation5 + $0xa58] sm:$0xff]  ;;  %v1133_v33 = vld [vmem:[%s8469_s7 + $0x1c90] sm:$0xff]  ;;  %v335_v0 = vld [vmem:[%s8469_s7 + $0x3a0] sm:$0xff] }
 0x471   : > { %v4469_v5 = vpop.f32.mrf.mxu1  ;;  %v4694_v34 = vpop.f32.mrf.mxu0  ;;  %6082 = vmatprep.subr.mxu0 %v13058_v61 }
 0x472   : > { %6083 = vmatpush1.msra.mxu0 %v2151_v18  ;;  %v1159_v18 = vld [vmem:[%s8469_s7 + $0x1d60] sm:$0xff]  ;;  %v361_v5 = vld [vmem:[%s8469_s7 + $0x470] sm:$0xff] }
 0x473   : > { %v4472_v32 = vpop.f32.mrf.mxu1  ;;  %v4697_v9 = vpop.f32.mrf.mxu0  ;;  %5161 = vmatmul.mubr.f32.gmra.mxu1 %v1108_v23  ;;  %5386 = vmatmul.mubr.f32.gmra.mxu0 %v310_v7 }
 0x474   : > { %v10991_v10 = vadd.f32 %v4472_v32, %v10639_v62  ;;  %v10994_v19 = vadd.f32 %v4697_v9, %v10642_v48  ;;  %5165 = vmatprep.mubr.f32.mxu1 %v1134_v26  ;;  %5390 = vmatprep.mubr.f32.mxu0 %v336_v40  ;;  %v2149_v48 = vld [vmem:[#allocation5 + $0xa50] sm:$0xff]  ;;  %v1158_v26 = vld [vmem:[%s8469_s7 + $0x1d58] sm:$0xff]  ;;  %v360_v40 = vld [vmem:[%s8469_s7 + $0x468] sm:$0xff] }
 0x475   : > { %v4474_v44 = vpop.f32.mrf.mxu1  ;;  %v4699_v21 = vpop.f32.mrf.mxu0  ;;  %6084 = vmatprep.subr.mxu0 %v13058_v61 }
 0x476   : > { %6085 = vmatpush1.msra.mxu0 %v2150_v45  ;;  %v1184_v45 = vld [vmem:[%s8469_s7 + $0x1e28] sm:$0xff]  ;;  %v386_v44 = vld [vmem:[%s8469_s7 + $0x538] sm:$0xff] }
 0x477   : > { %v4477_v62 = vpop.f32.mrf.mxu1  ;;  %v4702_v23 = vpop.f32.mrf.mxu0  ;;  %5166 = vmatmul.mubr.f32.gmra.mxu1 %v1133_v33  ;;  %5391 = vmatmul.mubr.f32.gmra.mxu0 %v335_v0  ;;  %v13206_v0 = vld [vmem:[#allocation18_spill] sm:$0xff] }
 0x478   : > { %v11002_v7 = vadd.f32 %v4477_v62, %v10650_v8  ;;  %v11005_v34 = vadd.f32 %v4702_v23, %v10653_v46  ;;  %5170 = vmatprep.mubr.f32.mxu1 %v1159_v18  ;;  %5395 = vmatprep.mubr.f32.mxu0 %v361_v5  ;;  %v2148_v46 = vld [vmem:[#allocation5 + $0xa48] sm:$0xff]  ;;  %v13208_v18 = vld [vmem:[#allocation27_spill] sm:$0xff]  ;;  %v385_v23 = vld [vmem:[%s8469_s7 + $0x530] sm:$0xff] }
 0x479   : > { %v4479_v32 = vpop.f32.mrf.mxu1  ;;  %v4704_v9 = vpop.f32.mrf.mxu0  ;;  %6086 = vmatprep.subr.mxu0 %v13058_v61  ;;  %v1183_v62 = vld [vmem:[%s8469_s7 + $0x1e20] sm:$0xff] }
 0x47a   : > { %13205 = vst [vmem:[#allocation17_spill] sm:$0xff] %v11005_v34  ;;  %6087 = vmatpush1.msra.mxu0 %v2149_v48  ;;  %v1209_v48 = vld [vmem:[%s8469_s7 + $0x1ef0] sm:$0xff]  ;;  %v411_v34 = vld [vmem:[%s8469_s7 + $0x600] sm:$0xff] }
 0x47b   : > { %v4482_v8 = vpop.f32.mrf.mxu1  ;;  %v4707_v33 = vpop.f32.mrf.mxu0  ;;  %5171 = vmatmul.mubr.f32.gmra.mxu1 %v1158_v26  ;;  %5396 = vmatmul.mubr.f32.gmra.mxu0 %v360_v40 }
 0x47c   : > { %v11013_v21 = vadd.f32 %v4482_v8, %v13206_v0  ;;  %v11016_v5 = vadd.f32 %v4707_v33, %v13208_v18  ;;  %5175 = vmatprep.mubr.f32.mxu1 %v1184_v45  ;;  %5400 = vmatprep.mubr.f32.mxu0 %v386_v44  ;;  %v2147_v8 = vld [vmem:[#allocation5 + $0xa40] sm:$0xff]  ;;  %v1208_v18 = vld [vmem:[%s8469_s7 + $0x1ee8] sm:$0xff] }
 0x47d   : > { %v4484_v32 = vpop.f32.mrf.mxu1  ;;  %v4709_v9 = vpop.f32.mrf.mxu0  ;;  %6088 = vmatprep.subr.mxu0 %v13058_v61  ;;  %v13210_v45 = vld [vmem:[#allocation19_spill] sm:$0xff]  ;;  %v13212_v33 = vld [vmem:[#allocation28_spill] sm:$0xff] }
 0x47e   : > { %13207 = vst [vmem:[#allocation26_spill] sm:$0xff] %v11013_v21  ;;  %13209 = vst [vmem:[#allocation18_spill] sm:$0xff] %v11016_v5  ;;  %6089 = vmatpush1.msra.mxu0 %v2148_v46  ;;  %v410_v32 = vld [vmem:[%s8469_s7 + $0x5f8] sm:$0xff]  ;;  %v436_v21 = vld [vmem:[%s8469_s7 + $0x6c8] sm:$0xff] }
 0x47f   : > { %v4487_v26 = vpop.f32.mrf.mxu1  ;;  %v4712_v40 = vpop.f32.mrf.mxu0  ;;  %5176 = vmatmul.mubr.f32.gmra.mxu1 %v1183_v62  ;;  %5401 = vmatmul.mubr.f32.gmra.mxu0 %v385_v23  ;;  %v1234_v46 = vld [vmem:[%s8469_s7 + $0x1fb8] sm:$0xff] }
 0x480   : > { %v11024_v44 = vadd.f32 %v4487_v26, %v13210_v45  ;;  %v11027_v0 = vadd.f32 %v4712_v40, %v13212_v33  ;;  %5180 = vmatprep.mubr.f32.mxu1 %v1209_v48  ;;  %5405 = vmatprep.mubr.f32.mxu0 %v411_v34  ;;  %v2146_v26 = vld [vmem:[#allocation5 + $0xa38] sm:$0xff]  ;;  %v13214_v48 = vld [vmem:[#allocation20_spill] sm:$0xff]  ;;  %v13216_v40 = vld [vmem:[#allocation29_spill] sm:$0xff] }
 0x481   : > { %v4489_v9 = vpop.f32.mrf.mxu1  ;;  %v4714_v5 = vpop.f32.mrf.mxu0  ;;  %6090 = vmatprep.subr.mxu0 %v13058_v61  ;;  %v435_v33 = vld [vmem:[%s8469_s7 + $0x6c0] sm:$0xff] }
 0x482   : > { %13211 = vst [vmem:[#allocation27_spill] sm:$0xff] %v11024_v44  ;;  %13213 = vst [vmem:[#allocation19_spill] sm:$0xff] %v11027_v0  ;;  %6091 = vmatpush1.msra.mxu0 %v2147_v8  ;;  %v1233_v5 = vld [vmem:[%s8469_s7 + $0x1fb0] sm:$0xff]  ;;  %v1259_v8 = vld [vmem:[%s8469_s7 + $0x2080] sm:$0xff] }
 0x483   : > { %v4492_v62 = vpop.f32.mrf.mxu1  ;;  %v4717_v23 = vpop.f32.mrf.mxu0  ;;  %5181 = vmatmul.mubr.f32.gmra.mxu1 %v1208_v18  ;;  %5406 = vmatmul.mubr.f32.gmra.mxu0 %v410_v32  ;;  %v461_v44 = vld [vmem:[%s8469_s7 + $0x790] sm:$0xff] }
 0x484   : > { %v11035_v34 = vadd.f32 %v4492_v62, %v13214_v48  ;;  %v11038_v45 = vadd.f32 %v4717_v23, %v13216_v40  ;;  %5185 = vmatprep.mubr.f32.mxu1 %v1234_v46  ;;  %5410 = vmatprep.mubr.f32.mxu0 %v436_v21  ;;  %v2145_v62 = vld [vmem:[#allocation5 + $0xa30] sm:$0xff]  ;;  %v13220_v23 = vld [vmem:[#allocation12_spill] sm:$0xff] }
 0x485   : > { %v4494_v9 = vpop.f32.mrf.mxu1  ;;  %v4719_v0 = vpop.f32.mrf.mxu0  ;;  %6092 = vmatprep.subr.mxu0 %v13058_v61  ;;  %v13218_v46 = vld [vmem:[#allocation30_spill] sm:$0xff]  ;;  %v460_v40 = vld [vmem:[%s8469_s7 + $0x788] sm:$0xff] }
 0x486   : > { %13215 = vst [vmem:[#allocation28_spill] sm:$0xff] %v11035_v34  ;;  %13217 = vst [vmem:[#allocation20_spill] sm:$0xff] %v11038_v45  ;;  %6093 = vmatpush1.msra.mxu0 %v2146_v26  ;;  %v1258_v0 = vld [vmem:[%s8469_s7 + $0x2078] sm:$0xff]  ;;  %v1284_v26 = vld [vmem:[%s8469_s7 + $0x2148] sm:$0xff] }
 0x487   : > { %v4497_v18 = vpop.f32.mrf.mxu1  ;;  %v4722_v32 = vpop.f32.mrf.mxu0  ;;  %5186 = vmatmul.mubr.f32.gmra.mxu1 %v1233_v5  ;;  %5411 = vmatmul.mubr.f32.gmra.mxu0 %v435_v33  ;;  %v486_v34 = vld [vmem:[%s8469_s7 + $0x858] sm:$0xff] }
 0x488   : > { %v11046_v21 = vadd.f32 %v4497_v18, %v13218_v46  ;;  %v11049_v48 = vadd.f32 %v4722_v32, %v13220_v23  ;;  %5190 = vmatprep.mubr.f32.mxu1 %v1259_v8  ;;  %5415 = vmatprep.mubr.f32.mxu0 %v461_v44  ;;  %v2144_v18 = vld [vmem:[#allocation5 + $0xa28] sm:$0xff]  ;;  %v485_v23 = vld [vmem:[%s8469_s7 + $0x850] sm:$0xff] }
 0x489   : > { %v4499_v9 = vpop.f32.mrf.mxu1  ;;  %v4724_v45 = vpop.f32.mrf.mxu0  ;;  %6094 = vmatprep.subr.mxu0 %v13058_v61  ;;  %v13222_v8 = vld [vmem:[#allocation21_spill] sm:$0xff] }
 0x48a   : > { %13219 = vst [vmem:[#allocation29_spill] sm:$0xff] %v11046_v21  ;;  %13221 = vst [vmem:[#allocation30_spill] sm:$0xff] %v11049_v48  ;;  %6095 = vmatpush1.msra.mxu0 %v2145_v62  ;;  %v13224_v32 = vld [vmem:[#allocation13_spill] sm:$0xff]  ;;  %v1283_v45 = vld [vmem:[%s8469_s7 + $0x2140] sm:$0xff] }
 0x48b   : > { %v4502_v5 = vpop.f32.mrf.mxu1  ;;  %v4727_v33 = vpop.f32.mrf.mxu0  ;;  %5191 = vmatmul.mubr.f32.gmra.mxu1 %v1258_v0  ;;  %5416 = vmatmul.mubr.f32.gmra.mxu0 %v460_v40  ;;  %v1309_v62 = vld [vmem:[%s8469_s7 + $0x2210] sm:$0xff]  ;;  %v511_v21 = vld [vmem:[%s8469_s7 + $0x920] sm:$0xff] }
 0x48c   : > { %v11057_v44 = vadd.f32 %v4502_v5, %v13222_v8  ;;  %v11060_v46 = vadd.f32 %v4727_v33, %v13224_v32  ;;  %5195 = vmatprep.mubr.f32.mxu1 %v1284_v26  ;;  %5420 = vmatprep.mubr.f32.mxu0 %v486_v34  ;;  %v2143_v5 = vld [vmem:[#allocation5 + $0xa20] sm:$0xff]  ;;  %v13226_v26 = vld [vmem:[#allocation22_spill] sm:$0xff] }
 0x48d   : > { %v4504_v9 = vpop.f32.mrf.mxu1  ;;  %v4729_v48 = vpop.f32.mrf.mxu0  ;;  %6096 = vmatprep.subr.mxu0 %v13058_v61  ;;  %v13227_v33 = vld [vmem:[#allocation14_spill] sm:$0xff] }
 0x48e   : > { %13223 = vst [vmem:[#allocation12_spill] sm:$0xff] %v11057_v44  ;;  %13225 = vst [vmem:[#allocation21_spill] sm:$0xff] %v11060_v46  ;;  %6097 = vmatpush1.msra.mxu0 %v2144_v18  ;;  %v1308_v48 = vld [vmem:[%s8469_s7 + $0x2208] sm:$0xff]  ;;  %v510_v32 = vld [vmem:[%s8469_s7 + $0x918] sm:$0xff] }
 0x48f   : > { %v4507_v0 = vpop.f32.mrf.mxu1  ;;  %v4732_v40 = vpop.f32.mrf.mxu0  ;;  %5196 = vmatmul.mubr.f32.gmra.mxu1 %v1283_v45  ;;  %5421 = vmatmul.mubr.f32.gmra.mxu0 %v485_v23  ;;  %v1334_v18 = vld [vmem:[%s8469_s7 + $0x22d8] sm:$0xff]  ;;  %v536_v44 = vld [vmem:[%s8469_s7 + $0x9e8] sm:$0xff] }
 0x490   : > { %v11068_v34 = vadd.f32 %v4507_v0, %v13226_v26  ;;  %v11071_v8 = vadd.f32 %v4732_v40, %v13227_v33  ;;  %5200 = vmatprep.mubr.f32.mxu1 %v1309_v62  ;;  %5425 = vmatprep.mubr.f32.mxu0 %v511_v21  ;;  %v2142_v0 = vld [vmem:[#allocation5 + $0xa18] sm:$0xff]  ;;  %v535_v40 = vld [vmem:[%s8469_s7 + $0x9e0] sm:$0xff] }
 0x491   : > { %v4509_v9 = vpop.f32.mrf.mxu1  ;;  %v4734_v46 = vpop.f32.mrf.mxu0  ;;  %6098 = vmatprep.subr.mxu0 %v13058_v61 }
 0x492   : > { %6099 = vmatpush1.msra.mxu0 %v2143_v5  ;;  %v1333_v46 = vld [vmem:[%s8469_s7 + $0x22d0] sm:$0xff]  ;;  %v1359_v5 = vld [vmem:[%s8469_s7 + $0x23a0] sm:$0xff] }
 0x493   : > { %v4512_v45 = vpop.f32.mrf.mxu1  ;;  %v4737_v23 = vpop.f32.mrf.mxu0  ;;  %5201 = vmatmul.mubr.f32.gmra.mxu1 %v1308_v48  ;;  %5426 = vmatmul.mubr.f32.gmra.mxu0 %v510_v32  ;;  %v561_v9 = vld [vmem:[%s8469_s7 + $0xab0] sm:$0xff] }
 0x494   : > { %v11079_v21 = vadd.f32 %v4512_v45, %v10727_v43  ;;  %v11082_v62 = vadd.f32 %v4737_v23, %v10730_v13  ;;  %5205 = vmatprep.mubr.f32.mxu1 %v1334_v18  ;;  %5430 = vmatprep.mubr.f32.mxu0 %v536_v44  ;;  %v2141_v13 = vld [vmem:[#allocation5 + $0xa10] sm:$0xff]  ;;  %v1358_v18 = vld [vmem:[%s8469_s7 + $0x2398] sm:$0xff]  ;;  %v560_v45 = vld [vmem:[%s8469_s7 + $0xaa8] sm:$0xff] }
 0x495   : > { %v4514_v26 = vpop.f32.mrf.mxu1  ;;  %v4739_v33 = vpop.f32.mrf.mxu0  ;;  %6100 = vmatprep.subr.mxu0 %v13058_v61 }
 0x496   : > { %6101 = vmatpush1.msra.mxu0 %v2142_v0  ;;  %v1384_v0 = vld [vmem:[%s8469_s7 + $0x2468] sm:$0xff]  ;;  %v586_v33 = vld [vmem:[%s8469_s7 + $0xb78] sm:$0xff] }
 0x497   : > { %v4517_v43 = vpop.f32.mrf.mxu1  ;;  %v4742_v48 = vpop.f32.mrf.mxu0  ;;  %5206 = vmatmul.mubr.f32.gmra.mxu1 %v1333_v46  ;;  %5431 = vmatmul.mubr.f32.gmra.mxu0 %v535_v40 }
 0x498   : > { %v11090_v44 = vadd.f32 %v4517_v43, %v10738_v42  ;;  %v11093_v32 = vadd.f32 %v4742_v48, %v10741_v49  ;;  %5210 = vmatprep.mubr.f32.mxu1 %v1359_v5  ;;  %5435 = vmatprep.mubr.f32.mxu0 %v561_v9  ;;  %v2140_v49 = vld [vmem:[#allocation5 + $0xa08] sm:$0xff]  ;;  %v1383_v9 = vld [vmem:[%s8469_s7 + $0x2460] sm:$0xff]  ;;  %v585_v43 = vld [vmem:[%s8469_s7 + $0xb70] sm:$0xff] }
 0x499   : > { %v4519_v23 = vpop.f32.mrf.mxu1  ;;  %v4744_v26 = vpop.f32.mrf.mxu0  ;;  %6102 = vmatprep.subr.mxu0 %v13058_v61 }
 0x49a   : > { %6103 = vmatpush1.msra.mxu0 %v2141_v13  ;;  %v1409_v13 = vld [vmem:[%s8469_s7 + $0x2530] sm:$0xff]  ;;  %v611_v26 = vld [vmem:[%s8469_s7 + $0xc40] sm:$0xff] }
 0x49b   : > { %v4522_v42 = vpop.f32.mrf.mxu1  ;;  %v4747_v46 = vpop.f32.mrf.mxu0  ;;  %5211 = vmatmul.mubr.f32.gmra.mxu1 %v1358_v18  ;;  %5436 = vmatmul.mubr.f32.gmra.mxu0 %v560_v45 }
 0x49c   : > { %v11101_v40 = vadd.f32 %v4522_v42, %v10749_v56  ;;  %v11104_v5 = vadd.f32 %v4747_v46, %v10752_v31  ;;  %5215 = vmatprep.mubr.f32.mxu1 %v1384_v0  ;;  %5440 = vmatprep.mubr.f32.mxu0 %v586_v33  ;;  %v2139_v31 = vld [vmem:[#allocation5 + $0xa00] sm:$0xff]  ;;  %v1408_v33 = vld [vmem:[%s8469_s7 + $0x2528] sm:$0xff]  ;;  %v610_v42 = vld [vmem:[%s8469_s7 + $0xc38] sm:$0xff] }
 0x49d   : > { %v4524_v48 = vpop.f32.mrf.mxu1  ;;  %v4749_v23 = vpop.f32.mrf.mxu0  ;;  %6104 = vmatprep.subr.mxu0 %v13058_v61 }
 0x49e   : > { %6105 = vmatpush1.msra.mxu0 %v2140_v49  ;;  %v1434_v49 = vld [vmem:[%s8469_s7 + $0x25f8] sm:$0xff]  ;;  %v636_v23 = vld [vmem:[%s8469_s7 + $0xd08] sm:$0xff] }
 0x49f   : > { %v4527_v56 = vpop.f32.mrf.mxu1  ;;  %v4752_v18 = vpop.f32.mrf.mxu0  ;;  %5216 = vmatmul.mubr.f32.gmra.mxu1 %v1383_v9  ;;  %5441 = vmatmul.mubr.f32.gmra.mxu0 %v585_v43 }
 0x4a0   : > { %v11112_v45 = vadd.f32 %v4527_v56, %v10760_v41  ;;  %v11115_v0 = vadd.f32 %v4752_v18, %v10763_v3  ;;  %5220 = vmatprep.mubr.f32.mxu1 %v1409_v13  ;;  %5445 = vmatprep.mubr.f32.mxu0 %v611_v26  ;;  %v2170_v3 = vld [vmem:[#allocation5 + $0xaf8] sm:$0xff]  ;;  %v1433_v26 = vld [vmem:[%s8469_s7 + $0x25f0] sm:$0xff]  ;;  %v635_v56 = vld [vmem:[%s8469_s7 + $0xd00] sm:$0xff] }
 0x4a1   : > { %v4529_v46 = vpop.f32.mrf.mxu1  ;;  %v4754_v48 = vpop.f32.mrf.mxu0  ;;  %6106 = vmatprep.subr.mxu0 %v13058_v61 }
 0x4a2   : > { %6107 = vmatpush1.msra.mxu0 %v2139_v31  ;;  %v1459_v31 = vld [vmem:[%s8469_s7 + $0x26c0] sm:$0xff]  ;;  %v661_v48 = vld [vmem:[%s8469_s7 + $0xdd0] sm:$0xff] }
 0x4a3   : > { %v4532_v41 = vpop.f32.mrf.mxu1  ;;  %v4757_v9 = vpop.f32.mrf.mxu0  ;;  %5221 = vmatmul.mubr.f32.gmra.mxu1 %v1408_v33  ;;  %5446 = vmatmul.mubr.f32.gmra.mxu0 %v610_v42 }
 0x4a4   : > { %v11123_v43 = vadd.f32 %v4532_v41, %v10771_v51  ;;  %v11126_v13 = vadd.f32 %v4757_v9, %v10774_v22  ;;  %5225 = vmatprep.mubr.f32.mxu1 %v1434_v49  ;;  %5450 = vmatprep.mubr.f32.mxu0 %v636_v23  ;;  %v2169_v22 = vld [vmem:[#allocation5 + $0xaf0] sm:$0xff]  ;;  %v1458_v23 = vld [vmem:[%s8469_s7 + $0x26b8] sm:$0xff]  ;;  %v660_v41 = vld [vmem:[%s8469_s7 + $0xdc8] sm:$0xff] }
 0x4a5   : > { %v4534_v18 = vpop.f32.mrf.mxu1  ;;  %v4759_v46 = vpop.f32.mrf.mxu0  ;;  %6108 = vmatprep.subr.mxu0 %v13058_v61 }
 0x4a6   : > { %6109 = vmatpush2.msra.mxu0 %v2170_v3  ;;  %v1484_v3 = vld [vmem:[%s8469_s7 + $0x2788] sm:$0xff]  ;;  %v686_v46 = vld [vmem:[%s8469_s7 + $0xe98] sm:$0xff] }
 0x4a7   : > { %v4762_v51 = vpop.f32.mrf.mxu0  ;;  %v4987_v33 = vpop.f32.mrf.mxu1  ;;  %5226 = vmatmul.mubr.f32.gmra.mxu1 %v1433_v26  ;;  %5451 = vmatmul.mubr.f32.gmra.mxu0 %v635_v56 }
 0x4a8   : > { %v11134_v42 = vadd.f32 %v4762_v51, %v10782_v39  ;;  %v11137_v49 = vadd.f32 %v4987_v33, %v10785_v58  ;;  %5230 = vmatprep.mubr.f32.mxu1 %v1459_v31  ;;  %5455 = vmatprep.mubr.f32.mxu0 %v661_v48  ;;  %v2168_v58 = vld [vmem:[#allocation5 + $0xae8] sm:$0xff]  ;;  %v1483_v48 = vld [vmem:[%s8469_s7 + $0x2780] sm:$0xff]  ;;  %v685_v51 = vld [vmem:[%s8469_s7 + $0xe90] sm:$0xff] }
 0x4a9   : > { %v4764_v9 = vpop.f32.mrf.mxu0  ;;  %v4989_v18 = vpop.f32.mrf.mxu1  ;;  %6110 = vmatprep.subr.mxu0 %v13058_v61 }
 0x4aa   : > { %6111 = vmatpush2.msra.mxu0 %v2169_v22  ;;  %v1509_v22 = vld [vmem:[%s8469_s7 + $0x2850] sm:$0xff]  ;;  %v711_v18 = vld [vmem:[%s8469_s7 + $0xf60] sm:$0xff] }
 0x4ab   : > { %v4767_v39 = vpop.f32.mrf.mxu0  ;;  %v4992_v26 = vpop.f32.mrf.mxu1  ;;  %5231 = vmatmul.mubr.f32.gmra.mxu1 %v1458_v23  ;;  %5456 = vmatmul.mubr.f32.gmra.mxu0 %v660_v41 }
 0x4ac   : > { %v11145_v56 = vadd.f32 %v4767_v39, %v10793_v35  ;;  %v11148_v31 = vadd.f32 %v4992_v26, %v10796_v63  ;;  %5235 = vmatprep.mubr.f32.mxu1 %v1484_v3  ;;  %5460 = vmatprep.mubr.f32.mxu0 %v686_v46  ;;  %v2167_v63 = vld [vmem:[#allocation5 + $0xae0] sm:$0xff]  ;;  %v1508_v46 = vld [vmem:[%s8469_s7 + $0x2848] sm:$0xff]  ;;  %v710_v39 = vld [vmem:[%s8469_s7 + $0xf58] sm:$0xff] }
 0x4ad   : > { %v4769_v33 = vpop.f32.mrf.mxu0  ;;  %v4994_v9 = vpop.f32.mrf.mxu1  ;;  %6112 = vmatprep.subr.mxu0 %v13058_v61 }
 0x4ae   : > { %6113 = vmatpush2.msra.mxu0 %v2168_v58  ;;  %v1534_v58 = vld [vmem:[%s8469_s7 + $0x2918] sm:$0xff]  ;;  %v736_v9 = vld [vmem:[%s8469_s7 + $0x1028] sm:$0xff] }
 0x4af   : > { %v4772_v35 = vpop.f32.mrf.mxu0  ;;  %v4997_v23 = vpop.f32.mrf.mxu1  ;;  %5236 = vmatmul.mubr.f32.gmra.mxu1 %v1483_v48  ;;  %5461 = vmatmul.mubr.f32.gmra.mxu0 %v685_v51 }
 0x4b0   : > { %v11156_v41 = vadd.f32 %v4772_v35, %v10804_v27  ;;  %v11159_v3 = vadd.f32 %v4997_v23, %v10807_v54  ;;  %5240 = vmatprep.mubr.f32.mxu1 %v1509_v22  ;;  %5465 = vmatprep.mubr.f32.mxu0 %v711_v18  ;;  %v2166_v54 = vld [vmem:[#allocation5 + $0xad8] sm:$0xff]  ;;  %v1533_v18 = vld [vmem:[%s8469_s7 + $0x2910] sm:$0xff]  ;;  %v735_v35 = vld [vmem:[%s8469_s7 + $0x1020] sm:$0xff] }
 0x4b1   : > { %v4774_v26 = vpop.f32.mrf.mxu0  ;;  %v4999_v33 = vpop.f32.mrf.mxu1  ;;  %6114 = vmatprep.subr.mxu0 %v13058_v61 }
 0x4b2   : > { %6115 = vmatpush2.msra.mxu0 %v2167_v63  ;;  %v1559_v63 = vld [vmem:[%s8469_s7 + $0x29e0] sm:$0xff]  ;;  %v761_v33 = vld [vmem:[%s8469_s7 + $0x10f0] sm:$0xff] }
 0x4b3   : > { %v4777_v27 = vpop.f32.mrf.mxu0  ;;  %v5002_v48 = vpop.f32.mrf.mxu1  ;;  %5241 = vmatmul.mubr.f32.gmra.mxu1 %v1508_v46  ;;  %5466 = vmatmul.mubr.f32.gmra.mxu0 %v710_v39 }
 0x4b4   : > { %v11167_v51 = vadd.f32 %v4777_v27, %v10815_v55  ;;  %v11170_v22 = vadd.f32 %v5002_v48, %v10818_v12  ;;  %5245 = vmatprep.mubr.f32.mxu1 %v1534_v58  ;;  %5470 = vmatprep.mubr.f32.mxu0 %v736_v9  ;;  %v2165_v12 = vld [vmem:[#allocation5 + $0xad0] sm:$0xff]  ;;  %v1558_v9 = vld [vmem:[%s8469_s7 + $0x29d8] sm:$0xff]  ;;  %v760_v27 = vld [vmem:[%s8469_s7 + $0x10e8] sm:$0xff] }
 0x4b5   : > { %v4779_v23 = vpop.f32.mrf.mxu0  ;;  %v5004_v26 = vpop.f32.mrf.mxu1  ;;  %6116 = vmatprep.subr.mxu0 %v13058_v61 }
 0x4b6   : > { %6117 = vmatpush2.msra.mxu0 %v2166_v54  ;;  %v1584_v54 = vld [vmem:[%s8469_s7 + $0x2aa8] sm:$0xff]  ;;  %v786_v26 = vld [vmem:[%s8469_s7 + $0x11b8] sm:$0xff] }
 0x4b7   : > { %v4782_v55 = vpop.f32.mrf.mxu0  ;;  %v5007_v46 = vpop.f32.mrf.mxu1  ;;  %5246 = vmatmul.mubr.f32.gmra.mxu1 %v1533_v18  ;;  %5471 = vmatmul.mubr.f32.gmra.mxu0 %v735_v35 }
 0x4b8   : > { %v11178_v39 = vadd.f32 %v4782_v55, %v10826_v47  ;;  %v11181_v58 = vadd.f32 %v5007_v46, %v10829_v6  ;;  %5250 = vmatprep.mubr.f32.mxu1 %v1559_v63  ;;  %5475 = vmatprep.mubr.f32.mxu0 %v761_v33  ;;  %v2164_v6 = vld [vmem:[#allocation5 + $0xac8] sm:$0xff]  ;;  %v1583_v33 = vld [vmem:[%s8469_s7 + $0x2aa0] sm:$0xff]  ;;  %v785_v55 = vld [vmem:[%s8469_s7 + $0x11b0] sm:$0xff] }
 0x4b9   : > { %v4784_v48 = vpop.f32.mrf.mxu0  ;;  %v5009_v23 = vpop.f32.mrf.mxu1  ;;  %6118 = vmatprep.subr.mxu0 %v13058_v61 }
 0x4ba   : > { %6119 = vmatpush2.msra.mxu0 %v2165_v12  ;;  %v1609_v12 = vld [vmem:[%s8469_s7 + $0x2b70] sm:$0xff]  ;;  %v811_v23 = vld [vmem:[%s8469_s7 + $0x1280] sm:$0xff] }
 0x4bb   : > { %v4787_v47 = vpop.f32.mrf.mxu0  ;;  %v5012_v18 = vpop.f32.mrf.mxu1  ;;  %5251 = vmatmul.mubr.f32.gmra.mxu1 %v1558_v9  ;;  %5476 = vmatmul.mubr.f32.gmra.mxu0 %v760_v27 }
 0x4bc   : > { %v11189_v35 = vadd.f32 %v4787_v47, %v10837_v53  ;;  %v11192_v63 = vadd.f32 %v5012_v18, %v10840_v60  ;;  %5255 = vmatprep.mubr.f32.mxu1 %v1584_v54  ;;  %5480 = vmatprep.mubr.f32.mxu0 %v786_v26  ;;  %v2163_v60 = vld [vmem:[#allocation5 + $0xac0] sm:$0xff]  ;;  %v1608_v26 = vld [vmem:[%s8469_s7 + $0x2b68] sm:$0xff]  ;;  %v810_v47 = vld [vmem:[%s8469_s7 + $0x1278] sm:$0xff] }
 0x4bd   : > { %v4789_v46 = vpop.f32.mrf.mxu0  ;;  %v5014_v48 = vpop.f32.mrf.mxu1  ;;  %6120 = vmatprep.subr.mxu0 %v13058_v61 }
 0x4be   : > { %6121 = vmatpush2.msra.mxu0 %v2164_v6  ;;  %v1634_v6 = vld [vmem:[%s8469_s7 + $0x2c38] sm:$0xff]  ;;  %v836_v48 = vld [vmem:[%s8469_s7 + $0x1348] sm:$0xff] }
 0x4bf   : > { %v4792_v53 = vpop.f32.mrf.mxu0  ;;  %v5017_v9 = vpop.f32.mrf.mxu1  ;;  %5256 = vmatmul.mubr.f32.gmra.mxu1 %v1583_v33  ;;  %5481 = vmatmul.mubr.f32.gmra.mxu0 %v785_v55 }
 0x4c0   : > { %v11200_v27 = vadd.f32 %v4792_v53, %v10848_v14  ;;  %v11203_v54 = vadd.f32 %v5017_v9, %v10851_v1  ;;  %5260 = vmatprep.mubr.f32.mxu1 %v1609_v12  ;;  %5485 = vmatprep.mubr.f32.mxu0 %v811_v23  ;;  %v2162_v1 = vld [vmem:[#allocation5 + $0xab8] sm:$0xff]  ;;  %v1633_v23 = vld [vmem:[%s8469_s7 + $0x2c30] sm:$0xff]  ;;  %v835_v53 = vld [vmem:[%s8469_s7 + $0x1340] sm:$0xff] }
 0x4c1   : > { %v4794_v18 = vpop.f32.mrf.mxu0  ;;  %v5019_v46 = vpop.f32.mrf.mxu1  ;;  %6122 = vmatprep.subr.mxu0 %v13058_v61 }
 0x4c2   : > { %6123 = vmatpush2.msra.mxu0 %v2163_v60  ;;  %v1659_v60 = vld [vmem:[%s8469_s7 + $0x2d00] sm:$0xff]  ;;  %v861_v46 = vld [vmem:[%s8469_s7 + $0x1410] sm:$0xff] }
 0x4c3   : > { %v4797_v14 = vpop.f32.mrf.mxu0  ;;  %v5022_v33 = vpop.f32.mrf.mxu1  ;;  %5261 = vmatmul.mubr.f32.gmra.mxu1 %v1608_v26  ;;  %5486 = vmatmul.mubr.f32.gmra.mxu0 %v810_v47 }
 0x4c4   : > { %v11211_v55 = vadd.f32 %v4797_v14, %v10859_v37  ;;  %v11214_v12 = vadd.f32 %v5022_v33, %v10862_v11  ;;  %5265 = vmatprep.mubr.f32.mxu1 %v1634_v6  ;;  %5490 = vmatprep.mubr.f32.mxu0 %v836_v48  ;;  %v2161_v11 = vld [vmem:[#allocation5 + $0xab0] sm:$0xff]  ;;  %v1658_v48 = vld [vmem:[%s8469_s7 + $0x2cf8] sm:$0xff]  ;;  %v860_v14 = vld [vmem:[%s8469_s7 + $0x1408] sm:$0xff] }
 0x4c5   : > { %v4799_v9 = vpop.f32.mrf.mxu0  ;;  %v5024_v18 = vpop.f32.mrf.mxu1  ;;  %6124 = vmatprep.subr.mxu0 %v13058_v61 }
 0x4c6   : > { %6125 = vmatpush2.msra.mxu0 %v2162_v1  ;;  %v1684_v1 = vld [vmem:[%s8469_s7 + $0x2dc8] sm:$0xff]  ;;  %v886_v18 = vld [vmem:[%s8469_s7 + $0x14d8] sm:$0xff] }
 0x4c7   : > { %v4802_v37 = vpop.f32.mrf.mxu0  ;;  %v5027_v26 = vpop.f32.mrf.mxu1  ;;  %5266 = vmatmul.mubr.f32.gmra.mxu1 %v1633_v23  ;;  %5491 = vmatmul.mubr.f32.gmra.mxu0 %v835_v53 }
 0x4c8   : > { %v11222_v47 = vadd.f32 %v4802_v37, %v10870_v17  ;;  %v11225_v6 = vadd.f32 %v5027_v26, %v10873_v38  ;;  %5270 = vmatprep.mubr.f32.mxu1 %v1659_v60  ;;  %5495 = vmatprep.mubr.f32.mxu0 %v861_v46  ;;  %v2160_v38 = vld [vmem:[#allocation5 + $0xaa8] sm:$0xff]  ;;  %v1683_v46 = vld [vmem:[%s8469_s7 + $0x2dc0] sm:$0xff]  ;;  %v885_v37 = vld [vmem:[%s8469_s7 + $0x14d0] sm:$0xff] }
 0x4c9   : > { %v4804_v33 = vpop.f32.mrf.mxu0  ;;  %v5029_v9 = vpop.f32.mrf.mxu1  ;;  %6126 = vmatprep.subr.mxu0 %v13058_v61 }
 0x4ca   : > { %6127 = vmatpush2.msra.mxu0 %v2161_v11  ;;  %v1709_v11 = vld [vmem:[%s8469_s7 + $0x2e90] sm:$0xff]  ;;  %v911_v9 = vld [vmem:[%s8469_s7 + $0x15a0] sm:$0xff] }
 0x4cb   : > { %v4807_v17 = vpop.f32.mrf.mxu0  ;;  %v5032_v23 = vpop.f32.mrf.mxu1  ;;  %5271 = vmatmul.mubr.f32.gmra.mxu1 %v1658_v48  ;;  %5496 = vmatmul.mubr.f32.gmra.mxu0 %v860_v14 }
 0x4cc   : > { %v11233_v53 = vadd.f32 %v4807_v17, %v10881_v24  ;;  %v11236_v60 = vadd.f32 %v5032_v23, %v10884_v29  ;;  %5275 = vmatprep.mubr.f32.mxu1 %v1684_v1  ;;  %5500 = vmatprep.mubr.f32.mxu0 %v886_v18  ;;  %v2159_v29 = vld [vmem:[#allocation5 + $0xaa0] sm:$0xff]  ;;  %v1708_v18 = vld [vmem:[%s8469_s7 + $0x2e88] sm:$0xff]  ;;  %v910_v17 = vld [vmem:[%s8469_s7 + $0x1598] sm:$0xff] }
 0x4cd   : > { %v4809_v26 = vpop.f32.mrf.mxu0  ;;  %v5034_v33 = vpop.f32.mrf.mxu1  ;;  %6128 = vmatprep.subr.mxu0 %v13058_v61 }
 0x4ce   : > { %6129 = vmatpush2.msra.mxu0 %v2160_v38  ;;  %v1734_v38 = vld [vmem:[%s8469_s7 + $0x2f58] sm:$0xff]  ;;  %v936_v33 = vld [vmem:[%s8469_s7 + $0x1668] sm:$0xff] }
 0x4cf   : > { %v4812_v24 = vpop.f32.mrf.mxu0  ;;  %v5037_v48 = vpop.f32.mrf.mxu1  ;;  %5276 = vmatmul.mubr.f32.gmra.mxu1 %v1683_v46  ;;  %5501 = vmatmul.mubr.f32.gmra.mxu0 %v885_v37 }
 0x4d0   : > { %v11244_v14 = vadd.f32 %v4812_v24, %v10892_v4  ;;  %v11247_v1 = vadd.f32 %v5037_v48, %v10895_v28  ;;  %5280 = vmatprep.mubr.f32.mxu1 %v1709_v11  ;;  %5505 = vmatprep.mubr.f32.mxu0 %v911_v9  ;;  %v2158_v28 = vld [vmem:[#allocation5 + $0xa98] sm:$0xff]  ;;  %v1733_v9 = vld [vmem:[%s8469_s7 + $0x2f50] sm:$0xff]  ;;  %v935_v24 = vld [vmem:[%s8469_s7 + $0x1660] sm:$0xff] }
 0x4d1   : > { %v4814_v23 = vpop.f32.mrf.mxu0  ;;  %v5039_v26 = vpop.f32.mrf.mxu1  ;;  %6130 = vmatprep.subr.mxu0 %v13058_v61 }
 0x4d2   : > { %6131 = vmatpush2.msra.mxu0 %v2159_v29  ;;  %v1759_v29 = vld [vmem:[%s8469_s7 + $0x3020] sm:$0xff]  ;;  %v961_v26 = vld [vmem:[%s8469_s7 + $0x1730] sm:$0xff] }
 0x4d3   : > { %v4817_v4 = vpop.f32.mrf.mxu0  ;;  %v5042_v46 = vpop.f32.mrf.mxu1  ;;  %5281 = vmatmul.mubr.f32.gmra.mxu1 %v1708_v18  ;;  %5506 = vmatmul.mubr.f32.gmra.mxu0 %v910_v17 }
 0x4d4   : > { %v11255_v37 = vadd.f32 %v4817_v4, %v10903_v59  ;;  %v11258_v11 = vadd.f32 %v5042_v46, %v10906_v30  ;;  %5285 = vmatprep.mubr.f32.mxu1 %v1734_v38  ;;  %5510 = vmatprep.mubr.f32.mxu0 %v936_v33  ;;  %v2157_v30 = vld [vmem:[#allocation5 + $0xa90] sm:$0xff]  ;;  %v13229_v38 = vld [vmem:[#allocation23_spill] sm:$0xff]  ;;  %v960_v46 = vld [vmem:[%s8469_s7 + $0x1728] sm:$0xff] }
 0x4d5   : > { %v4819_v48 = vpop.f32.mrf.mxu0  ;;  %v5044_v23 = vpop.f32.mrf.mxu1  ;;  %6132 = vmatprep.subr.mxu0 %v13058_v61  ;;  %v1758_v4 = vld [vmem:[%s8469_s7 + $0x3018] sm:$0xff] }
 0x4d6   : > { %13228 = vst [vmem:[#allocation13_spill] sm:$0xff] %v11258_v11  ;;  %6133 = vmatpush2.msra.mxu0 %v2158_v28  ;;  %v1784_v28 = vld [vmem:[%s8469_s7 + $0x30e8] sm:$0xff]  ;;  %v986_v11 = vld [vmem:[%s8469_s7 + $0x17f8] sm:$0xff] }
 0x4d7   : > { %v4822_v59 = vpop.f32.mrf.mxu0  ;;  %v5047_v18 = vpop.f32.mrf.mxu1  ;;  %5286 = vmatmul.mubr.f32.gmra.mxu1 %v1733_v9  ;;  %5511 = vmatmul.mubr.f32.gmra.mxu0 %v935_v24  ;;  %v2156_v24 = vld [vmem:[#allocation5 + $0xa88] sm:$0xff] }
 0x4d8   : > { %v11266_v17 = vadd.f32 %v4822_v59, %v10914_v2  ;;  %v11269_v33 = vadd.f32 %v5047_v18, %v13229_v38  ;;  %5290 = vmatprep.mubr.f32.mxu1 %v1759_v29  ;;  %5515 = vmatprep.mubr.f32.mxu0 %v961_v26  ;;  %v13231_v26 = vld [vmem:[#allocation15_spill] sm:$0xff]  ;;  %v985_v38 = vld [vmem:[%s8469_s7 + $0x17f0] sm:$0xff] }
 0x4d9   : > { %v4824_v48 = vpop.f32.mrf.mxu0  ;;  %v5049_v23 = vpop.f32.mrf.mxu1  ;;  %6134 = vmatprep.subr.mxu0 %v13058_v61  ;;  %v1783_v18 = vld [vmem:[%s8469_s7 + $0x30e0] sm:$0xff] }
 0x4da   : > { %13230 = vst [vmem:[#allocation22_spill] sm:$0xff] %v11269_v33  ;;  %6135 = vmatpush2.msra.mxu0 %v2157_v30  ;;  %v1809_v30 = vld [vmem:[%s8469_s7 + $0x31b0] sm:$0xff]  ;;  %v1011_v33 = vld [vmem:[%s8469_s7 + $0x18c0] sm:$0xff] }
 0x4db   : > { %v4827_v2 = vpop.f32.mrf.mxu0  ;;  %v5052_v9 = vpop.f32.mrf.mxu1  ;;  %5291 = vmatmul.mubr.f32.gmra.mxu1 %v1758_v4  ;;  %5516 = vmatmul.mubr.f32.gmra.mxu0 %v960_v46 }
 0x4dc   : > { %v11277_v29 = vadd.f32 %v4827_v2, %v10925_v36  ;;  %v11280_v59 = vadd.f32 %v5052_v9, %v13231_v26  ;;  %5295 = vmatprep.mubr.f32.mxu1 %v1784_v28  ;;  %5520 = vmatprep.mubr.f32.mxu0 %v986_v11  ;;  %v13234_v11 = vld [vmem:[#allocation24_spill] sm:$0xff]  ;;  %v1010_v9 = vld [vmem:[%s8469_s7 + $0x18b8] sm:$0xff] }
 0x4dd   : > { %v4829_v48 = vpop.f32.mrf.mxu0  ;;  %v5054_v23 = vpop.f32.mrf.mxu1  ;;  %6136 = vmatprep.subr.mxu0 %v13058_v61  ;;  %v1808_v2 = vld [vmem:[%s8469_s7 + $0x31a8] sm:$0xff]  ;;  %v2155_v26 = vld [vmem:[#allocation5 + $0xa80] sm:$0xff] }
 0x4de   : > { %13232 = vst [vmem:[#allocation14_spill] sm:$0xff] %v11280_v59  ;;  %6137 = vmatpush2.msra.mxu0 %v2156_v24  ;;  %v1036_v24 = vld [vmem:[%s8469_s7 + $0x1988] sm:$0xff]  ;;  %v238_v59 = vld [vmem:[%s8469_s7 + $0x98] sm:$0xff] }
 0x4df   : > { %v4832_v36 = vpop.f32.mrf.mxu0  ;;  %v5057_v4 = vpop.f32.mrf.mxu1  ;;  %5296 = vmatmul.mubr.f32.gmra.mxu1 %v1783_v18  ;;  %5521 = vmatmul.mubr.f32.gmra.mxu0 %v985_v38  ;;  %v13236_v38 = vld [vmem:[#allocation16_spill] sm:$0xff] }
 0x4e0   : > { %v11288_v46 = vadd.f32 %v4832_v36, %v10936_v57  ;;  %v11291_v28 = vadd.f32 %v5057_v4, %v13234_v11  ;;  %5300 = vmatprep.mubr.f32.mxu1 %v1809_v30  ;;  %5525 = vmatprep.mubr.f32.mxu0 %v1011_v33  ;;  %v13237_v30 = vld [vmem:[#allocation25_spill] sm:$0xff]  ;;  %v1035_v4 = vld [vmem:[%s8469_s7 + $0x1980] sm:$0xff] }
 0x4e1   : > { %v4834_v48 = vpop.f32.mrf.mxu0  ;;  %v5059_v23 = vpop.f32.mrf.mxu1  ;;  %6138 = vmatprep.subr.mxu0 %v13058_v61  ;;  %v237_v11 = vld [vmem:[%s8469_s7 + $0x90] sm:$0xff] }
 0x4e2   : > { %13233 = vst [vmem:[#allocation23_spill] sm:$0xff] %v11288_v46  ;;  %13235 = vst [vmem:[#allocation15_spill] sm:$0xff] %v11291_v28  ;;  %6139 = vmatpush2.msra.mxu0 %v2155_v26  ;;  %v2186_v28 = vld [vmem:[#allocation5 + $0xb78] sm:$0xff]  ;;  %v1061_v26 = vld [vmem:[%s8469_s7 + $0x1a50] sm:$0xff] }
 0x4e3   : > { %v4837_v57 = vpop.f32.mrf.mxu0  ;;  %v5062_v18 = vpop.f32.mrf.mxu1  ;;  %5301 = vmatmul.mubr.f32.gmra.mxu1 %v1808_v2  ;;  %5526 = vmatmul.mubr.f32.gmra.mxu0 %v1010_v9  ;;  %v263_v46 = vld [vmem:[%s8469_s7 + $0x160] sm:$0xff] }
 0x4e4   : > { %v11299_v33 = vadd.f32 %v4837_v57, %v13236_v38  ;;  %v11302_v36 = vadd.f32 %v5062_v18, %v13237_v30  ;;  %5530 = vmatprep.mubr.f32.mxu0 %v1036_v24  ;;  %5755 = vmatprep.mubr.f32.mxu1 %v238_v59  ;;  %v2185_v57 = vld [vmem:[#allocation5 + $0xb70] sm:$0xff]  ;;  %v1060_v24 = vld [vmem:[%s8469_s7 + $0x1a48] sm:$0xff]  ;;  %v262_v38 = vld [vmem:[%s8469_s7 + $0x158] sm:$0xff] }
 0x4e5   : > { %v4839_v48 = vpop.f32.mrf.mxu0  ;;  %v5064_v23 = vpop.f32.mrf.mxu1  ;;  %v2218_v30 = vld [vmem:[#allocation5 + $0xc78] sm:$0xff] }
 0x4e6   : > { %13238 = vst [vmem:[#allocation24_spill] sm:$0xff] %v11302_v36  ;;  %v1086_v36 = vld [vmem:[%s8469_s7 + $0x1b18] sm:$0xff]  ;;  %7884 = vmatprep.subr.mxu0 %v2218_v30  ;;  %v1111_v30 = vld [vmem:[%s8469_s7 + $0x1be0] sm:$0xff] }
 0x4e7   : > { %v4842_v2 = vpop.f32.mrf.mxu0  ;;  %v5067_v9 = vpop.f32.mrf.mxu1  ;;  %5531 = vmatmul.mubr.f32.gmra.mxu0 %v1035_v4  ;;  %5756 = vmatmul.mubr.f32.vlgmr.msra.gmra.mxu1 %v237_v11  ;;  %v288_v4 = vld [vmem:[%s8469_s7 + $0x228] sm:$0xff] }
 0x4e8   : > { %v11309_v18 = vadd.f32 %v4842_v2, %v10958_v52  ;;  %v11312_v59 = vadd.f32 %v5067_v9, %v10961_v16  ;;  %6462 = vmatpush1.msra.mxu1 %v2186_v28  ;;  %5535 = vmatprep.mubr.f32.mxu0 %v1061_v26  ;;  %v2184_v28 = vld [vmem:[#allocation5 + $0xb68] sm:$0xff]  ;;  %v287_v2 = vld [vmem:[%s8469_s7 + $0x220] sm:$0xff] }
 0x4e9   : > { %v4844_v48 = vpop.f32.mrf.mxu0  ;;  %v5069_v23 = vpop.f32.mrf.mxu1  ;;  %5760 = vmatprep.mubr.f32.mxu1 %v263_v46  ;;  %6463 = vmatprep.subr.mxu1 %v13058_v61  ;;  %v1085_v46 = vld [vmem:[%s8469_s7 + $0x1b10] sm:$0xff] }
 0x4ea   : > { %6464 = vmatpush1.msra.mxu1 %v2185_v57  ;;  %v313_v48 = vld [vmem:[%s8469_s7 + $0x2f0] sm:$0xff]  ;;  %v1110_v23 = vld [vmem:[%s8469_s7 + $0x1bd8] sm:$0xff] }
 0x4eb   : > { %v4847_v52 = vpop.f32.mrf.mxu0  ;;  %v5072_v16 = vpop.f32.mrf.mxu1  ;;  %5536 = vmatmul.mubr.f32.gmra.mxu0 %v1060_v24  ;;  %5761 = vmatmul.mubr.f32.gmra.mxu1 %v262_v38 }
 0x4ec   : > { %v11320_v11 = vadd.f32 %v4847_v52, %v10969_v25  ;;  %v11323_v26 = vadd.f32 %v5072_v16, %v10972_v20  ;;  %5540 = vmatprep.mubr.f32.mxu0 %v1086_v36  ;;  %5765 = vmatprep.mubr.f32.mxu1 %v288_v4  ;;  %v2183_v20 = vld [vmem:[#allocation5 + $0xb60] sm:$0xff]  ;;  %v312_v4 = vld [vmem:[%s8469_s7 + $0x2e8] sm:$0xff] }
 0x4ed   : > { %v4849_v9 = vpop.f32.mrf.mxu0  ;;  %v5074_v57 = vpop.f32.mrf.mxu1  ;;  %6465 = vmatprep.subr.mxu1 %v13058_v61 }
 0x4ee   : > { %6466 = vmatpush1.msra.mxu1 %v2184_v28  ;;  %v1136_v28 = vld [vmem:[%s8469_s7 + $0x1ca8] sm:$0xff]  ;;  %v338_v9 = vld [vmem:[%s8469_s7 + $0x3b8] sm:$0xff] }
 0x4ef   : > { %v4852_v25 = vpop.f32.mrf.mxu0  ;;  %v5077_v24 = vpop.f32.mrf.mxu1  ;;  %5541 = vmatmul.mubr.f32.gmra.mxu0 %v1085_v46  ;;  %5766 = vmatmul.mubr.f32.gmra.mxu1 %v287_v2 }
 0x4f0   : > { %v11331_v36 = vadd.f32 %v4852_v25, %v10980_v15  ;;  %v11334_v38 = vadd.f32 %v5077_v24, %v10983_v50  ;;  %5545 = vmatprep.mubr.f32.mxu0 %v1111_v30  ;;  %5770 = vmatprep.mubr.f32.mxu1 %v313_v48  ;;  %v2182_v50 = vld [vmem:[#allocation5 + $0xb58] sm:$0xff]  ;;  %v1135_v30 = vld [vmem:[%s8469_s7 + $0x1ca0] sm:$0xff]  ;;  %v337_v48 = vld [vmem:[%s8469_s7 + $0x3b0] sm:$0xff] }
 0x4f1   : > { %v4854_v52 = vpop.f32.mrf.mxu0  ;;  %v5079_v16 = vpop.f32.mrf.mxu1  ;;  %6467 = vmatprep.subr.mxu1 %v13058_v61 }
 0x4f2   : > { %6468 = vmatpush1.msra.mxu1 %v2183_v20  ;;  %v1161_v20 = vld [vmem:[%s8469_s7 + $0x1d70] sm:$0xff]  ;;  %v363_v52 = vld [vmem:[%s8469_s7 + $0x480] sm:$0xff] }
 0x4f3   : > { %v4857_v15 = vpop.f32.mrf.mxu0  ;;  %v5082_v46 = vpop.f32.mrf.mxu1  ;;  %5546 = vmatmul.mubr.f32.gmra.mxu0 %v1110_v23  ;;  %5771 = vmatmul.mubr.f32.gmra.mxu1 %v312_v4  ;;  %v13240_v16 = vld [vmem:[#allocation17_spill] sm:$0xff] }
 0x4f4   : > { %v11342_v2 = vadd.f32 %v4857_v15, %v10991_v10  ;;  %v11345_v57 = vadd.f32 %v5082_v46, %v10994_v19  ;;  %5550 = vmatprep.mubr.f32.mxu0 %v1136_v28  ;;  %5775 = vmatprep.mubr.f32.mxu1 %v338_v9  ;;  %v2181_v19 = vld [vmem:[#allocation5 + $0xb50] sm:$0xff]  ;;  %v1160_v9 = vld [vmem:[%s8469_s7 + $0x1d68] sm:$0xff]  ;;  %v362_v15 = vld [vmem:[%s8469_s7 + $0x478] sm:$0xff] }
 0x4f5   : > { %v4859_v25 = vpop.f32.mrf.mxu0  ;;  %v5084_v24 = vpop.f32.mrf.mxu1  ;;  %6469 = vmatprep.subr.mxu1 %v13058_v61 }
 0x4f6   : > { %6470 = vmatpush1.msra.mxu1 %v2182_v50  ;;  %v1186_v50 = vld [vmem:[%s8469_s7 + $0x1e38] sm:$0xff]  ;;  %v388_v24 = vld [vmem:[%s8469_s7 + $0x548] sm:$0xff] }
 0x4f7   : > { %v4862_v10 = vpop.f32.mrf.mxu0  ;;  %v5087_v23 = vpop.f32.mrf.mxu1  ;;  %5551 = vmatmul.mubr.f32.gmra.mxu0 %v1135_v30  ;;  %5776 = vmatmul.mubr.f32.gmra.mxu1 %v337_v48  ;;  %v2180_v48 = vld [vmem:[#allocation5 + $0xb48] sm:$0xff] }
 0x4f8   : > { %v11353_v4 = vadd.f32 %v4862_v10, %v11002_v7  ;;  %v11356_v28 = vadd.f32 %v5087_v23, %v13240_v16  ;;  %5555 = vmatprep.mubr.f32.mxu0 %v1161_v20  ;;  %5780 = vmatprep.mubr.f32.mxu1 %v363_v52  ;;  %v13242_v20 = vld [vmem:[#allocation26_spill] sm:$0xff] }
 0x4f9   : > { %v4864_v46 = vpop.f32.mrf.mxu0  ;;  %v5089_v25 = vpop.f32.mrf.mxu1  ;;  %6471 = vmatprep.subr.mxu1 %v13058_v61  ;;  %v13244_v10 = vld [vmem:[#allocation18_spill] sm:$0xff] }
 0x4fa   : > { %13239 = vst [vmem:[#allocation16_spill] sm:$0xff] %v11353_v4  ;;  %13241 = vst [vmem:[#allocation25_spill] sm:$0xff] %v11356_v28  ;;  %6472 = vmatpush1.msra.mxu1 %v2181_v19  ;;  %v1185_v16 = vld [vmem:[%s8469_s7 + $0x1e30] sm:$0xff]  ;;  %v387_v46 = vld [vmem:[%s8469_s7 + $0x540] sm:$0xff] }
 0x4fb   : > { %v4867_v7 = vpop.f32.mrf.mxu0  ;;  %v5092_v30 = vpop.f32.mrf.mxu1  ;;  %5556 = vmatmul.mubr.f32.gmra.mxu0 %v1160_v9  ;;  %5781 = vmatmul.mubr.f32.gmra.mxu1 %v362_v15  ;;  %v1211_v19 = vld [vmem:[%s8469_s7 + $0x1f00] sm:$0xff]  ;;  %v413_v4 = vld [vmem:[%s8469_s7 + $0x610] sm:$0xff] }
 0x4fc   : > { %v11364_v52 = vadd.f32 %v4867_v7, %v13242_v20  ;;  %v11367_v23 = vadd.f32 %v5092_v30, %v13244_v10  ;;  %5560 = vmatprep.mubr.f32.mxu0 %v1186_v50  ;;  %5785 = vmatprep.mubr.f32.mxu1 %v388_v24  ;;  %v2179_v7 = vld [vmem:[#allocation5 + $0xb40] sm:$0xff]  ;;  %v412_v10 = vld [vmem:[%s8469_s7 + $0x608] sm:$0xff] }
 0x4fd   : > { %v4869_v25 = vpop.f32.mrf.mxu0  ;;  %v5094_v28 = vpop.f32.mrf.mxu1  ;;  %6473 = vmatprep.subr.mxu1 %v13058_v61  ;;  %v13246_v50 = vld [vmem:[#allocation27_spill] sm:$0xff] }
 0x4fe   : > { %13243 = vst [vmem:[#allocation17_spill] sm:$0xff] %v11364_v52  ;;  %13245 = vst [vmem:[#allocation26_spill] sm:$0xff] %v11367_v23  ;;  %6474 = vmatpush1.msra.mxu1 %v2180_v48  ;;  %v13248_v30 = vld [vmem:[#allocation19_spill] sm:$0xff]  ;;  %v1236_v48 = vld [vmem:[%s8469_s7 + $0x1fc8] sm:$0xff] }
 0x4ff   : > { %v4872_v9 = vpop.f32.mrf.mxu0  ;;  %v5097_v15 = vpop.f32.mrf.mxu1  ;;  %5561 = vmatmul.mubr.f32.gmra.mxu0 %v1185_v16  ;;  %5786 = vmatmul.mubr.f32.gmra.mxu1 %v387_v46  ;;  %v1210_v28 = vld [vmem:[%s8469_s7 + $0x1ef8] sm:$0xff] }
 0x500   : > { %v11375_v24 = vadd.f32 %v4872_v9, %v13246_v50  ;;  %v11378_v20 = vadd.f32 %v5097_v15, %v13248_v30  ;;  %5565 = vmatprep.mubr.f32.mxu0 %v1211_v19  ;;  %5790 = vmatprep.mubr.f32.mxu1 %v413_v4  ;;  %v438_v52 = vld [vmem:[%s8469_s7 + $0x6d8] sm:$0xff]  ;;  %v13250_v19 = vld [vmem:[#allocation28_spill] sm:$0xff]  ;;  %v437_v30 = vld [vmem:[%s8469_s7 + $0x6d0] sm:$0xff] }
 0x501   : > { %v4874_v25 = vpop.f32.mrf.mxu0  ;;  %v5099_v23 = vpop.f32.mrf.mxu1  ;;  %6475 = vmatprep.subr.mxu1 %v13058_v61  ;;  %v2178_v9 = vld [vmem:[#allocation5 + $0xb38] sm:$0xff]  ;;  %v13252_v15 = vld [vmem:[#allocation20_spill] sm:$0xff] }
 0x502   : > { %13247 = vst [vmem:[#allocation18_spill] sm:$0xff] %v11375_v24  ;;  %13249 = vst [vmem:[#allocation27_spill] sm:$0xff] %v11378_v20  ;;  %6476 = vmatpush1.msra.mxu1 %v2179_v7  ;;  %v1235_v23 = vld [vmem:[%s8469_s7 + $0x1fc0] sm:$0xff]  ;;  %v1261_v7 = vld [vmem:[%s8469_s7 + $0x2090] sm:$0xff] }
 0x503   : > { %v4877_v16 = vpop.f32.mrf.mxu0  ;;  %v5102_v46 = vpop.f32.mrf.mxu1  ;;  %5566 = vmatmul.mubr.f32.gmra.mxu0 %v1210_v28  ;;  %5791 = vmatmul.mubr.f32.gmra.mxu1 %v412_v10  ;;  %v463_v24 = vld [vmem:[%s8469_s7 + $0x7a0] sm:$0xff] }
 0x504   : > { %v11386_v4 = vadd.f32 %v4877_v16, %v13250_v19  ;;  %v11389_v50 = vadd.f32 %v5102_v46, %v13252_v15  ;;  %5570 = vmatprep.mubr.f32.mxu0 %v1236_v48  ;;  %5795 = vmatprep.mubr.f32.mxu1 %v438_v52  ;;  %v2177_v16 = vld [vmem:[#allocation5 + $0xb30] sm:$0xff]  ;;  %v462_v15 = vld [vmem:[%s8469_s7 + $0x798] sm:$0xff] }
 0x505   : > { %v4879_v25 = vpop.f32.mrf.mxu0  ;;  %v5104_v20 = vpop.f32.mrf.mxu1  ;;  %6477 = vmatprep.subr.mxu1 %v13058_v61  ;;  %v13254_v48 = vld [vmem:[#allocation29_spill] sm:$0xff]  ;;  %v13256_v46 = vld [vmem:[#allocation30_spill] sm:$0xff] }
 0x506   : > { %13251 = vst [vmem:[#allocation19_spill] sm:$0xff] %v11386_v4  ;;  %13253 = vst [vmem:[#allocation28_spill] sm:$0xff] %v11389_v50  ;;  %6478 = vmatpush1.msra.mxu1 %v2178_v9  ;;  %v1260_v20 = vld [vmem:[%s8469_s7 + $0x2088] sm:$0xff]  ;;  %v1286_v9 = vld [vmem:[%s8469_s7 + $0x2158] sm:$0xff] }
 0x507   : > { %v4882_v28 = vpop.f32.mrf.mxu0  ;;  %v5107_v10 = vpop.f32.mrf.mxu1  ;;  %5571 = vmatmul.mubr.f32.gmra.mxu0 %v1235_v23  ;;  %5796 = vmatmul.mubr.f32.gmra.mxu1 %v437_v30  ;;  %v488_v4 = vld [vmem:[%s8469_s7 + $0x868] sm:$0xff] }
 0x508   : > { %v11397_v52 = vadd.f32 %v4882_v28, %v13254_v48  ;;  %v11400_v19 = vadd.f32 %v5107_v10, %v13256_v46  ;;  %5575 = vmatprep.mubr.f32.mxu0 %v1261_v7  ;;  %5800 = vmatprep.mubr.f32.mxu1 %v463_v24  ;;  %v2176_v28 = vld [vmem:[#allocation5 + $0xb28] sm:$0xff]  ;;  %v487_v46 = vld [vmem:[%s8469_s7 + $0x860] sm:$0xff] }
 0x509   : > { %v4884_v25 = vpop.f32.mrf.mxu0  ;;  %v5109_v50 = vpop.f32.mrf.mxu1  ;;  %6479 = vmatprep.subr.mxu1 %v13058_v61  ;;  %v13258_v7 = vld [vmem:[#allocation12_spill] sm:$0xff]  ;;  %v13259_v10 = vld [vmem:[#allocation21_spill] sm:$0xff] }
 0x50a   : > { %13255 = vst [vmem:[#allocation20_spill] sm:$0xff] %v11397_v52  ;;  %13257 = vst [vmem:[#allocation29_spill] sm:$0xff] %v11400_v19  ;;  %6480 = vmatpush1.msra.mxu1 %v2177_v16  ;;  %v1285_v50 = vld [vmem:[%s8469_s7 + $0x2150] sm:$0xff]  ;;  %v1311_v16 = vld [vmem:[%s8469_s7 + $0x2220] sm:$0xff] }
 0x50b   : > { %v4887_v23 = vpop.f32.mrf.mxu0  ;;  %v5112_v30 = vpop.f32.mrf.mxu1  ;;  %5576 = vmatmul.mubr.f32.gmra.mxu0 %v1260_v20  ;;  %5801 = vmatmul.mubr.f32.gmra.mxu1 %v462_v15  ;;  %v513_v52 = vld [vmem:[%s8469_s7 + $0x930] sm:$0xff] }
 0x50c   : > { %v11408_v24 = vadd.f32 %v4887_v23, %v13258_v7  ;;  %v11411_v48 = vadd.f32 %v5112_v30, %v13259_v10  ;;  %5580 = vmatprep.mubr.f32.mxu0 %v1286_v9  ;;  %5805 = vmatprep.mubr.f32.mxu1 %v488_v4  ;;  %v2175_v23 = vld [vmem:[#allocation5 + $0xb20] sm:$0xff]  ;;  %v512_v30 = vld [vmem:[%s8469_s7 + $0x928] sm:$0xff] }
 0x50d   : > { %v4889_v25 = vpop.f32.mrf.mxu0  ;;  %v5114_v19 = vpop.f32.mrf.mxu1  ;;  %6481 = vmatprep.subr.mxu1 %v13058_v61 }
 0x50e   : > { %6482 = vmatpush1.msra.mxu1 %v2176_v28  ;;  %v1310_v19 = vld [vmem:[%s8469_s7 + $0x2218] sm:$0xff]  ;;  %v1336_v28 = vld [vmem:[%s8469_s7 + $0x22e8] sm:$0xff] }
 0x50f   : > { %v4892_v20 = vpop.f32.mrf.mxu0  ;;  %v5117_v15 = vpop.f32.mrf.mxu1  ;;  %5581 = vmatmul.mubr.f32.gmra.mxu0 %v1285_v50  ;;  %5806 = vmatmul.mubr.f32.gmra.mxu1 %v487_v46  ;;  %v538_v25 = vld [vmem:[%s8469_s7 + $0x9f8] sm:$0xff] }
 0x510   : > { %v11419_v4 = vadd.f32 %v4892_v20, %v11068_v34  ;;  %v11422_v9 = vadd.f32 %v5117_v15, %v11071_v8  ;;  %5585 = vmatprep.mubr.f32.mxu0 %v1311_v16  ;;  %5810 = vmatprep.mubr.f32.mxu1 %v513_v52  ;;  %v2174_v8 = vld [vmem:[#allocation5 + $0xb18] sm:$0xff]  ;;  %v1335_v16 = vld [vmem:[%s8469_s7 + $0x22e0] sm:$0xff]  ;;  %v537_v20 = vld [vmem:[%s8469_s7 + $0x9f0] sm:$0xff] }
 0x511   : > { %v4894_v7 = vpop.f32.mrf.mxu0  ;;  %v5119_v10 = vpop.f32.mrf.mxu1  ;;  %6483 = vmatprep.subr.mxu1 %v13058_v61 }
 0x512   : > { %6484 = vmatpush1.msra.mxu1 %v2175_v23  ;;  %v1361_v23 = vld [vmem:[%s8469_s7 + $0x23b0] sm:$0xff]  ;;  %v563_v10 = vld [vmem:[%s8469_s7 + $0xac0] sm:$0xff] }
 0x513   : > { %v4897_v34 = vpop.f32.mrf.mxu0  ;;  %v5122_v50 = vpop.f32.mrf.mxu1  ;;  %5586 = vmatmul.mubr.f32.gmra.mxu0 %v1310_v19  ;;  %5811 = vmatmul.mubr.f32.gmra.mxu1 %v512_v30 }
 0x514   : > { %v11430_v52 = vadd.f32 %v4897_v34, %v11079_v21  ;;  %v11433_v46 = vadd.f32 %v5122_v50, %v11082_v62  ;;  %5590 = vmatprep.mubr.f32.mxu0 %v1336_v28  ;;  %5815 = vmatprep.mubr.f32.mxu1 %v538_v25  ;;  %v2173_v62 = vld [vmem:[#allocation5 + $0xb10] sm:$0xff]  ;;  %v1360_v25 = vld [vmem:[%s8469_s7 + $0x23a8] sm:$0xff]  ;;  %v562_v34 = vld [vmem:[%s8469_s7 + $0xab8] sm:$0xff] }
 0x515   : > { %v4899_v15 = vpop.f32.mrf.mxu0  ;;  %v5124_v7 = vpop.f32.mrf.mxu1  ;;  %6485 = vmatprep.subr.mxu1 %v13058_v61 }
 0x516   : > { %6486 = vmatpush1.msra.mxu1 %v2174_v8  ;;  %v1386_v8 = vld [vmem:[%s8469_s7 + $0x2478] sm:$0xff]  ;;  %v588_v7 = vld [vmem:[%s8469_s7 + $0xb88] sm:$0xff] }
 0x517   : > { %v4902_v21 = vpop.f32.mrf.mxu0  ;;  %v5127_v19 = vpop.f32.mrf.mxu1  ;;  %5591 = vmatmul.mubr.f32.gmra.mxu0 %v1335_v16  ;;  %5816 = vmatmul.mubr.f32.gmra.mxu1 %v537_v20 }
 0x518   : > { %v11441_v30 = vadd.f32 %v4902_v21, %v11090_v44  ;;  %v11444_v28 = vadd.f32 %v5127_v19, %v11093_v32  ;;  %5595 = vmatprep.mubr.f32.mxu0 %v1361_v23  ;;  %5820 = vmatprep.mubr.f32.mxu1 %v563_v10  ;;  %v2172_v32 = vld [vmem:[#allocation5 + $0xb08] sm:$0xff]  ;;  %v1385_v10 = vld [vmem:[%s8469_s7 + $0x2470] sm:$0xff]  ;;  %v587_v21 = vld [vmem:[%s8469_s7 + $0xb80] sm:$0xff] }
 0x519   : > { %v4904_v50 = vpop.f32.mrf.mxu0  ;;  %v5129_v15 = vpop.f32.mrf.mxu1  ;;  %6487 = vmatprep.subr.mxu1 %v13058_v61 }
 0x51a   : > { %6488 = vmatpush1.msra.mxu1 %v2173_v62  ;;  %v1411_v62 = vld [vmem:[%s8469_s7 + $0x2540] sm:$0xff]  ;;  %v613_v15 = vld [vmem:[%s8469_s7 + $0xc50] sm:$0xff] }
 0x51b   : > { %v4907_v44 = vpop.f32.mrf.mxu0  ;;  %v5132_v16 = vpop.f32.mrf.mxu1  ;;  %5596 = vmatmul.mubr.f32.gmra.mxu0 %v1360_v25  ;;  %5821 = vmatmul.mubr.f32.gmra.mxu1 %v562_v34 }
 0x51c   : > { %v11452_v20 = vadd.f32 %v4907_v44, %v11101_v40  ;;  %v11455_v23 = vadd.f32 %v5132_v16, %v11104_v5  ;;  %5600 = vmatprep.mubr.f32.mxu0 %v1386_v8  ;;  %5825 = vmatprep.mubr.f32.mxu1 %v588_v7  ;;  %v2171_v5 = vld [vmem:[#allocation5 + $0xb00] sm:$0xff]  ;;  %v1410_v7 = vld [vmem:[%s8469_s7 + $0x2538] sm:$0xff]  ;;  %v612_v44 = vld [vmem:[%s8469_s7 + $0xc48] sm:$0xff] }
 0x51d   : > { %v4909_v19 = vpop.f32.mrf.mxu0  ;;  %v5134_v50 = vpop.f32.mrf.mxu1  ;;  %6489 = vmatprep.subr.mxu1 %v13058_v61 }
 0x51e   : > { %6490 = vmatpush1.msra.mxu1 %v2172_v32  ;;  %v1436_v32 = vld [vmem:[%s8469_s7 + $0x2608] sm:$0xff]  ;;  %v638_v50 = vld [vmem:[%s8469_s7 + $0xd18] sm:$0xff] }
 0x51f   : > { %v4912_v40 = vpop.f32.mrf.mxu0  ;;  %v5137_v25 = vpop.f32.mrf.mxu1  ;;  %5601 = vmatmul.mubr.f32.gmra.mxu0 %v1385_v10  ;;  %5826 = vmatmul.mubr.f32.gmra.mxu1 %v587_v21 }
 0x520   : > { %v11463_v34 = vadd.f32 %v4912_v40, %v11112_v45  ;;  %v11466_v8 = vadd.f32 %v5137_v25, %v11115_v0  ;;  %5605 = vmatprep.mubr.f32.mxu0 %v1411_v62  ;;  %5830 = vmatprep.mubr.f32.mxu1 %v613_v15  ;;  %v2202_v0 = vld [vmem:[#allocation5 + $0xbf8] sm:$0xff]  ;;  %v1435_v15 = vld [vmem:[%s8469_s7 + $0x2600] sm:$0xff]  ;;  %v637_v40 = vld [vmem:[%s8469_s7 + $0xd10] sm:$0xff] }
 0x521   : > { %v4914_v16 = vpop.f32.mrf.mxu0  ;;  %v5139_v19 = vpop.f32.mrf.mxu1  ;;  %6491 = vmatprep.subr.mxu1 %v13058_v61 }
 0x522   : > { %6492 = vmatpush1.msra.mxu1 %v2171_v5  ;;  %v1461_v5 = vld [vmem:[%s8469_s7 + $0x26d0] sm:$0xff]  ;;  %v663_v19 = vld [vmem:[%s8469_s7 + $0xde0] sm:$0xff] }
 0x523   : > { %v4917_v45 = vpop.f32.mrf.mxu0  ;;  %v5142_v10 = vpop.f32.mrf.mxu1  ;;  %5606 = vmatmul.mubr.f32.gmra.mxu0 %v1410_v7  ;;  %5831 = vmatmul.mubr.f32.gmra.mxu1 %v612_v44 }
 0x524   : > { %v11474_v21 = vadd.f32 %v4917_v45, %v11123_v43  ;;  %v11477_v62 = vadd.f32 %v5142_v10, %v11126_v13  ;;  %5610 = vmatprep.mubr.f32.mxu0 %v1436_v32  ;;  %5835 = vmatprep.mubr.f32.mxu1 %v638_v50  ;;  %v2201_v13 = vld [vmem:[#allocation5 + $0xbf0] sm:$0xff]  ;;  %v1460_v50 = vld [vmem:[%s8469_s7 + $0x26c8] sm:$0xff]  ;;  %v662_v45 = vld [vmem:[%s8469_s7 + $0xdd8] sm:$0xff] }
 0x525   : > { %v4919_v25 = vpop.f32.mrf.mxu0  ;;  %v5144_v16 = vpop.f32.mrf.mxu1  ;;  %6493 = vmatprep.subr.mxu1 %v13058_v61 }
 0x526   : > { %6494 = vmatpush2.msra.mxu1 %v2202_v0  ;;  %v1486_v0 = vld [vmem:[%s8469_s7 + $0x2798] sm:$0xff]  ;;  %v688_v16 = vld [vmem:[%s8469_s7 + $0xea8] sm:$0xff] }
 0x527   : > { %v5147_v43 = vpop.f32.mrf.mxu1  ;;  %v5372_v7 = vpop.f32.mrf.mxu0  ;;  %5611 = vmatmul.mubr.f32.gmra.mxu0 %v1435_v15  ;;  %5836 = vmatmul.mubr.f32.gmra.mxu1 %v637_v40 }
 0x528   : > { %v11485_v44 = vadd.f32 %v5147_v43, %v11134_v42  ;;  %v11488_v32 = vadd.f32 %v5372_v7, %v11137_v49  ;;  %5615 = vmatprep.mubr.f32.mxu0 %v1461_v5  ;;  %5840 = vmatprep.mubr.f32.mxu1 %v663_v19  ;;  %v2200_v49 = vld [vmem:[#allocation5 + $0xbe8] sm:$0xff]  ;;  %v1485_v19 = vld [vmem:[%s8469_s7 + $0x2790] sm:$0xff]  ;;  %v687_v43 = vld [vmem:[%s8469_s7 + $0xea0] sm:$0xff] }
 0x529   : > { %v5149_v10 = vpop.f32.mrf.mxu1  ;;  %v5374_v25 = vpop.f32.mrf.mxu0  ;;  %6495 = vmatprep.subr.mxu1 %v13058_v61 }
 0x52a   : > { %6496 = vmatpush2.msra.mxu1 %v2201_v13  ;;  %v1511_v13 = vld [vmem:[%s8469_s7 + $0x2860] sm:$0xff]  ;;  %v713_v25 = vld [vmem:[%s8469_s7 + $0xf70] sm:$0xff] }
 0x52b   : > { %v5152_v42 = vpop.f32.mrf.mxu1  ;;  %v5377_v15 = vpop.f32.mrf.mxu0  ;;  %5616 = vmatmul.mubr.f32.gmra.mxu0 %v1460_v50  ;;  %5841 = vmatmul.mubr.f32.gmra.mxu1 %v662_v45 }
 0x52c   : > { %v11496_v40 = vadd.f32 %v5152_v42, %v11145_v56  ;;  %v11499_v5 = vadd.f32 %v5377_v15, %v11148_v31  ;;  %5620 = vmatprep.mubr.f32.mxu0 %v1486_v0  ;;  %5845 = vmatprep.mubr.f32.mxu1 %v688_v16  ;;  %v2199_v31 = vld [vmem:[#allocation5 + $0xbe0] sm:$0xff]  ;;  %v1510_v16 = vld [vmem:[%s8469_s7 + $0x2858] sm:$0xff]  ;;  %v712_v42 = vld [vmem:[%s8469_s7 + $0xf68] sm:$0xff] }
 0x52d   : > { %v5154_v7 = vpop.f32.mrf.mxu1  ;;  %v5379_v10 = vpop.f32.mrf.mxu0  ;;  %6497 = vmatprep.subr.mxu1 %v13058_v61 }
 0x52e   : > { %6498 = vmatpush2.msra.mxu1 %v2200_v49  ;;  %v1536_v49 = vld [vmem:[%s8469_s7 + $0x2928] sm:$0xff]  ;;  %v738_v10 = vld [vmem:[%s8469_s7 + $0x1038] sm:$0xff] }
 0x52f   : > { %v5157_v56 = vpop.f32.mrf.mxu1  ;;  %v5382_v50 = vpop.f32.mrf.mxu0  ;;  %5621 = vmatmul.mubr.f32.gmra.mxu0 %v1485_v19  ;;  %5846 = vmatmul.mubr.f32.gmra.mxu1 %v687_v43 }
 0x530   : > { %v11507_v45 = vadd.f32 %v5157_v56, %v11156_v41  ;;  %v11510_v0 = vadd.f32 %v5382_v50, %v11159_v3  ;;  %5625 = vmatprep.mubr.f32.mxu0 %v1511_v13  ;;  %5850 = vmatprep.mubr.f32.mxu1 %v713_v25  ;;  %v2198_v3 = vld [vmem:[#allocation5 + $0xbd8] sm:$0xff]  ;;  %v1535_v25 = vld [vmem:[%s8469_s7 + $0x2920] sm:$0xff]  ;;  %v737_v56 = vld [vmem:[%s8469_s7 + $0x1030] sm:$0xff] }
 0x531   : > { %v5159_v15 = vpop.f32.mrf.mxu1  ;;  %v5384_v7 = vpop.f32.mrf.mxu0  ;;  %6499 = vmatprep.subr.mxu1 %v13058_v61 }
 0x532   : > { %6500 = vmatpush2.msra.mxu1 %v2199_v31  ;;  %v1561_v31 = vld [vmem:[%s8469_s7 + $0x29f0] sm:$0xff]  ;;  %v763_v7 = vld [vmem:[%s8469_s7 + $0x1100] sm:$0xff] }
 0x533   : > { %v5162_v41 = vpop.f32.mrf.mxu1  ;;  %v5387_v19 = vpop.f32.mrf.mxu0  ;;  %5626 = vmatmul.mubr.f32.gmra.mxu0 %v1510_v16  ;;  %5851 = vmatmul.mubr.f32.gmra.mxu1 %v712_v42 }
 0x534   : > { %v11518_v43 = vadd.f32 %v5162_v41, %v11167_v51  ;;  %v11521_v13 = vadd.f32 %v5387_v19, %v11170_v22  ;;  %5630 = vmatprep.mubr.f32.mxu0 %v1536_v49  ;;  %5855 = vmatprep.mubr.f32.mxu1 %v738_v10  ;;  %v2197_v22 = vld [vmem:[#allocation5 + $0xbd0] sm:$0xff]  ;;  %v1560_v10 = vld [vmem:[%s8469_s7 + $0x29e8] sm:$0xff]  ;;  %v762_v41 = vld [vmem:[%s8469_s7 + $0x10f8] sm:$0xff] }
 0x535   : > { %v5164_v50 = vpop.f32.mrf.mxu1  ;;  %v5389_v15 = vpop.f32.mrf.mxu0  ;;  %6501 = vmatprep.subr.mxu1 %v13058_v61 }
 0x536   : > { %6502 = vmatpush2.msra.mxu1 %v2198_v3  ;;  %v1586_v3 = vld [vmem:[%s8469_s7 + $0x2ab8] sm:$0xff]  ;;  %v788_v15 = vld [vmem:[%s8469_s7 + $0x11c8] sm:$0xff] }
 0x537   : > { %v5167_v51 = vpop.f32.mrf.mxu1  ;;  %v5392_v16 = vpop.f32.mrf.mxu0  ;;  %5631 = vmatmul.mubr.f32.gmra.mxu0 %v1535_v25  ;;  %5856 = vmatmul.mubr.f32.gmra.mxu1 %v737_v56 }
 0x538   : > { %v11529_v42 = vadd.f32 %v5167_v51, %v11178_v39  ;;  %v11532_v49 = vadd.f32 %v5392_v16, %v11181_v58  ;;  %5635 = vmatprep.mubr.f32.mxu0 %v1561_v31  ;;  %5860 = vmatprep.mubr.f32.mxu1 %v763_v7  ;;  %v2196_v58 = vld [vmem:[#allocation5 + $0xbc8] sm:$0xff]  ;;  %v1585_v7 = vld [vmem:[%s8469_s7 + $0x2ab0] sm:$0xff]  ;;  %v787_v51 = vld [vmem:[%s8469_s7 + $0x11c0] sm:$0xff] }
 0x539   : > { %v5169_v19 = vpop.f32.mrf.mxu1  ;;  %v5394_v50 = vpop.f32.mrf.mxu0  ;;  %6503 = vmatprep.subr.mxu1 %v13058_v61 }
 0x53a   : > { %6504 = vmatpush2.msra.mxu1 %v2197_v22  ;;  %v1611_v22 = vld [vmem:[%s8469_s7 + $0x2b80] sm:$0xff]  ;;  %v813_v50 = vld [vmem:[%s8469_s7 + $0x1290] sm:$0xff] }
 0x53b   : > { %v5172_v39 = vpop.f32.mrf.mxu1  ;;  %v5397_v25 = vpop.f32.mrf.mxu0  ;;  %5636 = vmatmul.mubr.f32.gmra.mxu0 %v1560_v10  ;;  %5861 = vmatmul.mubr.f32.gmra.mxu1 %v762_v41 }
 0x53c   : > { %v11540_v56 = vadd.f32 %v5172_v39, %v11189_v35  ;;  %v11543_v31 = vadd.f32 %v5397_v25, %v11192_v63  ;;  %5640 = vmatprep.mubr.f32.mxu0 %v1586_v3  ;;  %5865 = vmatprep.mubr.f32.mxu1 %v788_v15  ;;  %v2195_v63 = vld [vmem:[#allocation5 + $0xbc0] sm:$0xff]  ;;  %v1610_v15 = vld [vmem:[%s8469_s7 + $0x2b78] sm:$0xff]  ;;  %v812_v39 = vld [vmem:[%s8469_s7 + $0x1288] sm:$0xff] }
 0x53d   : > { %v5174_v16 = vpop.f32.mrf.mxu1  ;;  %v5399_v19 = vpop.f32.mrf.mxu0  ;;  %6505 = vmatprep.subr.mxu1 %v13058_v61 }
 0x53e   : > { %6506 = vmatpush2.msra.mxu1 %v2196_v58  ;;  %v1636_v58 = vld [vmem:[%s8469_s7 + $0x2c48] sm:$0xff]  ;;  %v838_v19 = vld [vmem:[%s8469_s7 + $0x1358] sm:$0xff] }
 0x53f   : > { %v5177_v35 = vpop.f32.mrf.mxu1  ;;  %v5402_v10 = vpop.f32.mrf.mxu0  ;;  %5641 = vmatmul.mubr.f32.gmra.mxu0 %v1585_v7  ;;  %5866 = vmatmul.mubr.f32.gmra.mxu1 %v787_v51 }
 0x540   : > { %v11551_v41 = vadd.f32 %v5177_v35, %v11200_v27  ;;  %v11554_v3 = vadd.f32 %v5402_v10, %v11203_v54  ;;  %5645 = vmatprep.mubr.f32.mxu0 %v1611_v22  ;;  %5870 = vmatprep.mubr.f32.mxu1 %v813_v50  ;;  %v2194_v54 = vld [vmem:[#allocation5 + $0xbb8] sm:$0xff]  ;;  %v1635_v50 = vld [vmem:[%s8469_s7 + $0x2c40] sm:$0xff]  ;;  %v837_v35 = vld [vmem:[%s8469_s7 + $0x1350] sm:$0xff] }
 0x541   : > { %v5179_v25 = vpop.f32.mrf.mxu1  ;;  %v5404_v16 = vpop.f32.mrf.mxu0  ;;  %6507 = vmatprep.subr.mxu1 %v13058_v61 }
 0x542   : > { %6508 = vmatpush2.msra.mxu1 %v2195_v63  ;;  %v1661_v63 = vld [vmem:[%s8469_s7 + $0x2d10] sm:$0xff]  ;;  %v863_v16 = vld [vmem:[%s8469_s7 + $0x1420] sm:$0xff] }
 0x543   : > { %v5182_v27 = vpop.f32.mrf.mxu1  ;;  %v5407_v7 = vpop.f32.mrf.mxu0  ;;  %5646 = vmatmul.mubr.f32.gmra.mxu0 %v1610_v15  ;;  %5871 = vmatmul.mubr.f32.gmra.mxu1 %v812_v39 }
 0x544   : > { %v11562_v51 = vadd.f32 %v5182_v27, %v11211_v55  ;;  %v11565_v22 = vadd.f32 %v5407_v7, %v11214_v12  ;;  %5650 = vmatprep.mubr.f32.mxu0 %v1636_v58  ;;  %5875 = vmatprep.mubr.f32.mxu1 %v838_v19  ;;  %v2193_v12 = vld [vmem:[#allocation5 + $0xbb0] sm:$0xff]  ;;  %v1660_v19 = vld [vmem:[%s8469_s7 + $0x2d08] sm:$0xff]  ;;  %v862_v27 = vld [vmem:[%s8469_s7 + $0x1418] sm:$0xff] }
 0x545   : > { %v5184_v10 = vpop.f32.mrf.mxu1  ;;  %v5409_v25 = vpop.f32.mrf.mxu0  ;;  %6509 = vmatprep.subr.mxu1 %v13058_v61 }
 0x546   : > { %6510 = vmatpush2.msra.mxu1 %v2194_v54  ;;  %v1686_v54 = vld [vmem:[%s8469_s7 + $0x2dd8] sm:$0xff]  ;;  %v888_v25 = vld [vmem:[%s8469_s7 + $0x14e8] sm:$0xff] }
 0x547   : > { %v5187_v55 = vpop.f32.mrf.mxu1  ;;  %v5412_v15 = vpop.f32.mrf.mxu0  ;;  %5651 = vmatmul.mubr.f32.gmra.mxu0 %v1635_v50  ;;  %5876 = vmatmul.mubr.f32.gmra.mxu1 %v837_v35 }
 0x548   : > { %v11573_v39 = vadd.f32 %v5187_v55, %v11222_v47  ;;  %v11576_v58 = vadd.f32 %v5412_v15, %v11225_v6  ;;  %5655 = vmatprep.mubr.f32.mxu0 %v1661_v63  ;;  %5880 = vmatprep.mubr.f32.mxu1 %v863_v16  ;;  %v2192_v6 = vld [vmem:[#allocation5 + $0xba8] sm:$0xff]  ;;  %v1685_v16 = vld [vmem:[%s8469_s7 + $0x2dd0] sm:$0xff]  ;;  %v887_v55 = vld [vmem:[%s8469_s7 + $0x14e0] sm:$0xff] }
 0x549   : > { %v5189_v7 = vpop.f32.mrf.mxu1  ;;  %v5414_v10 = vpop.f32.mrf.mxu0  ;;  %6511 = vmatprep.subr.mxu1 %v13058_v61 }
 0x54a   : > { %6512 = vmatpush2.msra.mxu1 %v2193_v12  ;;  %v1711_v12 = vld [vmem:[%s8469_s7 + $0x2ea0] sm:$0xff]  ;;  %v913_v10 = vld [vmem:[%s8469_s7 + $0x15b0] sm:$0xff] }
 0x54b   : > { %v5192_v47 = vpop.f32.mrf.mxu1  ;;  %v5417_v50 = vpop.f32.mrf.mxu0  ;;  %5656 = vmatmul.mubr.f32.gmra.mxu0 %v1660_v19  ;;  %5881 = vmatmul.mubr.f32.gmra.mxu1 %v862_v27 }
 0x54c   : > { %v11584_v35 = vadd.f32 %v5192_v47, %v11233_v53  ;;  %v11587_v63 = vadd.f32 %v5417_v50, %v11236_v60  ;;  %5660 = vmatprep.mubr.f32.mxu0 %v1686_v54  ;;  %5885 = vmatprep.mubr.f32.mxu1 %v888_v25  ;;  %v2191_v60 = vld [vmem:[#allocation5 + $0xba0] sm:$0xff]  ;;  %v1710_v25 = vld [vmem:[%s8469_s7 + $0x2e98] sm:$0xff]  ;;  %v912_v47 = vld [vmem:[%s8469_s7 + $0x15a8] sm:$0xff] }
 0x54d   : > { %v5194_v15 = vpop.f32.mrf.mxu1  ;;  %v5419_v7 = vpop.f32.mrf.mxu0  ;;  %6513 = vmatprep.subr.mxu1 %v13058_v61 }
 0x54e   : > { %6514 = vmatpush2.msra.mxu1 %v2192_v6  ;;  %v1736_v6 = vld [vmem:[%s8469_s7 + $0x2f68] sm:$0xff]  ;;  %v938_v7 = vld [vmem:[%s8469_s7 + $0x1678] sm:$0xff] }
 0x54f   : > { %v5197_v53 = vpop.f32.mrf.mxu1  ;;  %v5422_v19 = vpop.f32.mrf.mxu0  ;;  %5661 = vmatmul.mubr.f32.gmra.mxu0 %v1685_v16  ;;  %5886 = vmatmul.mubr.f32.gmra.mxu1 %v887_v55 }
 0x550   : > { %v11595_v27 = vadd.f32 %v5197_v53, %v11244_v14  ;;  %v11598_v54 = vadd.f32 %v5422_v19, %v11247_v1  ;;  %5665 = vmatprep.mubr.f32.mxu0 %v1711_v12  ;;  %5890 = vmatprep.mubr.f32.mxu1 %v913_v10  ;;  %v2190_v1 = vld [vmem:[#allocation5 + $0xb98] sm:$0xff]  ;;  %v13261_v12 = vld [vmem:[#allocation13_spill] sm:$0xff]  ;;  %v1735_v53 = vld [vmem:[%s8469_s7 + $0x2f60] sm:$0xff] }
 0x551   : > { %v5199_v50 = vpop.f32.mrf.mxu1  ;;  %v5424_v15 = vpop.f32.mrf.mxu0  ;;  %6515 = vmatprep.subr.mxu1 %v13058_v61  ;;  %v937_v19 = vld [vmem:[%s8469_s7 + $0x1670] sm:$0xff] }
 0x552   : > { %13260 = vst [vmem:[#allocation30_spill] sm:$0xff] %v11598_v54  ;;  %6516 = vmatpush2.msra.mxu1 %v2191_v60  ;;  %v1761_v60 = vld [vmem:[%s8469_s7 + $0x3030] sm:$0xff]  ;;  %v963_v54 = vld [vmem:[%s8469_s7 + $0x1740] sm:$0xff] }
 0x553   : > { %v5202_v14 = vpop.f32.mrf.mxu1  ;;  %v5427_v16 = vpop.f32.mrf.mxu0  ;;  %5666 = vmatmul.mubr.f32.gmra.mxu0 %v1710_v25  ;;  %5891 = vmatmul.mubr.f32.gmra.mxu1 %v912_v47  ;;  %v2189_v47 = vld [vmem:[#allocation5 + $0xb90] sm:$0xff] }
 0x554   : > { %v11606_v55 = vadd.f32 %v5202_v14, %v11255_v37  ;;  %v11609_v10 = vadd.f32 %v5427_v16, %v13261_v12  ;;  %5670 = vmatprep.mubr.f32.mxu0 %v1736_v6  ;;  %5895 = vmatprep.mubr.f32.mxu1 %v938_v7  ;;  %v13263_v7 = vld [vmem:[#allocation22_spill] sm:$0xff]  ;;  %v1760_v16 = vld [vmem:[%s8469_s7 + $0x3028] sm:$0xff] }
 0x555   : > { %v5204_v50 = vpop.f32.mrf.mxu1  ;;  %v5429_v15 = vpop.f32.mrf.mxu0  ;;  %6517 = vmatprep.subr.mxu1 %v13058_v61  ;;  %v962_v12 = vld [vmem:[%s8469_s7 + $0x1738] sm:$0xff] }
 0x556   : > { %13262 = vst [vmem:[#allocation12_spill] sm:$0xff] %v11609_v10  ;;  %6518 = vmatpush2.msra.mxu1 %v2190_v1  ;;  %v1786_v1 = vld [vmem:[%s8469_s7 + $0x30f8] sm:$0xff]  ;;  %v988_v10 = vld [vmem:[%s8469_s7 + $0x1808] sm:$0xff] }
 0x557   : > { %v5207_v37 = vpop.f32.mrf.mxu1  ;;  %v5432_v25 = vpop.f32.mrf.mxu0  ;;  %5671 = vmatmul.mubr.f32.gmra.mxu0 %v1735_v53  ;;  %5896 = vmatmul.mubr.f32.gmra.mxu1 %v937_v19  ;;  %v2188_v19 = vld [vmem:[#allocation5 + $0xb88] sm:$0xff] }
 0x558   : > { %v11617_v6 = vadd.f32 %v5207_v37, %v11266_v17  ;;  %v11620_v14 = vadd.f32 %v5432_v25, %v13263_v7  ;;  %5675 = vmatprep.mubr.f32.mxu0 %v1761_v60  ;;  %5900 = vmatprep.mubr.f32.mxu1 %v963_v54  ;;  %v13266_v60 = vld [vmem:[#allocation14_spill] sm:$0xff]  ;;  %v987_v7 = vld [vmem:[%s8469_s7 + $0x1800] sm:$0xff] }
 0x559   : > { %v5209_v50 = vpop.f32.mrf.mxu1  ;;  %v5434_v15 = vpop.f32.mrf.mxu0  ;;  %6519 = vmatprep.subr.mxu1 %v13058_v61  ;;  %v1785_v25 = vld [vmem:[%s8469_s7 + $0x30f0] sm:$0xff] }
 0x55a   : > { %13264 = vst [vmem:[#allocation21_spill] sm:$0xff] %v11620_v14  ;;  %6520 = vmatpush2.msra.mxu1 %v2189_v47  ;;  %v1811_v47 = vld [vmem:[%s8469_s7 + $0x31c0] sm:$0xff]  ;;  %v1013_v14 = vld [vmem:[%s8469_s7 + $0x18d0] sm:$0xff] }
 0x55b   : > { %v5212_v17 = vpop.f32.mrf.mxu1  ;;  %v5437_v53 = vpop.f32.mrf.mxu0  ;;  %5676 = vmatmul.mubr.f32.gmra.mxu0 %v1760_v16  ;;  %5901 = vmatmul.mubr.f32.gmra.mxu1 %v962_v12  ;;  %v13268_v12 = vld [vmem:[#allocation23_spill] sm:$0xff] }
 0x55c   : > { %v11628_v54 = vadd.f32 %v5212_v17, %v11277_v29  ;;  %v11631_v37 = vadd.f32 %v5437_v53, %v13266_v60  ;;  %5680 = vmatprep.mubr.f32.mxu0 %v1786_v1  ;;  %5905 = vmatprep.mubr.f32.mxu1 %v988_v10  ;;  %v13269_v10 = vld [vmem:[#allocation15_spill] sm:$0xff]  ;;  %v1012_v60 = vld [vmem:[%s8469_s7 + $0x18c8] sm:$0xff] }
 0x55d   : > { %v5214_v50 = vpop.f32.mrf.mxu1  ;;  %v5439_v15 = vpop.f32.mrf.mxu0  ;;  %6521 = vmatprep.subr.mxu1 %v13058_v61  ;;  %v1810_v53 = vld [vmem:[%s8469_s7 + $0x31b8] sm:$0xff] }
 0x55e   : > { %13265 = vst [vmem:[#allocation13_spill] sm:$0xff] %v11628_v54  ;;  %13267 = vst [vmem:[#allocation22_spill] sm:$0xff] %v11631_v37  ;;  %6522 = vmatpush2.msra.mxu1 %v2188_v19  ;;  %v2187_v50 = vld [vmem:[#allocation5 + $0xb80] sm:$0xff]  ;;  %v1038_v19 = vld [vmem:[%s8469_s7 + $0x1998] sm:$0xff] }
 0x55f   : > { %v5217_v29 = vpop.f32.mrf.mxu1  ;;  %v5442_v16 = vpop.f32.mrf.mxu0  ;;  %5681 = vmatmul.mubr.f32.gmra.mxu0 %v1785_v25  ;;  %5906 = vmatmul.mubr.f32.gmra.mxu1 %v987_v7  ;;  %v240_v54 = vld [vmem:[%s8469_s7 + $0xa8] sm:$0xff] }
 0x560   : > { %v11639_v1 = vadd.f32 %v5217_v29, %v13268_v12  ;;  %v11642_v17 = vadd.f32 %v5442_v16, %v13269_v10  ;;  %5685 = vmatprep.mubr.f32.mxu0 %v1811_v47  ;;  %5910 = vmatprep.mubr.f32.mxu1 %v1013_v14  ;;  %v13270_v47 = vld [vmem:[#allocation24_spill] sm:$0xff] }
 0x561   : > { %v5219_v15 = vpop.f32.mrf.mxu1  ;;  %v5444_v37 = vpop.f32.mrf.mxu0  ;;  %6523 = vmatprep.subr.mxu1 %v13058_v61  ;;  %v239_v16 = vld [vmem:[%s8469_s7 + $0xa0] sm:$0xff] }
 0x562   : > { %6524 = vmatpush2.msra.mxu1 %v2187_v50  ;;  %v1037_v37 = vld [vmem:[%s8469_s7 + $0x1990] sm:$0xff]  ;;  %v1063_v61 = vld [vmem:[%s8469_s7 + $0x1a60] sm:$0xff] }
 0x563   : > { %v5222_v25 = vpop.f32.mrf.mxu1  ;;  %v5447_v7 = vpop.f32.mrf.mxu0  ;;  %5686 = vmatmul.mubr.f32.gmra.mxu0 %v1810_v53  ;;  %5911 = vmatmul.mubr.f32.gmra.mxu1 %v1012_v60  ;;  %v265_v50 = vld [vmem:[%s8469_s7 + $0x170] sm:$0xff] }
 0x564   : > { %v11650_v14 = vadd.f32 %v5222_v25, %v11299_v33  ;;  %v11653_v29 = vadd.f32 %v5447_v7, %v13270_v47  ;;  %5915 = vmatprep.mubr.f32.mxu1 %v1038_v19  ;;  %6140 = vmatprep.mubr.f32.mxu0 %v240_v54  ;;  %v2217_v15 = vld [vmem:[#allocation5 + $0xc70] sm:$0xff]  ;;  %v8156_v19 = vld [vmem:[#allocation5 + $0xc78] sm:$0xff]  ;;  %v264_v7 = vld [vmem:[%s8469_s7 + $0x168] sm:$0xff] }
 0x565   : > { %v5224_v12 = vpop.f32.mrf.mxu1  ;;  %v5449_v10 = vpop.f32.mrf.mxu0  ;;  %v1062_v25 = vld [vmem:[%s8469_s7 + $0x1a58] sm:$0xff] }
 0x566   : > { %13271 = vst [vmem:[#allocation14_spill] sm:$0xff] %v11653_v29  ;;  %v1088_v10 = vld [vmem:[%s8469_s7 + $0x1b28] sm:$0xff]  ;;  %v290_v29 = vld [vmem:[%s8469_s7 + $0x238] sm:$0xff] }
 0x567   : > { %v5227_v53 = vpop.f32.mrf.mxu1  ;;  %v5452_v60 = vpop.f32.mrf.mxu0  ;;  %5916 = vmatmul.mubr.f32.gmra.mxu1 %v1037_v37  ;;  %6141 = vmatmul.mubr.f32.vlgmr.msra.gmra.mxu0 %v239_v16 }
 0x568   : > { %v11660_v33 = vadd.f32 %v5227_v53, %v11309_v18  ;;  %v11663_v54 = vadd.f32 %v5452_v60, %v11312_v59  ;;  %7885 = vmatpush3.msra.mxu0 %v8156_v19  ;;  %5920 = vmatprep.mubr.f32.mxu1 %v1063_v61  ;;  %v2216_v18 = vld [vmem:[#allocation5 + $0xc68] sm:$0xff]  ;;  %v289_v53 = vld [vmem:[%s8469_s7 + $0x230] sm:$0xff] }
 0x569   : > { %v5229_v47 = vpop.f32.mrf.mxu1  ;;  %v5454_v12 = vpop.f32.mrf.mxu0  ;;  %6145 = vmatprep.mubr.f32.mxu0 %v265_v50  ;;  %7886 = vmatprep.subr.mxu0 %v2217_v15  ;;  %v1087_v50 = vld [vmem:[%s8469_s7 + $0x1b20] sm:$0xff] }
 0x56a   : > { %7887 = vmatpush3.msra.mxu0 %v2217_v15  ;;  %v1113_v15 = vld [vmem:[%s8469_s7 + $0x1bf0] sm:$0xff]  ;;  %v315_v47 = vld [vmem:[%s8469_s7 + $0x300] sm:$0xff]  ;;  %v1112_v12 = vld [vmem:[%s8469_s7 + $0x1be8] sm:$0xff] }
 0x56b   : > { %v5232_v37 = vpop.f32.mrf.mxu1  ;;  %v5457_v59 = vpop.f32.mrf.mxu0  ;;  %5921 = vmatmul.mubr.f32.gmra.mxu1 %v1062_v25  ;;  %6146 = vmatmul.mubr.f32.gmra.mxu0 %v264_v7  ;;  %v2215_v25 = vld [vmem:[#allocation5 + $0xc60] sm:$0xff] }
 0x56c   : > { %v11670_v16 = vadd.f32 %v5232_v37, %v11320_v11  ;;  %v11673_v61 = vadd.f32 %v5457_v59, %v11323_v26  ;;  %5925 = vmatprep.mubr.f32.mxu1 %v1088_v10  ;;  %6150 = vmatprep.mubr.f32.mxu0 %v290_v29  ;;  %v314_v10 = vld [vmem:[%s8469_s7 + $0x2f8] sm:$0xff] }
 0x56d   : > { %v5234_v60 = vpop.f32.mrf.mxu1  ;;  %v5459_v19 = vpop.f32.mrf.mxu0  ;;  %7888 = vmatprep.subr.mxu0 %v2216_v18 }
 0x56e   : > { %7889 = vmatpush3.msra.mxu0 %v2216_v18  ;;  %v1138_v18 = vld [vmem:[%s8469_s7 + $0x1cb8] sm:$0xff]  ;;  %v340_v60 = vld [vmem:[%s8469_s7 + $0x3c8] sm:$0xff] }
 0x56f   : > { %v5237_v11 = vpop.f32.mrf.mxu1  ;;  %v5462_v7 = vpop.f32.mrf.mxu0  ;;  %5926 = vmatmul.mubr.f32.gmra.mxu1 %v1087_v50  ;;  %6151 = vmatmul.mubr.f32.gmra.mxu0 %v289_v53  ;;  %v2214_v50 = vld [vmem:[#allocation5 + $0xc58] sm:$0xff] }
 0x570   : > { %v11680_v26 = vadd.f32 %v5237_v11, %v11331_v36  ;;  %v11683_v29 = vadd.f32 %v5462_v7, %v11334_v38  ;;  %5930 = vmatprep.mubr.f32.mxu1 %v1113_v15  ;;  %6155 = vmatprep.mubr.f32.mxu0 %v315_v47  ;;  %v1137_v15 = vld [vmem:[%s8469_s7 + $0x1cb0] sm:$0xff]  ;;  %v339_v47 = vld [vmem:[%s8469_s7 + $0x3c0] sm:$0xff] }
 0x571   : > { %v5239_v37 = vpop.f32.mrf.mxu1  ;;  %v5464_v59 = vpop.f32.mrf.mxu0  ;;  %7890 = vmatprep.subr.mxu0 %v2215_v25 }
 0x572   : > { %7891 = vmatpush3.msra.mxu0 %v2215_v25  ;;  %v1163_v25 = vld [vmem:[%s8469_s7 + $0x1d80] sm:$0xff]  ;;  %v365_v37 = vld [vmem:[%s8469_s7 + $0x490] sm:$0xff] }
 0x573   : > { %v5242_v36 = vpop.f32.mrf.mxu1  ;;  %v5467_v53 = vpop.f32.mrf.mxu0  ;;  %5931 = vmatmul.mubr.f32.gmra.mxu1 %v1112_v12  ;;  %6156 = vmatmul.mubr.f32.gmra.mxu0 %v314_v10  ;;  %v2213_v12 = vld [vmem:[#allocation5 + $0xc50] sm:$0xff] }
 0x574   : > { %v11690_v38 = vadd.f32 %v5242_v36, %v11342_v2  ;;  %v11693_v19 = vadd.f32 %v5467_v53, %v11345_v57  ;;  %5935 = vmatprep.mubr.f32.mxu1 %v1138_v18  ;;  %6160 = vmatprep.mubr.f32.mxu0 %v340_v60  ;;  %v13273_v57 = vld [vmem:[#allocation16_spill] sm:$0xff]  ;;  %v13275_v18 = vld [vmem:[#allocation25_spill] sm:$0xff]  ;;  %v1162_v36 = vld [vmem:[%s8469_s7 + $0x1d78] sm:$0xff] }
 0x575   : > { %v5244_v11 = vpop.f32.mrf.mxu1  ;;  %v5469_v7 = vpop.f32.mrf.mxu0  ;;  %7892 = vmatprep.subr.mxu0 %v2214_v50  ;;  %v364_v53 = vld [vmem:[%s8469_s7 + $0x488] sm:$0xff] }
 0x576   : > { %13272 = vst [vmem:[#allocation23_spill] sm:$0xff] %v11693_v19  ;;  %7893 = vmatpush3.msra.mxu0 %v2214_v50  ;;  %v1188_v50 = vld [vmem:[%s8469_s7 + $0x1e48] sm:$0xff]  ;;  %v390_v19 = vld [vmem:[%s8469_s7 + $0x558] sm:$0xff] }
 0x577   : > { %v5247_v2 = vpop.f32.mrf.mxu1  ;;  %v5472_v10 = vpop.f32.mrf.mxu0  ;;  %5936 = vmatmul.mubr.f32.gmra.mxu1 %v1137_v15  ;;  %6161 = vmatmul.mubr.f32.gmra.mxu0 %v339_v47  ;;  %v2212_v15 = vld [vmem:[#allocation5 + $0xc48] sm:$0xff] }
 0x578   : > { %v11700_v59 = vadd.f32 %v5247_v2, %v13273_v57  ;;  %v11703_v60 = vadd.f32 %v5472_v10, %v13275_v18  ;;  %5940 = vmatprep.mubr.f32.mxu1 %v1163_v25  ;;  %6165 = vmatprep.mubr.f32.mxu0 %v365_v37  ;;  %v13277_v10 = vld [vmem:[#allocation17_spill] sm:$0xff]  ;;  %v13279_v37 = vld [vmem:[#allocation26_spill] sm:$0xff]  ;;  %v1187_v18 = vld [vmem:[%s8469_s7 + $0x1e40] sm:$0xff] }
 0x579   : > { %v5249_v11 = vpop.f32.mrf.mxu1  ;;  %v5474_v7 = vpop.f32.mrf.mxu0  ;;  %7894 = vmatprep.subr.mxu0 %v2213_v12 }
 0x57a   : > { %13274 = vst [vmem:[#allocation15_spill] sm:$0xff] %v11700_v59  ;;  %13276 = vst [vmem:[#allocation24_spill] sm:$0xff] %v11703_v60  ;;  %7895 = vmatpush3.msra.mxu0 %v2213_v12  ;;  %v389_v11 = vld [vmem:[%s8469_s7 + $0x550] sm:$0xff]  ;;  %v415_v59 = vld [vmem:[%s8469_s7 + $0x620] sm:$0xff] }
 0x57b   : > { %v5252_v47 = vpop.f32.mrf.mxu1  ;;  %v5477_v2 = vpop.f32.mrf.mxu0  ;;  %5941 = vmatmul.mubr.f32.gmra.mxu1 %v1162_v36  ;;  %6166 = vmatmul.mubr.f32.gmra.mxu0 %v364_v53  ;;  %v1213_v12 = vld [vmem:[%s8469_s7 + $0x1f10] sm:$0xff]  ;;  %v2211_v36 = vld [vmem:[#allocation5 + $0xc40] sm:$0xff] }
 0x57c   : > { %v11710_v25 = vadd.f32 %v5252_v47, %v13277_v10  ;;  %v11713_v57 = vadd.f32 %v5477_v2, %v13279_v37  ;;  %5945 = vmatprep.mubr.f32.mxu1 %v1188_v50  ;;  %6170 = vmatprep.mubr.f32.mxu0 %v390_v19  ;;  %v13281_v2 = vld [vmem:[#allocation18_spill] sm:$0xff]  ;;  %v13283_v19 = vld [vmem:[#allocation27_spill] sm:$0xff] }
 0x57d   : > { %v5254_v7 = vpop.f32.mrf.mxu1  ;;  %v5479_v60 = vpop.f32.mrf.mxu0  ;;  %7896 = vmatprep.subr.mxu0 %v2212_v15  ;;  %v414_v37 = vld [vmem:[%s8469_s7 + $0x618] sm:$0xff] }
 0x57e   : > { %13278 = vst [vmem:[#allocation16_spill] sm:$0xff] %v11710_v25  ;;  %13280 = vst [vmem:[#allocation25_spill] sm:$0xff] %v11713_v57  ;;  %7897 = vmatpush3.msra.mxu0 %v2212_v15  ;;  %v1212_v60 = vld [vmem:[%s8469_s7 + $0x1f08] sm:$0xff]  ;;  %v1238_v15 = vld [vmem:[%s8469_s7 + $0x1fd8] sm:$0xff] }
 0x57f   : > { %v5257_v53 = vpop.f32.mrf.mxu1  ;;  %v5482_v47 = vpop.f32.mrf.mxu0  ;;  %5946 = vmatmul.mubr.f32.gmra.mxu1 %v1187_v18  ;;  %6171 = vmatmul.mubr.f32.gmra.mxu0 %v389_v11  ;;  %v440_v25 = vld [vmem:[%s8469_s7 + $0x6e8] sm:$0xff]  ;;  %v2210_v18 = vld [vmem:[#allocation5 + $0xc38] sm:$0xff] }
 0x580   : > { %v11720_v50 = vadd.f32 %v5257_v53, %v13281_v2  ;;  %v11723_v10 = vadd.f32 %v5482_v47, %v13283_v19  ;;  %5950 = vmatprep.mubr.f32.mxu1 %v1213_v12  ;;  %6175 = vmatprep.mubr.f32.mxu0 %v415_v59  ;;  %v13285_v47 = vld [vmem:[#allocation19_spill] sm:$0xff]  ;;  %v13287_v59 = vld [vmem:[#allocation28_spill] sm:$0xff] }
 0x581   : > { %v5259_v7 = vpop.f32.mrf.mxu1  ;;  %v5484_v57 = vpop.f32.mrf.mxu0  ;;  %7898 = vmatprep.subr.mxu0 %v2211_v36  ;;  %v439_v19 = vld [vmem:[%s8469_s7 + $0x6e0] sm:$0xff] }
 0x582   : > { %13282 = vst [vmem:[#allocation17_spill] sm:$0xff] %v11720_v50  ;;  %13284 = vst [vmem:[#allocation26_spill] sm:$0xff] %v11723_v10  ;;  %7899 = vmatpush3.msra.mxu0 %v2211_v36  ;;  %v1237_v57 = vld [vmem:[%s8469_s7 + $0x1fd0] sm:$0xff]  ;;  %v1263_v36 = vld [vmem:[%s8469_s7 + $0x20a0] sm:$0xff] }
 0x583   : > { %v5262_v11 = vpop.f32.mrf.mxu1  ;;  %v5487_v53 = vpop.f32.mrf.mxu0  ;;  %5951 = vmatmul.mubr.f32.gmra.mxu1 %v1212_v60  ;;  %6176 = vmatmul.mubr.f32.gmra.mxu0 %v414_v37  ;;  %v465_v50 = vld [vmem:[%s8469_s7 + $0x7b0] sm:$0xff] }
 0x584   : > { %v11730_v12 = vadd.f32 %v5262_v11, %v13285_v47  ;;  %v11733_v2 = vadd.f32 %v5487_v53, %v13287_v59  ;;  %5955 = vmatprep.mubr.f32.mxu1 %v1238_v15  ;;  %6180 = vmatprep.mubr.f32.mxu0 %v440_v25  ;;  %v2209_v60 = vld [vmem:[#allocation5 + $0xc30] sm:$0xff]  ;;  %v13289_v53 = vld [vmem:[#allocation20_spill] sm:$0xff] }
 0x585   : > { %v5264_v7 = vpop.f32.mrf.mxu1  ;;  %v5489_v10 = vpop.f32.mrf.mxu0  ;;  %7900 = vmatprep.subr.mxu0 %v2210_v18  ;;  %v13290_v25 = vld [vmem:[#allocation29_spill] sm:$0xff] }
 0x586   : > { %13286 = vst [vmem:[#allocation18_spill] sm:$0xff] %v11730_v12  ;;  %13288 = vst [vmem:[#allocation27_spill] sm:$0xff] %v11733_v2  ;;  %7901 = vmatpush3.msra.mxu0 %v2210_v18  ;;  %v1262_v10 = vld [vmem:[%s8469_s7 + $0x2098] sm:$0xff]  ;;  %v464_v59 = vld [vmem:[%s8469_s7 + $0x7a8] sm:$0xff] }
 0x587   : > { %v5267_v37 = vpop.f32.mrf.mxu1  ;;  %v5492_v11 = vpop.f32.mrf.mxu0  ;;  %5956 = vmatmul.mubr.f32.gmra.mxu1 %v1237_v57  ;;  %6181 = vmatmul.mubr.f32.gmra.mxu0 %v439_v19  ;;  %v1288_v18 = vld [vmem:[%s8469_s7 + $0x2168] sm:$0xff]  ;;  %v490_v12 = vld [vmem:[%s8469_s7 + $0x878] sm:$0xff] }
 0x588   : > { %v11740_v15 = vadd.f32 %v5267_v37, %v13289_v53  ;;  %v11743_v47 = vadd.f32 %v5492_v11, %v13290_v25  ;;  %5960 = vmatprep.mubr.f32.mxu1 %v1263_v36  ;;  %6185 = vmatprep.mubr.f32.mxu0 %v465_v50  ;;  %v2208_v57 = vld [vmem:[#allocation5 + $0xc28] sm:$0xff]  ;;  %v489_v11 = vld [vmem:[%s8469_s7 + $0x870] sm:$0xff] }
 0x589   : > { %v5269_v7 = vpop.f32.mrf.mxu1  ;;  %v5494_v2 = vpop.f32.mrf.mxu0  ;;  %7902 = vmatprep.subr.mxu0 %v2209_v60 }
 0x58a   : > { %7903 = vmatpush3.msra.mxu0 %v2209_v60  ;;  %v1287_v2 = vld [vmem:[%s8469_s7 + $0x2160] sm:$0xff]  ;;  %v1313_v60 = vld [vmem:[%s8469_s7 + $0x2230] sm:$0xff] }
 0x58b   : > { %v5272_v19 = vpop.f32.mrf.mxu1  ;;  %v5497_v37 = vpop.f32.mrf.mxu0  ;;  %5961 = vmatmul.mubr.f32.gmra.mxu1 %v1262_v10  ;;  %6186 = vmatmul.mubr.f32.gmra.mxu0 %v464_v59  ;;  %v515_v7 = vld [vmem:[%s8469_s7 + $0x940] sm:$0xff]  ;;  %v1312_v59 = vld [vmem:[%s8469_s7 + $0x2228] sm:$0xff] }
 0x58c   : > { %v11750_v36 = vadd.f32 %v5272_v19, %v11408_v24  ;;  %v11753_v50 = vadd.f32 %v5497_v37, %v11411_v48  ;;  %5965 = vmatprep.mubr.f32.mxu1 %v1288_v18  ;;  %6190 = vmatprep.mubr.f32.mxu0 %v490_v12  ;;  %v514_v18 = vld [vmem:[%s8469_s7 + $0x938] sm:$0xff] }
 0x58d   : > { %v5274_v53 = vpop.f32.mrf.mxu1  ;;  %v5499_v25 = vpop.f32.mrf.mxu0  ;;  %7904 = vmatprep.subr.mxu0 %v2208_v57 }
 0x58e   : > { %7905 = vmatpush3.msra.mxu0 %v2208_v57  ;;  %v1338_v57 = vld [vmem:[%s8469_s7 + $0x22f8] sm:$0xff]  ;;  %v540_v53 = vld [vmem:[%s8469_s7 + $0xa08] sm:$0xff]  ;;  %v1337_v25 = vld [vmem:[%s8469_s7 + $0x22f0] sm:$0xff] }
 0x58f   : > { %v5277_v10 = vpop.f32.mrf.mxu1  ;;  %v5502_v24 = vpop.f32.mrf.mxu0  ;;  %5966 = vmatmul.mubr.f32.gmra.mxu1 %v1287_v2  ;;  %6191 = vmatmul.mubr.f32.gmra.mxu0 %v489_v11 }
 0x590   : > { %v11760_v48 = vadd.f32 %v5277_v10, %v11419_v4  ;;  %v11763_v12 = vadd.f32 %v5502_v24, %v11422_v9  ;;  %5970 = vmatprep.mubr.f32.mxu1 %v1313_v60  ;;  %6195 = vmatprep.mubr.f32.mxu0 %v515_v7  ;;  %v539_v60 = vld [vmem:[%s8469_s7 + $0xa00] sm:$0xff] }
 0x591   : > { %v5279_v19 = vpop.f32.mrf.mxu1  ;;  %v5504_v37 = vpop.f32.mrf.mxu0  ;;  %v1363_v24 = vld [vmem:[%s8469_s7 + $0x23c0] sm:$0xff] }
 0x592   : > { %v565_v19 = vld [vmem:[%s8469_s7 + $0xad0] sm:$0xff]  ;;  %v1362_v37 = vld [vmem:[%s8469_s7 + $0x23b8] sm:$0xff] }
 0x593   : > { %v5282_v2 = vpop.f32.mrf.mxu1  ;;  %v5507_v11 = vpop.f32.mrf.mxu0  ;;  %5971 = vmatmul.mubr.f32.gmra.mxu1 %v1312_v59  ;;  %6196 = vmatmul.mubr.f32.gmra.mxu0 %v514_v18 }
 0x594   : > { %v11770_v4 = vadd.f32 %v5282_v2, %v11430_v52  ;;  %v11773_v9 = vadd.f32 %v5507_v11, %v11433_v46  ;;  %5975 = vmatprep.mubr.f32.mxu1 %v1338_v57  ;;  %6200 = vmatprep.mubr.f32.mxu0 %v540_v53  ;;  %v564_v57 = vld [vmem:[%s8469_s7 + $0xac8] sm:$0xff]  ;;  %v2207_v53 = vld [vmem:[#allocation5 + $0xc20] sm:$0xff] }
 0x595   : > { %v5284_v7 = vpop.f32.mrf.mxu1  ;;  %v5509_v10 = vpop.f32.mrf.mxu0  ;;  %7906 = vmatprep.subr.mxu0 %v2207_v53 }
 0x596   : > { %v1388_v7 = vld [vmem:[%s8469_s7 + $0x2488] sm:$0xff]  ;;  %v590_v10 = vld [vmem:[%s8469_s7 + $0xb98] sm:$0xff]  ;;  %7907 = vmatpush3.msra.mxu0 %v2207_v53  ;;  %v1413_v53 = vld [vmem:[%s8469_s7 + $0x2550] sm:$0xff] }
 0x597   : > { %v5287_v59 = vpop.f32.mrf.mxu1  ;;  %v5512_v18 = vpop.f32.mrf.mxu0  ;;  %5976 = vmatmul.mubr.f32.gmra.mxu1 %v1337_v25  ;;  %6201 = vmatmul.mubr.f32.gmra.mxu0 %v539_v60 }
 0x598   : > { %v11780_v52 = vadd.f32 %v5287_v59, %v11441_v30  ;;  %v11783_v46 = vadd.f32 %v5512_v18, %v11444_v28  ;;  %5980 = vmatprep.mubr.f32.mxu1 %v1363_v24  ;;  %6205 = vmatprep.mubr.f32.mxu0 %v565_v19  ;;  %v1387_v24 = vld [vmem:[%s8469_s7 + $0x2480] sm:$0xff]  ;;  %v589_v19 = vld [vmem:[%s8469_s7 + $0xb90] sm:$0xff] }
 0x599   : > { %v5289_v2 = vpop.f32.mrf.mxu1  ;;  %v5514_v11 = vpop.f32.mrf.mxu0 }
 0x59a   : > { %v615_v2 = vld [vmem:[%s8469_s7 + $0xc60] sm:$0xff]  ;;  %v1412_v11 = vld [vmem:[%s8469_s7 + $0x2548] sm:$0xff] }
 0x59b   : > { %v5292_v30 = vpop.f32.mrf.mxu1  ;;  %v5517_v25 = vpop.f32.mrf.mxu0  ;;  %5981 = vmatmul.mubr.f32.gmra.mxu1 %v1362_v37  ;;  %6206 = vmatmul.mubr.f32.gmra.mxu0 %v564_v57 }
 0x59c   : > { %v11790_v28 = vadd.f32 %v5292_v30, %v11452_v20  ;;  %v11793_v60 = vadd.f32 %v5517_v25, %v11455_v23  ;;  %5985 = vmatprep.mubr.f32.mxu1 %v1388_v7  ;;  %6210 = vmatprep.mubr.f32.mxu0 %v590_v10  ;;  %v614_v7 = vld [vmem:[%s8469_s7 + $0xc58] sm:$0xff] }
 0x59d   : > { %v5294_v59 = vpop.f32.mrf.mxu1  ;;  %v5519_v18 = vpop.f32.mrf.mxu0  ;;  %v1438_v25 = vld [vmem:[%s8469_s7 + $0x2618] sm:$0xff] }
 0x59e   : > { %v640_v59 = vld [vmem:[%s8469_s7 + $0xd28] sm:$0xff]  ;;  %v1437_v18 = vld [vmem:[%s8469_s7 + $0x2610] sm:$0xff] }
 0x59f   : > { %v5297_v37 = vpop.f32.mrf.mxu1  ;;  %v5522_v57 = vpop.f32.mrf.mxu0  ;;  %5986 = vmatmul.mubr.f32.gmra.mxu1 %v1387_v24  ;;  %6211 = vmatmul.mubr.f32.gmra.mxu0 %v589_v19 }
 0x5a0   : > { %v11800_v20 = vadd.f32 %v5297_v37, %v11463_v34  ;;  %v11803_v23 = vadd.f32 %v5522_v57, %v11466_v8  ;;  %5990 = vmatprep.mubr.f32.mxu1 %v1413_v53  ;;  %6215 = vmatprep.mubr.f32.mxu0 %v615_v2  ;;  %v639_v53 = vld [vmem:[%s8469_s7 + $0xd20] sm:$0xff] }
 0x5a1   : > { %v5299_v10 = vpop.f32.mrf.mxu1  ;;  %v5524_v30 = vpop.f32.mrf.mxu0  ;;  %v1463_v57 = vld [vmem:[%s8469_s7 + $0x26e0] sm:$0xff] }
 0x5a2   : > { %v665_v10 = vld [vmem:[%s8469_s7 + $0xdf0] sm:$0xff]  ;;  %v1462_v30 = vld [vmem:[%s8469_s7 + $0x26d8] sm:$0xff] }
 0x5a3   : > { %v5302_v24 = vpop.f32.mrf.mxu1  ;;  %v5527_v19 = vpop.f32.mrf.mxu0  ;;  %5991 = vmatmul.mubr.f32.gmra.mxu1 %v1412_v11  ;;  %6216 = vmatmul.mubr.f32.gmra.mxu0 %v614_v7 }
 0x5a4   : > { %v11810_v34 = vadd.f32 %v5302_v24, %v11474_v21  ;;  %v11813_v8 = vadd.f32 %v5527_v19, %v11477_v62  ;;  %5995 = vmatprep.mubr.f32.mxu1 %v1438_v25  ;;  %6220 = vmatprep.mubr.f32.mxu0 %v640_v59  ;;  %v664_v25 = vld [vmem:[%s8469_s7 + $0xde8] sm:$0xff]  ;;  %v2206_v59 = vld [vmem:[#allocation5 + $0xc18] sm:$0xff] }
 0x5a5   : > { %v5304_v2 = vpop.f32.mrf.mxu1  ;;  %v5529_v37 = vpop.f32.mrf.mxu0  ;;  %7908 = vmatprep.subr.mxu0 %v2206_v59 }
 0x5a6   : > { %v1488_v2 = vld [vmem:[%s8469_s7 + $0x27a8] sm:$0xff]  ;;  %v690_v37 = vld [vmem:[%s8469_s7 + $0xeb8] sm:$0xff]  ;;  %7909 = vmatpush3.msra.mxu0 %v2206_v59  ;;  %v1513_v59 = vld [vmem:[%s8469_s7 + $0x2870] sm:$0xff] }
 0x5a7   : > { %v5532_v11 = vpop.f32.mrf.mxu0  ;;  %v5757_v7 = vpop.f32.mrf.mxu1  ;;  %5996 = vmatmul.mubr.f32.gmra.mxu1 %v1437_v18  ;;  %6221 = vmatmul.mubr.f32.gmra.mxu0 %v639_v53 }
 0x5a8   : > { %v11820_v21 = vadd.f32 %v5532_v11, %v11485_v44  ;;  %v11823_v62 = vadd.f32 %v5757_v7, %v11488_v32  ;;  %6000 = vmatprep.mubr.f32.mxu1 %v1463_v57  ;;  %6225 = vmatprep.mubr.f32.mxu0 %v665_v10  ;;  %v1487_v57 = vld [vmem:[%s8469_s7 + $0x27a0] sm:$0xff]  ;;  %v689_v10 = vld [vmem:[%s8469_s7 + $0xeb0] sm:$0xff] }
 0x5a9   : > { %v5534_v24 = vpop.f32.mrf.mxu0  ;;  %v5759_v19 = vpop.f32.mrf.mxu1 }
 0x5aa   : > { %v715_v24 = vld [vmem:[%s8469_s7 + $0xf80] sm:$0xff]  ;;  %v1512_v19 = vld [vmem:[%s8469_s7 + $0x2868] sm:$0xff] }
 0x5ab   : > { %v5537_v44 = vpop.f32.mrf.mxu0  ;;  %v5762_v18 = vpop.f32.mrf.mxu1  ;;  %6001 = vmatmul.mubr.f32.gmra.mxu1 %v1462_v30  ;;  %6226 = vmatmul.mubr.f32.gmra.mxu0 %v664_v25 }
 0x5ac   : > { %v11830_v32 = vadd.f32 %v5537_v44, %v11496_v40  ;;  %v11833_v53 = vadd.f32 %v5762_v18, %v11499_v5  ;;  %6005 = vmatprep.mubr.f32.mxu1 %v1488_v2  ;;  %6230 = vmatprep.mubr.f32.mxu0 %v690_v37  ;;  %v714_v2 = vld [vmem:[%s8469_s7 + $0xf78] sm:$0xff] }
 0x5ad   : > { %v5539_v11 = vpop.f32.mrf.mxu0  ;;  %v5764_v7 = vpop.f32.mrf.mxu1  ;;  %v1538_v18 = vld [vmem:[%s8469_s7 + $0x2938] sm:$0xff] }
 0x5ae   : > { %v740_v11 = vld [vmem:[%s8469_s7 + $0x1048] sm:$0xff]  ;;  %v1537_v7 = vld [vmem:[%s8469_s7 + $0x2930] sm:$0xff] }
 0x5af   : > { %v5542_v30 = vpop.f32.mrf.mxu0  ;;  %v5767_v25 = vpop.f32.mrf.mxu1  ;;  %6006 = vmatmul.mubr.f32.gmra.mxu1 %v1487_v57  ;;  %6231 = vmatmul.mubr.f32.gmra.mxu0 %v689_v10 }
 0x5b0   : > { %v11840_v40 = vadd.f32 %v5542_v30, %v11507_v45  ;;  %v11843_v5 = vadd.f32 %v5767_v25, %v11510_v0  ;;  %6010 = vmatprep.mubr.f32.mxu1 %v1513_v59  ;;  %6235 = vmatprep.mubr.f32.mxu0 %v715_v24  ;;  %v739_v59 = vld [vmem:[%s8469_s7 + $0x1040] sm:$0xff] }
 0x5b1   : > { %v5544_v37 = vpop.f32.mrf.mxu0  ;;  %v5769_v44 = vpop.f32.mrf.mxu1  ;;  %v1563_v25 = vld [vmem:[%s8469_s7 + $0x2a00] sm:$0xff] }
 0x5b2   : > { %v765_v37 = vld [vmem:[%s8469_s7 + $0x1110] sm:$0xff]  ;;  %v1562_v44 = vld [vmem:[%s8469_s7 + $0x29f8] sm:$0xff] }
 0x5b3   : > { %v5547_v57 = vpop.f32.mrf.mxu0  ;;  %v5772_v10 = vpop.f32.mrf.mxu1  ;;  %6011 = vmatmul.mubr.f32.gmra.mxu1 %v1512_v19  ;;  %6236 = vmatmul.mubr.f32.gmra.mxu0 %v714_v2 }
 0x5b4   : > { %v11850_v45 = vadd.f32 %v5547_v57, %v11518_v43  ;;  %v11853_v0 = vadd.f32 %v5772_v10, %v11521_v13  ;;  %6015 = vmatprep.mubr.f32.mxu1 %v1538_v18  ;;  %6240 = vmatprep.mubr.f32.mxu0 %v740_v11  ;;  %v764_v18 = vld [vmem:[%s8469_s7 + $0x1108] sm:$0xff]  ;;  %v2205_v11 = vld [vmem:[#allocation5 + $0xc10] sm:$0xff] }
 0x5b5   : > { %v5549_v24 = vpop.f32.mrf.mxu0  ;;  %v5774_v30 = vpop.f32.mrf.mxu1  ;;  %7910 = vmatprep.subr.mxu0 %v2205_v11 }
 0x5b6   : > { %v1588_v24 = vld [vmem:[%s8469_s7 + $0x2ac8] sm:$0xff]  ;;  %v790_v30 = vld [vmem:[%s8469_s7 + $0x11d8] sm:$0xff]  ;;  %7911 = vmatpush3.msra.mxu0 %v2205_v11  ;;  %v1613_v11 = vld [vmem:[%s8469_s7 + $0x2b90] sm:$0xff] }
 0x5b7   : > { %v5552_v19 = vpop.f32.mrf.mxu0  ;;  %v5777_v2 = vpop.f32.mrf.mxu1  ;;  %6016 = vmatmul.mubr.f32.gmra.mxu1 %v1537_v7  ;;  %6241 = vmatmul.mubr.f32.gmra.mxu0 %v739_v59 }
 0x5b8   : > { %v11860_v43 = vadd.f32 %v5552_v19, %v11529_v42  ;;  %v11863_v13 = vadd.f32 %v5777_v2, %v11532_v49  ;;  %6020 = vmatprep.mubr.f32.mxu1 %v1563_v25  ;;  %6245 = vmatprep.mubr.f32.mxu0 %v765_v37  ;;  %v1587_v25 = vld [vmem:[%s8469_s7 + $0x2ac0] sm:$0xff]  ;;  %v789_v37 = vld [vmem:[%s8469_s7 + $0x11d0] sm:$0xff] }
 0x5b9   : > { %v5554_v57 = vpop.f32.mrf.mxu0  ;;  %v5779_v10 = vpop.f32.mrf.mxu1 }
 0x5ba   : > { %v815_v57 = vld [vmem:[%s8469_s7 + $0x12a0] sm:$0xff]  ;;  %v1612_v10 = vld [vmem:[%s8469_s7 + $0x2b88] sm:$0xff] }
 0x5bb   : > { %v5557_v42 = vpop.f32.mrf.mxu0  ;;  %v5782_v7 = vpop.f32.mrf.mxu1  ;;  %6021 = vmatmul.mubr.f32.gmra.mxu1 %v1562_v44  ;;  %6246 = vmatmul.mubr.f32.gmra.mxu0 %v764_v18 }
 0x5bc   : > { %v11870_v49 = vadd.f32 %v5557_v42, %v11540_v56  ;;  %v11873_v59 = vadd.f32 %v5782_v7, %v11543_v31  ;;  %6025 = vmatprep.mubr.f32.mxu1 %v1588_v24  ;;  %6250 = vmatprep.mubr.f32.mxu0 %v790_v30  ;;  %v814_v24 = vld [vmem:[%s8469_s7 + $0x1298] sm:$0xff] }
 0x5bd   : > { %v5559_v19 = vpop.f32.mrf.mxu0  ;;  %v5784_v2 = vpop.f32.mrf.mxu1  ;;  %v1638_v7 = vld [vmem:[%s8469_s7 + $0x2c58] sm:$0xff] }
 0x5be   : > { %v840_v19 = vld [vmem:[%s8469_s7 + $0x1368] sm:$0xff]  ;;  %v1637_v2 = vld [vmem:[%s8469_s7 + $0x2c50] sm:$0xff] }
 0x5bf   : > { %v5562_v44 = vpop.f32.mrf.mxu0  ;;  %v5787_v18 = vpop.f32.mrf.mxu1  ;;  %6026 = vmatmul.mubr.f32.gmra.mxu1 %v1587_v25  ;;  %6251 = vmatmul.mubr.f32.gmra.mxu0 %v789_v37 }
 0x5c0   : > { %v11880_v56 = vadd.f32 %v5562_v44, %v11551_v41  ;;  %v11883_v31 = vadd.f32 %v5787_v18, %v11554_v3  ;;  %6030 = vmatprep.mubr.f32.mxu1 %v1613_v11  ;;  %6255 = vmatprep.mubr.f32.mxu0 %v815_v57  ;;  %v839_v11 = vld [vmem:[%s8469_s7 + $0x1360] sm:$0xff] }
 0x5c1   : > { %v5564_v30 = vpop.f32.mrf.mxu0  ;;  %v5789_v42 = vpop.f32.mrf.mxu1  ;;  %v1663_v18 = vld [vmem:[%s8469_s7 + $0x2d20] sm:$0xff] }
 0x5c2   : > { %v865_v30 = vld [vmem:[%s8469_s7 + $0x1430] sm:$0xff]  ;;  %v1662_v42 = vld [vmem:[%s8469_s7 + $0x2d18] sm:$0xff] }
 0x5c3   : > { %v5567_v25 = vpop.f32.mrf.mxu0  ;;  %v5792_v37 = vpop.f32.mrf.mxu1  ;;  %6031 = vmatmul.mubr.f32.gmra.mxu1 %v1612_v10  ;;  %6256 = vmatmul.mubr.f32.gmra.mxu0 %v814_v24 }
 0x5c4   : > { %v11890_v41 = vadd.f32 %v5567_v25, %v11562_v51  ;;  %v11893_v3 = vadd.f32 %v5792_v37, %v11565_v22  ;;  %6035 = vmatprep.mubr.f32.mxu1 %v1638_v7  ;;  %6260 = vmatprep.mubr.f32.mxu0 %v840_v19  ;;  %v864_v7 = vld [vmem:[%s8469_s7 + $0x1428] sm:$0xff] }
 0x5c5   : > { %v5569_v57 = vpop.f32.mrf.mxu0  ;;  %v5794_v44 = vpop.f32.mrf.mxu1  ;;  %v2204_v19 = vld [vmem:[#allocation5 + $0xc08] sm:$0xff] }
 0x5c6   : > { %v1688_v57 = vld [vmem:[%s8469_s7 + $0x2de8] sm:$0xff]  ;;  %v890_v44 = vld [vmem:[%s8469_s7 + $0x14f8] sm:$0xff]  ;;  %7912 = vmatprep.subr.mxu0 %v2204_v19 }
 0x5c7   : > { %v5572_v10 = vpop.f32.mrf.mxu0  ;;  %v5797_v24 = vpop.f32.mrf.mxu1  ;;  %6036 = vmatmul.mubr.f32.gmra.mxu1 %v1637_v2  ;;  %6261 = vmatmul.mubr.f32.gmra.mxu0 %v839_v11 }
 0x5c8   : > { %v11900_v51 = vadd.f32 %v5572_v10, %v11573_v39  ;;  %v11903_v22 = vadd.f32 %v5797_v24, %v11576_v58  ;;  %6040 = vmatprep.mubr.f32.mxu1 %v1663_v18  ;;  %6265 = vmatprep.mubr.f32.mxu0 %v865_v30  ;;  %v1687_v18 = vld [vmem:[%s8469_s7 + $0x2de0] sm:$0xff]  ;;  %v889_v30 = vld [vmem:[%s8469_s7 + $0x14f0] sm:$0xff] }
 0x5c9   : > { %v5574_v25 = vpop.f32.mrf.mxu0  ;;  %v5799_v37 = vpop.f32.mrf.mxu1  ;;  %7913 = vmatpush3.msra.mxu0 %v2204_v19  ;;  %v1713_v19 = vld [vmem:[%s8469_s7 + $0x2eb0] sm:$0xff] }
 0x5ca   : > { %v915_v25 = vld [vmem:[%s8469_s7 + $0x15c0] sm:$0xff] }
 0x5cb   : > { %v5577_v39 = vpop.f32.mrf.mxu0  ;;  %v5802_v2 = vpop.f32.mrf.mxu1  ;;  %6041 = vmatmul.mubr.f32.gmra.mxu1 %v1662_v42  ;;  %6266 = vmatmul.mubr.f32.gmra.mxu0 %v864_v7 }
 0x5cc   : > { %v11910_v58 = vadd.f32 %v5577_v39, %v11584_v35  ;;  %v11913_v11 = vadd.f32 %v5802_v2, %v11587_v63  ;;  %6045 = vmatprep.mubr.f32.mxu1 %v1688_v57  ;;  %6270 = vmatprep.mubr.f32.mxu0 %v890_v44  ;;  %v13291_v63 = vld [vmem:[#allocation30_spill] sm:$0xff]  ;;  %v1712_v57 = vld [vmem:[%s8469_s7 + $0x2ea8] sm:$0xff] }
 0x5cd   : > { %v5579_v10 = vpop.f32.mrf.mxu0  ;;  %v5804_v24 = vpop.f32.mrf.mxu1  ;;  %v914_v44 = vld [vmem:[%s8469_s7 + $0x15b8] sm:$0xff] }
 0x5ce   : > { %v1738_v10 = vld [vmem:[%s8469_s7 + $0x2f78] sm:$0xff]  ;;  %v940_v24 = vld [vmem:[%s8469_s7 + $0x1688] sm:$0xff] }
 0x5cf   : > { %v5582_v42 = vpop.f32.mrf.mxu0  ;;  %v5807_v7 = vpop.f32.mrf.mxu1  ;;  %6046 = vmatmul.mubr.f32.gmra.mxu1 %v1687_v18  ;;  %6271 = vmatmul.mubr.f32.gmra.mxu0 %v889_v30 }
 0x5d0   : > { %v11920_v35 = vadd.f32 %v5582_v42, %v11595_v27  ;;  %v11923_v37 = vadd.f32 %v5807_v7, %v13291_v63  ;;  %6050 = vmatprep.mubr.f32.mxu1 %v1713_v19  ;;  %6275 = vmatprep.mubr.f32.mxu0 %v915_v25  ;;  %v13294_v42 = vld [vmem:[#allocation12_spill] sm:$0xff]  ;;  %v1737_v25 = vld [vmem:[%s8469_s7 + $0x2f70] sm:$0xff] }
 0x5d1   : > { %v5584_v39 = vpop.f32.mrf.mxu0  ;;  %v5809_v2 = vpop.f32.mrf.mxu1  ;;  %v939_v7 = vld [vmem:[%s8469_s7 + $0x1680] sm:$0xff] }
 0x5d2   : > { %13292 = vst [vmem:[#allocation19_spill] sm:$0xff] %v11923_v37  ;;  %v1763_v2 = vld [vmem:[%s8469_s7 + $0x3040] sm:$0xff]  ;;  %v965_v37 = vld [vmem:[%s8469_s7 + $0x1750] sm:$0xff] }
 0x5d3   : > { %v5587_v18 = vpop.f32.mrf.mxu0  ;;  %v5812_v30 = vpop.f32.mrf.mxu1  ;;  %6051 = vmatmul.mubr.f32.gmra.mxu1 %v1712_v57  ;;  %6276 = vmatmul.mubr.f32.gmra.mxu0 %v914_v44 }
 0x5d4   : > { %v11930_v27 = vadd.f32 %v5587_v18, %v11606_v55  ;;  %v11933_v19 = vadd.f32 %v5812_v30, %v13294_v42  ;;  %6055 = vmatprep.mubr.f32.mxu1 %v1738_v10  ;;  %6280 = vmatprep.mubr.f32.mxu0 %v940_v24  ;;  %v13296_v18 = vld [vmem:[#allocation21_spill] sm:$0xff]  ;;  %v1762_v24 = vld [vmem:[%s8469_s7 + $0x3038] sm:$0xff]  ;;  %v2203_v42 = vld [vmem:[#allocation5 + $0xc00] sm:$0xff] }
 0x5d5   : > { %v5589_v63 = vpop.f32.mrf.mxu0  ;;  %v5814_v39 = vpop.f32.mrf.mxu1  ;;  %v964_v30 = vld [vmem:[%s8469_s7 + $0x1748] sm:$0xff]  ;;  %7914 = vmatprep.subr.mxu0 %v2203_v42 }
 0x5d6   : > { %13293 = vst [vmem:[#allocation28_spill] sm:$0xff] %v11930_v27  ;;  %13295 = vst [vmem:[#allocation20_spill] sm:$0xff] %v11933_v19  ;;  %v1788_v19 = vld [vmem:[%s8469_s7 + $0x3108] sm:$0xff]  ;;  %v990_v27 = vld [vmem:[%s8469_s7 + $0x1818] sm:$0xff]  ;;  %7915 = vmatpush3.msra.mxu0 %v2203_v42 }
 0x5d7   : > { %v5592_v57 = vpop.f32.mrf.mxu0  ;;  %v5817_v44 = vpop.f32.mrf.mxu1  ;;  %6056 = vmatmul.mubr.f32.gmra.mxu1 %v1737_v25  ;;  %6281 = vmatmul.mubr.f32.gmra.mxu0 %v939_v7  ;;  %v13298_v7 = vld [vmem:[#allocation13_spill] sm:$0xff] }
 0x5d8   : > { %v11940_v55 = vadd.f32 %v5592_v57, %v11617_v6  ;;  %v11943_v10 = vadd.f32 %v5817_v44, %v13296_v18  ;;  %6060 = vmatprep.mubr.f32.mxu1 %v1763_v2  ;;  %6285 = vmatprep.mubr.f32.mxu0 %v965_v37  ;;  %v13299_v37 = vld [vmem:[#allocation22_spill] sm:$0xff]  ;;  %v1787_v44 = vld [vmem:[%s8469_s7 + $0x3100] sm:$0xff] }
 0x5d9   : > { %v5594_v63 = vpop.f32.mrf.mxu0  ;;  %v5819_v39 = vpop.f32.mrf.mxu1  ;;  %v989_v18 = vld [vmem:[%s8469_s7 + $0x1810] sm:$0xff] }
 0x5da   : > { %13297 = vst [vmem:[#allocation29_spill] sm:$0xff] %v11943_v10  ;;  %v1813_v42 = vld [vmem:[%s8469_s7 + $0x31d0] sm:$0xff]  ;;  %v1015_v10 = vld [vmem:[%s8469_s7 + $0x18e0] sm:$0xff] }
 0x5db   : > { %v5597_v6 = vpop.f32.mrf.mxu0  ;;  %v5822_v25 = vpop.f32.mrf.mxu1  ;;  %6061 = vmatmul.mubr.f32.gmra.mxu1 %v1762_v24  ;;  %6286 = vmatmul.mubr.f32.gmra.mxu0 %v964_v30 }
 0x5dc   : > { %v11950_v2 = vadd.f32 %v5597_v6, %v13298_v7  ;;  %v11953_v57 = vadd.f32 %v5822_v25, %v13299_v37  ;;  %6065 = vmatprep.mubr.f32.mxu1 %v1788_v19  ;;  %6290 = vmatprep.mubr.f32.mxu0 %v990_v27  ;;  %v1812_v27 = vld [vmem:[%s8469_s7 + $0x31c8] sm:$0xff]  ;;  %v1014_v25 = vld [vmem:[%s8469_s7 + $0x18d8] sm:$0xff] }
 0x5dd   : > { %v5599_v63 = vpop.f32.mrf.mxu0  ;;  %v5824_v39 = vpop.f32.mrf.mxu1 }
 0x5de   : > { %v1040_v63 = vld [vmem:[%s8469_s7 + $0x19a8] sm:$0xff]  ;;  %v242_v39 = vld [vmem:[%s8469_s7 + $0xb8] sm:$0xff] }
 0x5df   : > { %v5602_v24 = vpop.f32.mrf.mxu0  ;;  %v5827_v30 = vpop.f32.mrf.mxu1  ;;  %6066 = vmatmul.mubr.f32.gmra.mxu1 %v1787_v44  ;;  %6291 = vmatmul.mubr.f32.gmra.mxu0 %v989_v18 }
 0x5e0   : > { %v11960_v6 = vadd.f32 %v5602_v24, %v11639_v1  ;;  %v11963_v19 = vadd.f32 %v5827_v30, %v11642_v17  ;;  %6070 = vmatprep.mubr.f32.mxu1 %v1813_v42  ;;  %6295 = vmatprep.mubr.f32.mxu0 %v1015_v10  ;;  %v13301_v17 = vld [vmem:[#allocation14_spill] sm:$0xff]  ;;  %v1039_v10 = vld [vmem:[%s8469_s7 + $0x19a0] sm:$0xff] }
 0x5e1   : > { %v5604_v7 = vpop.f32.mrf.mxu0  ;;  %v5829_v37 = vpop.f32.mrf.mxu1  ;;  %v241_v24 = vld [vmem:[%s8469_s7 + $0xb0] sm:$0xff] }
 0x5e2   : > { %13300 = vst [vmem:[#allocation30_spill] sm:$0xff] %v11963_v19  ;;  %v1065_v37 = vld [vmem:[%s8469_s7 + $0x1a70] sm:$0xff]  ;;  %v267_v19 = vld [vmem:[%s8469_s7 + $0x180] sm:$0xff] }
 0x5e3   : > { %v5607_v44 = vpop.f32.mrf.mxu0  ;;  %v5832_v18 = vpop.f32.mrf.mxu1  ;;  %6071 = vmatmul.mubr.f32.gmra.mxu1 %v1812_v27  ;;  %6296 = vmatmul.mubr.f32.gmra.mxu0 %v1014_v25 }
 0x5e4   : > { %v11970_v1 = vadd.f32 %v5607_v44, %v11650_v14  ;;  %v11973_v42 = vadd.f32 %v5832_v18, %v13301_v17  ;;  %6300 = vmatprep.mubr.f32.mxu0 %v1040_v63  ;;  %6525 = vmatprep.mubr.f32.mxu1 %v242_v39  ;;  %v1064_v39 = vld [vmem:[%s8469_s7 + $0x1a68] sm:$0xff]  ;;  %v266_v44 = vld [vmem:[%s8469_s7 + $0x178] sm:$0xff] }
 0x5e5   : > { %v5609_v30 = vpop.f32.mrf.mxu0  ;;  %v5834_v7 = vpop.f32.mrf.mxu1 }
 0x5e6   : > { %v1090_v30 = vld [vmem:[%s8469_s7 + $0x1b38] sm:$0xff]  ;;  %v292_v7 = vld [vmem:[%s8469_s7 + $0x248] sm:$0xff] }
 0x5e7   : > { %v5612_v27 = vpop.f32.mrf.mxu0  ;;  %v5837_v25 = vpop.f32.mrf.mxu1  ;;  %6301 = vmatmul.mubr.f32.gmra.mxu0 %v1039_v10  ;;  %6526 = vmatmul.mubr.f32.vlgmr.msra.gmra.mxu1 %v241_v24 }
 0x5e8   : > { %v11980_v14 = vadd.f32 %v5612_v27, %v11660_v33  ;;  %v11983_v63 = vadd.f32 %v5837_v25, %v11663_v54  ;;  %6305 = vmatprep.mubr.f32.mxu0 %v1065_v37  ;;  %6530 = vmatprep.mubr.f32.mxu1 %v267_v19  ;;  %v1089_v19 = vld [vmem:[%s8469_s7 + $0x1b30] sm:$0xff]  ;;  %v291_v37 = vld [vmem:[%s8469_s7 + $0x240] sm:$0xff] }
 0x5e9   : > { %v5614_v18 = vpop.f32.mrf.mxu0  ;;  %v5839_v17 = vpop.f32.mrf.mxu1 }
 0x5ea   : > { %v1115_v18 = vld [vmem:[%s8469_s7 + $0x1c00] sm:$0xff]  ;;  %v317_v17 = vld [vmem:[%s8469_s7 + $0x310] sm:$0xff] }
 0x5eb   : > { %v5617_v10 = vpop.f32.mrf.mxu0  ;;  %v5842_v24 = vpop.f32.mrf.mxu1  ;;  %6306 = vmatmul.mubr.f32.gmra.mxu0 %v1064_v39  ;;  %6531 = vmatmul.mubr.f32.gmra.mxu1 %v266_v44 }
 0x5ec   : > { %v11990_v33 = vadd.f32 %v5617_v10, %v11670_v16  ;;  %v11993_v54 = vadd.f32 %v5842_v24, %v11673_v61  ;;  %6310 = vmatprep.mubr.f32.mxu0 %v1090_v30  ;;  %6535 = vmatprep.mubr.f32.mxu1 %v292_v7  ;;  %v1114_v30 = vld [vmem:[%s8469_s7 + $0x1bf8] sm:$0xff]  ;;  %v316_v7 = vld [vmem:[%s8469_s7 + $0x308] sm:$0xff] }
 0x5ed   : > { %v5619_v27 = vpop.f32.mrf.mxu0  ;;  %v5844_v25 = vpop.f32.mrf.mxu1 }
 0x5ee   : > { %v1140_v27 = vld [vmem:[%s8469_s7 + $0x1cc8] sm:$0xff]  ;;  %v342_v25 = vld [vmem:[%s8469_s7 + $0x3d8] sm:$0xff] }
 0x5ef   : > { %v5622_v39 = vpop.f32.mrf.mxu0  ;;  %v5847_v44 = vpop.f32.mrf.mxu1  ;;  %6311 = vmatmul.mubr.f32.gmra.mxu0 %v1089_v19  ;;  %6536 = vmatmul.mubr.f32.gmra.mxu1 %v291_v37 }
 0x5f0   : > { %v12000_v16 = vadd.f32 %v5622_v39, %v11680_v26  ;;  %v12003_v61 = vadd.f32 %v5847_v44, %v11683_v29  ;;  %6315 = vmatprep.mubr.f32.mxu0 %v1115_v18  ;;  %6540 = vmatprep.mubr.f32.mxu1 %v317_v17  ;;  %v13304_v29 = vld [vmem:[#allocation23_spill] sm:$0xff]  ;;  %v341_v39 = vld [vmem:[%s8469_s7 + $0x3d0] sm:$0xff] }
 0x5f1   : > { %v5624_v10 = vpop.f32.mrf.mxu0  ;;  %v5849_v24 = vpop.f32.mrf.mxu1  ;;  %v1139_v17 = vld [vmem:[%s8469_s7 + $0x1cc0] sm:$0xff] }
 0x5f2   : > { %13302 = vst [vmem:[#allocation12_spill] sm:$0xff] %v12003_v61  ;;  %v1165_v24 = vld [vmem:[%s8469_s7 + $0x1d90] sm:$0xff]  ;;  %v367_v61 = vld [vmem:[%s8469_s7 + $0x4a0] sm:$0xff] }
 0x5f3   : > { %v5627_v19 = vpop.f32.mrf.mxu0  ;;  %v5852_v37 = vpop.f32.mrf.mxu1  ;;  %6316 = vmatmul.mubr.f32.gmra.mxu0 %v1114_v30  ;;  %6541 = vmatmul.mubr.f32.gmra.mxu1 %v316_v7 }
 0x5f4   : > { %v12010_v26 = vadd.f32 %v5627_v19, %v11690_v38  ;;  %v12013_v18 = vadd.f32 %v5852_v37, %v13304_v29  ;;  %6320 = vmatprep.mubr.f32.mxu0 %v1140_v27  ;;  %6545 = vmatprep.mubr.f32.mxu1 %v342_v25  ;;  %v13306_v38 = vld [vmem:[#allocation15_spill] sm:$0xff]  ;;  %v13308_v37 = vld [vmem:[#allocation24_spill] sm:$0xff] }
 0x5f5   : > { %v5629_v44 = vpop.f32.mrf.mxu0  ;;  %v5854_v10 = vpop.f32.mrf.mxu1  ;;  %v1164_v25 = vld [vmem:[%s8469_s7 + $0x1d88] sm:$0xff]  ;;  %v366_v29 = vld [vmem:[%s8469_s7 + $0x498] sm:$0xff] }
 0x5f6   : > { %13303 = vst [vmem:[#allocation21_spill] sm:$0xff] %v12010_v26  ;;  %13305 = vst [vmem:[#allocation13_spill] sm:$0xff] %v12013_v18  ;;  %v1190_v18 = vld [vmem:[%s8469_s7 + $0x1e58] sm:$0xff]  ;;  %v392_v26 = vld [vmem:[%s8469_s7 + $0x568] sm:$0xff] }
 0x5f7   : > { %v5632_v30 = vpop.f32.mrf.mxu0  ;;  %v5857_v7 = vpop.f32.mrf.mxu1  ;;  %6321 = vmatmul.mubr.f32.gmra.mxu0 %v1139_v17  ;;  %6546 = vmatmul.mubr.f32.gmra.mxu1 %v341_v39 }
 0x5f8   : > { %v12020_v19 = vadd.f32 %v5632_v30, %v13306_v38  ;;  %v12023_v27 = vadd.f32 %v5857_v7, %v13308_v37  ;;  %6325 = vmatprep.mubr.f32.mxu0 %v1165_v24  ;;  %6550 = vmatprep.mubr.f32.mxu1 %v367_v61  ;;  %v13310_v30 = vld [vmem:[#allocation16_spill] sm:$0xff]  ;;  %v13312_v7 = vld [vmem:[#allocation25_spill] sm:$0xff] }
 0x5f9   : > { %v5634_v44 = vpop.f32.mrf.mxu0  ;;  %v5859_v10 = vpop.f32.mrf.mxu1  ;;  %v1189_v61 = vld [vmem:[%s8469_s7 + $0x1e50] sm:$0xff]  ;;  %v391_v37 = vld [vmem:[%s8469_s7 + $0x560] sm:$0xff] }
 0x5fa   : > { %13307 = vst [vmem:[#allocation22_spill] sm:$0xff] %v12020_v19  ;;  %13309 = vst [vmem:[#allocation14_spill] sm:$0xff] %v12023_v27  ;;  %v1215_v27 = vld [vmem:[%s8469_s7 + $0x1f20] sm:$0xff]  ;;  %v417_v19 = vld [vmem:[%s8469_s7 + $0x630] sm:$0xff] }
 0x5fb   : > { %v5637_v17 = vpop.f32.mrf.mxu0  ;;  %v5862_v39 = vpop.f32.mrf.mxu1  ;;  %6326 = vmatmul.mubr.f32.gmra.mxu0 %v1164_v25  ;;  %6551 = vmatmul.mubr.f32.gmra.mxu1 %v366_v29 }
 0x5fc   : > { %v12030_v38 = vadd.f32 %v5637_v17, %v13310_v30  ;;  %v12033_v24 = vadd.f32 %v5862_v39, %v13312_v7  ;;  %6330 = vmatprep.mubr.f32.mxu0 %v1190_v18  ;;  %6555 = vmatprep.mubr.f32.mxu1 %v392_v26  ;;  %v13314_v17 = vld [vmem:[#allocation17_spill] sm:$0xff]  ;;  %v13316_v39 = vld [vmem:[#allocation26_spill] sm:$0xff] }
 0x5fd   : > { %v5639_v44 = vpop.f32.mrf.mxu0  ;;  %v5864_v10 = vpop.f32.mrf.mxu1  ;;  %v1214_v26 = vld [vmem:[%s8469_s7 + $0x1f18] sm:$0xff]  ;;  %v416_v7 = vld [vmem:[%s8469_s7 + $0x628] sm:$0xff] }
 0x5fe   : > { %13311 = vst [vmem:[#allocation23_spill] sm:$0xff] %v12030_v38  ;;  %13313 = vst [vmem:[#allocation15_spill] sm:$0xff] %v12033_v24  ;;  %v1240_v24 = vld [vmem:[%s8469_s7 + $0x1fe8] sm:$0xff]  ;;  %v442_v38 = vld [vmem:[%s8469_s7 + $0x6f8] sm:$0xff] }
 0x5ff   : > { %v5642_v25 = vpop.f32.mrf.mxu0  ;;  %v5867_v29 = vpop.f32.mrf.mxu1  ;;  %6331 = vmatmul.mubr.f32.gmra.mxu0 %v1189_v61  ;;  %6556 = vmatmul.mubr.f32.gmra.mxu1 %v391_v37 }
 0x600   : > { %v12040_v30 = vadd.f32 %v5642_v25, %v13314_v17  ;;  %v12043_v18 = vadd.f32 %v5867_v29, %v13316_v39  ;;  %6335 = vmatprep.mubr.f32.mxu0 %v1215_v27  ;;  %6560 = vmatprep.mubr.f32.mxu1 %v417_v19  ;;  %v13318_v25 = vld [vmem:[#allocation18_spill] sm:$0xff]  ;;  %v13319_v29 = vld [vmem:[#allocation27_spill] sm:$0xff] }
 0x601   : > { %v5644_v44 = vpop.f32.mrf.mxu0  ;;  %v5869_v10 = vpop.f32.mrf.mxu1  ;;  %v1239_v19 = vld [vmem:[%s8469_s7 + $0x1fe0] sm:$0xff]  ;;  %v441_v39 = vld [vmem:[%s8469_s7 + $0x6f0] sm:$0xff] }
 0x602   : > { %13315 = vst [vmem:[#allocation24_spill] sm:$0xff] %v12040_v30  ;;  %13317 = vst [vmem:[#allocation16_spill] sm:$0xff] %v12043_v18  ;;  %v1265_v18 = vld [vmem:[%s8469_s7 + $0x20b0] sm:$0xff]  ;;  %v467_v30 = vld [vmem:[%s8469_s7 + $0x7c0] sm:$0xff] }
 0x603   : > { %v5647_v61 = vpop.f32.mrf.mxu0  ;;  %v5872_v37 = vpop.f32.mrf.mxu1  ;;  %6336 = vmatmul.mubr.f32.gmra.mxu0 %v1214_v26  ;;  %6561 = vmatmul.mubr.f32.gmra.mxu1 %v416_v7 }
 0x604   : > { %v12050_v17 = vadd.f32 %v5647_v61, %v13318_v25  ;;  %v12053_v27 = vadd.f32 %v5872_v37, %v13319_v29  ;;  %6340 = vmatprep.mubr.f32.mxu0 %v1240_v24  ;;  %6565 = vmatprep.mubr.f32.mxu1 %v442_v38  ;;  %v1264_v38 = vld [vmem:[%s8469_s7 + $0x20a8] sm:$0xff]  ;;  %v466_v37 = vld [vmem:[%s8469_s7 + $0x7b8] sm:$0xff] }
 0x605   : > { %v5649_v44 = vpop.f32.mrf.mxu0  ;;  %v5874_v10 = vpop.f32.mrf.mxu1 }
 0x606   : > { %v1290_v44 = vld [vmem:[%s8469_s7 + $0x2178] sm:$0xff]  ;;  %v492_v10 = vld [vmem:[%s8469_s7 + $0x888] sm:$0xff] }
 0x607   : > { %v5652_v26 = vpop.f32.mrf.mxu0  ;;  %v5877_v7 = vpop.f32.mrf.mxu1  ;;  %6341 = vmatmul.mubr.f32.gmra.mxu0 %v1239_v19  ;;  %6566 = vmatmul.mubr.f32.gmra.mxu1 %v441_v39 }
 0x608   : > { %v12060_v61 = vadd.f32 %v5652_v26, %v11740_v15  ;;  %v12063_v24 = vadd.f32 %v5877_v7, %v11743_v47  ;;  %6345 = vmatprep.mubr.f32.mxu0 %v1265_v18  ;;  %6570 = vmatprep.mubr.f32.mxu1 %v467_v30  ;;  %v1289_v30 = vld [vmem:[%s8469_s7 + $0x2170] sm:$0xff]  ;;  %v491_v18 = vld [vmem:[%s8469_s7 + $0x880] sm:$0xff] }
 0x609   : > { %v5654_v25 = vpop.f32.mrf.mxu0  ;;  %v5879_v29 = vpop.f32.mrf.mxu1 }
 0x60a   : > { %v1315_v25 = vld [vmem:[%s8469_s7 + $0x2240] sm:$0xff]  ;;  %v517_v29 = vld [vmem:[%s8469_s7 + $0x950] sm:$0xff] }
 0x60b   : > { %v5657_v19 = vpop.f32.mrf.mxu0  ;;  %v5882_v39 = vpop.f32.mrf.mxu1  ;;  %6346 = vmatmul.mubr.f32.gmra.mxu0 %v1264_v38  ;;  %6571 = vmatmul.mubr.f32.gmra.mxu1 %v466_v37 }
 0x60c   : > { %v12070_v15 = vadd.f32 %v5657_v19, %v11750_v36  ;;  %v12073_v47 = vadd.f32 %v5882_v39, %v11753_v50  ;;  %6350 = vmatprep.mubr.f32.mxu0 %v1290_v44  ;;  %6575 = vmatprep.mubr.f32.mxu1 %v492_v10  ;;  %v1314_v44 = vld [vmem:[%s8469_s7 + $0x2238] sm:$0xff]  ;;  %v516_v10 = vld [vmem:[%s8469_s7 + $0x948] sm:$0xff] }
 0x60d   : > { %v5659_v26 = vpop.f32.mrf.mxu0  ;;  %v5884_v7 = vpop.f32.mrf.mxu1 }
 0x60e   : > { %v1340_v26 = vld [vmem:[%s8469_s7 + $0x2308] sm:$0xff]  ;;  %v542_v7 = vld [vmem:[%s8469_s7 + $0xa18] sm:$0xff] }
 0x60f   : > { %v5662_v38 = vpop.f32.mrf.mxu0  ;;  %v5887_v37 = vpop.f32.mrf.mxu1  ;;  %6351 = vmatmul.mubr.f32.gmra.mxu0 %v1289_v30  ;;  %6576 = vmatmul.mubr.f32.gmra.mxu1 %v491_v18 }
 0x610   : > { %v12080_v36 = vadd.f32 %v5662_v38, %v11760_v48  ;;  %v12083_v50 = vadd.f32 %v5887_v37, %v11763_v12  ;;  %6355 = vmatprep.mubr.f32.mxu0 %v1315_v25  ;;  %6580 = vmatprep.mubr.f32.mxu1 %v517_v29  ;;  %v1339_v25 = vld [vmem:[%s8469_s7 + $0x2300] sm:$0xff]  ;;  %v541_v29 = vld [vmem:[%s8469_s7 + $0xa10] sm:$0xff] }
 0x611   : > { %v5664_v19 = vpop.f32.mrf.mxu0  ;;  %v5889_v39 = vpop.f32.mrf.mxu1 }
 0x612   : > { %v1365_v19 = vld [vmem:[%s8469_s7 + $0x23d0] sm:$0xff]  ;;  %v567_v39 = vld [vmem:[%s8469_s7 + $0xae0] sm:$0xff] }
 0x613   : > { %v5667_v30 = vpop.f32.mrf.mxu0  ;;  %v5892_v18 = vpop.f32.mrf.mxu1  ;;  %6356 = vmatmul.mubr.f32.gmra.mxu0 %v1314_v44  ;;  %6581 = vmatmul.mubr.f32.gmra.mxu1 %v516_v10 }
 0x614   : > { %v12090_v48 = vadd.f32 %v5667_v30, %v11770_v4  ;;  %v12093_v12 = vadd.f32 %v5892_v18, %v11773_v9  ;;  %6360 = vmatprep.mubr.f32.mxu0 %v1340_v26  ;;  %6585 = vmatprep.mubr.f32.mxu1 %v542_v7  ;;  %v1364_v26 = vld [vmem:[%s8469_s7 + $0x23c8] sm:$0xff]  ;;  %v566_v7 = vld [vmem:[%s8469_s7 + $0xad8] sm:$0xff] }
 0x615   : > { %v5669_v38 = vpop.f32.mrf.mxu0  ;;  %v5894_v37 = vpop.f32.mrf.mxu1 }
 0x616   : > { %v1390_v38 = vld [vmem:[%s8469_s7 + $0x2498] sm:$0xff]  ;;  %v592_v37 = vld [vmem:[%s8469_s7 + $0xba8] sm:$0xff] }
 0x617   : > { %v5672_v44 = vpop.f32.mrf.mxu0  ;;  %v5897_v10 = vpop.f32.mrf.mxu1  ;;  %6361 = vmatmul.mubr.f32.gmra.mxu0 %v1339_v25  ;;  %6586 = vmatmul.mubr.f32.gmra.mxu1 %v541_v29 }
 0x618   : > { %v12100_v4 = vadd.f32 %v5672_v44, %v11780_v52  ;;  %v12103_v9 = vadd.f32 %v5897_v10, %v11783_v46  ;;  %6365 = vmatprep.mubr.f32.mxu0 %v1365_v19  ;;  %6590 = vmatprep.mubr.f32.mxu1 %v567_v39  ;;  %v1389_v19 = vld [vmem:[%s8469_s7 + $0x2490] sm:$0xff]  ;;  %v591_v39 = vld [vmem:[%s8469_s7 + $0xba0] sm:$0xff] }
 0x619   : > { %v5674_v30 = vpop.f32.mrf.mxu0  ;;  %v5899_v18 = vpop.f32.mrf.mxu1 }
 0x61a   : > { %v1415_v30 = vld [vmem:[%s8469_s7 + $0x2560] sm:$0xff]  ;;  %v617_v18 = vld [vmem:[%s8469_s7 + $0xc70] sm:$0xff] }
 0x61b   : > { %v5677_v25 = vpop.f32.mrf.mxu0  ;;  %v5902_v29 = vpop.f32.mrf.mxu1  ;;  %6366 = vmatmul.mubr.f32.gmra.mxu0 %v1364_v26  ;;  %6591 = vmatmul.mubr.f32.gmra.mxu1 %v566_v7 }
 0x61c   : > { %v12110_v52 = vadd.f32 %v5677_v25, %v11790_v28  ;;  %v12113_v46 = vadd.f32 %v5902_v29, %v11793_v60  ;;  %6370 = vmatprep.mubr.f32.mxu0 %v1390_v38  ;;  %6595 = vmatprep.mubr.f32.mxu1 %v592_v37  ;;  %v1414_v38 = vld [vmem:[%s8469_s7 + $0x2558] sm:$0xff]  ;;  %v616_v37 = vld [vmem:[%s8469_s7 + $0xc68] sm:$0xff] }
 0x61d   : > { %v5679_v44 = vpop.f32.mrf.mxu0  ;;  %v5904_v10 = vpop.f32.mrf.mxu1 }
 0x61e   : > { %v1440_v44 = vld [vmem:[%s8469_s7 + $0x2628] sm:$0xff]  ;;  %v642_v10 = vld [vmem:[%s8469_s7 + $0xd38] sm:$0xff] }
 0x61f   : > { %v5682_v26 = vpop.f32.mrf.mxu0  ;;  %v5907_v7 = vpop.f32.mrf.mxu1  ;;  %6371 = vmatmul.mubr.f32.gmra.mxu0 %v1389_v19  ;;  %6596 = vmatmul.mubr.f32.gmra.mxu1 %v591_v39 }
 0x620   : > { %v12120_v28 = vadd.f32 %v5682_v26, %v11800_v20  ;;  %v12123_v60 = vadd.f32 %v5907_v7, %v11803_v23  ;;  %6375 = vmatprep.mubr.f32.mxu0 %v1415_v30  ;;  %6600 = vmatprep.mubr.f32.mxu1 %v617_v18  ;;  %v1439_v30 = vld [vmem:[%s8469_s7 + $0x2620] sm:$0xff]  ;;  %v641_v18 = vld [vmem:[%s8469_s7 + $0xd30] sm:$0xff] }
 0x621   : > { %v5684_v25 = vpop.f32.mrf.mxu0  ;;  %v5909_v29 = vpop.f32.mrf.mxu1 }
 0x622   : > { %v1465_v25 = vld [vmem:[%s8469_s7 + $0x26f0] sm:$0xff]  ;;  %v667_v29 = vld [vmem:[%s8469_s7 + $0xe00] sm:$0xff] }
 0x623   : > { %v5687_v19 = vpop.f32.mrf.mxu0  ;;  %v5912_v39 = vpop.f32.mrf.mxu1  ;;  %6376 = vmatmul.mubr.f32.gmra.mxu0 %v1414_v38  ;;  %6601 = vmatmul.mubr.f32.gmra.mxu1 %v616_v37 }
 0x624   : > { %v12130_v20 = vadd.f32 %v5687_v19, %v11810_v34  ;;  %v12133_v23 = vadd.f32 %v5912_v39, %v11813_v8  ;;  %6380 = vmatprep.mubr.f32.mxu0 %v1440_v44  ;;  %6605 = vmatprep.mubr.f32.mxu1 %v642_v10  ;;  %v1464_v44 = vld [vmem:[%s8469_s7 + $0x26e8] sm:$0xff]  ;;  %v666_v10 = vld [vmem:[%s8469_s7 + $0xdf8] sm:$0xff] }
 0x625   : > { %v5689_v26 = vpop.f32.mrf.mxu0  ;;  %v5914_v7 = vpop.f32.mrf.mxu1 }
 0x626   : > { %v1490_v26 = vld [vmem:[%s8469_s7 + $0x27b8] sm:$0xff]  ;;  %v692_v7 = vld [vmem:[%s8469_s7 + $0xec8] sm:$0xff] }
 0x627   : > { %v5917_v38 = vpop.f32.mrf.mxu1  ;;  %v6142_v37 = vpop.f32.mrf.mxu0  ;;  %6381 = vmatmul.mubr.f32.gmra.mxu0 %v1439_v30  ;;  %6606 = vmatmul.mubr.f32.gmra.mxu1 %v641_v18 }
 0x628   : > { %v12140_v34 = vadd.f32 %v5917_v38, %v11820_v21  ;;  %v12143_v8 = vadd.f32 %v6142_v37, %v11823_v62  ;;  %6385 = vmatprep.mubr.f32.mxu0 %v1465_v25  ;;  %6610 = vmatprep.mubr.f32.mxu1 %v667_v29  ;;  %v1489_v25 = vld [vmem:[%s8469_s7 + $0x27b0] sm:$0xff]  ;;  %v691_v29 = vld [vmem:[%s8469_s7 + $0xec0] sm:$0xff] }
 0x629   : > { %v5919_v19 = vpop.f32.mrf.mxu1  ;;  %v6144_v39 = vpop.f32.mrf.mxu0 }
 0x62a   : > { %v1515_v19 = vld [vmem:[%s8469_s7 + $0x2880] sm:$0xff]  ;;  %v717_v39 = vld [vmem:[%s8469_s7 + $0xf90] sm:$0xff] }
 0x62b   : > { %v5922_v30 = vpop.f32.mrf.mxu1  ;;  %v6147_v18 = vpop.f32.mrf.mxu0  ;;  %6386 = vmatmul.mubr.f32.gmra.mxu0 %v1464_v44  ;;  %6611 = vmatmul.mubr.f32.gmra.mxu1 %v666_v10 }
 0x62c   : > { %v12150_v21 = vadd.f32 %v5922_v30, %v11830_v32  ;;  %v12153_v62 = vadd.f32 %v6147_v18, %v11833_v53  ;;  %6390 = vmatprep.mubr.f32.mxu0 %v1490_v26  ;;  %6615 = vmatprep.mubr.f32.mxu1 %v692_v7  ;;  %v1514_v26 = vld [vmem:[%s8469_s7 + $0x2878] sm:$0xff]  ;;  %v716_v7 = vld [vmem:[%s8469_s7 + $0xf88] sm:$0xff] }
 0x62d   : > { %v5924_v38 = vpop.f32.mrf.mxu1  ;;  %v6149_v37 = vpop.f32.mrf.mxu0 }
 0x62e   : > { %v1540_v38 = vld [vmem:[%s8469_s7 + $0x2948] sm:$0xff]  ;;  %v742_v37 = vld [vmem:[%s8469_s7 + $0x1058] sm:$0xff] }
 0x62f   : > { %v5927_v44 = vpop.f32.mrf.mxu1  ;;  %v6152_v10 = vpop.f32.mrf.mxu0  ;;  %6391 = vmatmul.mubr.f32.gmra.mxu0 %v1489_v25  ;;  %6616 = vmatmul.mubr.f32.gmra.mxu1 %v691_v29 }
 0x630   : > { %v12160_v32 = vadd.f32 %v5927_v44, %v11840_v40  ;;  %v12163_v53 = vadd.f32 %v6152_v10, %v11843_v5  ;;  %6395 = vmatprep.mubr.f32.mxu0 %v1515_v19  ;;  %6620 = vmatprep.mubr.f32.mxu1 %v717_v39  ;;  %v1539_v19 = vld [vmem:[%s8469_s7 + $0x2940] sm:$0xff]  ;;  %v741_v39 = vld [vmem:[%s8469_s7 + $0x1050] sm:$0xff] }
 0x631   : > { %v5929_v30 = vpop.f32.mrf.mxu1  ;;  %v6154_v18 = vpop.f32.mrf.mxu0 }
 0x632   : > { %v1565_v30 = vld [vmem:[%s8469_s7 + $0x2a10] sm:$0xff]  ;;  %v767_v18 = vld [vmem:[%s8469_s7 + $0x1120] sm:$0xff] }
 0x633   : > { %v5932_v25 = vpop.f32.mrf.mxu1  ;;  %v6157_v29 = vpop.f32.mrf.mxu0  ;;  %6396 = vmatmul.mubr.f32.gmra.mxu0 %v1514_v26  ;;  %6621 = vmatmul.mubr.f32.gmra.mxu1 %v716_v7 }
 0x634   : > { %v12170_v40 = vadd.f32 %v5932_v25, %v11850_v45  ;;  %v12173_v5 = vadd.f32 %v6157_v29, %v11853_v0  ;;  %6400 = vmatprep.mubr.f32.mxu0 %v1540_v38  ;;  %6625 = vmatprep.mubr.f32.mxu1 %v742_v37  ;;  %v1564_v38 = vld [vmem:[%s8469_s7 + $0x2a08] sm:$0xff]  ;;  %v766_v37 = vld [vmem:[%s8469_s7 + $0x1118] sm:$0xff] }
 0x635   : > { %v5934_v44 = vpop.f32.mrf.mxu1  ;;  %v6159_v10 = vpop.f32.mrf.mxu0 }
 0x636   : > { %v1590_v44 = vld [vmem:[%s8469_s7 + $0x2ad8] sm:$0xff]  ;;  %v792_v10 = vld [vmem:[%s8469_s7 + $0x11e8] sm:$0xff] }
 0x637   : > { %v5937_v26 = vpop.f32.mrf.mxu1  ;;  %v6162_v7 = vpop.f32.mrf.mxu0  ;;  %6401 = vmatmul.mubr.f32.gmra.mxu0 %v1539_v19  ;;  %6626 = vmatmul.mubr.f32.gmra.mxu1 %v741_v39 }
 0x638   : > { %v12180_v45 = vadd.f32 %v5937_v26, %v11860_v43  ;;  %v12183_v0 = vadd.f32 %v6162_v7, %v11863_v13  ;;  %6405 = vmatprep.mubr.f32.mxu0 %v1565_v30  ;;  %6630 = vmatprep.mubr.f32.mxu1 %v767_v18  ;;  %v1589_v30 = vld [vmem:[%s8469_s7 + $0x2ad0] sm:$0xff]  ;;  %v791_v18 = vld [vmem:[%s8469_s7 + $0x11e0] sm:$0xff] }
 0x639   : > { %v5939_v25 = vpop.f32.mrf.mxu1  ;;  %v6164_v29 = vpop.f32.mrf.mxu0 }
 0x63a   : > { %v1615_v25 = vld [vmem:[%s8469_s7 + $0x2ba0] sm:$0xff]  ;;  %v817_v29 = vld [vmem:[%s8469_s7 + $0x12b0] sm:$0xff] }
 0x63b   : > { %v5942_v19 = vpop.f32.mrf.mxu1  ;;  %v6167_v39 = vpop.f32.mrf.mxu0  ;;  %6406 = vmatmul.mubr.f32.gmra.mxu0 %v1564_v38  ;;  %6631 = vmatmul.mubr.f32.gmra.mxu1 %v766_v37 }
 0x63c   : > { %v12190_v43 = vadd.f32 %v5942_v19, %v11870_v49  ;;  %v12193_v13 = vadd.f32 %v6167_v39, %v11873_v59  ;;  %6410 = vmatprep.mubr.f32.mxu0 %v1590_v44  ;;  %6635 = vmatprep.mubr.f32.mxu1 %v792_v10  ;;  %v1614_v44 = vld [vmem:[%s8469_s7 + $0x2b98] sm:$0xff]  ;;  %v816_v10 = vld [vmem:[%s8469_s7 + $0x12a8] sm:$0xff] }
 0x63d   : > { %v5944_v26 = vpop.f32.mrf.mxu1  ;;  %v6169_v7 = vpop.f32.mrf.mxu0 }
 0x63e   : > { %v1640_v26 = vld [vmem:[%s8469_s7 + $0x2c68] sm:$0xff]  ;;  %v842_v7 = vld [vmem:[%s8469_s7 + $0x1378] sm:$0xff] }
 0x63f   : > { %v5947_v38 = vpop.f32.mrf.mxu1  ;;  %v6172_v37 = vpop.f32.mrf.mxu0  ;;  %6411 = vmatmul.mubr.f32.gmra.mxu0 %v1589_v30  ;;  %6636 = vmatmul.mubr.f32.gmra.mxu1 %v791_v18 }
 0x640   : > { %v12200_v49 = vadd.f32 %v5947_v38, %v11880_v56  ;;  %v12203_v59 = vadd.f32 %v6172_v37, %v11883_v31  ;;  %6415 = vmatprep.mubr.f32.mxu0 %v1615_v25  ;;  %6640 = vmatprep.mubr.f32.mxu1 %v817_v29  ;;  %v1639_v25 = vld [vmem:[%s8469_s7 + $0x2c60] sm:$0xff]  ;;  %v841_v29 = vld [vmem:[%s8469_s7 + $0x1370] sm:$0xff] }
 0x641   : > { %v5949_v19 = vpop.f32.mrf.mxu1  ;;  %v6174_v39 = vpop.f32.mrf.mxu0 }
 0x642   : > { %v1665_v19 = vld [vmem:[%s8469_s7 + $0x2d30] sm:$0xff]  ;;  %v867_v39 = vld [vmem:[%s8469_s7 + $0x1440] sm:$0xff] }
 0x643   : > { %v5952_v30 = vpop.f32.mrf.mxu1  ;;  %v6177_v18 = vpop.f32.mrf.mxu0  ;;  %6416 = vmatmul.mubr.f32.gmra.mxu0 %v1614_v44  ;;  %6641 = vmatmul.mubr.f32.gmra.mxu1 %v816_v10 }
 0x644   : > { %v12210_v56 = vadd.f32 %v5952_v30, %v11890_v41  ;;  %v12213_v31 = vadd.f32 %v6177_v18, %v11893_v3  ;;  %6420 = vmatprep.mubr.f32.mxu0 %v1640_v26  ;;  %6645 = vmatprep.mubr.f32.mxu1 %v842_v7  ;;  %v1664_v26 = vld [vmem:[%s8469_s7 + $0x2d28] sm:$0xff]  ;;  %v866_v7 = vld [vmem:[%s8469_s7 + $0x1438] sm:$0xff] }
 0x645   : > { %v5954_v38 = vpop.f32.mrf.mxu1  ;;  %v6179_v37 = vpop.f32.mrf.mxu0 }
 0x646   : > { %v1690_v38 = vld [vmem:[%s8469_s7 + $0x2df8] sm:$0xff]  ;;  %v892_v37 = vld [vmem:[%s8469_s7 + $0x1508] sm:$0xff] }
 0x647   : > { %v5957_v44 = vpop.f32.mrf.mxu1  ;;  %v6182_v10 = vpop.f32.mrf.mxu0  ;;  %6421 = vmatmul.mubr.f32.gmra.mxu0 %v1639_v25  ;;  %6646 = vmatmul.mubr.f32.gmra.mxu1 %v841_v29 }
 0x648   : > { %v12220_v41 = vadd.f32 %v5957_v44, %v11900_v51  ;;  %v12223_v3 = vadd.f32 %v6182_v10, %v11903_v22  ;;  %6425 = vmatprep.mubr.f32.mxu0 %v1665_v19  ;;  %6650 = vmatprep.mubr.f32.mxu1 %v867_v39  ;;  %v1689_v19 = vld [vmem:[%s8469_s7 + $0x2df0] sm:$0xff]  ;;  %v891_v39 = vld [vmem:[%s8469_s7 + $0x1500] sm:$0xff] }
 0x649   : > { %v5959_v30 = vpop.f32.mrf.mxu1  ;;  %v6184_v18 = vpop.f32.mrf.mxu0 }
 0x64a   : > { %v1715_v30 = vld [vmem:[%s8469_s7 + $0x2ec0] sm:$0xff]  ;;  %v917_v18 = vld [vmem:[%s8469_s7 + $0x15d0] sm:$0xff] }
 0x64b   : > { %v5962_v25 = vpop.f32.mrf.mxu1  ;;  %v6187_v29 = vpop.f32.mrf.mxu0  ;;  %6426 = vmatmul.mubr.f32.gmra.mxu0 %v1664_v26  ;;  %6651 = vmatmul.mubr.f32.gmra.mxu1 %v866_v7 }
 0x64c   : > { %v12230_v51 = vadd.f32 %v5962_v25, %v11910_v58  ;;  %v12233_v22 = vadd.f32 %v6187_v29, %v11913_v11  ;;  %6430 = vmatprep.mubr.f32.mxu0 %v1690_v38  ;;  %6655 = vmatprep.mubr.f32.mxu1 %v892_v37  ;;  %v13322_v11 = vld [vmem:[#allocation19_spill] sm:$0xff]  ;;  %v916_v25 = vld [vmem:[%s8469_s7 + $0x15c8] sm:$0xff] }
 0x64d   : > { %v5964_v44 = vpop.f32.mrf.mxu1  ;;  %v6189_v10 = vpop.f32.mrf.mxu0  ;;  %v1714_v37 = vld [vmem:[%s8469_s7 + $0x2eb8] sm:$0xff] }
 0x64e   : > { %13320 = vst [vmem:[#allocation25_spill] sm:$0xff] %v12233_v22  ;;  %v1740_v10 = vld [vmem:[%s8469_s7 + $0x2f88] sm:$0xff]  ;;  %v942_v22 = vld [vmem:[%s8469_s7 + $0x1698] sm:$0xff] }
 0x64f   : > { %v5967_v26 = vpop.f32.mrf.mxu1  ;;  %v6192_v7 = vpop.f32.mrf.mxu0  ;;  %6431 = vmatmul.mubr.f32.gmra.mxu0 %v1689_v19  ;;  %6656 = vmatmul.mubr.f32.gmra.mxu1 %v891_v39 }
 0x650   : > { %v12240_v58 = vadd.f32 %v5967_v26, %v11920_v35  ;;  %v12243_v38 = vadd.f32 %v6192_v7, %v13322_v11  ;;  %6435 = vmatprep.mubr.f32.mxu0 %v1715_v30  ;;  %6660 = vmatprep.mubr.f32.mxu1 %v917_v18  ;;  %v13324_v35 = vld [vmem:[#allocation28_spill] sm:$0xff]  ;;  %v941_v11 = vld [vmem:[%s8469_s7 + $0x1690] sm:$0xff] }
 0x651   : > { %v5969_v29 = vpop.f32.mrf.mxu1  ;;  %v6194_v44 = vpop.f32.mrf.mxu0  ;;  %v13325_v7 = vld [vmem:[#allocation20_spill] sm:$0xff] }
 0x652   : > { %13321 = vst [vmem:[#allocation17_spill] sm:$0xff] %v12240_v58  ;;  %13323 = vst [vmem:[#allocation26_spill] sm:$0xff] %v12243_v38  ;;  %v1739_v18 = vld [vmem:[%s8469_s7 + $0x2f80] sm:$0xff]  ;;  %v1765_v38 = vld [vmem:[%s8469_s7 + $0x3050] sm:$0xff] }
 0x653   : > { %v5972_v19 = vpop.f32.mrf.mxu1  ;;  %v6197_v39 = vpop.f32.mrf.mxu0  ;;  %6436 = vmatmul.mubr.f32.gmra.mxu0 %v1714_v37  ;;  %6661 = vmatmul.mubr.f32.gmra.mxu1 %v916_v25  ;;  %v967_v58 = vld [vmem:[%s8469_s7 + $0x1760] sm:$0xff] }
 0x654   : > { %v12250_v26 = vadd.f32 %v5972_v19, %v13324_v35  ;;  %v12253_v30 = vadd.f32 %v6197_v39, %v13325_v7  ;;  %6440 = vmatprep.mubr.f32.mxu0 %v1740_v10  ;;  %6665 = vmatprep.mubr.f32.mxu1 %v942_v22  ;;  %v13327_v39 = vld [vmem:[#allocation29_spill] sm:$0xff]  ;;  %v966_v35 = vld [vmem:[%s8469_s7 + $0x1758] sm:$0xff] }
 0x655   : > { %v5974_v29 = vpop.f32.mrf.mxu1  ;;  %v6199_v44 = vpop.f32.mrf.mxu0  ;;  %v1764_v22 = vld [vmem:[%s8469_s7 + $0x3048] sm:$0xff] }
 0x656   : > { %13326 = vst [vmem:[#allocation18_spill] sm:$0xff] %v12253_v30  ;;  %v1790_v44 = vld [vmem:[%s8469_s7 + $0x3118] sm:$0xff]  ;;  %v992_v30 = vld [vmem:[%s8469_s7 + $0x1828] sm:$0xff] }
 0x657   : > { %v5977_v37 = vpop.f32.mrf.mxu1  ;;  %v6202_v25 = vpop.f32.mrf.mxu0  ;;  %6441 = vmatmul.mubr.f32.gmra.mxu0 %v1739_v18  ;;  %6666 = vmatmul.mubr.f32.gmra.mxu1 %v941_v11 }
 0x658   : > { %v12260_v19 = vadd.f32 %v5977_v37, %v11940_v55  ;;  %v12263_v10 = vadd.f32 %v6202_v25, %v13327_v39  ;;  %6445 = vmatprep.mubr.f32.mxu0 %v1765_v38  ;;  %6670 = vmatprep.mubr.f32.mxu1 %v967_v58  ;;  %v1789_v58 = vld [vmem:[%s8469_s7 + $0x3110] sm:$0xff]  ;;  %v991_v37 = vld [vmem:[%s8469_s7 + $0x1820] sm:$0xff] }
 0x659   : > { %v5979_v7 = vpop.f32.mrf.mxu1  ;;  %v6204_v29 = vpop.f32.mrf.mxu0 }
 0x65a   : > { %v1815_v7 = vld [vmem:[%s8469_s7 + $0x31e0] sm:$0xff]  ;;  %v1017_v29 = vld [vmem:[%s8469_s7 + $0x18f0] sm:$0xff] }
 0x65b   : > { %v5982_v18 = vpop.f32.mrf.mxu1  ;;  %v6207_v11 = vpop.f32.mrf.mxu0  ;;  %6446 = vmatmul.mubr.f32.gmra.mxu0 %v1764_v22  ;;  %6671 = vmatmul.mubr.f32.gmra.mxu1 %v966_v35 }
 0x65c   : > { %v12270_v55 = vadd.f32 %v5982_v18, %v11950_v2  ;;  %v12273_v38 = vadd.f32 %v6207_v11, %v11953_v57  ;;  %6450 = vmatprep.mubr.f32.mxu0 %v1790_v44  ;;  %6675 = vmatprep.mubr.f32.mxu1 %v992_v30  ;;  %v13329_v57 = vld [vmem:[#allocation30_spill] sm:$0xff]  ;;  %v1016_v18 = vld [vmem:[%s8469_s7 + $0x18e8] sm:$0xff] }
 0x65d   : > { %v5984_v25 = vpop.f32.mrf.mxu1  ;;  %v6209_v39 = vpop.f32.mrf.mxu0  ;;  %v1814_v30 = vld [vmem:[%s8469_s7 + $0x31d8] sm:$0xff] }
 0x65e   : > { %13328 = vst [vmem:[#allocation27_spill] sm:$0xff] %v12273_v38  ;;  %v1042_v39 = vld [vmem:[%s8469_s7 + $0x19b8] sm:$0xff]  ;;  %v243_v38 = vld [vmem:[%s8469_s7 + $0xc0] sm:$0xff] }
 0x65f   : > { %v5987_v22 = vpop.f32.mrf.mxu1  ;;  %v6212_v35 = vpop.f32.mrf.mxu0  ;;  %6451 = vmatmul.mubr.f32.gmra.mxu0 %v1789_v58  ;;  %6676 = vmatmul.mubr.f32.gmra.mxu1 %v991_v37 }
 0x660   : > { %v12280_v2 = vadd.f32 %v5987_v22, %v11960_v6  ;;  %v12283_v44 = vadd.f32 %v6212_v35, %v13329_v57  ;;  %6455 = vmatprep.mubr.f32.mxu0 %v1815_v7  ;;  %6680 = vmatprep.mubr.f32.mxu1 %v1017_v29  ;;  %v1041_v29 = vld [vmem:[%s8469_s7 + $0x19b0] sm:$0xff]  ;;  %v268_v22 = vld [vmem:[%s8469_s7 + $0x188] sm:$0xff] }
 0x661   : > { %v5989_v11 = vpop.f32.mrf.mxu1  ;;  %v6214_v25 = vpop.f32.mrf.mxu0 }
 0x662   : > { %v1067_v11 = vld [vmem:[%s8469_s7 + $0x1a80] sm:$0xff]  ;;  %v293_v25 = vld [vmem:[%s8469_s7 + $0x250] sm:$0xff] }
 0x663   : > { %v5992_v58 = vpop.f32.mrf.mxu1  ;;  %v6217_v37 = vpop.f32.mrf.mxu0  ;;  %6456 = vmatmul.mubr.f32.gmra.mxu0 %v1814_v30  ;;  %6681 = vmatmul.mubr.f32.gmra.mxu1 %v1016_v18 }
 0x664   : > { %v12290_v6 = vadd.f32 %v5992_v58, %v11970_v1  ;;  %v12293_v7 = vadd.f32 %v6217_v37, %v11973_v42  ;;  %6685 = vmatprep.mubr.f32.mxu1 %v1042_v39  ;;  %7916 = vmatprep.mubr.f32.mxu0 %v243_v38  ;;  %v1066_v38 = vld [vmem:[%s8469_s7 + $0x1a78] sm:$0xff] }
 0x665   : > { %v5994_v35 = vpop.f32.mrf.mxu1  ;;  %v6219_v57 = vpop.f32.mrf.mxu0  ;;  %v318_v39 = vld [vmem:[%s8469_s7 + $0x318] sm:$0xff] }
 0x666   : > { %v1092_v35 = vld [vmem:[%s8469_s7 + $0x1b48] sm:$0xff]  ;;  %v343_v57 = vld [vmem:[%s8469_s7 + $0x3e0] sm:$0xff] }
 0x667   : > { %v5997_v30 = vpop.f32.mrf.mxu1  ;;  %v6222_v18 = vpop.f32.mrf.mxu0  ;;  %6686 = vmatmul.mubr.f32.gmra.mxu1 %v1041_v29  ;;  %7917 = vmatmul.mubr.f32.vlgmr.msra.gmra.mxu0 %v268_v22 }
 0x668   : > { %v12300_v1 = vadd.f32 %v5997_v30, %v11980_v14  ;;  %v12303_v42 = vadd.f32 %v6222_v18, %v11983_v63  ;;  %6690 = vmatprep.mubr.f32.mxu1 %v1067_v11  ;;  %7919 = vmatprep.mubr.f32.mxu0 %v293_v25  ;;  %v1091_v11 = vld [vmem:[%s8469_s7 + $0x1b40] sm:$0xff]  ;;  %v368_v25 = vld [vmem:[%s8469_s7 + $0x4a8] sm:$0xff] }
 0x669   : > { %v5999_v58 = vpop.f32.mrf.mxu1  ;;  %v6224_v37 = vpop.f32.mrf.mxu0 }
 0x66a   : > { %v1117_v58 = vld [vmem:[%s8469_s7 + $0x1c10] sm:$0xff] }
 0x66b   : > { %v6002_v29 = vpop.f32.mrf.mxu1  ;;  %v6227_v22 = vpop.f32.mrf.mxu0  ;;  %6691 = vmatmul.mubr.f32.gmra.mxu1 %v1066_v38  ;;  %7920 = vmatmul.mubr.f32.gmra.mxu0 %v318_v39  ;;  %v393_v37 = vld [vmem:[%s8469_s7 + $0x570] sm:$0xff] }
 0x66c   : > { %v12310_v14 = vadd.f32 %v6002_v29, %v11990_v33  ;;  %v12313_v63 = vadd.f32 %v6227_v22, %v11993_v54  ;;  %6695 = vmatprep.mubr.f32.mxu1 %v1092_v35  ;;  %7922 = vmatprep.mubr.f32.mxu0 %v343_v57  ;;  %v13332_v54 = vld [vmem:[#allocation12_spill] sm:$0xff]  ;;  %v418_v29 = vld [vmem:[%s8469_s7 + $0x638] sm:$0xff] }
 0x66d   : > { %v6004_v30 = vpop.f32.mrf.mxu1  ;;  %v6229_v18 = vpop.f32.mrf.mxu0  ;;  %v1116_v57 = vld [vmem:[%s8469_s7 + $0x1c08] sm:$0xff] }
 0x66e   : > { %13330 = vst [vmem:[#allocation19_spill] sm:$0xff] %v12313_v63  ;;  %v1142_v18 = vld [vmem:[%s8469_s7 + $0x1cd8] sm:$0xff]  ;;  %v443_v63 = vld [vmem:[%s8469_s7 + $0x700] sm:$0xff] }
 0x66f   : > { %v6007_v38 = vpop.f32.mrf.mxu1  ;;  %v6232_v39 = vpop.f32.mrf.mxu0  ;;  %6696 = vmatmul.mubr.f32.gmra.mxu1 %v1091_v11  ;;  %7923 = vmatmul.mubr.f32.gmra.mxu0 %v368_v25 }
 0x670   : > { %v12320_v33 = vadd.f32 %v6007_v38, %v12000_v16  ;;  %v12323_v35 = vadd.f32 %v6232_v39, %v13332_v54  ;;  %6700 = vmatprep.mubr.f32.mxu1 %v1117_v58  ;;  %7925 = vmatprep.mubr.f32.mxu0 %v393_v37  ;;  %v13334_v16 = vld [vmem:[#allocation21_spill] sm:$0xff] }
 0x671   : > { %v6009_v22 = vpop.f32.mrf.mxu1  ;;  %v6234_v30 = vpop.f32.mrf.mxu0  ;;  %v13336_v39 = vld [vmem:[#allocation13_spill] sm:$0xff] }
 0x672   : > { %13331 = vst [vmem:[#allocation28_spill] sm:$0xff] %v12320_v33  ;;  %13333 = vst [vmem:[#allocation20_spill] sm:$0xff] %v12323_v35  ;;  %v1141_v37 = vld [vmem:[%s8469_s7 + $0x1cd0] sm:$0xff]  ;;  %v468_v54 = vld [vmem:[%s8469_s7 + $0x7c8] sm:$0xff] }
 0x673   : > { %v6012_v11 = vpop.f32.mrf.mxu1  ;;  %v6237_v25 = vpop.f32.mrf.mxu0  ;;  %6701 = vmatmul.mubr.f32.gmra.mxu1 %v1116_v57  ;;  %7926 = vmatmul.mubr.f32.gmra.mxu0 %v418_v29  ;;  %v1167_v35 = vld [vmem:[%s8469_s7 + $0x1da0] sm:$0xff]  ;;  %v493_v33 = vld [vmem:[%s8469_s7 + $0x890] sm:$0xff] }
 0x674   : > { %v12330_v38 = vadd.f32 %v6012_v11, %v13334_v16  ;;  %v12333_v58 = vadd.f32 %v6237_v25, %v13336_v39  ;;  %6705 = vmatprep.mubr.f32.mxu1 %v1142_v18  ;;  %7928 = vmatprep.mubr.f32.mxu0 %v443_v63  ;;  %v13338_v11 = vld [vmem:[#allocation22_spill] sm:$0xff] }
 0x675   : > { %v6014_v22 = vpop.f32.mrf.mxu1  ;;  %v6239_v30 = vpop.f32.mrf.mxu0  ;;  %v13340_v25 = vld [vmem:[#allocation14_spill] sm:$0xff] }
 0x676   : > { %13335 = vst [vmem:[#allocation29_spill] sm:$0xff] %v12330_v38  ;;  %13337 = vst [vmem:[#allocation30_spill] sm:$0xff] %v12333_v58  ;;  %v1166_v63 = vld [vmem:[%s8469_s7 + $0x1d98] sm:$0xff]  ;;  %v1192_v58 = vld [vmem:[%s8469_s7 + $0x1e68] sm:$0xff] }
 0x677   : > { %v6017_v57 = vpop.f32.mrf.mxu1  ;;  %v6242_v29 = vpop.f32.mrf.mxu0  ;;  %6706 = vmatmul.mubr.f32.gmra.mxu1 %v1141_v37  ;;  %7929 = vmatmul.mubr.f32.gmra.mxu0 %v468_v54  ;;  %v518_v39 = vld [vmem:[%s8469_s7 + $0x958] sm:$0xff]  ;;  %v543_v38 = vld [vmem:[%s8469_s7 + $0xa20] sm:$0xff] }
 0x678   : > { %v12340_v16 = vadd.f32 %v6017_v57, %v13338_v11  ;;  %v12343_v18 = vadd.f32 %v6242_v29, %v13340_v25  ;;  %6710 = vmatprep.mubr.f32.mxu1 %v1167_v35  ;;  %7931 = vmatprep.mubr.f32.mxu0 %v493_v33  ;;  %v13342_v57 = vld [vmem:[#allocation23_spill] sm:$0xff]  ;;  %v568_v25 = vld [vmem:[%s8469_s7 + $0xae8] sm:$0xff] }
 0x679   : > { %v6019_v22 = vpop.f32.mrf.mxu1  ;;  %v6244_v30 = vpop.f32.mrf.mxu0  ;;  %v13344_v29 = vld [vmem:[#allocation15_spill] sm:$0xff] }
 0x67a   : > { %13339 = vst [vmem:[#allocation12_spill] sm:$0xff] %v12340_v16  ;;  %13341 = vst [vmem:[#allocation21_spill] sm:$0xff] %v12343_v18  ;;  %v1191_v33 = vld [vmem:[%s8469_s7 + $0x1e60] sm:$0xff]  ;;  %v1217_v18 = vld [vmem:[%s8469_s7 + $0x1f30] sm:$0xff] }
 0x67b   : > { %v6022_v37 = vpop.f32.mrf.mxu1  ;;  %v6247_v54 = vpop.f32.mrf.mxu0  ;;  %6711 = vmatmul.mubr.f32.gmra.mxu1 %v1166_v63  ;;  %7932 = vmatmul.mubr.f32.gmra.mxu0 %v518_v39  ;;  %v593_v16 = vld [vmem:[%s8469_s7 + $0xbb0] sm:$0xff] }
 0x67c   : > { %v12350_v11 = vadd.f32 %v6022_v37, %v13342_v57  ;;  %v12353_v35 = vadd.f32 %v6247_v54, %v13344_v29  ;;  %6715 = vmatprep.mubr.f32.mxu1 %v1192_v58  ;;  %7934 = vmatprep.mubr.f32.mxu0 %v543_v38  ;;  %v13346_v37 = vld [vmem:[#allocation24_spill] sm:$0xff]  ;;  %v618_v29 = vld [vmem:[%s8469_s7 + $0xc78] sm:$0xff] }
 0x67d   : > { %v6024_v22 = vpop.f32.mrf.mxu1  ;;  %v6249_v30 = vpop.f32.mrf.mxu0  ;;  %v13347_v54 = vld [vmem:[#allocation16_spill] sm:$0xff] }
 0x67e   : > { %13343 = vst [vmem:[#allocation13_spill] sm:$0xff] %v12350_v11  ;;  %13345 = vst [vmem:[#allocation22_spill] sm:$0xff] %v12353_v35  ;;  %v1216_v38 = vld [vmem:[%s8469_s7 + $0x1f28] sm:$0xff]  ;;  %v1242_v35 = vld [vmem:[%s8469_s7 + $0x1ff8] sm:$0xff] }
 0x67f   : > { %v6027_v63 = vpop.f32.mrf.mxu1  ;;  %v6252_v39 = vpop.f32.mrf.mxu0  ;;  %6716 = vmatmul.mubr.f32.gmra.mxu1 %v1191_v33  ;;  %7935 = vmatmul.mubr.f32.gmra.mxu0 %v568_v25  ;;  %v643_v11 = vld [vmem:[%s8469_s7 + $0xd40] sm:$0xff] }
 0x680   : > { %v12360_v57 = vadd.f32 %v6027_v63, %v13346_v37  ;;  %v12363_v58 = vadd.f32 %v6252_v39, %v13347_v54  ;;  %6720 = vmatprep.mubr.f32.mxu1 %v1217_v18  ;;  %7937 = vmatprep.mubr.f32.mxu0 %v593_v16  ;;  %v1241_v16 = vld [vmem:[%s8469_s7 + $0x1ff0] sm:$0xff]  ;;  %v668_v39 = vld [vmem:[%s8469_s7 + $0xe08] sm:$0xff] }
 0x681   : > { %v6029_v22 = vpop.f32.mrf.mxu1  ;;  %v6254_v30 = vpop.f32.mrf.mxu0 }
 0x682   : > { %v1267_v22 = vld [vmem:[%s8469_s7 + $0x20c0] sm:$0xff]  ;;  %v693_v30 = vld [vmem:[%s8469_s7 + $0xed0] sm:$0xff] }
 0x683   : > { %v6032_v33 = vpop.f32.mrf.mxu1  ;;  %v6257_v25 = vpop.f32.mrf.mxu0  ;;  %6721 = vmatmul.mubr.f32.gmra.mxu1 %v1216_v38  ;;  %7938 = vmatmul.mubr.f32.gmra.mxu0 %v618_v29 }
 0x684   : > { %v12370_v63 = vadd.f32 %v6032_v33, %v12050_v17  ;;  %v12373_v18 = vadd.f32 %v6257_v25, %v12053_v27  ;;  %6725 = vmatprep.mubr.f32.mxu1 %v1242_v35  ;;  %7940 = vmatprep.mubr.f32.mxu0 %v643_v11  ;;  %v1266_v11 = vld [vmem:[%s8469_s7 + $0x20b8] sm:$0xff] }
 0x685   : > { %v6034_v37 = vpop.f32.mrf.mxu1  ;;  %v6259_v54 = vpop.f32.mrf.mxu0  ;;  %v718_v35 = vld [vmem:[%s8469_s7 + $0xf98] sm:$0xff] }
 0x686   : > { %v1292_v37 = vld [vmem:[%s8469_s7 + $0x2188] sm:$0xff]  ;;  %v743_v54 = vld [vmem:[%s8469_s7 + $0x1060] sm:$0xff] }
 0x687   : > { %v6037_v38 = vpop.f32.mrf.mxu1  ;;  %v6262_v29 = vpop.f32.mrf.mxu0  ;;  %6726 = vmatmul.mubr.f32.gmra.mxu1 %v1241_v16  ;;  %7941 = vmatmul.mubr.f32.gmra.mxu0 %v668_v39 }
 0x688   : > { %v12380_v17 = vadd.f32 %v6037_v38, %v12060_v61  ;;  %v12383_v27 = vadd.f32 %v6262_v29, %v12063_v24  ;;  %6730 = vmatprep.mubr.f32.mxu1 %v1267_v22  ;;  %7943 = vmatprep.mubr.f32.mxu0 %v693_v30  ;;  %v1291_v22 = vld [vmem:[%s8469_s7 + $0x2180] sm:$0xff]  ;;  %v768_v30 = vld [vmem:[%s8469_s7 + $0x1128] sm:$0xff] }
 0x689   : > { %v6039_v33 = vpop.f32.mrf.mxu1  ;;  %v6264_v25 = vpop.f32.mrf.mxu0 }
 0x68a   : > { %v1317_v33 = vld [vmem:[%s8469_s7 + $0x2250] sm:$0xff] }
 0x68b   : > { %v6042_v16 = vpop.f32.mrf.mxu1  ;;  %v6267_v39 = vpop.f32.mrf.mxu0  ;;  %6731 = vmatmul.mubr.f32.gmra.mxu1 %v1266_v11  ;;  %7944 = vmatmul.mubr.f32.gmra.mxu0 %v718_v35  ;;  %v793_v25 = vld [vmem:[%s8469_s7 + $0x11f0] sm:$0xff] }
 0x68c   : > { %v12390_v61 = vadd.f32 %v6042_v16, %v12070_v15  ;;  %v12393_v24 = vadd.f32 %v6267_v39, %v12073_v47  ;;  %6735 = vmatprep.mubr.f32.mxu1 %v1292_v37  ;;  %7946 = vmatprep.mubr.f32.mxu0 %v743_v54  ;;  %v1316_v37 = vld [vmem:[%s8469_s7 + $0x2248] sm:$0xff]  ;;  %v818_v54 = vld [vmem:[%s8469_s7 + $0x12b8] sm:$0xff] }
 0x68d   : > { %v6044_v38 = vpop.f32.mrf.mxu1  ;;  %v6269_v29 = vpop.f32.mrf.mxu0 }
 0x68e   : > { %v1342_v38 = vld [vmem:[%s8469_s7 + $0x2318] sm:$0xff]  ;;  %v843_v29 = vld [vmem:[%s8469_s7 + $0x1380] sm:$0xff] }
 0x68f   : > { %v6047_v11 = vpop.f32.mrf.mxu1  ;;  %v6272_v35 = vpop.f32.mrf.mxu0  ;;  %6736 = vmatmul.mubr.f32.gmra.mxu1 %v1291_v22  ;;  %7947 = vmatmul.mubr.f32.gmra.mxu0 %v768_v30 }
 0x690   : > { %v12400_v15 = vadd.f32 %v6047_v11, %v12080_v36  ;;  %v12403_v47 = vadd.f32 %v6272_v35, %v12083_v50  ;;  %6740 = vmatprep.mubr.f32.mxu1 %v1317_v33  ;;  %7949 = vmatprep.mubr.f32.mxu0 %v793_v25  ;;  %v1341_v33 = vld [vmem:[%s8469_s7 + $0x2310] sm:$0xff]  ;;  %v868_v25 = vld [vmem:[%s8469_s7 + $0x1448] sm:$0xff] }
 0x691   : > { %v6049_v16 = vpop.f32.mrf.mxu1  ;;  %v6274_v39 = vpop.f32.mrf.mxu0 }
 0x692   : > { %v1367_v16 = vld [vmem:[%s8469_s7 + $0x23e0] sm:$0xff]  ;;  %v893_v39 = vld [vmem:[%s8469_s7 + $0x1510] sm:$0xff] }
 0x693   : > { %v6052_v22 = vpop.f32.mrf.mxu1  ;;  %v6277_v30 = vpop.f32.mrf.mxu0  ;;  %6741 = vmatmul.mubr.f32.gmra.mxu1 %v1316_v37  ;;  %7950 = vmatmul.mubr.f32.gmra.mxu0 %v818_v54 }
 0x694   : > { %v12410_v36 = vadd.f32 %v6052_v22, %v12090_v48  ;;  %v12413_v50 = vadd.f32 %v6277_v30, %v12093_v12  ;;  %6745 = vmatprep.mubr.f32.mxu1 %v1342_v38  ;;  %7952 = vmatprep.mubr.f32.mxu0 %v843_v29  ;;  %v1366_v38 = vld [vmem:[%s8469_s7 + $0x23d8] sm:$0xff] }
 0x695   : > { %v6054_v11 = vpop.f32.mrf.mxu1  ;;  %v6279_v35 = vpop.f32.mrf.mxu0  ;;  %v918_v29 = vld [vmem:[%s8469_s7 + $0x15d8] sm:$0xff] }
 0x696   : > { %v1392_v11 = vld [vmem:[%s8469_s7 + $0x24a8] sm:$0xff]  ;;  %v943_v35 = vld [vmem:[%s8469_s7 + $0x16a0] sm:$0xff] }
 0x697   : > { %v6057_v37 = vpop.f32.mrf.mxu1  ;;  %v6282_v54 = vpop.f32.mrf.mxu0  ;;  %6746 = vmatmul.mubr.f32.gmra.mxu1 %v1341_v33  ;;  %7953 = vmatmul.mubr.f32.gmra.mxu0 %v868_v25 }
 0x698   : > { %v12420_v48 = vadd.f32 %v6057_v37, %v12100_v4  ;;  %v12423_v12 = vadd.f32 %v6282_v54, %v12103_v9  ;;  %6750 = vmatprep.mubr.f32.mxu1 %v1367_v16  ;;  %7955 = vmatprep.mubr.f32.mxu0 %v893_v39  ;;  %v1391_v16 = vld [vmem:[%s8469_s7 + $0x24a0] sm:$0xff]  ;;  %v968_v39 = vld [vmem:[%s8469_s7 + $0x1768] sm:$0xff] }
 0x699   : > { %v6059_v22 = vpop.f32.mrf.mxu1  ;;  %v6284_v30 = vpop.f32.mrf.mxu0 }
 0x69a   : > { %v1417_v22 = vld [vmem:[%s8469_s7 + $0x2570] sm:$0xff] }
 0x69b   : > { %v6062_v33 = vpop.f32.mrf.mxu1  ;;  %v6287_v25 = vpop.f32.mrf.mxu0  ;;  %6751 = vmatmul.mubr.f32.gmra.mxu1 %v1366_v38  ;;  %7956 = vmatmul.mubr.f32.gmra.mxu0 %v918_v29  ;;  %v993_v30 = vld [vmem:[%s8469_s7 + $0x1830] sm:$0xff] }
 0x69c   : > { %v12430_v4 = vadd.f32 %v6062_v33, %v12110_v52  ;;  %v12433_v9 = vadd.f32 %v6287_v25, %v12113_v46  ;;  %6755 = vmatprep.mubr.f32.mxu1 %v1392_v11  ;;  %7958 = vmatprep.mubr.f32.mxu0 %v943_v35  ;;  %v1416_v11 = vld [vmem:[%s8469_s7 + $0x2568] sm:$0xff]  ;;  %v1018_v35 = vld [vmem:[%s8469_s7 + $0x18f8] sm:$0xff] }
 0x69d   : > { %v6064_v37 = vpop.f32.mrf.mxu1  ;;  %v6289_v54 = vpop.f32.mrf.mxu0 }
 0x69e   : > { %v1442_v37 = vld [vmem:[%s8469_s7 + $0x2638] sm:$0xff]  ;;  %v1043_v54 = vld [vmem:[%s8469_s7 + $0x19c0] sm:$0xff] }
 0x69f   : > { %v6067_v38 = vpop.f32.mrf.mxu1  ;;  %v6292_v29 = vpop.f32.mrf.mxu0  ;;  %6756 = vmatmul.mubr.f32.gmra.mxu1 %v1391_v16  ;;  %7959 = vmatmul.mubr.f32.gmra.mxu0 %v968_v39 }
 0x6a0   : > { %v12440_v52 = vadd.f32 %v6067_v38, %v12120_v28  ;;  %v12443_v46 = vadd.f32 %v6292_v29, %v12123_v60  ;;  %6760 = vmatprep.mubr.f32.mxu1 %v1417_v22  ;;  %7961 = vmatprep.mubr.f32.mxu0 %v993_v30  ;;  %v1441_v22 = vld [vmem:[%s8469_s7 + $0x2630] sm:$0xff]  ;;  %v1068_v30 = vld [vmem:[%s8469_s7 + $0x1a88] sm:$0xff] }
 0x6a1   : > { %v6069_v33 = vpop.f32.mrf.mxu1  ;;  %v6294_v25 = vpop.f32.mrf.mxu0 }
 0x6a2   : > { %v1467_v33 = vld [vmem:[%s8469_s7 + $0x2700] sm:$0xff]  ;;  %v1093_v25 = vld [vmem:[%s8469_s7 + $0x1b50] sm:$0xff] }
 0x6a3   : > { %v6072_v16 = vpop.f32.mrf.mxu1  ;;  %v6297_v39 = vpop.f32.mrf.mxu0  ;;  %6761 = vmatmul.mubr.f32.gmra.mxu1 %v1416_v11  ;;  %7962 = vmatmul.mubr.f32.gmra.mxu0 %v1018_v35 }
 0x6a4   : > { %v12450_v28 = vadd.f32 %v6072_v16, %v12130_v20  ;;  %v12453_v60 = vadd.f32 %v6297_v39, %v12133_v23  ;;  %6765 = vmatprep.mubr.f32.mxu1 %v1442_v37  ;;  %7964 = vmatprep.mubr.f32.mxu0 %v1043_v54  ;;  %v1466_v37 = vld [vmem:[%s8469_s7 + $0x26f8] sm:$0xff] }
 0x6a5   : > { %v6074_v38 = vpop.f32.mrf.mxu1  ;;  %v6299_v29 = vpop.f32.mrf.mxu0  ;;  %v1118_v54 = vld [vmem:[%s8469_s7 + $0x1c18] sm:$0xff] }
 0x6a6   : > { %v1492_v38 = vld [vmem:[%s8469_s7 + $0x27c8] sm:$0xff]  ;;  %v1143_v29 = vld [vmem:[%s8469_s7 + $0x1ce0] sm:$0xff] }
 0x6a7   : > { %v6302_v11 = vpop.f32.mrf.mxu0  ;;  %v6527_v35 = vpop.f32.mrf.mxu1  ;;  %6766 = vmatmul.mubr.f32.gmra.mxu1 %v1441_v22  ;;  %7965 = vmatmul.mubr.f32.gmra.mxu0 %v1068_v30 }
 0x6a8   : > { %v12460_v20 = vadd.f32 %v6302_v11, %v12140_v34  ;;  %v12463_v23 = vadd.f32 %v6527_v35, %v12143_v8  ;;  %6770 = vmatprep.mubr.f32.mxu1 %v1467_v33  ;;  %7967 = vmatprep.mubr.f32.mxu0 %v1093_v25  ;;  %v1491_v33 = vld [vmem:[%s8469_s7 + $0x27c0] sm:$0xff]  ;;  %v1168_v25 = vld [vmem:[%s8469_s7 + $0x1da8] sm:$0xff] }
 0x6a9   : > { %v6304_v16 = vpop.f32.mrf.mxu0  ;;  %v6529_v39 = vpop.f32.mrf.mxu1 }
 0x6aa   : > { %v1517_v16 = vld [vmem:[%s8469_s7 + $0x2890] sm:$0xff] }
 0x6ab   : > { %v6307_v22 = vpop.f32.mrf.mxu0  ;;  %v6532_v30 = vpop.f32.mrf.mxu1  ;;  %6771 = vmatmul.mubr.f32.gmra.mxu1 %v1466_v37  ;;  %7968 = vmatmul.mubr.f32.gmra.mxu0 %v1118_v54  ;;  %v1193_v39 = vld [vmem:[%s8469_s7 + $0x1e70] sm:$0xff] }
 0x6ac   : > { %v12470_v34 = vadd.f32 %v6307_v22, %v12150_v21  ;;  %v12473_v8 = vadd.f32 %v6532_v30, %v12153_v62  ;;  %6775 = vmatprep.mubr.f32.mxu1 %v1492_v38  ;;  %7970 = vmatprep.mubr.f32.mxu0 %v1143_v29  ;;  %v1516_v38 = vld [vmem:[%s8469_s7 + $0x2888] sm:$0xff]  ;;  %v1218_v29 = vld [vmem:[%s8469_s7 + $0x1f38] sm:$0xff] }
 0x6ad   : > { %v6309_v11 = vpop.f32.mrf.mxu0  ;;  %v6534_v35 = vpop.f32.mrf.mxu1 }
 0x6ae   : > { %v1542_v11 = vld [vmem:[%s8469_s7 + $0x2958] sm:$0xff]  ;;  %v1243_v35 = vld [vmem:[%s8469_s7 + $0x2000] sm:$0xff] }
 0x6af   : > { %v6312_v37 = vpop.f32.mrf.mxu0  ;;  %v6537_v54 = vpop.f32.mrf.mxu1  ;;  %6776 = vmatmul.mubr.f32.gmra.mxu1 %v1491_v33  ;;  %7971 = vmatmul.mubr.f32.gmra.mxu0 %v1168_v25 }
 0x6b0   : > { %v12480_v21 = vadd.f32 %v6312_v37, %v12160_v32  ;;  %v12483_v62 = vadd.f32 %v6537_v54, %v12163_v53  ;;  %6780 = vmatprep.mubr.f32.mxu1 %v1517_v16  ;;  %7973 = vmatprep.mubr.f32.mxu0 %v1193_v39  ;;  %v1541_v16 = vld [vmem:[%s8469_s7 + $0x2950] sm:$0xff]  ;;  %v1268_v39 = vld [vmem:[%s8469_s7 + $0x20c8] sm:$0xff] }
 0x6b1   : > { %v6314_v22 = vpop.f32.mrf.mxu0  ;;  %v6539_v30 = vpop.f32.mrf.mxu1 }
 0x6b2   : > { %v1567_v22 = vld [vmem:[%s8469_s7 + $0x2a20] sm:$0xff]  ;;  %v1293_v30 = vld [vmem:[%s8469_s7 + $0x2190] sm:$0xff] }
 0x6b3   : > { %v6317_v33 = vpop.f32.mrf.mxu0  ;;  %v6542_v25 = vpop.f32.mrf.mxu1  ;;  %6781 = vmatmul.mubr.f32.gmra.mxu1 %v1516_v38  ;;  %7974 = vmatmul.mubr.f32.gmra.mxu0 %v1218_v29 }
 0x6b4   : > { %v12490_v32 = vadd.f32 %v6317_v33, %v12170_v40  ;;  %v12493_v53 = vadd.f32 %v6542_v25, %v12173_v5  ;;  %6785 = vmatprep.mubr.f32.mxu1 %v1542_v11  ;;  %7976 = vmatprep.mubr.f32.mxu0 %v1243_v35  ;;  %v1566_v11 = vld [vmem:[%s8469_s7 + $0x2a18] sm:$0xff] }
 0x6b5   : > { %v6319_v37 = vpop.f32.mrf.mxu0  ;;  %v6544_v54 = vpop.f32.mrf.mxu1  ;;  %v1318_v35 = vld [vmem:[%s8469_s7 + $0x2258] sm:$0xff] }
 0x6b6   : > { %v1592_v37 = vld [vmem:[%s8469_s7 + $0x2ae8] sm:$0xff]  ;;  %v1343_v54 = vld [vmem:[%s8469_s7 + $0x2320] sm:$0xff] }
 0x6b7   : > { %v6322_v38 = vpop.f32.mrf.mxu0  ;;  %v6547_v29 = vpop.f32.mrf.mxu1  ;;  %6786 = vmatmul.mubr.f32.gmra.mxu1 %v1541_v16  ;;  %7977 = vmatmul.mubr.f32.gmra.mxu0 %v1268_v39 }
 0x6b8   : > { %v12500_v40 = vadd.f32 %v6322_v38, %v12180_v45  ;;  %v12503_v5 = vadd.f32 %v6547_v29, %v12183_v0  ;;  %6790 = vmatprep.mubr.f32.mxu1 %v1567_v22  ;;  %7979 = vmatprep.mubr.f32.mxu0 %v1293_v30  ;;  %v1591_v22 = vld [vmem:[%s8469_s7 + $0x2ae0] sm:$0xff]  ;;  %v1368_v30 = vld [vmem:[%s8469_s7 + $0x23e8] sm:$0xff] }
 0x6b9   : > { %v6324_v33 = vpop.f32.mrf.mxu0  ;;  %v6549_v25 = vpop.f32.mrf.mxu1 }
 0x6ba   : > { %v1617_v33 = vld [vmem:[%s8469_s7 + $0x2bb0] sm:$0xff] }
 0x6bb   : > { %v6327_v16 = vpop.f32.mrf.mxu0  ;;  %v6552_v39 = vpop.f32.mrf.mxu1  ;;  %6791 = vmatmul.mubr.f32.gmra.mxu1 %v1566_v11  ;;  %7980 = vmatmul.mubr.f32.gmra.mxu0 %v1318_v35  ;;  %v1393_v25 = vld [vmem:[%s8469_s7 + $0x24b0] sm:$0xff] }
 0x6bc   : > { %v12510_v45 = vadd.f32 %v6327_v16, %v12190_v43  ;;  %v12513_v0 = vadd.f32 %v6552_v39, %v12193_v13  ;;  %6795 = vmatprep.mubr.f32.mxu1 %v1592_v37  ;;  %7982 = vmatprep.mubr.f32.mxu0 %v1343_v54  ;;  %v1616_v37 = vld [vmem:[%s8469_s7 + $0x2ba8] sm:$0xff]  ;;  %v1418_v54 = vld [vmem:[%s8469_s7 + $0x2578] sm:$0xff] }
 0x6bd   : > { %v6329_v38 = vpop.f32.mrf.mxu0  ;;  %v6554_v29 = vpop.f32.mrf.mxu1 }
 0x6be   : > { %v1642_v38 = vld [vmem:[%s8469_s7 + $0x2c78] sm:$0xff]  ;;  %v1443_v29 = vld [vmem:[%s8469_s7 + $0x2640] sm:$0xff] }
 0x6bf   : > { %v6332_v11 = vpop.f32.mrf.mxu0  ;;  %v6557_v35 = vpop.f32.mrf.mxu1  ;;  %6796 = vmatmul.mubr.f32.gmra.mxu1 %v1591_v22  ;;  %7983 = vmatmul.mubr.f32.gmra.mxu0 %v1368_v30 }
 0x6c0   : > { %v12520_v43 = vadd.f32 %v6332_v11, %v12200_v49  ;;  %v12523_v13 = vadd.f32 %v6557_v35, %v12203_v59  ;;  %6800 = vmatprep.mubr.f32.mxu1 %v1617_v33  ;;  %7985 = vmatprep.mubr.f32.mxu0 %v1393_v25  ;;  %v1641_v33 = vld [vmem:[%s8469_s7 + $0x2c70] sm:$0xff]  ;;  %v1468_v25 = vld [vmem:[%s8469_s7 + $0x2708] sm:$0xff] }
 0x6c1   : > { %v6334_v16 = vpop.f32.mrf.mxu0  ;;  %v6559_v39 = vpop.f32.mrf.mxu1 }
 0x6c2   : > { %13348 = vst [vmem:[#allocation14_spill] sm:$0xff] %v12520_v43  ;;  %v1667_v16 = vld [vmem:[%s8469_s7 + $0x2d40] sm:$0xff]  ;;  %v1493_v39 = vld [vmem:[%s8469_s7 + $0x27d0] sm:$0xff] }
 0x6c3   : > { %v6337_v22 = vpop.f32.mrf.mxu0  ;;  %v6562_v30 = vpop.f32.mrf.mxu1  ;;  %6801 = vmatmul.mubr.f32.gmra.mxu1 %v1616_v37  ;;  %7986 = vmatmul.mubr.f32.gmra.mxu0 %v1418_v54  ;;  %v1643_v43 = vld [vmem:[%s8469_s7 + $0x2c80] sm:$0xff] }
 0x6c4   : > { %v12530_v49 = vadd.f32 %v6337_v22, %v12210_v56  ;;  %v12533_v59 = vadd.f32 %v6562_v30, %v12213_v31  ;;  %6805 = vmatprep.mubr.f32.mxu1 %v1642_v38  ;;  %7988 = vmatprep.mubr.f32.mxu0 %v1443_v29  ;;  %v1666_v38 = vld [vmem:[%s8469_s7 + $0x2d38] sm:$0xff] }
 0x6c5   : > { %v6339_v11 = vpop.f32.mrf.mxu0  ;;  %v6564_v35 = vpop.f32.mrf.mxu1  ;;  %v1518_v29 = vld [vmem:[%s8469_s7 + $0x2898] sm:$0xff] }
 0x6c6   : > { %13349 = vst [vmem:[#allocation23_spill] sm:$0xff] %v12530_v49  ;;  %v1692_v11 = vld [vmem:[%s8469_s7 + $0x2e08] sm:$0xff]  ;;  %v1543_v35 = vld [vmem:[%s8469_s7 + $0x2960] sm:$0xff] }
 0x6c7   : > { %v6342_v37 = vpop.f32.mrf.mxu0  ;;  %v6567_v54 = vpop.f32.mrf.mxu1  ;;  %6806 = vmatmul.mubr.f32.gmra.mxu1 %v1641_v33  ;;  %7989 = vmatmul.mubr.f32.gmra.mxu0 %v1468_v25 }
 0x6c8   : > { %v12540_v56 = vadd.f32 %v6342_v37, %v12220_v41  ;;  %v12543_v31 = vadd.f32 %v6567_v54, %v12223_v3  ;;  %6810 = vmatprep.mubr.f32.mxu1 %v1667_v16  ;;  %7991 = vmatprep.mubr.f32.mxu0 %v1493_v39  ;;  %v13352_v3 = vld [vmem:[#allocation25_spill] sm:$0xff]  ;;  %v1691_v39 = vld [vmem:[%s8469_s7 + $0x2e00] sm:$0xff] }
 0x6c9   : > { %v6344_v22 = vpop.f32.mrf.mxu0  ;;  %v6569_v30 = vpop.f32.mrf.mxu1  ;;  %v1568_v37 = vld [vmem:[%s8469_s7 + $0x2a28] sm:$0xff] }
 0x6ca   : > { %13350 = vst [vmem:[#allocation15_spill] sm:$0xff] %v12540_v56  ;;  %v1717_v30 = vld [vmem:[%s8469_s7 + $0x2ed0] sm:$0xff] }
 0x6cb   : > { %v6347_v33 = vpop.f32.mrf.mxu0  ;;  %v6572_v25 = vpop.f32.mrf.mxu1  ;;  %6811 = vmatmul.mubr.f32.gmra.mxu1 %v1666_v38  ;;  %7992 = vmatmul.mubr.f32.gmra.mxu0 %v1518_v29  ;;  %v1593_v56 = vld [vmem:[%s8469_s7 + $0x2af0] sm:$0xff] }
 0x6cc   : > { %v12550_v41 = vadd.f32 %v6347_v33, %v12230_v51  ;;  %v12553_v16 = vadd.f32 %v6572_v25, %v13352_v3  ;;  %6815 = vmatprep.mubr.f32.mxu1 %v1692_v11  ;;  %7994 = vmatprep.mubr.f32.mxu0 %v1543_v35  ;;  %v13353_v51 = vld [vmem:[#allocation17_spill] sm:$0xff]  ;;  %v13355_v25 = vld [vmem:[#allocation26_spill] sm:$0xff] }
 0x6cd   : > { %v6349_v54 = vpop.f32.mrf.mxu0  ;;  %v6574_v22 = vpop.f32.mrf.mxu1  ;;  %v1716_v35 = vld [vmem:[%s8469_s7 + $0x2ec8] sm:$0xff]  ;;  %v1618_v3 = vld [vmem:[%s8469_s7 + $0x2bb8] sm:$0xff] }
 0x6ce   : > { %13351 = vst [vmem:[#allocation24_spill] sm:$0xff] %v12550_v41  ;;  %v1742_v41 = vld [vmem:[%s8469_s7 + $0x2f98] sm:$0xff] }
 0x6cf   : > { %v6352_v38 = vpop.f32.mrf.mxu0  ;;  %v6577_v29 = vpop.f32.mrf.mxu1  ;;  %6816 = vmatmul.mubr.f32.gmra.mxu1 %v1691_v39  ;;  %7995 = vmatmul.mubr.f32.gmra.mxu0 %v1568_v37 }
 0x6d0   : > { %v12560_v33 = vadd.f32 %v6352_v38, %v13353_v51  ;;  %v12563_v11 = vadd.f32 %v6577_v29, %v13355_v25  ;;  %6820 = vmatprep.mubr.f32.mxu1 %v1717_v30  ;;  %7997 = vmatprep.mubr.f32.mxu0 %v1593_v56  ;;  %v13357_v29 = vld [vmem:[#allocation18_spill] sm:$0xff]  ;;  %v1668_v51 = vld [vmem:[%s8469_s7 + $0x2d48] sm:$0xff] }
 0x6d1   : > { %v6354_v54 = vpop.f32.mrf.mxu0  ;;  %v6579_v22 = vpop.f32.mrf.mxu1  ;;  %v1741_v56 = vld [vmem:[%s8469_s7 + $0x2f90] sm:$0xff] }
 0x6d2   : > { %13354 = vst [vmem:[#allocation16_spill] sm:$0xff] %v12560_v33  ;;  %v1767_v22 = vld [vmem:[%s8469_s7 + $0x3060] sm:$0xff]  ;;  %v1693_v33 = vld [vmem:[%s8469_s7 + $0x2e10] sm:$0xff] }
 0x6d3   : > { %v6357_v39 = vpop.f32.mrf.mxu0  ;;  %v6582_v37 = vpop.f32.mrf.mxu1  ;;  %6821 = vmatmul.mubr.f32.gmra.mxu1 %v1716_v35  ;;  %7998 = vmatmul.mubr.f32.gmra.mxu0 %v1618_v3 }
 0x6d4   : > { %v12570_v38 = vadd.f32 %v6357_v39, %v12250_v26  ;;  %v12573_v30 = vadd.f32 %v6582_v37, %v13357_v29  ;;  %6825 = vmatprep.mubr.f32.mxu1 %v1742_v41  ;;  %8000 = vmatprep.mubr.f32.mxu0 %v1643_v43  ;;  %v1766_v43 = vld [vmem:[%s8469_s7 + $0x3058] sm:$0xff] }
 0x6d5   : > { %v6359_v25 = vpop.f32.mrf.mxu0  ;;  %v6584_v54 = vpop.f32.mrf.mxu1  ;;  %v1718_v39 = vld [vmem:[%s8469_s7 + $0x2ed8] sm:$0xff] }
 0x6d6   : > { %13356 = vst [vmem:[#allocation25_spill] sm:$0xff] %v12570_v38  ;;  %v1792_v25 = vld [vmem:[%s8469_s7 + $0x3128] sm:$0xff]  ;;  %v1743_v54 = vld [vmem:[%s8469_s7 + $0x2fa0] sm:$0xff] }
 0x6d7   : > { %v6362_v35 = vpop.f32.mrf.mxu0  ;;  %v6587_v3 = vpop.f32.mrf.mxu1  ;;  %6826 = vmatmul.mubr.f32.gmra.mxu1 %v1741_v56  ;;  %8001 = vmatmul.mubr.f32.gmra.mxu0 %v1668_v51 }
 0x6d8   : > { %v12580_v26 = vadd.f32 %v6362_v35, %v12260_v19  ;;  %v12583_v41 = vadd.f32 %v6587_v3, %v12263_v10  ;;  %6830 = vmatprep.mubr.f32.mxu1 %v1767_v22  ;;  %8003 = vmatprep.mubr.f32.mxu0 %v1693_v33  ;;  %v13360_v10 = vld [vmem:[#allocation27_spill] sm:$0xff]  ;;  %v1768_v35 = vld [vmem:[%s8469_s7 + $0x3068] sm:$0xff] }
 0x6d9   : > { %v6364_v37 = vpop.f32.mrf.mxu0  ;;  %v6589_v29 = vpop.f32.mrf.mxu1  ;;  %v1791_v33 = vld [vmem:[%s8469_s7 + $0x3120] sm:$0xff] }
 0x6da   : > { %13358 = vst [vmem:[#allocation17_spill] sm:$0xff] %v12580_v26  ;;  %v1817_v29 = vld [vmem:[%s8469_s7 + $0x31f0] sm:$0xff] }
 0x6db   : > { %v6367_v56 = vpop.f32.mrf.mxu0  ;;  %v6592_v51 = vpop.f32.mrf.mxu1  ;;  %6831 = vmatmul.mubr.f32.gmra.mxu1 %v1766_v43  ;;  %8004 = vmatmul.mubr.f32.gmra.mxu0 %v1718_v39  ;;  %v1793_v26 = vld [vmem:[%s8469_s7 + $0x3130] sm:$0xff]  ;;  %v1816_v39 = vld [vmem:[%s8469_s7 + $0x31e8] sm:$0xff] }
 0x6dc   : > { %v12590_v19 = vadd.f32 %v6367_v56, %v12270_v55  ;;  %v12593_v22 = vadd.f32 %v6592_v51, %v13360_v10  ;;  %6835 = vmatprep.mubr.f32.mxu1 %v1792_v25  ;;  %8006 = vmatprep.mubr.f32.mxu0 %v1743_v54  ;;  %v1818_v25 = vld [vmem:[%s8469_s7 + $0x31f8] sm:$0xff] }
 0x6dd   : > { %v6369_v3 = vpop.f32.mrf.mxu0  ;;  %v6594_v37 = vpop.f32.mrf.mxu1 }
 0x6de   : > { %13359 = vst [vmem:[#allocation26_spill] sm:$0xff] %v12590_v19  ;;  %v13374_v19 = vld [vmem:[#allocation13_spill] sm:$0xff] }
 0x6df   : > { %v6372_v38 = vpop.f32.mrf.mxu0  ;;  %v6597_v49 = vpop.f32.mrf.mxu1  ;;  %6836 = vmatmul.mubr.f32.gmra.mxu1 %v1791_v33  ;;  %8007 = vmatmul.mubr.f32.gmra.mxu0 %v1768_v35 }
 0x6e0   : > { %v12600_v55 = vadd.f32 %v6372_v38, %v12280_v2  ;;  %v12603_v43 = vadd.f32 %v6597_v49, %v12283_v44  ;;  %6840 = vmatprep.mubr.f32.mxu1 %v1817_v29  ;;  %8009 = vmatprep.mubr.f32.mxu0 %v1793_v26 }
 0x6e1   : > { %v6374_v54 = vpop.f32.mrf.mxu0  ;;  %v6599_v56 = vpop.f32.mrf.mxu1 }
 0x6e2   : > { %13361 = vst [vmem:[#allocation18_spill] sm:$0xff] %v12600_v55  ;;  %v13365_v54 = vld [vmem:[#allocation19_spill] sm:$0xff]  ;;  %v13369_v55 = vld [vmem:[#allocation29_spill] sm:$0xff] }
 0x6e3   : > { %v6377_v51 = vpop.f32.mrf.mxu0  ;;  %v6602_v10 = vpop.f32.mrf.mxu1  ;;  %6841 = vmatmul.mubr.f32.gmra.mxu1 %v1816_v39  ;;  %8010 = vmatmul.mubr.f32.gmra.mxu0 %v1818_v25 }
 0x6e4   : > { %v12608_v3 = vadd.f32 %v6377_v51, %v12290_v6  ;;  %v12611_v33 = vadd.f32 %v6602_v10, %v12293_v7 }
 0x6e5   : > { %v6379_v2 = vpop.f32.mrf.mxu0  ;;  %v6604_v38 = vpop.f32.mrf.mxu1 }
 0x6e6   : > { %13362 = vst [vmem:[#allocation27_spill] sm:$0xff] %v12608_v3  ;;  %v13366_v38 = vld [vmem:[#allocation28_spill] sm:$0xff] }
 0x6e7   : > { %v6382_v44 = vpop.f32.mrf.mxu0  ;;  %v6607_v49 = vpop.f32.mrf.mxu1  ;;  %v13372_v3 = vld [vmem:[#allocation12_spill] sm:$0xff] }
 0x6e8   : > { %v12614_v26 = vadd.f32 %v6382_v44, %v12300_v1  ;;  %v12617_v35 = vadd.f32 %v6607_v49, %v12303_v42  ;;  %v13368_v44 = vld [vmem:[#allocation20_spill] sm:$0xff] }
 0x6e9   : > { %v6384_v37 = vpop.f32.mrf.mxu0  ;;  %v6609_v29 = vpop.f32.mrf.mxu1 }
 0x6ea   : > { %13363 = vst [vmem:[#allocation31_spill] sm:$0xff] %v12614_v26 }
 0x6eb   : > { %v6387_v39 = vpop.f32.mrf.mxu0  ;;  %v6612_v25 = vpop.f32.mrf.mxu1 }
 0x6ec   : > { %v12620_v6 = vadd.f32 %v6387_v39, %v12310_v14  ;;  %v12623_v7 = vadd.f32 %v6612_v25, %v13365_v54  ;;  %v13371_v39 = vld [vmem:[#allocation30_spill] sm:$0xff] }
 0x6ed   : > { %v6389_v56 = vpop.f32.mrf.mxu0  ;;  %v6614_v51 = vpop.f32.mrf.mxu1 }
 0x6ee   : > { %13364 = vst [vmem:[#allocation32_spill] sm:$0xff] %v12620_v6 }
 0x6ef   : > { %v6392_v10 = vpop.f32.mrf.mxu0  ;;  %v6617_v2 = vpop.f32.mrf.mxu1 }
 0x6f0   : > { %v12626_v1 = vadd.f32 %v6392_v10, %v13366_v38  ;;  %v12629_v42 = vadd.f32 %v6617_v2, %v13368_v44  ;;  %v13373_v38 = vld [vmem:[#allocation21_spill] sm:$0xff] }
 0x6f1   : > { %v6394_v49 = vpop.f32.mrf.mxu0  ;;  %v6619_v37 = vpop.f32.mrf.mxu1 }
 0x6f2   : > { %13367 = vst [vmem:[#allocation19_spill] sm:$0xff] %v12626_v1 }
 0x6f3   : > { %v6397_v29 = vpop.f32.mrf.mxu0  ;;  %v6622_v26 = vpop.f32.mrf.mxu1 }
 0x6f4   : > { %v12632_v14 = vadd.f32 %v6397_v29, %v13369_v55  ;;  %v12635_v25 = vadd.f32 %v6622_v26, %v13371_v39  ;;  %v13375_v29 = vld [vmem:[#allocation22_spill] sm:$0xff] }
 0x6f5   : > { %v6399_v54 = vpop.f32.mrf.mxu0  ;;  %v6624_v56 = vpop.f32.mrf.mxu1 }
 0x6f6   : > { %13370 = vst [vmem:[#allocation28_spill] sm:$0xff] %v12632_v14 }
 0x6f7   : > { %v6402_v51 = vpop.f32.mrf.mxu0  ;;  %v6627_v6 = vpop.f32.mrf.mxu1 }
 0x6f8   : > { %v12638_v10 = vadd.f32 %v6402_v51, %v13372_v3  ;;  %v12641_v2 = vadd.f32 %v6627_v6, %v13373_v38 }
 0x6f9   : > { %v6404_v44 = vpop.f32.mrf.mxu0  ;;  %v6629_v49 = vpop.f32.mrf.mxu1 }
 0x6fb   : > { %v6407_v37 = vpop.f32.mrf.mxu0  ;;  %v6632_v1 = vpop.f32.mrf.mxu1 }
 0x6fc   : > { %v12644_v55 = vadd.f32 %v6407_v37, %v13374_v19  ;;  %v12647_v26 = vadd.f32 %v6632_v1, %v13375_v29 }
 0x6fd   : > { %v6409_v39 = vpop.f32.mrf.mxu0  ;;  %v6634_v54 = vpop.f32.mrf.mxu1 }
 0x6ff   : > { %v6412_v56 = vpop.f32.mrf.mxu0  ;;  %v6637_v14 = vpop.f32.mrf.mxu1 }
 0x700   : > { %v12650_v3 = vadd.f32 %v6412_v56, %v12360_v57  ;;  %v12653_v6 = vadd.f32 %v6637_v14, %v12363_v58 }
 0x701   : > { %v6414_v51 = vpop.f32.mrf.mxu0  ;;  %v6639_v38 = vpop.f32.mrf.mxu1 }
 0x703   : > { %v6417_v44 = vpop.f32.mrf.mxu0  ;;  %v6642_v49 = vpop.f32.mrf.mxu1 }
 0x704   : > { %v12656_v19 = vadd.f32 %v6417_v44, %v12370_v63  ;;  %v12659_v1 = vadd.f32 %v6642_v49, %v12373_v18 }
 0x705   : > { %v6419_v37 = vpop.f32.mrf.mxu0  ;;  %v6644_v29 = vpop.f32.mrf.mxu1 }
 0x707   : > { %v6422_v39 = vpop.f32.mrf.mxu0  ;;  %v6647_v54 = vpop.f32.mrf.mxu1 }
 0x708   : > { %v12662_v57 = vadd.f32 %v6422_v39, %v12380_v17  ;;  %v12665_v58 = vadd.f32 %v6647_v54, %v12383_v27 }
 0x709   : > { %v6424_v14 = vpop.f32.mrf.mxu0  ;;  %v6649_v56 = vpop.f32.mrf.mxu1 }
 0x70b   : > { %v6427_v51 = vpop.f32.mrf.mxu0  ;;  %v6652_v38 = vpop.f32.mrf.mxu1 }
 0x70c   : > { %v12668_v63 = vadd.f32 %v6427_v51, %v12390_v61  ;;  %v12671_v18 = vadd.f32 %v6652_v38, %v12393_v24 }
 0x70d   : > { %v6429_v44 = vpop.f32.mrf.mxu0  ;;  %v6654_v49 = vpop.f32.mrf.mxu1 }
 0x70f   : > { %v6432_v37 = vpop.f32.mrf.mxu0  ;;  %v6657_v29 = vpop.f32.mrf.mxu1 }
 0x710   : > { %v12674_v17 = vadd.f32 %v6432_v37, %v12400_v15  ;;  %v12677_v27 = vadd.f32 %v6657_v29, %v12403_v47 }
 0x711   : > { %v6434_v39 = vpop.f32.mrf.mxu0  ;;  %v6659_v54 = vpop.f32.mrf.mxu1 }
 0x713   : > { %v6437_v14 = vpop.f32.mrf.mxu0  ;;  %v6662_v56 = vpop.f32.mrf.mxu1 }
 0x714   : > { %v12680_v61 = vadd.f32 %v6437_v14, %v12410_v36  ;;  %v12683_v24 = vadd.f32 %v6662_v56, %v12413_v50 }
 0x715   : > { %v6439_v51 = vpop.f32.mrf.mxu0  ;;  %v6664_v38 = vpop.f32.mrf.mxu1 }
 0x717   : > { %v6442_v44 = vpop.f32.mrf.mxu0  ;;  %v6667_v49 = vpop.f32.mrf.mxu1 }
 0x718   : > { %v12686_v15 = vadd.f32 %v6442_v44, %v12420_v48  ;;  %v12689_v47 = vadd.f32 %v6667_v49, %v12423_v12 }
 0x719   : > { %v6444_v37 = vpop.f32.mrf.mxu0  ;;  %v6669_v29 = vpop.f32.mrf.mxu1 }
 0x71b   : > { %v6447_v39 = vpop.f32.mrf.mxu0  ;;  %v6672_v54 = vpop.f32.mrf.mxu1 }
 0x71c   : > { %v12692_v36 = vadd.f32 %v6447_v39, %v12430_v4  ;;  %v12695_v50 = vadd.f32 %v6672_v54, %v12433_v9 }
 0x71d   : > { %v6449_v14 = vpop.f32.mrf.mxu0  ;;  %v6674_v56 = vpop.f32.mrf.mxu1 }
 0x71f   : > { %v6452_v51 = vpop.f32.mrf.mxu0  ;;  %v6677_v38 = vpop.f32.mrf.mxu1 }
 0x720   : > { %v12698_v48 = vadd.f32 %v6452_v51, %v12440_v52  ;;  %v12701_v12 = vadd.f32 %v6677_v38, %v12443_v46 }
 0x721   : > { %v6454_v44 = vpop.f32.mrf.mxu0  ;;  %v6679_v49 = vpop.f32.mrf.mxu1 }
 0x722   : > { %13376 = vst [vmem:[#allocation20_spill] sm:$0xff] %v12698_v48 }
 0x723   : > { %v6457_v37 = vpop.f32.mrf.mxu0  ;;  %v12703_v29 = vpop.f32.mrf.mxu1 }
 0x724   : > { %v12706_v4 = vadd.f32 %v6457_v37, %v12450_v28  ;;  %v8315_v37 = vmov 0.5  }
 0x725   : > { %v6459_v9 = vpop.f32.mrf.mxu0  ;;  %v6684_v39 = vpop.f32.mrf.mxu1 }
 0x727   : > { %v6687_v54 = vpop.f32.mrf.mxu1  ;;  %v7918_v14 = vpop.f32.mrf.mxu0 }
 0x728   : > { %v12709_v56 = vadd.f32 %v6687_v54, %v12460_v20  ;;  %v6918_v52 = vadd.f32 %v7918_v14, %v12473_v8 }
 0x729   : > { %v6689_v46 = vpop.f32.mrf.mxu1  ;;  %v6912_v51 = vpop.f32.mrf.mxu0 }
 0x72a   : > { %v7735_v38 = vadd.f32 -0.5, %v6918_v52  ;;  %v6913_v44 = vadd.f32 %v6912_v51, %v12463_v23 }
 0x72b   : > { %v12714_v49 = vpop.f32.mrf.mxu1  ;;  %v7921_v48 = vpop.f32.mrf.mxu0 }
 0x72c   : > { %vm7296_vm0 = vcmp.gt.f32.partialorder %v7735_v38, 0.0  ;;  %vm7360_vm1 = vcmp.lt.f32.partialorder %v7735_v38, 0.0  ;;  %v7734_v28 = vadd.f32 -0.5, %v6913_v44  ;;  %v6928_v20 = vadd.f32 %v7921_v48, %v12493_v53 }
 0x72d   : > { %v7424_v9 = vsel %vm7360_vm1, 0.0, %v8315_v37  ;;  %v6694_v39 = vpop.f32.mrf.mxu1  ;;  %v6922_v54 = vpop.f32.mrf.mxu0 }
 0x72e   : > { %v7488_v8 = vsel %vm7296_vm0, 1.0, %v7424_v9  ;;  %vm7295_vm2 = vcmp.gt.f32.partialorder %v7734_v28, 0.0  ;;  %vm7359_vm3 = vcmp.lt.f32.partialorder %v7734_v28, 0.0  ;;  %v6923_v14 = vadd.f32 %v6922_v54, %v12483_v62 }
 0x72f   : > { %7552 = vst [vmem:[%s12719_s20 + $0x8] sm:$0xff] %v7488_v8  ;;  %v7423_v23 = vsel %vm7359_vm3, 0.0, %v8315_v37  ;;  %v7737_v52 = vadd.f32 -0.5, %v6928_v20  ;;  %v12723_v46 = vpop.f32.mrf.mxu1  ;;  %v7924_v51 = vpop.f32.mrf.mxu0 }
 0x730   : > { %v7487_v38 = vsel %vm7295_vm2, 1.0, %v7423_v23  ;;  %v7736_v53 = vadd.f32 -0.5, %v6923_v14  ;;  %v6938_v48 = vadd.f32 %v7924_v51, %v12513_v0 }
 0x731   : > { %7551 = vst [vmem:[%s12719_s20] sm:$0xff] %v7487_v38  ;;  %vm7298_vm4 = vcmp.gt.f32.partialorder %v7737_v52, 0.0  ;;  %vm7362_vm5 = vcmp.lt.f32.partialorder %v7737_v52, 0.0  ;;  %v6699_v62 = vpop.f32.mrf.mxu1  ;;  %v6932_v44 = vpop.f32.mrf.mxu0 }
 0x732   : > { %v7426_v28 = vsel %vm7362_vm5, 0.0, %v8315_v37  ;;  %vm7297_vm6 = vcmp.gt.f32.partialorder %v7736_v53, 0.0  ;;  %vm7361_vm7 = vcmp.lt.f32.partialorder %v7736_v53, 0.0  ;;  %v7739_v9 = vadd.f32 -0.5, %v6938_v48 }
 0x733   : > { %v7490_v20 = vsel %vm7298_vm4, 1.0, %v7426_v28  ;;  %v7425_v39 = vsel %vm7361_vm7, 0.0, %v8315_v37  ;;  %v6933_v54 = vadd.f32 %v6932_v44, %v12503_v5  ;;  %v12730_v8 = vpop.f32.mrf.mxu1  ;;  %v7927_v0 = vpop.f32.mrf.mxu0 }
 0x734   : > { %7554 = vst [vmem:[%s12719_s20 + $0x18] sm:$0xff] %v7490_v20  ;;  %v7489_v14 = vsel %vm7297_vm6, 1.0, %v7425_v39  ;;  %vm7300_vm8 = vcmp.gt.f32.partialorder %v7739_v9, 0.0  ;;  %vm7364_vm9 = vcmp.lt.f32.partialorder %v7739_v9, 0.0  ;;  %v6948_v51 = vadd.f32 %v7927_v0, %v12533_v59 }
 0x735   : > { %7553 = vst [vmem:[%s12719_s20 + $0x10] sm:$0xff] %v7489_v14  ;;  %v7428_v23 = vsel %vm7364_vm9, 0.0, %v8315_v37  ;;  %v7738_v52 = vadd.f32 -0.5, %v6933_v54  ;;  %v6704_v38 = vpop.f32.mrf.mxu1  ;;  %v6942_v53 = vpop.f32.mrf.mxu0 }
 0x736   : > { %v7492_v48 = vsel %vm7300_vm8, 1.0, %v7428_v23  ;;  %v6943_v62 = vadd.f32 %v6942_v53, %v12523_v13  ;;  %v7741_v5 = vadd.f32 -0.5, %v6948_v51 }
 0x737   : > { %7556 = vst [vmem:[%s12719_s20 + $0x28] sm:$0xff] %v7492_v48  ;;  %vm7299_vm10 = vcmp.gt.f32.partialorder %v7738_v52, 0.0  ;;  %vm7363_vm11 = vcmp.lt.f32.partialorder %v7738_v52, 0.0  ;;  %v12738_v44 = vpop.f32.mrf.mxu1  ;;  %v7930_v28 = vpop.f32.mrf.mxu0 }
 0x738   : > { %v7427_v9 = vsel %vm7363_vm11, 0.0, %v8315_v37  ;;  %v7740_v20 = vadd.f32 -0.5, %v6943_v62  ;;  %v6958_v39 = vadd.f32 %v7930_v28, %v12553_v16  ;;  %vm7302_vm12 = vcmp.gt.f32.partialorder %v7741_v5, 0.0 }
 0x739   : > { %v7491_v59 = vsel %vm7299_vm10, 1.0, %v7427_v9  ;;  %vm7366_vm13 = vcmp.lt.f32.partialorder %v7741_v5, 0.0  ;;  %v6709_v54 = vpop.f32.mrf.mxu1  ;;  %v6952_v0 = vpop.f32.mrf.mxu0 }
 0x73a   : > { %7555 = vst [vmem:[%s12719_s20 + $0x20] sm:$0xff] %v7491_v59  ;;  %v7430_v13 = vsel %vm7366_vm13, 0.0, %v8315_v37  ;;  %vm7301_vm14 = vcmp.gt.f32.partialorder %v7740_v20, 0.0  ;;  %vm7365_vm15 = vcmp.lt.f32.partialorder %v7740_v20, 0.0  ;;  %v7743_v14 = vadd.f32 -0.5, %v6958_v39 }
 0x73b   : > { %v7494_v23 = vsel %vm7302_vm12, 1.0, %v7430_v13  ;;  %v7429_v52 = vsel %vm7365_vm15, 0.0, %v8315_v37  ;;  %v6953_v51 = vadd.f32 %v6952_v0, %v12543_v31  ;;  %v12746_v16 = vpop.f32.mrf.mxu1  ;;  %v7933_v38 = vpop.f32.mrf.mxu0 }
 0x73c   : > { %7558 = vst [vmem:[%s12719_s20 + $0x38] sm:$0xff] %v7494_v23  ;;  %v7493_v53 = vsel %vm7301_vm14, 1.0, %v7429_v52  ;;  %vm7304_vm0 = vcmp.gt.f32.partialorder %v7743_v14, 0.0  ;;  %vm7368_vm1 = vcmp.lt.f32.partialorder %v7743_v14, 0.0  ;;  %v6968_v5 = vadd.f32 %v7933_v38, %v12573_v30 }
 0x73d   : > { %7557 = vst [vmem:[%s12719_s20 + $0x30] sm:$0xff] %v7493_v53  ;;  %v7432_v48 = vsel %vm7368_vm1, 0.0, %v8315_v37  ;;  %v7742_v62 = vadd.f32 -0.5, %v6953_v51  ;;  %v6714_v28 = vpop.f32.mrf.mxu1  ;;  %v6962_v9 = vpop.f32.mrf.mxu0 }
 0x73e   : > { %v7496_v20 = vsel %vm7304_vm0, 1.0, %v7432_v48  ;;  %v6963_v39 = vadd.f32 %v6962_v9, %v12563_v11  ;;  %v7745_v31 = vadd.f32 -0.5, %v6968_v5 }
 0x73f   : > { %7560 = vst [vmem:[%s12719_s20 + $0x48] sm:$0xff] %v7496_v20  ;;  %vm7303_vm2 = vcmp.gt.f32.partialorder %v7742_v62, 0.0  ;;  %vm7367_vm3 = vcmp.lt.f32.partialorder %v7742_v62, 0.0  ;;  %v12754_v59 = vpop.f32.mrf.mxu1  ;;  %v7936_v54 = vpop.f32.mrf.mxu0 }
 0x740   : > { %v7431_v0 = vsel %vm7367_vm3, 0.0, %v8315_v37  ;;  %v7744_v13 = vadd.f32 -0.5, %v6963_v39  ;;  %v6978_v14 = vadd.f32 %v7936_v54, %v12593_v22  ;;  %vm7306_vm4 = vcmp.gt.f32.partialorder %v7745_v31, 0.0 }
 0x741   : > { %v7495_v30 = vsel %vm7303_vm2, 1.0, %v7431_v0  ;;  %vm7370_vm5 = vcmp.lt.f32.partialorder %v7745_v31, 0.0  ;;  %v6719_v23 = vpop.f32.mrf.mxu1  ;;  %v6972_v52 = vpop.f32.mrf.mxu0 }
 0x742   : > { %7559 = vst [vmem:[%s12719_s20 + $0x40] sm:$0xff] %v7495_v30  ;;  %v7434_v11 = vsel %vm7370_vm5, 0.0, %v8315_v37  ;;  %vm7305_vm6 = vcmp.gt.f32.partialorder %v7744_v13, 0.0  ;;  %vm7369_vm7 = vcmp.lt.f32.partialorder %v7744_v13, 0.0  ;;  %v7747_v51 = vadd.f32 -0.5, %v6978_v14 }
 0x743   : > { %v7498_v38 = vsel %vm7306_vm4, 1.0, %v7434_v11  ;;  %v7433_v53 = vsel %vm7369_vm7, 0.0, %v8315_v37  ;;  %v6973_v48 = vadd.f32 %v6972_v52, %v12583_v41  ;;  %v12762_v22 = vpop.f32.mrf.mxu1  ;;  %v7939_v62 = vpop.f32.mrf.mxu0 }
 0x744   : > { %7562 = vst [vmem:[%s12719_s20 + $0x58] sm:$0xff] %v7498_v38  ;;  %v7497_v5 = vsel %vm7305_vm6, 1.0, %v7433_v53  ;;  %vm7308_vm8 = vcmp.gt.f32.partialorder %v7747_v51, 0.0  ;;  %vm7372_vm9 = vcmp.lt.f32.partialorder %v7747_v51, 0.0  ;;  %v6988_v20 = vadd.f32 %v7939_v62, %v12611_v33 }
 0x745   : > { %7561 = vst [vmem:[%s12719_s20 + $0x50] sm:$0xff] %v7497_v5  ;;  %v7436_v28 = vsel %vm7372_vm9, 0.0, %v8315_v37  ;;  %v7746_v9 = vadd.f32 -0.5, %v6973_v48  ;;  %v6724_v39 = vpop.f32.mrf.mxu1  ;;  %v6982_v31 = vpop.f32.mrf.mxu0 }
 0x746   : > { %v7500_v54 = vsel %vm7308_vm8, 1.0, %v7436_v28  ;;  %v6983_v0 = vadd.f32 %v6982_v31, %v12603_v43  ;;  %v7749_v41 = vadd.f32 -0.5, %v6988_v20 }
 0x747   : > { %7564 = vst [vmem:[%s12719_s20 + $0x68] sm:$0xff] %v7500_v54  ;;  %vm7307_vm10 = vcmp.gt.f32.partialorder %v7746_v9, 0.0  ;;  %vm7371_vm11 = vcmp.lt.f32.partialorder %v7746_v9, 0.0  ;;  %v12770_v13 = vpop.f32.mrf.mxu1  ;;  %v7942_v14 = vpop.f32.mrf.mxu0 }
 0x748   : > { %v7435_v30 = vsel %vm7371_vm11, 0.0, %v8315_v37  ;;  %v7748_v23 = vadd.f32 -0.5, %v6983_v0  ;;  %v6998_v52 = vadd.f32 %v7942_v14, %v12623_v7  ;;  %vm7310_vm12 = vcmp.gt.f32.partialorder %v7749_v41, 0.0 }
 0x749   : > { %v7499_v33 = vsel %vm7307_vm10, 1.0, %v7435_v30  ;;  %vm7374_vm13 = vcmp.lt.f32.partialorder %v7749_v41, 0.0  ;;  %v6729_v11 = vpop.f32.mrf.mxu1  ;;  %v6992_v51 = vpop.f32.mrf.mxu0 }
 0x74a   : > { %7563 = vst [vmem:[%s12719_s20 + $0x60] sm:$0xff] %v7499_v33  ;;  %v7438_v43 = vsel %vm7374_vm13, 0.0, %v8315_v37  ;;  %vm7309_vm14 = vcmp.gt.f32.partialorder %v7748_v23, 0.0  ;;  %vm7373_vm15 = vcmp.lt.f32.partialorder %v7748_v23, 0.0  ;;  %v7751_v38 = vadd.f32 -0.5, %v6998_v52 }
 0x74b   : > { %v7502_v53 = vsel %vm7310_vm12, 1.0, %v7438_v43  ;;  %v7437_v48 = vsel %vm7373_vm15, 0.0, %v8315_v37  ;;  %v6993_v62 = vadd.f32 %v6992_v51, %v12617_v35  ;;  %v12778_v7 = vpop.f32.mrf.mxu1  ;;  %v7945_v5 = vpop.f32.mrf.mxu0 }
 0x74c   : > { %7566 = vst [vmem:[%s12719_s20 + $0x78] sm:$0xff] %v7502_v53  ;;  %v7501_v28 = vsel %vm7309_vm14, 1.0, %v7437_v48  ;;  %vm7312_vm0 = vcmp.gt.f32.partialorder %v7751_v38, 0.0  ;;  %vm7376_vm1 = vcmp.lt.f32.partialorder %v7751_v38, 0.0  ;;  %v7008_v39 = vadd.f32 %v7945_v5, %v12635_v25 }
 0x74d   : > { %7565 = vst [vmem:[%s12719_s20 + $0x70] sm:$0xff] %v7501_v28  ;;  %v7440_v9 = vsel %vm7376_vm1, 0.0, %v8315_v37  ;;  %v7750_v20 = vadd.f32 -0.5, %v6993_v62  ;;  %v6734_v31 = vpop.f32.mrf.mxu1  ;;  %v7002_v54 = vpop.f32.mrf.mxu0 }
 0x74e   : > { %v7504_v0 = vsel %vm7312_vm0, 1.0, %v7440_v9  ;;  %v7003_v41 = vadd.f32 %v7002_v54, %v12629_v42  ;;  %v7753_v35 = vadd.f32 -0.5, %v7008_v39 }
 0x74f   : > { %7568 = vst [vmem:[%s12719_s20 + $0x88] sm:$0xff] %v7504_v0  ;;  %vm7311_vm2 = vcmp.gt.f32.partialorder %v7750_v20, 0.0  ;;  %vm7375_vm3 = vcmp.lt.f32.partialorder %v7750_v20, 0.0  ;;  %v12786_v14 = vpop.f32.mrf.mxu1  ;;  %v7948_v30 = vpop.f32.mrf.mxu0 }
 0x750   : > { %v7439_v23 = vsel %vm7375_vm3, 0.0, %v8315_v37  ;;  %v7752_v52 = vadd.f32 -0.5, %v7003_v41  ;;  %v7018_v33 = vadd.f32 %v7948_v30, %v12647_v26  ;;  %vm7314_vm4 = vcmp.gt.f32.partialorder %v7753_v35, 0.0 }
 0x751   : > { %v7503_v25 = vsel %vm7311_vm2, 1.0, %v7439_v23  ;;  %vm7378_vm5 = vcmp.lt.f32.partialorder %v7753_v35, 0.0  ;;  %v6739_v11 = vpop.f32.mrf.mxu1  ;;  %v7012_v51 = vpop.f32.mrf.mxu0 }
 0x752   : > { %7567 = vst [vmem:[%s12719_s20 + $0x80] sm:$0xff] %v7503_v25  ;;  %v7442_v42 = vsel %vm7378_vm5, 0.0, %v8315_v37  ;;  %vm7313_vm6 = vcmp.gt.f32.partialorder %v7752_v52, 0.0  ;;  %vm7377_vm7 = vcmp.lt.f32.partialorder %v7752_v52, 0.0  ;;  %v7755_v43 = vadd.f32 -0.5, %v7018_v33 }
 0x753   : > { %v7506_v38 = vsel %vm7314_vm4, 1.0, %v7442_v42  ;;  %v7441_v53 = vsel %vm7377_vm7, 0.0, %v8315_v37  ;;  %v7013_v48 = vadd.f32 %v7012_v51, %v12641_v2  ;;  %v12794_v26 = vpop.f32.mrf.mxu1  ;;  %v7951_v62 = vpop.f32.mrf.mxu0 }
 0x754   : > { %7570 = vst [vmem:[%s12719_s20 + $0x98] sm:$0xff] %v7506_v38  ;;  %v7505_v5 = vsel %vm7313_vm6, 1.0, %v7441_v53  ;;  %vm7316_vm8 = vcmp.gt.f32.partialorder %v7755_v43, 0.0  ;;  %vm7380_vm9 = vcmp.lt.f32.partialorder %v7755_v43, 0.0  ;;  %v7028_v20 = vadd.f32 %v7951_v62, %v12659_v1 }
 0x755   : > { %7569 = vst [vmem:[%s12719_s20 + $0x90] sm:$0xff] %v7505_v5  ;;  %v7444_v28 = vsel %vm7380_vm9, 0.0, %v8315_v37  ;;  %v7754_v9 = vadd.f32 -0.5, %v7013_v48  ;;  %v6744_v39 = vpop.f32.mrf.mxu1  ;;  %v7022_v31 = vpop.f32.mrf.mxu0 }
 0x756   : > { %v7508_v54 = vsel %vm7316_vm8, 1.0, %v7444_v28  ;;  %v7023_v0 = vadd.f32 %v7022_v31, %v12653_v6  ;;  %v7757_v2 = vadd.f32 -0.5, %v7028_v20 }
 0x757   : > { %7572 = vst [vmem:[%s12719_s20 + $0xa8] sm:$0xff] %v7508_v54  ;;  %vm7315_vm10 = vcmp.gt.f32.partialorder %v7754_v9, 0.0  ;;  %vm7379_vm11 = vcmp.lt.f32.partialorder %v7754_v9, 0.0  ;;  %v12802_v41 = vpop.f32.mrf.mxu1  ;;  %v7954_v35 = vpop.f32.mrf.mxu0 }
 0x758   : > { %v7443_v30 = vsel %vm7379_vm11, 0.0, %v8315_v37  ;;  %v7756_v23 = vadd.f32 -0.5, %v7023_v0  ;;  %v7038_v52 = vadd.f32 %v7954_v35, %v12671_v18  ;;  %vm7318_vm12 = vcmp.gt.f32.partialorder %v7757_v2, 0.0 }
 0x759   : > { %v7507_v1 = vsel %vm7315_vm10, 1.0, %v7443_v30  ;;  %vm7382_vm13 = vcmp.lt.f32.partialorder %v7757_v2, 0.0  ;;  %v6749_v33 = vpop.f32.mrf.mxu1  ;;  %v7032_v25 = vpop.f32.mrf.mxu0 }
 0x75a   : > { %7571 = vst [vmem:[%s12719_s20 + $0xa0] sm:$0xff] %v7507_v1  ;;  %v7446_v6 = vsel %vm7382_vm13, 0.0, %v8315_v37  ;;  %vm7317_vm14 = vcmp.gt.f32.partialorder %v7756_v23, 0.0  ;;  %vm7381_vm15 = vcmp.lt.f32.partialorder %v7756_v23, 0.0  ;;  %v7759_v11 = vadd.f32 -0.5, %v7038_v52 }
 0x75b   : > { %v7510_v51 = vsel %vm7318_vm12, 1.0, %v7446_v6  ;;  %v7445_v42 = vsel %vm7381_vm15, 0.0, %v8315_v37  ;;  %v7033_v43 = vadd.f32 %v7032_v25, %v12665_v58  ;;  %v12810_v18 = vpop.f32.mrf.mxu1  ;;  %v7957_v38 = vpop.f32.mrf.mxu0  ;;  %v6683_v1 = vadd.f32 %v12703_v29, %v12453_v60 }
 0x75c   : > { %7574 = vst [vmem:[%s12719_s20 + $0xb8] sm:$0xff] %v7510_v51  ;;  %v7509_v53 = vsel %vm7317_vm14, 1.0, %v7445_v42  ;;  %vm7320_vm0 = vcmp.gt.f32.partialorder %v7759_v11, 0.0  ;;  %vm7384_vm1 = vcmp.lt.f32.partialorder %v7759_v11, 0.0  ;;  %v7048_v5 = vadd.f32 %v7957_v38, %v12683_v24 }
 0x75d   : > { %7573 = vst [vmem:[%s12719_s20 + $0xb0] sm:$0xff] %v7509_v53  ;;  %v7448_v48 = vsel %vm7384_vm1, 0.0, %v8315_v37  ;;  %v7758_v62 = vadd.f32 -0.5, %v7033_v43  ;;  %v6754_v28 = vpop.f32.mrf.mxu1  ;;  %v7042_v9 = vpop.f32.mrf.mxu0  ;;  %v6693_v29 = vadd.f32 %v12714_v49, %v12470_v34 }
 0x75e   : > { %v7512_v20 = vsel %vm7320_vm0, 1.0, %v7448_v48  ;;  %v7043_v39 = vadd.f32 %v7042_v9, %v12677_v27  ;;  %v7761_v58 = vadd.f32 -0.5, %v7048_v5 }
 0x75f   : > { %7576 = vst [vmem:[%s12719_s20 + $0xc8] sm:$0xff] %v7512_v20  ;;  %vm7319_vm2 = vcmp.gt.f32.partialorder %v7758_v62, 0.0  ;;  %vm7383_vm3 = vcmp.lt.f32.partialorder %v7758_v62, 0.0  ;;  %v12818_v31 = vpop.f32.mrf.mxu1  ;;  %v7960_v54 = vpop.f32.mrf.mxu0 }
 0x760   : > { %v7447_v0 = vsel %vm7383_vm3, 0.0, %v8315_v37  ;;  %v7760_v2 = vadd.f32 -0.5, %v7043_v39  ;;  %v7058_v35 = vadd.f32 %v7960_v54, %v12695_v50  ;;  %vm7322_vm4 = vcmp.gt.f32.partialorder %v7761_v58, 0.0 }
 0x761   : > { %v7511_v30 = vsel %vm7319_vm2, 1.0, %v7447_v0  ;;  %vm7386_vm5 = vcmp.lt.f32.partialorder %v7761_v58, 0.0  ;;  %v6759_v24 = vpop.f32.mrf.mxu1  ;;  %v7052_v23 = vpop.f32.mrf.mxu0  ;;  %v6703_v0 = vadd.f32 %v12730_v8, %v12490_v32 }
 0x762   : > { %7575 = vst [vmem:[%s12719_s20 + $0xc0] sm:$0xff] %v7511_v30  ;;  %v7450_v27 = vsel %vm7386_vm5, 0.0, %v8315_v37  ;;  %vm7321_vm6 = vcmp.gt.f32.partialorder %v7760_v2, 0.0  ;;  %vm7385_vm7 = vcmp.lt.f32.partialorder %v7760_v2, 0.0  ;;  %v7763_v52 = vadd.f32 -0.5, %v7058_v35 }
 0x763   : > { %v7514_v33 = vsel %vm7322_vm4, 1.0, %v7450_v27  ;;  %v7449_v25 = vsel %vm7385_vm7, 0.0, %v8315_v37  ;;  %v7053_v50 = vadd.f32 %v7052_v23, %v12689_v47  ;;  %v12828_v6 = vpop.f32.mrf.mxu1  ;;  %v7963_v11 = vpop.f32.mrf.mxu0  ;;  %v6698_v27 = vadd.f32 %v12723_v46, %v12480_v21 }
 0x764   : > { %7578 = vst [vmem:[%s12719_s20 + $0xd8] sm:$0xff] %v7514_v33  ;;  %v7513_v51 = vsel %vm7321_vm6, 1.0, %v7449_v25  ;;  %vm7324_vm8 = vcmp.gt.f32.partialorder %v7763_v52, 0.0  ;;  %vm7388_vm9 = vcmp.lt.f32.partialorder %v7763_v52, 0.0  ;;  %v7068_v38 = vadd.f32 %v7963_v11, %v6683_v1 }
 0x765   : > { %7577 = vst [vmem:[%s12719_s20 + $0xd0] sm:$0xff] %v7513_v51  ;;  %v7452_v42 = vsel %vm7388_vm9, 0.0, %v8315_v37  ;;  %v7762_v43 = vadd.f32 -0.5, %v7053_v50  ;;  %v6764_v53 = vpop.f32.mrf.mxu1  ;;  %v7062_v60 = vpop.f32.mrf.mxu0 }
 0x766   : > { %v7516_v48 = vsel %vm7324_vm8, 1.0, %v7452_v42  ;;  %v7063_v47 = vadd.f32 %v7062_v60, %v12701_v12  ;;  %v7765_v62 = vadd.f32 -0.5, %v7068_v38  ;;  %v6708_v53 = vadd.f32 %v12738_v44, %v12500_v40 }
 0x767   : > { %7580 = vst [vmem:[%s12719_s20 + $0xe8] sm:$0xff] %v7516_v48  ;;  %vm7323_vm10 = vcmp.gt.f32.partialorder %v7762_v43, 0.0  ;;  %vm7387_vm11 = vcmp.lt.f32.partialorder %v7762_v43, 0.0  ;;  %v12837_v5 = vpop.f32.mrf.mxu1  ;;  %v7966_v28 = vpop.f32.mrf.mxu0 }
 0x768   : > { %v7451_v9 = vsel %vm7387_vm11, 0.0, %v8315_v37  ;;  %v7764_v20 = vadd.f32 -0.5, %v7063_v47  ;;  %v7078_v39 = vadd.f32 %v7966_v28, %v6693_v29  ;;  %vm7326_vm12 = vcmp.gt.f32.partialorder %v7765_v62, 0.0  ;;  %v13377_v47 = vld [vmem:[#allocation23_spill] sm:$0xff] }
 0x769   : > { %v7515_v58 = vsel %vm7323_vm10, 1.0, %v7451_v9  ;;  %vm7390_vm13 = vcmp.lt.f32.partialorder %v7765_v62, 0.0  ;;  %v6769_v34 = vpop.f32.mrf.mxu1  ;;  %v7072_v49 = vpop.f32.mrf.mxu0  ;;  %v6723_v62 = vadd.f32 %v12762_v22, %v13377_v47 }
 0x76a   : > { %7579 = vst [vmem:[%s12719_s20 + $0xe0] sm:$0xff] %v7515_v58  ;;  %v7454_v12 = vsel %vm7390_vm13, 0.0, %v8315_v37  ;;  %vm7325_vm14 = vcmp.gt.f32.partialorder %v7764_v20, 0.0  ;;  %vm7389_vm15 = vcmp.lt.f32.partialorder %v7764_v20, 0.0  ;;  %v7767_v54 = vadd.f32 -0.5, %v7078_v39  ;;  %v13378_v39 = vld [vmem:[#allocation14_spill] sm:$0xff] }
 0x76b   : > { %v7518_v2 = vsel %vm7326_vm12, 1.0, %v7454_v12  ;;  %v7453_v35 = vsel %vm7389_vm15, 0.0, %v8315_v37  ;;  %v7073_v30 = vadd.f32 %v7072_v49, %v12709_v56  ;;  %v12846_v24 = vpop.f32.mrf.mxu1  ;;  %v7969_v23 = vpop.f32.mrf.mxu0  ;;  %v6713_v56 = vadd.f32 %v12746_v16, %v12510_v45 }
 0x76c   : > { %7582 = vst [vmem:[%s12719_s20 + $0xf8] sm:$0xff] %v7518_v2  ;;  %v7517_v52 = vsel %vm7325_vm14, 1.0, %v7453_v35  ;;  %vm7328_vm0 = vcmp.gt.f32.partialorder %v7767_v54, 0.0  ;;  %vm7392_vm1 = vcmp.lt.f32.partialorder %v7767_v54, 0.0  ;;  %v7088_v8 = vadd.f32 %v7969_v23, %v6703_v0  ;;  %v13379_v2 = vld [vmem:[#allocation24_spill] sm:$0xff] }
 0x76d   : > { %7581 = vst [vmem:[%s12719_s20 + $0xf0] sm:$0xff] %v7517_v52  ;;  %v7456_v1 = vsel %vm7392_vm1, 0.0, %v8315_v37  ;;  %v7766_v32 = vadd.f32 -0.5, %v7073_v30  ;;  %v6774_v33 = vpop.f32.mrf.mxu1  ;;  %v7082_v25 = vpop.f32.mrf.mxu0  ;;  %v6718_v58 = vadd.f32 %v12754_v59, %v13378_v39  ;;  %v6733_v35 = vadd.f32 %v12778_v7, %v13379_v2 }
 0x76e   : > { %v7520_v50 = vsel %vm7328_vm0, 1.0, %v7456_v1  ;;  %v7083_v11 = vadd.f32 %v7082_v25, %v6698_v27  ;;  %v7769_v21 = vadd.f32 -0.5, %v7088_v8  ;;  %v13380_v33 = vld [vmem:[#allocation15_spill] sm:$0xff] }
 0x76f   : > { %7584 = vst [vmem:[%s12719_s20 + $0x108] sm:$0xff] %v7520_v50  ;;  %vm7327_vm2 = vcmp.gt.f32.partialorder %v7766_v32, 0.0  ;;  %vm7391_vm3 = vcmp.lt.f32.partialorder %v7766_v32, 0.0  ;;  %v12856_v46 = vpop.f32.mrf.mxu1  ;;  %v7972_v51 = vpop.f32.mrf.mxu0  ;;  %v6728_v25 = vadd.f32 %v12770_v13, %v13380_v33 }
 0x770   : > { %v7455_v42 = vsel %vm7391_vm3, 0.0, %v8315_v37  ;;  %v7768_v43 = vadd.f32 -0.5, %v7083_v11  ;;  %v7098_v38 = vadd.f32 %v7972_v51, %v6713_v56  ;;  %vm7330_vm4 = vcmp.gt.f32.partialorder %v7769_v21, 0.0  ;;  %v13381_v51 = vld [vmem:[#allocation25_spill] sm:$0xff] }
 0x771   : > { %v7519_v60 = vsel %vm7327_vm2, 1.0, %v7455_v42  ;;  %vm7394_vm5 = vcmp.lt.f32.partialorder %v7769_v21, 0.0  ;;  %v6779_v45 = vpop.f32.mrf.mxu1  ;;  %v7092_v16 = vpop.f32.mrf.mxu0  ;;  %v6743_v42 = vadd.f32 %v12794_v26, %v13381_v51 }
 0x772   : > { %7583 = vst [vmem:[%s12719_s20 + $0x100] sm:$0xff] %v7519_v60  ;;  %v7458_v29 = vsel %vm7394_vm5, 0.0, %v8315_v37  ;;  %vm7329_vm6 = vcmp.gt.f32.partialorder %v7768_v43, 0.0  ;;  %vm7393_vm7 = vcmp.lt.f32.partialorder %v7768_v43, 0.0  ;;  %v7771_v48 = vadd.f32 -0.5, %v7098_v38  ;;  %v13382_v45 = vld [vmem:[#allocation16_spill] sm:$0xff] }
 0x773   : > { %v7522_v28 = vsel %vm7330_vm4, 1.0, %v7458_v29  ;;  %v7457_v9 = vsel %vm7393_vm7, 0.0, %v8315_v37  ;;  %v7093_v40 = vadd.f32 %v7092_v16, %v6708_v53  ;;  %v12866_v44 = vpop.f32.mrf.mxu1  ;;  %v7975_v20 = vpop.f32.mrf.mxu0  ;;  %v6738_v16 = vadd.f32 %v12786_v14, %v13382_v45 }
 0x774   : > { %7586 = vst [vmem:[%s12719_s20 + $0x118] sm:$0xff] %v7522_v28  ;;  %v7521_v34 = vsel %vm7329_vm6, 1.0, %v7457_v9  ;;  %vm7332_vm8 = vcmp.gt.f32.partialorder %v7771_v48, 0.0  ;;  %vm7396_vm9 = vcmp.lt.f32.partialorder %v7771_v48, 0.0  ;;  %v7108_v22 = vadd.f32 %v7975_v20, %v6723_v62  ;;  %v13383_v9 = vld [vmem:[#allocation26_spill] sm:$0xff] }
 0x775   : > { %7585 = vst [vmem:[%s12719_s20 + $0x110] sm:$0xff] %v7521_v34  ;;  %v7460_v49 = vsel %vm7396_vm9, 0.0, %v8315_v37  ;;  %v7770_v12 = vadd.f32 -0.5, %v7093_v40  ;;  %v6784_v54 = vpop.f32.mrf.mxu1  ;;  %v7102_v0 = vpop.f32.mrf.mxu0  ;;  %v6753_v40 = vadd.f32 %v12810_v18, %v13383_v9 }
 0x776   : > { %v7524_v30 = vsel %vm7332_vm8, 1.0, %v7460_v49  ;;  %v7103_v23 = vadd.f32 %v7102_v0, %v6718_v58  ;;  %v7773_v59 = vadd.f32 -0.5, %v7108_v22  ;;  %v13384_v54 = vld [vmem:[#allocation17_spill] sm:$0xff] }
 0x777   : > { %7588 = vst [vmem:[%s12719_s20 + $0x128] sm:$0xff] %v7524_v30  ;;  %vm7331_vm10 = vcmp.gt.f32.partialorder %v7770_v12, 0.0  ;;  %vm7395_vm11 = vcmp.lt.f32.partialorder %v7770_v12, 0.0  ;;  %v12876_v27 = vpop.f32.mrf.mxu1  ;;  %v7978_v52 = vpop.f32.mrf.mxu0  ;;  %v6748_v0 = vadd.f32 %v12802_v41, %v13384_v54 }
 0x778   : > { %v7459_v1 = vsel %vm7395_vm11, 0.0, %v8315_v37  ;;  %v7772_v32 = vadd.f32 -0.5, %v7103_v23  ;;  %v7118_v8 = vadd.f32 %v7978_v52, %v6733_v35  ;;  %vm7334_vm12 = vcmp.gt.f32.partialorder %v7773_v59, 0.0 }
 0x779   : > { %v7523_v56 = vsel %vm7331_vm10, 1.0, %v7459_v1  ;;  %vm7398_vm13 = vcmp.lt.f32.partialorder %v7773_v59, 0.0  ;;  %v6789_v7 = vpop.f32.mrf.mxu1  ;;  %v7112_v50 = vpop.f32.mrf.mxu0  ;;  %v13385_v59 = vld [vmem:[#allocation27_spill] sm:$0xff] }
 0x77a   : > { %7587 = vst [vmem:[%s12719_s20 + $0x120] sm:$0xff] %v7523_v56  ;;  %v7462_v11 = vsel %vm7398_vm13, 0.0, %v8315_v37  ;;  %vm7333_vm14 = vcmp.gt.f32.partialorder %v7772_v32, 0.0  ;;  %vm7397_vm15 = vcmp.lt.f32.partialorder %v7772_v32, 0.0  ;;  %v7775_v21 = vadd.f32 -0.5, %v7118_v8 }
 0x77b   : > { %v7526_v43 = vsel %vm7334_vm12, 1.0, %v7462_v11  ;;  %v7461_v38 = vsel %vm7397_vm15, 0.0, %v8315_v37  ;;  %v7113_v13 = vadd.f32 %v7112_v50, %v6728_v25  ;;  %v12886_v53 = vpop.f32.mrf.mxu1  ;;  %v7981_v60 = vpop.f32.mrf.mxu0  ;;  %v6763_v52 = vadd.f32 %v12828_v6, %v13385_v59  ;;  %v13386_v25 = vld [vmem:[#allocation18_spill] sm:$0xff] }
 0x77c   : > { %7590 = vst [vmem:[%s12719_s20 + $0x138] sm:$0xff] %v7526_v43  ;;  %v7525_v29 = vsel %vm7333_vm14, 1.0, %v7461_v38  ;;  %vm7336_vm0 = vcmp.gt.f32.partialorder %v7775_v21, 0.0  ;;  %vm7400_vm1 = vcmp.lt.f32.partialorder %v7775_v21, 0.0  ;;  %v7128_v26 = vadd.f32 %v7981_v60, %v6743_v42  ;;  %v13387_v42 = vld [vmem:[#allocation32_spill] sm:$0xff] }
 0x77d   : > { %7589 = vst [vmem:[%s12719_s20 + $0x130] sm:$0xff] %v7525_v29  ;;  %v7464_v48 = vsel %vm7400_vm1, 0.0, %v8315_v37  ;;  %v7774_v47 = vadd.f32 -0.5, %v7113_v13  ;;  %v6794_v62 = vpop.f32.mrf.mxu1  ;;  %v7122_v28 = vpop.f32.mrf.mxu0  ;;  %v6758_v56 = vadd.f32 %v12818_v31, %v13386_v25  ;;  %v6773_v43 = vadd.f32 %v12846_v24, %v13387_v42 }
 0x77e   : > { %v7528_v20 = vsel %vm7336_vm0, 1.0, %v7464_v48  ;;  %v7123_v39 = vadd.f32 %v7122_v28, %v6738_v16  ;;  %v7777_v14 = vadd.f32 -0.5, %v7128_v26 }
 0x77f   : > { %7592 = vst [vmem:[%s12719_s20 + $0x148] sm:$0xff] %v7528_v20  ;;  %vm7335_vm2 = vcmp.gt.f32.partialorder %v7774_v47, 0.0  ;;  %vm7399_vm3 = vcmp.lt.f32.partialorder %v7774_v47, 0.0  ;;  %v12896_v58 = vpop.f32.mrf.mxu1  ;;  %v7984_v34 = vpop.f32.mrf.mxu0  ;;  %v13388_v47 = vld [vmem:[#allocation31_spill] sm:$0xff]  ;;  %v13389_v20 = vld [vmem:[#allocation28_spill] sm:$0xff] }
 0x780   : > { %v7463_v49 = vsel %vm7399_vm3, 0.0, %v8315_v37  ;;  %v7776_v12 = vadd.f32 -0.5, %v7123_v39  ;;  %v7138_v22 = vadd.f32 %v7984_v34, %v6753_v40  ;;  %vm7338_vm4 = vcmp.gt.f32.partialorder %v7777_v14, 0.0 }
 0x781   : > { %v7527_v2 = vsel %vm7335_vm2, 1.0, %v7463_v49  ;;  %vm7402_vm5 = vcmp.lt.f32.partialorder %v7777_v14, 0.0  ;;  %v6799_v18 = vpop.f32.mrf.mxu1  ;;  %v7132_v35 = vpop.f32.mrf.mxu0  ;;  %v6768_v26 = vadd.f32 %v12837_v5, %v13388_v47  ;;  %v6783_v39 = vadd.f32 %v12866_v44, %v13389_v20 }
 0x782   : > { %7591 = vst [vmem:[%s12719_s20 + $0x140] sm:$0xff] %v7527_v2  ;;  %v7466_v30 = vsel %vm7402_vm5, 0.0, %v8315_v37  ;;  %vm7337_vm6 = vcmp.gt.f32.partialorder %v7776_v12, 0.0  ;;  %vm7401_vm7 = vcmp.lt.f32.partialorder %v7776_v12, 0.0  ;;  %v7779_v23 = vadd.f32 -0.5, %v7138_v22  ;;  %v13390_v22 = vld [vmem:[#allocation19_spill] sm:$0xff] }
 0x783   : > { %v7530_v1 = vsel %vm7338_vm4, 1.0, %v7466_v30  ;;  %v7465_v32 = vsel %vm7401_vm7, 0.0, %v8315_v37  ;;  %v7133_v41 = vadd.f32 %v7132_v35, %v6748_v0  ;;  %v12906_v8 = vpop.f32.mrf.mxu1  ;;  %v7987_v33 = vpop.f32.mrf.mxu0  ;;  %v6778_v54 = vadd.f32 %v12856_v46, %v13390_v22 }
 0x784   : > { %7594 = vst [vmem:[%s12719_s20 + $0x158] sm:$0xff] %v7530_v1  ;;  %v7529_v7 = vsel %vm7337_vm6, 1.0, %v7465_v32  ;;  %vm7340_vm8 = vcmp.gt.f32.partialorder %v7779_v23, 0.0  ;;  %vm7404_vm9 = vcmp.lt.f32.partialorder %v7779_v23, 0.0  ;;  %v7148_v6 = vadd.f32 %v7987_v33, %v6763_v52 }
 0x785   : > { %7593 = vst [vmem:[%s12719_s20 + $0x150] sm:$0xff] %v7529_v7  ;;  %v7468_v50 = vsel %vm7404_vm9, 0.0, %v8315_v37  ;;  %v7778_v11 = vadd.f32 -0.5, %v7133_v41  ;;  %v6804_v21 = vpop.f32.mrf.mxu1  ;;  %v7142_v51 = vpop.f32.mrf.mxu0  ;;  %v6793_v23 = vadd.f32 %v12886_v53, %v12644_v55 }
 0x786   : > { %v7532_v38 = vsel %vm7340_vm8, 1.0, %v7468_v50  ;;  %v7143_v13 = vadd.f32 %v7142_v51, %v6758_v56  ;;  %v7781_v31 = vadd.f32 -0.5, %v7148_v6  ;;  %v6788_v56 = vadd.f32 %v12876_v27, %v12638_v10 }
 0x787   : > { %7596 = vst [vmem:[%s12719_s20 + $0x168] sm:$0xff] %v7532_v38  ;;  %vm7339_vm10 = vcmp.gt.f32.partialorder %v7778_v11, 0.0  ;;  %vm7403_vm11 = vcmp.lt.f32.partialorder %v7778_v11, 0.0  ;;  %v12916_v60 = vpop.f32.mrf.mxu1  ;;  %v7990_v45 = vpop.f32.mrf.mxu0  ;;  %v6803_v6 = vadd.f32 %v12906_v8, %v12656_v19 }
 0x788   : > { %v7467_v16 = vsel %vm7403_vm11, 0.0, %v8315_v37  ;;  %v7780_v29 = vadd.f32 -0.5, %v7143_v13  ;;  %v7158_v48 = vadd.f32 %v7990_v45, %v6773_v43  ;;  %vm7342_vm12 = vcmp.gt.f32.partialorder %v7781_v31, 0.0 }
 0x789   : > { %v7531_v62 = vsel %vm7339_vm10, 1.0, %v7467_v16  ;;  %vm7406_vm13 = vcmp.lt.f32.partialorder %v7781_v31, 0.0  ;;  %v6809_v24 = vpop.f32.mrf.mxu1  ;;  %v7152_v28 = vpop.f32.mrf.mxu0  ;;  %v6798_v43 = vadd.f32 %v12896_v58, %v12650_v3 }
 0x78a   : > { %7595 = vst [vmem:[%s12719_s20 + $0x160] sm:$0xff] %v7531_v62  ;;  %v7470_v9 = vsel %vm7406_vm13, 0.0, %v8315_v37  ;;  %vm7341_vm14 = vcmp.gt.f32.partialorder %v7780_v29, 0.0  ;;  %vm7405_vm15 = vcmp.lt.f32.partialorder %v7780_v29, 0.0  ;;  %v7783_v40 = vadd.f32 -0.5, %v7158_v48 }
 0x78b   : > { %v7534_v14 = vsel %vm7342_vm12, 1.0, %v7470_v9  ;;  %v7469_v34 = vsel %vm7405_vm15, 0.0, %v8315_v37  ;;  %v7153_v5 = vadd.f32 %v7152_v28, %v6768_v26  ;;  %v6812_v49 = vpop.f32.mrf.mxu1  ;;  %v7993_v12 = vpop.f32.mrf.mxu0  ;;  %v6808_v28 = vadd.f32 %v12916_v60, %v12662_v57 }
 0x78c   : > { %7598 = vst [vmem:[%s12719_s20 + $0x178] sm:$0xff] %v7534_v14  ;;  %v7533_v0 = vsel %vm7341_vm14, 1.0, %v7469_v34  ;;  %vm7344_vm0 = vcmp.gt.f32.partialorder %v7783_v40, 0.0  ;;  %vm7408_vm1 = vcmp.lt.f32.partialorder %v7783_v40, 0.0  ;;  %v7168_v35 = vadd.f32 %v7993_v12, %v6783_v39 }
 0x78d   : > { %7597 = vst [vmem:[%s12719_s20 + $0x170] sm:$0xff] %v7533_v0  ;;  %v7472_v2 = vsel %vm7408_vm1, 0.0, %v8315_v37  ;;  %v7782_v18 = vadd.f32 -0.5, %v7153_v5  ;;  %v6814_v44 = vpop.f32.mrf.mxu1  ;;  %v7162_v30 = vpop.f32.mrf.mxu0  ;;  %v6813_v16 = vadd.f32 %v6812_v49, %v12668_v63 }
 0x78e   : > { %v7536_v59 = vsel %vm7344_vm0, 1.0, %v7472_v2  ;;  %v7163_v52 = vadd.f32 %v7162_v30, %v6778_v54  ;;  %v7785_v46 = vadd.f32 -0.5, %v7168_v35 }
 0x78f   : > { %7600 = vst [vmem:[%s12719_s20 + $0x188] sm:$0xff] %v7536_v59  ;;  %vm7343_vm2 = vcmp.gt.f32.partialorder %v7782_v18, 0.0  ;;  %vm7407_vm3 = vcmp.lt.f32.partialorder %v7782_v18, 0.0  ;;  %v6817_v1 = vpop.f32.mrf.mxu1  ;;  %v7996_v32 = vpop.f32.mrf.mxu0 }
 0x790   : > { %v7471_v41 = vsel %vm7407_vm3, 0.0, %v8315_v37  ;;  %v7784_v33 = vadd.f32 -0.5, %v7163_v52  ;;  %v7178_v25 = vadd.f32 %v7996_v32, %v6793_v23  ;;  %vm7346_vm4 = vcmp.gt.f32.partialorder %v7785_v46, 0.0 }
 0x791   : > { %v7535_v7 = vsel %vm7343_vm2, 1.0, %v7471_v41  ;;  %vm7410_vm5 = vcmp.lt.f32.partialorder %v7785_v46, 0.0  ;;  %v6819_v55 = vpop.f32.mrf.mxu1  ;;  %v7172_v53 = vpop.f32.mrf.mxu0  ;;  %v6818_v12 = vadd.f32 %v6817_v1, %v12674_v17 }
 0x792   : > { %7599 = vst [vmem:[%s12719_s20 + $0x180] sm:$0xff] %v7535_v7  ;;  %v7474_v50 = vsel %vm7410_vm5, 0.0, %v8315_v37  ;;  %vm7345_vm6 = vcmp.gt.f32.partialorder %v7784_v33, 0.0  ;;  %vm7409_vm7 = vcmp.lt.f32.partialorder %v7784_v33, 0.0  ;;  %v7787_v11 = vadd.f32 -0.5, %v7178_v25 }
 0x793   : > { %v7538_v21 = vsel %vm7346_vm4, 1.0, %v7474_v50  ;;  %v7473_v51 = vsel %vm7409_vm7, 0.0, %v8315_v37  ;;  %v7173_v10 = vadd.f32 %v7172_v53, %v6788_v56  ;;  %v6822_v27 = vpop.f32.mrf.mxu1  ;;  %v7999_v42 = vpop.f32.mrf.mxu0  ;;  %v13391_v53 = vld [vmem:[#allocation20_spill] sm:$0xff] }
 0x794   : > { %7602 = vst [vmem:[%s12719_s20 + $0x198] sm:$0xff] %v7538_v21  ;;  %v7537_v38 = vsel %vm7345_vm6, 1.0, %v7473_v51  ;;  %vm7348_vm8 = vcmp.gt.f32.partialorder %v7787_v11, 0.0  ;;  %vm7412_vm9 = vcmp.lt.f32.partialorder %v7787_v11, 0.0  ;;  %v7188_v45 = vadd.f32 %v7999_v42, %v6803_v6 }
 0x795   : > { %7601 = vst [vmem:[%s12719_s20 + $0x190] sm:$0xff] %v7537_v38  ;;  %v7476_v13 = vsel %vm7412_vm9, 0.0, %v8315_v37  ;;  %v7786_v31 = vadd.f32 -0.5, %v7173_v10  ;;  %v6824_v19 = vpop.f32.mrf.mxu1  ;;  %v7182_v8 = vpop.f32.mrf.mxu0  ;;  %v6823_v14 = vadd.f32 %v6822_v27, %v12680_v61 }
 0x796   : > { %v7540_v29 = vsel %vm7348_vm8, 1.0, %v7476_v13  ;;  %v7183_v48 = vadd.f32 %v7182_v8, %v6798_v43  ;;  %v7789_v3 = vadd.f32 -0.5, %v7188_v45 }
 0x797   : > { %7604 = vst [vmem:[%s12719_s20 + $0x1a8] sm:$0xff] %v7540_v29  ;;  %vm7347_vm10 = vcmp.gt.f32.partialorder %v7786_v31, 0.0  ;;  %vm7411_vm11 = vcmp.lt.f32.partialorder %v7786_v31, 0.0  ;;  %v6827_v58 = vpop.f32.mrf.mxu1  ;;  %v8002_v47 = vpop.f32.mrf.mxu0 }
 0x798   : > { %v7475_v26 = vsel %vm7411_vm11, 0.0, %v8315_v37  ;;  %v7788_v62 = vadd.f32 -0.5, %v7183_v48  ;;  %v7198_v24 = vadd.f32 %v8002_v47, %v6813_v16  ;;  %vm7350_vm12 = vcmp.gt.f32.partialorder %v7789_v3, 0.0 }
 0x799   : > { %v7539_v9 = vsel %vm7347_vm10, 1.0, %v7475_v26  ;;  %vm7414_vm13 = vcmp.lt.f32.partialorder %v7789_v3, 0.0  ;;  %v6829_v63 = vpop.f32.mrf.mxu1  ;;  %v7192_v40 = vpop.f32.mrf.mxu0  ;;  %v6828_v32 = vadd.f32 %v6827_v58, %v12686_v15 }
 0x79a   : > { %7603 = vst [vmem:[%s12719_s20 + $0x1a0] sm:$0xff] %v7539_v9  ;;  %v7478_v20 = vsel %vm7414_vm13, 0.0, %v8315_v37  ;;  %vm7349_vm14 = vcmp.gt.f32.partialorder %v7788_v62, 0.0  ;;  %vm7413_vm15 = vcmp.lt.f32.partialorder %v7788_v62, 0.0  ;;  %v7791_v39 = vadd.f32 -0.5, %v7198_v24 }
 0x79b   : > { %v7542_v34 = vsel %vm7350_vm12, 1.0, %v7478_v20  ;;  %v7477_v5 = vsel %vm7413_vm15, 0.0, %v8315_v37  ;;  %v7193_v49 = vadd.f32 %v7192_v40, %v6808_v28  ;;  %v6832_v57 = vpop.f32.mrf.mxu1  ;;  %v8005_v60 = vpop.f32.mrf.mxu0 }
 0x79c   : > { %7606 = vst [vmem:[%s12719_s20 + $0x1b8] sm:$0xff] %v7542_v34  ;;  %v7541_v22 = vsel %vm7349_vm14, 1.0, %v7477_v5  ;;  %vm7352_vm0 = vcmp.gt.f32.partialorder %v7791_v39, 0.0  ;;  %vm7416_vm1 = vcmp.lt.f32.partialorder %v7791_v39, 0.0  ;;  %v7208_v2 = vadd.f32 %v8005_v60, %v6823_v14 }
 0x79d   : > { %7605 = vst [vmem:[%s12719_s20 + $0x1b0] sm:$0xff] %v7541_v22  ;;  %v7480_v54 = vsel %vm7416_vm1, 0.0, %v8315_v37  ;;  %v7790_v0 = vadd.f32 -0.5, %v7193_v49  ;;  %v6834_v18 = vpop.f32.mrf.mxu1  ;;  %v7202_v61 = vpop.f32.mrf.mxu0  ;;  %v6833_v44 = vadd.f32 %v6832_v57, %v12692_v36 }
 0x79e   : > { %v7544_v35 = vsel %vm7352_vm0, 1.0, %v7480_v54  ;;  %v7203_v30 = vadd.f32 %v7202_v61, %v6818_v12  ;;  %v7793_v17 = vadd.f32 -0.5, %v7208_v2 }
 0x79f   : > { %7608 = vst [vmem:[%s12719_s20 + $0x1c8] sm:$0xff] %v7544_v35  ;;  %vm7351_vm2 = vcmp.gt.f32.partialorder %v7790_v0, 0.0  ;;  %vm7415_vm3 = vcmp.lt.f32.partialorder %v7790_v0, 0.0  ;;  %v6837_v23 = vpop.f32.mrf.mxu1  ;;  %v8008_v59 = vpop.f32.mrf.mxu0 }
 0x7a0   : > { %v7479_v52 = vsel %vm7415_vm3, 0.0, %v8315_v37  ;;  %v7792_v46 = vadd.f32 -0.5, %v7203_v30  ;;  %v7218_v1 = vadd.f32 %v8008_v59, %v6833_v44  ;;  %vm7354_vm4 = vcmp.gt.f32.partialorder %v7793_v17, 0.0 }
 0x7a1   : > { %v7543_v41 = vsel %vm7351_vm2, 1.0, %v7479_v52  ;;  %vm7418_vm5 = vcmp.lt.f32.partialorder %v7793_v17, 0.0  ;;  %v6839_v33 = vpop.f32.mrf.mxu1  ;;  %v7212_v36 = vpop.f32.mrf.mxu0  ;;  %v6838_v50 = vadd.f32 %v6837_v23, %v13391_v53 }
 0x7a2   : > { %7607 = vst [vmem:[%s12719_s20 + $0x1c0] sm:$0xff] %v7543_v41  ;;  %v7482_v25 = vsel %vm7418_vm5, 0.0, %v8315_v37  ;;  %vm7353_vm6 = vcmp.gt.f32.partialorder %v7792_v46, 0.0  ;;  %vm7417_vm7 = vcmp.lt.f32.partialorder %v7792_v46, 0.0  ;;  %v7795_v56 = vadd.f32 -0.5, %v7218_v1 }
 0x7a3   : > { %v7546_v7 = vsel %vm7354_vm4, 1.0, %v7482_v25  ;;  %v7481_v55 = vsel %vm7417_vm7, 0.0, %v8315_v37  ;;  %v7213_v11 = vadd.f32 %v7212_v36, %v6828_v32  ;;  %v6842_v15 = vpop.f32.mrf.mxu1  ;;  %v8011_v6 = vpop.f32.mrf.mxu0 }
 0x7a4   : > { %7610 = vst [vmem:[%s12719_s20 + $0x1d8] sm:$0xff] %v7546_v7  ;;  %v7545_v21 = vsel %vm7353_vm6, 1.0, %v7481_v55  ;;  %vm7356_vm8 = vcmp.gt.f32.partialorder %v7795_v56, 0.0  ;;  %vm7420_vm9 = vcmp.lt.f32.partialorder %v7795_v56, 0.0  ;;  %v6843_v51 = vadd.f32 %v6842_v15, %v12706_v4 }
 0x7a5   : > { %7609 = vst [vmem:[%s12719_s20 + $0x1d0] sm:$0xff] %v7545_v21  ;;  %v7484_v10 = vsel %vm7420_vm9, 0.0, %v8315_v37  ;;  %v7794_v27 = vadd.f32 -0.5, %v7213_v11  ;;  %v6844_v42 = vpop.f32.mrf.mxu1  ;;  %v7222_v43 = vpop.f32.mrf.mxu0 }
 0x7a6   : > { %v7548_v38 = vsel %vm7356_vm8, 1.0, %v7484_v10  ;;  %v7228_v13 = vadd.f32 %v8011_v6, %v6843_v51  ;;  %v7223_v31 = vadd.f32 %v7222_v43, %v6838_v50 }
 0x7a7   : > { %7612 = vst [vmem:[%s12719_s20 + $0x1e8] sm:$0xff] %v7548_v38  ;;  %vm7355_vm10 = vcmp.gt.f32.partialorder %v7794_v27, 0.0  ;;  %vm7419_vm11 = vcmp.lt.f32.partialorder %v7794_v27, 0.0 }
 0x7a8   : > { %v7483_v45 = vsel %vm7419_vm11, 0.0, %v8315_v37  ;;  %v7797_v4 = vadd.f32 -0.5, %v7228_v13  ;;  %v7796_v19 = vadd.f32 -0.5, %v7223_v31 }
 0x7a9   : > { %v7547_v8 = vsel %vm7355_vm10, 1.0, %v7483_v45 }
 0x7aa   : > { %7611 = vst [vmem:[%s12719_s20 + $0x1e0] sm:$0xff] %v7547_v8  ;;  %vm7358_vm12 = vcmp.gt.f32.partialorder %v7797_v4, 0.0  ;;  %vm7422_vm13 = vcmp.lt.f32.partialorder %v7797_v4, 0.0  ;;  %vm7357_vm14 = vcmp.gt.f32.partialorder %v7796_v19, 0.0  ;;  %vm7421_vm15 = vcmp.lt.f32.partialorder %v7796_v19, 0.0 }
 0x7ab   : > { %v7486_v16 = vsel %vm7422_vm13, 0.0, %v8315_v37  ;;  %v7485_v29 = vsel %vm7421_vm15, 0.0, %v8315_v37 }
 0x7ac   : > { %v7550_v48 = vsel %vm7358_vm12, 1.0, %v7486_v16  ;;  %v7549_v3 = vsel %vm7357_vm14, 1.0, %v7485_v29 }
 0x7ad   : > { %7614 = vst [vmem:[%s12719_s20 + $0x1f8] sm:$0xff] %v7550_v48  ;;  %7613 = vst [vmem:[%s12719_s20 + $0x1f0] sm:$0xff] %v7549_v3 }
 0x7ae   : > { %8250 = shalt.err (!%p8247_p13)
}
 0x7af   : > { %s8251_s25 = scalar_lea.hbm %s12980_s9, 8192  ;;  %s8255_s5 = scalar_lea.hbm %s13031_s3, 32768 }
 0x7b0   : > { %p8252_p3 = scmp.ne.s32.totalorder %s12980_s9, %s8251_s25  ;;  %p8256_p4 = scmp.lt.s32.totalorder %s12980_s9, %s13031_s3 }
 0x7b1   : > { %p8257_p6 = scmp.lt.s32.totalorder %s8255_s5, %s8251_s25 }
 0x7b2   : > { %p8253_p5 = pnand %p8252_p3, %p13392_p10 }
 0x7b3   : > { %p8258_p8 = por %p8257_p6, %p8256_p4 }
 0x7b4   : > { %p8254_p0 = pneg %p8253_p5 }
 0x7b6   : > { %p8259_p9 = pnand %p8258_p8, %p8254_p0 }
 0x7b8   : > { %8262 = shalt.err (!%p8259_p9)
}
 0x7b9   : > { %s8317_s18 = smov 128   ;;  %s8318_s20 = smov 8  }
 0x7ba   : > { %8089 = dma.vmem_to_hbm [thread:$0]  (%p13392_p10), %s12982_s27, 8192, %s12980_s9, %s7616_s16, %s8317_s18, %s8317_s18, %s8318_s20  }
 0x7bb PF: > { %p8111_p1 = scmp.ge.s32.totalorder %s8305_s15, 2  ;;  %s7644_s24 = sand.u32 1, %s8293_s12  }
 0x7bc   : > { %p13393_p2 = scmp.ne.s32.totalorder %s13039_s19, 0  ;;  %s7645_s29 = scalar_lea.sflag [#allocation4], %s7644_s24 }
 0x7be   : > { %p8103_p11 = pnand %p8111_p1, %p13393_p2 }
 0x7c0   : > { %p8104_p7 = pneg %p8103_p11 }
 0x7c2   : > { %8288 = dma.done.wait (%p8104_p7), %s7645_s29, 8192  }
 0x7c3   : > { %8290 = vsyncadd (%p8104_p7), %s7645_s29, 4294959104  ;;  %p17_p12 = scmp.ge.s32.totalorder %s8410_s8, 6   ;;  %s13394_s12 = smov %s8297_s13 }
 0x7c4   : > { %s13395_s13 = smov %s8301_s14  ;;  %s13396_s14 = smov %s8426_s17 }
 0x7c5   : > { %s13397_s15 = smov %s8410_s8  ;;  %19 = sbr.rel (!%p17_p12) target bundleno = 6 (0x6), region = 85 }
 0x7ca   :  { %7650 = vsyncpa [#allocation3], 1 }
 0x7cb   :  { %7652 = vsyncpa [#allocation3 + $0x1], 1 }
 0x7cc   :  { %7653 = vsyncpa [#allocation6], 1 }
 0x7cd   :  { %7654 = vsyncpa [#allocation4], 1 }
 0x7ce   :  { %7656 = vsyncpa [#allocation4 + $0x1], 1 }

</bundles_post_ra>
